<compile_context>
chip_gen: v7x
topology: tpu7x:2x2x1
jax: 0.10.0
libtpu: 0.0.40
codegen_flags: <defaults>
</compile_context>

<pallas_src>
import functools

import jax
import jax.numpy as jnp
from jax.experimental import pallas as pl
from jax.experimental.pallas import tpu as pltpu

# ---------------- model hyper-params (mirroring ModelEmbeddings.__init__) ----------------
CHAR_EMBED_SIZE = 50      # self.char_embed_size
MAX_WORD_LENGTH = 21      # self.max_word_length
KERNEL_SIZE = 5           # self.kernel_size
DROPOUT_RATE = 0.3        # unused at inference
PAD_IDX = 0               # vocab.char2id['<pad>'] (synthetic)


def _char_cnn_highway_kernel(ids_ref, wt_ref, bc_ref, wp_ref, bp_ref, wg_ref, bg_ref, o_ref,
                             *, kernel_size, t_out, vocab_size, tile_n):
    """One tile of tile_n words in a transposed, lane-dense layout.

    ids_ref : (1, K, M) int32   window char ids; column m = t * tile_n + j  (word j, window pos t)
    wt_ref  : (K, E, V) f32     per-tap conv weights with the embedding table folded in
    bc_ref  : (E, 1)            conv bias
    wp/bp, wg/bg                highway proj / gate (torch Linear weights, used as y = W x + b)
    o_ref   : (E, tile_n)       highway output (transposed; lane dim = tile_n is a mult. of 128)
    """
    m = t_out * tile_n
    ids = ids_ref[0]                                                    # (K, M) int32
    iota_v = jax.lax.broadcasted_iota(jnp.int32, (vocab_size, m), 0)    # (V, M)

    # Conv1d as K big matmuls against one-hot char indicators (embedding fused into the weights).
    acc = None
    for k in range(kernel_size):
        onehot = (iota_v == ids[k:k + 1, :]).astype(jnp.float32)        # (V, M)
        part = jnp.dot(wt_ref[k], onehot, preferred_element_type=jnp.float32)   # (E, M)
        acc = part if acc is None else acc + part

    # Max-pool over time: columns are t-major, so window t occupies lanes [t*tile_n,(t+1)*tile_n)
    # (aligned, tile_n % 128 == 0).
    pooled = acc[:, 0:tile_n]
    for t in range(1, t_out):
        pooled = jnp.maximum(pooled, acc[:, t * tile_n:(t + 1) * tile_n])

    # Bias add + ReLU hoisted out of the loop (bias is t-invariant, ReLU is monotone => exact).
    conv_out = jnp.maximum(pooled + bc_ref[...], 0.0)                   # (E, TN)

    # Highway, column-vector form: y = W x + b  (torch Linear weights used untransposed).
    proj = jnp.maximum(
        jnp.dot(wp_ref[...], conv_out, preferred_element_type=jnp.float32) + bp_ref[...], 0.0)
    gate = jax.nn.sigmoid(
        jnp.dot(wg_ref[...], conv_out, preferred_element_type=jnp.float32) + bg_ref[...])
    highway = conv_out + gate * (proj - conv_out)   # == gate*proj + (1-gate)*conv_out

    o_ref[...] = highway.astype(o_ref.dtype)        # dropout: eval-mode identity


def model_embeddings_forward(char_ids, params, *, embed_size, tile_n=256):
    """
    char_ids: int32 (sentence_length, batch_size, max_word_length)
    returns : float32 (sentence_length, batch_size, embed_size)
    """
    s_len, b_size, l = char_ids.shape
    assert l == MAX_WORD_LENGTH
    assert tile_n % 128 == 0, "tile_n must be lane-aligned"

    n = s_len * b_size
    k = KERNEL_SIZE
    t_out = l - k + 1
    e = embed_size
    vcb = params["embedding"].shape[0]

    # --- pad the word axis so the grid tiles evenly (pad words use the <pad> char -> finite) ---
    n_pad = ((n + tile_n - 1) // tile_n) * tile_n
    nb = n_pad // tile_n
    ids = char_ids.reshape(n, l).astype(jnp.int32)
    if n_pad != n:
        ids = jnp.concatenate(
            [ids, jnp.full((n_pad - n, l), PAD_IDX, dtype=jnp.int32)], axis=0)

    # --- window ids per block, t-major along lanes: win[b, k, t*tile_n + j] = ids[b*tile_n+j, t+k]
    win = jnp.stack([ids[:, kk:kk + t_out] for kk in range(k)], axis=0)     # (K, N_pad, T)
    win = win.reshape(k, nb, tile_n, t_out)                                 # [k, b, j, t]
    win = jnp.transpose(win, (1, 0, 3, 2)).reshape(nb, k, t_out * tile_n)   # (Nb, K, M)

    # --- fold nn.Embedding into the Conv1d taps (exact: emb[PAD] row is zero, bias added later) ---
    w_taps = jnp.einsum("eck,vc->kev", params["conv_w"], params["embedding"])   # (K, E, V)
    b_conv = params["conv_b"].reshape(e, 1)
    w_proj = params["proj_w"]                    # (E, E) torch layout; used as y = W x + b
    b_proj = params["proj_b"].reshape(e, 1)
    w_gate = params["gate_w"]
    b_gate = params["gate_b"].reshape(e, 1)

    m = t_out * tile_n
    kern = functools.partial(_char_cnn_highway_kernel,
                             kernel_size=k, t_out=t_out, vocab_size=vcb, tile_n=tile_n)

    out_t = pl.pallas_call(
        kern,
        out_shape=jax.ShapeDtypeStruct((e, n_pad), jnp.float32),
        grid_spec=pltpu.PrefetchScalarGridSpec(
            num_scalar_prefetch=0,
            grid=(nb,),
            in_specs=[
                pl.BlockSpec((1, k, m), lambda i: (i, 0, 0)),        # window char ids
                pl.BlockSpec((k, e, vcb), lambda i: (0, 0, 0)),      # per-tap folded conv weights
                pl.BlockSpec((e, 1), lambda i: (0, 0)),              # conv bias
                pl.BlockSpec((e, e), lambda i: (0, 0)),              # highway proj W
                pl.BlockSpec((e, 1), lambda i: (0, 0)),              # highway proj b
                pl.BlockSpec((e, e), lambda i: (0, 0)),              # highway gate W
                pl.BlockSpec((e, 1), lambda i: (0, 0)),              # highway gate b
            ],
            out_specs=pl.BlockSpec((e, tile_n), lambda i: (0, i)),   # lane-dense (E, tile_n)
        ),
        compiler_params=pltpu.CompilerParams(
            dimension_semantics=("parallel",),
            vmem_limit_bytes=32 * 1024 * 1024,   # safe on v5e/v6e/v7x; tile_n=256 uses ~8 MiB
        ),
    )(win, w_taps, b_conv, w_proj, b_proj, w_gate, b_gate)

    return out_t[:, :n].T.reshape(s_len, b_size, e)


def init_params(key, *, vocab_size, embed_size):
    c, k, e = CHAR_EMBED_SIZE, KERNEL_SIZE, embed_size
    keys = jax.random.split(key, 6)
    emb = 0.1 * jax.random.normal(keys[0], (vocab_size, c), jnp.float32)
    emb = emb.at[PAD_IDX].set(0.0)                            # padding_idx => zero row
    return {
        "embedding": emb,
        "conv_w": 0.1 * jax.random.normal(keys[1], (e, c, k), jnp.float32),  # torch Conv1d layout
        "conv_b": 0.1 * jax.random.normal(keys[2], (e,), jnp.float32),
        "proj_w": 0.1 * jax.random.normal(keys[3], (e, e), jnp.float32),     # torch Linear layout
        "proj_b": jnp.zeros((e,), jnp.float32),
        "gate_w": 0.1 * jax.random.normal(keys[4], (e, e), jnp.float32),
        "gate_b": jnp.zeros((e,), jnp.float32),
    }


def reference_forward(char_ids, params, *, embed_size):
    """Pure-JAX reference matching the PyTorch module (Embedding->Conv1d->ReLU->MaxPool->Highway)."""
    s_len, b_size, l = char_ids.shape
    n = s_len * b_size
    k = KERNEL_SIZE
    t_out = l - k + 1
    x = jnp.take(params["embedding"], char_ids.reshape(n, l), axis=0)          # (N, L, C)
    windows = jnp.stack([x[:, t:t + k, :] for t in range(t_out)], axis=1)      # (N, T, K, C)
    pre = jnp.einsum("ntkc,eck->net", windows, params["conv_w"],
                     precision="highest") + params["conv_b"][None, :, None]
    conv_out = jnp.max(jnp.maximum(pre, 0.0), axis=-1)                         # (N, E)
    proj = jnp.maximum(jnp.einsum("ne,fe->nf", conv_out, params["proj_w"],
                                  precision="highest") + params["proj_b"], 0.0)
    gate = jax.nn.sigmoid(jnp.einsum("ne,fe->nf", conv_out, params["gate_w"],
                                     precision="highest") + params["gate_b"])
    out = gate * proj + (1.0 - gate) * conv_out
    return out.reshape(s_len, b_size, embed_size)


if __name__ == "__main__":
    embed_size = 32
    vocab_size = 96
    sentence_length, batch_size = 8, 2

    root = jax.random.PRNGKey(0)
    k_param, k_ids = jax.random.split(root)
    params = init_params(k_param, vocab_size=vocab_size, embed_size=embed_size)
    char_ids = jax.random.randint(
        k_ids, (sentence_length, batch_size, MAX_WORD_LENGTH), 0, vocab_size, dtype=jnp.int32)

    out = model_embeddings_forward(char_ids, params, embed_size=embed_size)
    jax.block_until_ready(out)
    assert out.shape == (sentence_length, batch_size, embed_size)
    assert bool(jnp.all(jnp.isfinite(out)))

    ref = reference_forward(char_ids, params, embed_size=embed_size)
    assert bool(jnp.allclose(out, ref, rtol=2e-3, atol=2e-3)), \
        f"max abs err {float(jnp.max(jnp.abs(out - ref)))}"
    print("KERNEL_OK")
</pallas_src>

<mosaic_0001>
module attributes {stable_mosaic.version = 11 : i64} {
  func.func @_char_cnn_highway_kernel(%arg0: i32, %arg1: memref<1x5x4352xi32, #tpu.memory_space<vmem>>, %arg2: memref<5x32x96xf32, #tpu.memory_space<vmem>>, %arg3: memref<32x1xf32, #tpu.memory_space<vmem>>, %arg4: memref<32x32xf32, #tpu.memory_space<vmem>>, %arg5: memref<32x1xf32, #tpu.memory_space<vmem>>, %arg6: memref<32x32xf32, #tpu.memory_space<vmem>>, %arg7: memref<32x1xf32, #tpu.memory_space<vmem>>, %arg8: memref<32x256xf32, #tpu.memory_space<vmem>>) attributes {dimension_semantics = [#tpu.dimension_semantics<parallel>], iteration_bounds = array<i64: 1>, scalar_prefetch = 0 : i64, scratch_operands = 0 : i64, tpu.core_type = #tpu.core_type<tc>, window_params = [{transform_indices = @transform_0, window_bounds = array<i64: 1, 5, 4352>}, {pipeline_mode = #tpu.pipeline_mode<synchronous>, transform_indices = @transform_1, window_bounds = array<i64: 5, 32, 96>}, {pipeline_mode = #tpu.pipeline_mode<synchronous>, transform_indices = @transform_2, window_bounds = array<i64: 32, 1>}, {pipeline_mode = #tpu.pipeline_mode<synchronous>, transform_indices = @transform_3, window_bounds = array<i64: 32, 32>}, {pipeline_mode = #tpu.pipeline_mode<synchronous>, transform_indices = @transform_4, window_bounds = array<i64: 32, 1>}, {pipeline_mode = #tpu.pipeline_mode<synchronous>, transform_indices = @transform_5, window_bounds = array<i64: 32, 32>}, {pipeline_mode = #tpu.pipeline_mode<synchronous>, transform_indices = @transform_6, window_bounds = array<i64: 32, 1>}, {transform_indices = @transform_7, window_bounds = array<i64: 32, 256>}]} {
    %c0 = arith.constant 0 : index
    %c0_0 = arith.constant 0 : index
    %c0_1 = arith.constant 0 : index
    %0 = vector.load %arg1[%c0, %c0_0, %c0_1] : memref<1x5x4352xi32, #tpu.memory_space<vmem>>, vector<1x5x4352xi32>
    %1 = vector.shape_cast %0 : vector<1x5x4352xi32> to vector<5x4352xi32>
    %2 = tpu.iota {dimensions = array<i32: 0>} : vector<96x4352xi32>
    %3 = vector.extract_strided_slice %1 {offsets = [0, 0], sizes = [1, 4352], strides = [1, 1]} : vector<5x4352xi32> to vector<1x4352xi32>
    %4 = vector.broadcast %3 : vector<1x4352xi32> to vector<96x4352xi32>
    %5 = arith.cmpi eq, %2, %4 : vector<96x4352xi32>
    %6 = arith.extui %5 : vector<96x4352xi1> to vector<96x4352xi32>
    %7 = arith.sitofp %6 : vector<96x4352xi32> to vector<96x4352xf32>
    %c0_2 = arith.constant 0 : index
    %c0_3 = arith.constant 0 : index
    %c0_4 = arith.constant 0 : index
    %8 = vector.load %arg2[%c0_2, %c0_3, %c0_4] : memref<5x32x96xf32, #tpu.memory_space<vmem>>, vector<1x32x96xf32>
    %9 = vector.shape_cast %8 : vector<1x32x96xf32> to vector<32x96xf32>
    %cst = arith.constant dense<0.000000e+00> : vector<32x4352xf32>
    %10 = tpu.matmul %9, %7, %cst {dimension_numbers = #tpu.dot_dimension_numbers<[1], [0], [0], [1], [0, 0, 1, 1], [], []>} : vector<32x96xf32>, vector<96x4352xf32>, vector<32x4352xf32> -> vector<32x4352xf32>
    %11 = vector.extract_strided_slice %1 {offsets = [1, 0], sizes = [1, 4352], strides = [1, 1]} : vector<5x4352xi32> to vector<1x4352xi32>
    %12 = vector.broadcast %11 : vector<1x4352xi32> to vector<96x4352xi32>
    %13 = arith.cmpi eq, %2, %12 : vector<96x4352xi32>
    %14 = arith.extui %13 : vector<96x4352xi1> to vector<96x4352xi32>
    %15 = arith.sitofp %14 : vector<96x4352xi32> to vector<96x4352xf32>
    %c1 = arith.constant 1 : index
    %c0_5 = arith.constant 0 : index
    %c0_6 = arith.constant 0 : index
    %16 = vector.load %arg2[%c1, %c0_5, %c0_6] : memref<5x32x96xf32, #tpu.memory_space<vmem>>, vector<1x32x96xf32>
    %17 = vector.shape_cast %16 : vector<1x32x96xf32> to vector<32x96xf32>
    %cst_7 = arith.constant dense<0.000000e+00> : vector<32x4352xf32>
    %18 = tpu.matmul %17, %15, %cst_7 {dimension_numbers = #tpu.dot_dimension_numbers<[1], [0], [0], [1], [0, 0, 1, 1], [], []>} : vector<32x96xf32>, vector<96x4352xf32>, vector<32x4352xf32> -> vector<32x4352xf32>
    %19 = arith.addf %10, %18 : vector<32x4352xf32>
    %20 = vector.extract_strided_slice %1 {offsets = [2, 0], sizes = [1, 4352], strides = [1, 1]} : vector<5x4352xi32> to vector<1x4352xi32>
    %21 = vector.broadcast %20 : vector<1x4352xi32> to vector<96x4352xi32>
    %22 = arith.cmpi eq, %2, %21 : vector<96x4352xi32>
    %23 = arith.extui %22 : vector<96x4352xi1> to vector<96x4352xi32>
    %24 = arith.sitofp %23 : vector<96x4352xi32> to vector<96x4352xf32>
    %c2 = arith.constant 2 : index
    %c0_8 = arith.constant 0 : index
    %c0_9 = arith.constant 0 : index
    %25 = vector.load %arg2[%c2, %c0_8, %c0_9] : memref<5x32x96xf32, #tpu.memory_space<vmem>>, vector<1x32x96xf32>
    %26 = vector.shape_cast %25 : vector<1x32x96xf32> to vector<32x96xf32>
    %cst_10 = arith.constant dense<0.000000e+00> : vector<32x4352xf32>
    %27 = tpu.matmul %26, %24, %cst_10 {dimension_numbers = #tpu.dot_dimension_numbers<[1], [0], [0], [1], [0, 0, 1, 1], [], []>} : vector<32x96xf32>, vector<96x4352xf32>, vector<32x4352xf32> -> vector<32x4352xf32>
    %28 = arith.addf %19, %27 : vector<32x4352xf32>
    %29 = vector.extract_strided_slice %1 {offsets = [3, 0], sizes = [1, 4352], strides = [1, 1]} : vector<5x4352xi32> to vector<1x4352xi32>
    %30 = vector.broadcast %29 : vector<1x4352xi32> to vector<96x4352xi32>
    %31 = arith.cmpi eq, %2, %30 : vector<96x4352xi32>
    %32 = arith.extui %31 : vector<96x4352xi1> to vector<96x4352xi32>
    %33 = arith.sitofp %32 : vector<96x4352xi32> to vector<96x4352xf32>
    %c3 = arith.constant 3 : index
    %c0_11 = arith.constant 0 : index
    %c0_12 = arith.constant 0 : index
    %34 = vector.load %arg2[%c3, %c0_11, %c0_12] : memref<5x32x96xf32, #tpu.memory_space<vmem>>, vector<1x32x96xf32>
    %35 = vector.shape_cast %34 : vector<1x32x96xf32> to vector<32x96xf32>
    %cst_13 = arith.constant dense<0.000000e+00> : vector<32x4352xf32>
    %36 = tpu.matmul %35, %33, %cst_13 {dimension_numbers = #tpu.dot_dimension_numbers<[1], [0], [0], [1], [0, 0, 1, 1], [], []>} : vector<32x96xf32>, vector<96x4352xf32>, vector<32x4352xf32> -> vector<32x4352xf32>
    %37 = arith.addf %28, %36 : vector<32x4352xf32>
    %38 = vector.extract_strided_slice %1 {offsets = [4, 0], sizes = [1, 4352], strides = [1, 1]} : vector<5x4352xi32> to vector<1x4352xi32>
    %39 = vector.broadcast %38 : vector<1x4352xi32> to vector<96x4352xi32>
    %40 = arith.cmpi eq, %2, %39 : vector<96x4352xi32>
    %41 = arith.extui %40 : vector<96x4352xi1> to vector<96x4352xi32>
    %42 = arith.sitofp %41 : vector<96x4352xi32> to vector<96x4352xf32>
    %c4 = arith.constant 4 : index
    %c0_14 = arith.constant 0 : index
    %c0_15 = arith.constant 0 : index
    %43 = vector.load %arg2[%c4, %c0_14, %c0_15] : memref<5x32x96xf32, #tpu.memory_space<vmem>>, vector<1x32x96xf32>
    %44 = vector.shape_cast %43 : vector<1x32x96xf32> to vector<32x96xf32>
    %cst_16 = arith.constant dense<0.000000e+00> : vector<32x4352xf32>
    %45 = tpu.matmul %44, %42, %cst_16 {dimension_numbers = #tpu.dot_dimension_numbers<[1], [0], [0], [1], [0, 0, 1, 1], [], []>} : vector<32x96xf32>, vector<96x4352xf32>, vector<32x4352xf32> -> vector<32x4352xf32>
    %46 = arith.addf %37, %45 : vector<32x4352xf32>
    %47 = vector.extract_strided_slice %46 {offsets = [0, 0], sizes = [32, 256], strides = [1, 1]} : vector<32x4352xf32> to vector<32x256xf32>
    %48 = vector.extract_strided_slice %46 {offsets = [0, 256], sizes = [32, 256], strides = [1, 1]} : vector<32x4352xf32> to vector<32x256xf32>
    %49 = arith.maximumf %47, %48 : vector<32x256xf32>
    %50 = vector.extract_strided_slice %46 {offsets = [0, 512], sizes = [32, 256], strides = [1, 1]} : vector<32x4352xf32> to vector<32x256xf32>
    %51 = arith.maximumf %49, %50 : vector<32x256xf32>
    %52 = vector.extract_strided_slice %46 {offsets = [0, 768], sizes = [32, 256], strides = [1, 1]} : vector<32x4352xf32> to vector<32x256xf32>
    %53 = arith.maximumf %51, %52 : vector<32x256xf32>
    %54 = vector.extract_strided_slice %46 {offsets = [0, 1024], sizes = [32, 256], strides = [1, 1]} : vector<32x4352xf32> to vector<32x256xf32>
    %55 = arith.maximumf %53, %54 : vector<32x256xf32>
    %56 = vector.extract_strided_slice %46 {offsets = [0, 1280], sizes = [32, 256], strides = [1, 1]} : vector<32x4352xf32> to vector<32x256xf32>
    %57 = arith.maximumf %55, %56 : vector<32x256xf32>
    %58 = vector.extract_strided_slice %46 {offsets = [0, 1536], sizes = [32, 256], strides = [1, 1]} : vector<32x4352xf32> to vector<32x256xf32>
    %59 = arith.maximumf %57, %58 : vector<32x256xf32>
    %60 = vector.extract_strided_slice %46 {offsets = [0, 1792], sizes = [32, 256], strides = [1, 1]} : vector<32x4352xf32> to vector<32x256xf32>
    %61 = arith.maximumf %59, %60 : vector<32x256xf32>
    %62 = vector.extract_strided_slice %46 {offsets = [0, 2048], sizes = [32, 256], strides = [1, 1]} : vector<32x4352xf32> to vector<32x256xf32>
    %63 = arith.maximumf %61, %62 : vector<32x256xf32>
    %64 = vector.extract_strided_slice %46 {offsets = [0, 2304], sizes = [32, 256], strides = [1, 1]} : vector<32x4352xf32> to vector<32x256xf32>
    %65 = arith.maximumf %63, %64 : vector<32x256xf32>
    %66 = vector.extract_strided_slice %46 {offsets = [0, 2560], sizes = [32, 256], strides = [1, 1]} : vector<32x4352xf32> to vector<32x256xf32>
    %67 = arith.maximumf %65, %66 : vector<32x256xf32>
    %68 = vector.extract_strided_slice %46 {offsets = [0, 2816], sizes = [32, 256], strides = [1, 1]} : vector<32x4352xf32> to vector<32x256xf32>
    %69 = arith.maximumf %67, %68 : vector<32x256xf32>
    %70 = vector.extract_strided_slice %46 {offsets = [0, 3072], sizes = [32, 256], strides = [1, 1]} : vector<32x4352xf32> to vector<32x256xf32>
    %71 = arith.maximumf %69, %70 : vector<32x256xf32>
    %72 = vector.extract_strided_slice %46 {offsets = [0, 3328], sizes = [32, 256], strides = [1, 1]} : vector<32x4352xf32> to vector<32x256xf32>
    %73 = arith.maximumf %71, %72 : vector<32x256xf32>
    %74 = vector.extract_strided_slice %46 {offsets = [0, 3584], sizes = [32, 256], strides = [1, 1]} : vector<32x4352xf32> to vector<32x256xf32>
    %75 = arith.maximumf %73, %74 : vector<32x256xf32>
    %76 = vector.extract_strided_slice %46 {offsets = [0, 3840], sizes = [32, 256], strides = [1, 1]} : vector<32x4352xf32> to vector<32x256xf32>
    %77 = arith.maximumf %75, %76 : vector<32x256xf32>
    %78 = vector.extract_strided_slice %46 {offsets = [0, 4096], sizes = [32, 256], strides = [1, 1]} : vector<32x4352xf32> to vector<32x256xf32>
    %79 = arith.maximumf %77, %78 : vector<32x256xf32>
    %c0_17 = arith.constant 0 : index
    %c0_18 = arith.constant 0 : index
    %80 = vector.load %arg3[%c0_17, %c0_18] : memref<32x1xf32, #tpu.memory_space<vmem>>, vector<32x1xf32>
    %81 = vector.broadcast %80 : vector<32x1xf32> to vector<32x256xf32>
    %82 = arith.addf %79, %81 : vector<32x256xf32>
    %cst_19 = arith.constant 0.000000e+00 : f32
    %83 = vector.broadcast %cst_19 : f32 to vector<32x256xf32>
    %84 = arith.maximumf %82, %83 : vector<32x256xf32>
    %c0_20 = arith.constant 0 : index
    %c0_21 = arith.constant 0 : index
    %85 = vector.load %arg4[%c0_20, %c0_21] : memref<32x32xf32, #tpu.memory_space<vmem>>, vector<32x32xf32>
    %cst_22 = arith.constant dense<0.000000e+00> : vector<32x256xf32>
    %86 = tpu.matmul %85, %84, %cst_22 {dimension_numbers = #tpu.dot_dimension_numbers<[1], [0], [0], [1], [0, 0, 1, 1], [], []>} : vector<32x32xf32>, vector<32x256xf32>, vector<32x256xf32> -> vector<32x256xf32>
    %c0_23 = arith.constant 0 : index
    %c0_24 = arith.constant 0 : index
    %87 = vector.load %arg5[%c0_23, %c0_24] : memref<32x1xf32, #tpu.memory_space<vmem>>, vector<32x1xf32>
    %88 = vector.broadcast %87 : vector<32x1xf32> to vector<32x256xf32>
    %89 = arith.addf %86, %88 : vector<32x256xf32>
    %cst_25 = arith.constant 0.000000e+00 : f32
    %90 = vector.broadcast %cst_25 : f32 to vector<32x256xf32>
    %91 = arith.maximumf %89, %90 : vector<32x256xf32>
    %c0_26 = arith.constant 0 : index
    %c0_27 = arith.constant 0 : index
    %92 = vector.load %arg6[%c0_26, %c0_27] : memref<32x32xf32, #tpu.memory_space<vmem>>, vector<32x32xf32>
    %cst_28 = arith.constant dense<0.000000e+00> : vector<32x256xf32>
    %93 = tpu.matmul %92, %84, %cst_28 {dimension_numbers = #tpu.dot_dimension_numbers<[1], [0], [0], [1], [0, 0, 1, 1], [], []>} : vector<32x32xf32>, vector<32x256xf32>, vector<32x256xf32> -> vector<32x256xf32>
    %c0_29 = arith.constant 0 : index
    %c0_30 = arith.constant 0 : index
    %94 = vector.load %arg7[%c0_29, %c0_30] : memref<32x1xf32, #tpu.memory_space<vmem>>, vector<32x1xf32>
    %95 = vector.broadcast %94 : vector<32x1xf32> to vector<32x256xf32>
    %96 = arith.addf %93, %95 : vector<32x256xf32>
    %97 = arith.negf %96 : vector<32x256xf32>
    %98 = math.exp %97 : vector<32x256xf32>
    %cst_31 = arith.constant 1.000000e+00 : f32
    %99 = vector.broadcast %cst_31 : f32 to vector<32x256xf32>
    %100 = arith.addf %99, %98 : vector<32x256xf32>
    %101 = arith.divf %99, %100 : vector<32x256xf32>
    %102 = arith.subf %91, %84 : vector<32x256xf32>
    %103 = arith.mulf %101, %102 : vector<32x256xf32>
    %104 = arith.addf %84, %103 : vector<32x256xf32>
    %c0_32 = arith.constant 0 : index
    %c0_33 = arith.constant 0 : index
    %105 = vector.load %arg8[%c0_32, %c0_33] : memref<32x256xf32, #tpu.memory_space<vmem>>, vector<32x256xf32>
    tpu.vector_store %arg8[%c0_32, %c0_33], %104 {strides = array<i32>} : memref<32x256xf32, #tpu.memory_space<vmem>>, vector<32x256xf32>,
    return
  }
  func.func @transform_0(%arg0: i32) -> (i32, i32, i32) {
    %c0_i32 = arith.constant 0 : i32
    %c0_i32_0 = arith.constant 0 : i32
    %c0_i32_1 = arith.constant 0 : i32
    return %arg0, %c0_i32, %c0_i32_0 : i32, i32, i32
  }
  func.func @transform_1(%arg0: i32) -> (i32, i32, i32) {
    %c0_i32 = arith.constant 0 : i32
    %c0_i32_0 = arith.constant 0 : i32
    %c0_i32_1 = arith.constant 0 : i32
    %c0_i32_2 = arith.constant 0 : i32
    return %c0_i32, %c0_i32_0, %c0_i32_1 : i32, i32, i32
  }
  func.func @transform_2(%arg0: i32) -> (i32, i32) {
    %c0_i32 = arith.constant 0 : i32
    %c0_i32_0 = arith.constant 0 : i32
    %c0_i32_1 = arith.constant 0 : i32
    return %c0_i32, %c0_i32_0 : i32, i32
  }
  func.func @transform_3(%arg0: i32) -> (i32, i32) {
    %c0_i32 = arith.constant 0 : i32
    %c0_i32_0 = arith.constant 0 : i32
    %c0_i32_1 = arith.constant 0 : i32
    return %c0_i32, %c0_i32_0 : i32, i32
  }
  func.func @transform_4(%arg0: i32) -> (i32, i32) {
    %c0_i32 = arith.constant 0 : i32
    %c0_i32_0 = arith.constant 0 : i32
    %c0_i32_1 = arith.constant 0 : i32
    return %c0_i32, %c0_i32_0 : i32, i32
  }
  func.func @transform_5(%arg0: i32) -> (i32, i32) {
    %c0_i32 = arith.constant 0 : i32
    %c0_i32_0 = arith.constant 0 : i32
    %c0_i32_1 = arith.constant 0 : i32
    return %c0_i32, %c0_i32_0 : i32, i32
  }
  func.func @transform_6(%arg0: i32) -> (i32, i32) {
    %c0_i32 = arith.constant 0 : i32
    %c0_i32_0 = arith.constant 0 : i32
    %c0_i32_1 = arith.constant 0 : i32
    return %c0_i32, %c0_i32_0 : i32, i32
  }
  func.func @transform_7(%arg0: i32) -> (i32, i32) {
    %c0_i32 = arith.constant 0 : i32
    %c0_i32_0 = arith.constant 0 : i32
    return %c0_i32, %arg0 : i32, i32
  }
}

</mosaic_0001>

<bundles_post_ra>
// kernel: tpu_custom_call.1
= control target key start
LH: loop header
LB: loop body
LE: loop exit
PB: predicated region body
PF: predicated region fallthrough
CT: control target
= control target key end

     0   :  { %v61_v0 = vlaneseq  ;;  %v22743_v3 = vmov 0.0   ;;  %v22744_v15 = vmov 1.0|1.0   ;;  %s31974_s0 = inlined_call_operand.vmem [shape: s32[1,5,4352], index: 0, kind: input, shape index: {}]   ;;  %s31975_s1 = inlined_call_operand.vmem [shape: f32[5,32,96], index: 1, kind: input, shape index: {}]   ;;  %s31976_s2 = inlined_call_operand.vmem [shape: f32[32,1], index: 2, kind: input, shape index: {}]   ;;  %s31977_s3 = inlined_call_operand.vmem [shape: f32[32,32], index: 3, kind: input, shape index: {}]   ;;  %s31978_s4 = inlined_call_operand.vmem [shape: f32[32,1], index: 4, kind: input, shape index: {}]   ;;  %s31979_s5 = inlined_call_operand.vmem [shape: f32[32,32], index: 5, kind: input, shape index: {}]   ;;  %s31980_s6 = inlined_call_operand.vmem [shape: f32[32,1], index: 6, kind: input, shape index: {}]   ;;  %s31981_s7 = inlined_call_operand.hbm [shape: f32[32,256], index: 7, kind: output, shape index: {}]  }
   0x1   :  { %v28_v1 = vld [vmem:[%s31974_s0 + $0x8] sm:$0x1f]  ;;  %2880 = vmatprep.mubr.f32.mxu1 %v22743_v3  ;;  %3236 = vmatprep.mubr.f32.mxu0 %v22743_v3  ;;  %v27_v5 = vld [vmem:[%s31974_s0] sm:$0x1f]  ;;  %v30_v24 = vld [vmem:[%s31974_s0 + $0x18] sm:$0x1f] }
   0x2   :  { %v22792_v2 = vshrl.u32 %v61_v0, 7  ;;  %v36_v4 = vld [vmem:[%s31974_s0 + $0x48] sm:$0x1f]  ;;  %v35_v6 = vld [vmem:[%s31974_s0 + $0x40] sm:$0x1f]  ;;  %v23083_v34 = vld [vmem:[%s31975_s1 + $0x30] sm:$0xff] }
   0x3   :  { %v40_v25 = vld [vmem:[%s31974_s0 + $0x68] sm:$0x1f]  ;;  %v29_v26 = vld [vmem:[%s31974_s0 + $0x10] sm:$0x1f]  ;;  %v39_v28 = vld [vmem:[%s31974_s0 + $0x60] sm:$0x1f] }
   0x4   :  { %v22806_v7 = vadd.s32 8, %v22792_v2  ;;  %v22809_v8 = vsub.s32 1, %v22792_v2  ;;  %v22812_v9 = vadd.s32 16, %v22792_v2  ;;  %v22815_v10 = vadd.s32 24, %v22792_v2  ;;  %v23019_v32 = vld [vmem:[%s31975_s1 + $0x20] sm:$0xff]  ;;  %v23052_v33 = vld [vmem:[%s31975_s1 + $0x28] sm:$0xff] }
   0x5   :  { %v22851_v16 = vadd.s32 32, %v22792_v2  ;;  %v22854_v17 = vadd.s32 40, %v22792_v2  ;;  %v22877_v18 = vadd.s32 48, %v22792_v2  ;;  %v22880_v19 = vadd.s32 56, %v22792_v2  ;;  %v23123_v35 = vld [vmem:[%s31975_s1 + $0x38] sm:$0xff] }
   0x6   :  { %v22818_v11 = vrot.slane %v28_v1, %v22809_v8  ;;  %v22821_v12 = vrot.slane %v36_v4, %v22809_v8  ;;  %v22824_v13 = vrot.slane %v27_v5, %v22809_v8  ;;  %v22827_v14 = vrot.slane %v35_v6, %v22809_v8  ;;  %v32_v36 = vld [vmem:[%s31974_s0 + $0x28] sm:$0x1f]  ;;  %v31_v38 = vld [vmem:[%s31974_s0 + $0x20] sm:$0x1f]  ;;  %v34_v44 = vld [vmem:[%s31974_s0 + $0x38] sm:$0x1f] }
   0x7   :  { %v22903_v20 = vadd.s32 64, %v22792_v2  ;;  %v22906_v21 = vadd.s32 72, %v22792_v2  ;;  %v22929_v22 = vadd.s32 80, %v22792_v2  ;;  %v22932_v23 = vadd.s32 88, %v22792_v2  ;;  %v44_v37 = vld [vmem:[%s31974_s0 + $0x88] sm:$0x1f] }
   0x8   :  { %vm1575_vm0 = vcmp.eq.s32.totalorder %v22792_v2, %v22818_v11  ;;  %vm1609_vm1 = vcmp.eq.s32.totalorder %v22806_v7, %v22818_v11  ;;  %vm1583_vm2 = vcmp.eq.s32.totalorder %v22792_v2, %v22821_v12  ;;  %vm1617_vm3 = vcmp.eq.s32.totalorder %v22806_v7, %v22821_v12  ;;  %v43_v40 = vld [vmem:[%s31974_s0 + $0x80] sm:$0x1f]  ;;  %v48_v45 = vld [vmem:[%s31974_s0 + $0xa8] sm:$0x1f]  ;;  %v33_v46 = vld [vmem:[%s31974_s0 + $0x30] sm:$0x1f] }
   0x9   :  { %vm19915_vm4 = vmpackc.low %vm1609_vm1, %vm1575_vm0  ;;  %vm1574_vm5 = vcmp.eq.s32.totalorder %v22792_v2, %v22824_v13  ;;  %vm1608_vm6 = vcmp.eq.s32.totalorder %v22806_v7, %v22824_v13  ;;  %vm1582_vm7 = vcmp.eq.s32.totalorder %v22792_v2, %v22827_v14  ;;  %vm1616_vm8 = vcmp.eq.s32.totalorder %v22806_v7, %v22827_v14  ;;  %v47_v48 = vld [vmem:[%s31974_s0 + $0xa0] sm:$0x1f]  ;;  %v38_v52 = vld [vmem:[%s31974_s0 + $0x58] sm:$0x1f] }
   0xa   :  { %19916 = vmatprep.subr.msk.bf16.mxu1 %vm19915_vm4, %v22744_v15  ;;  %vm20011_vm9 = vmpackc.low %vm1617_vm3, %vm1583_vm2  ;;  %vm1643_vm10 = vcmp.eq.s32.totalorder %v22812_v9, %v22818_v11  ;;  %vm1677_vm11 = vcmp.eq.s32.totalorder %v22815_v10, %v22818_v11  ;;  %vm1651_vm13 = vcmp.eq.s32.totalorder %v22812_v9, %v22821_v12  ;;  %vm1685_vm14 = vcmp.eq.s32.totalorder %v22815_v10, %v22821_v12  ;;  %v52_v53 = vld [vmem:[%s31974_s0 + $0xc8] sm:$0x1f]  ;;  %v37_v54 = vld [vmem:[%s31974_s0 + $0x50] sm:$0x1f] }
   0xb   :  { %20012 = vmatprep.subr.msk.bf16.mxu0 %vm20011_vm9, %v22744_v15  ;;  %vm19917_vm12 = vmpackc.low %vm1608_vm6, %vm1574_vm5  ;;  %vm1642_vm0 = vcmp.eq.s32.totalorder %v22812_v9, %v22824_v13  ;;  %vm1676_vm1 = vcmp.eq.s32.totalorder %v22815_v10, %v22824_v13  ;;  %vm1650_vm3 = vcmp.eq.s32.totalorder %v22812_v9, %v22827_v14  ;;  %vm1684_vm4 = vcmp.eq.s32.totalorder %v22815_v10, %v22827_v14  ;;  %v51_v56 = vld [vmem:[%s31974_s0 + $0xc0] sm:$0x1f]  ;;  %v42_v60 = vld [vmem:[%s31974_s0 + $0x78] sm:$0x1f] }
   0xc   :  { %19918 = vmatpush1.bf16.msk.msra.mxu1 %vm19917_vm12, %v22744_v15  ;;  %vm20013_vm15 = vmpackc.low %vm1616_vm8, %vm1582_vm7  ;;  %vm1711_vm6 = vcmp.eq.s32.totalorder %v22851_v16, %v22818_v11  ;;  %vm1745_vm7 = vcmp.eq.s32.totalorder %v22854_v17, %v22818_v11  ;;  %vm1719_vm9 = vcmp.eq.s32.totalorder %v22851_v16, %v22821_v12  ;;  %vm1710_vm12 = vcmp.eq.s32.totalorder %v22851_v16, %v22824_v13  ;;  %v56_v61 = vld [vmem:[%s31974_s0 + $0xe8] sm:$0x1f]  ;;  %v41_v62 = vld [vmem:[%s31974_s0 + $0x70] sm:$0x1f] }
   0xd   :  { %20014 = vmatpush1.bf16.msk.msra.mxu0 %vm20013_vm15, %v22744_v15  ;;  %vm19919_vm2 = vmpackc.low %vm1677_vm11, %vm1643_vm10  ;;  %vm1753_vm10 = vcmp.eq.s32.totalorder %v22854_v17, %v22821_v12  ;;  %vm1718_vm15 = vcmp.eq.s32.totalorder %v22851_v16, %v22827_v14  ;;  %v22967_v27 = vrot.slane %v30_v24, %v22809_v8  ;;  %v22981_v29 = vrot.slane %v40_v25, %v22809_v8  ;;  %v55_v0 = vld [vmem:[%s31974_s0 + $0xe0] sm:$0x1f]  ;;  %v46_v6 = vld [vmem:[%s31974_s0 + $0x98] sm:$0x1f] }
   0xe   :  { %19920 = vmatprep.subr.msk.bf16.mxu1 %vm19919_vm2, %v22744_v15  ;;  %vm20015_vm5 = vmpackc.low %vm1685_vm14, %vm1651_vm13  ;;  %vm1744_vm13 = vcmp.eq.s32.totalorder %v22854_v17, %v22824_v13  ;;  %vm1779_vm2 = vcmp.eq.s32.totalorder %v22877_v18, %v22818_v11  ;;  %v22992_v30 = vrot.slane %v29_v26, %v22809_v8  ;;  %v23003_v31 = vrot.slane %v39_v28, %v22809_v8  ;;  %v24112_v28 = vld [vmem:[%s31975_s1 + $0x28] sm:$0xff] }
   0xf   :  { %20016 = vmatprep.subr.msk.bf16.mxu0 %vm20015_vm5, %v22744_v15  ;;  %vm19921_vm8 = vmpackc.low %vm1676_vm1, %vm1642_vm0  ;;  %vm1752_vm0 = vcmp.eq.s32.totalorder %v22854_v17, %v22827_v14  ;;  %vm1787_vm5 = vcmp.eq.s32.totalorder %v22877_v18, %v22821_v12  ;;  %v23196_v39 = vrot.slane %v32_v36, %v22809_v8  ;;  %v23214_v41 = vrot.slane %v44_v37, %v22809_v8 }
  0x10   :  { %19922 = vmatpush1.bf16.msk.msra.mxu1 %vm19921_vm8, %v22744_v15  ;;  %vm20017_vm11 = vmpackc.low %vm1684_vm4, %vm1650_vm3  ;;  %vm1813_vm3 = vcmp.eq.s32.totalorder %v22880_v19, %v22818_v11  ;;  %vm1778_vm8 = vcmp.eq.s32.totalorder %v22877_v18, %v22824_v13  ;;  %v23228_v42 = vrot.slane %v31_v38, %v22809_v8  ;;  %v23242_v43 = vrot.slane %v43_v40, %v22809_v8  ;;  %v22564_v38 = vld [vmem:[%s31974_s0] sm:$0x1f]  ;;  %v54_v40 = vld [vmem:[%s31974_s0 + $0xd8] sm:$0x1f] }
  0x11   :  { %20018 = vmatpush1.bf16.msk.msra.mxu0 %vm20017_vm11, %v22744_v15  ;;  %vm19923_vm14 = vmpackc.low %vm1745_vm7, %vm1711_vm6  ;;  %vm1821_vm6 = vcmp.eq.s32.totalorder %v22880_v19, %v22821_v12  ;;  %vm1786_vm11 = vcmp.eq.s32.totalorder %v22877_v18, %v22827_v14  ;;  %v23397_v47 = vrot.slane %v34_v44, %v22809_v8  ;;  %v23415_v49 = vrot.slane %v48_v45, %v22809_v8 }
  0x12   :  { %19924 = vmatprep.subr.msk.bf16.mxu1 %vm19923_vm14, %v22744_v15  ;;  %vm20019_vm1 = vmpackc.low %vm1753_vm10, %vm1719_vm9  ;;  %vm1812_vm9 = vcmp.eq.s32.totalorder %v22880_v19, %v22824_v13  ;;  %vm1847_vm14 = vcmp.eq.s32.totalorder %v22903_v20, %v22818_v11  ;;  %v23429_v50 = vrot.slane %v33_v46, %v22809_v8  ;;  %v23443_v51 = vrot.slane %v47_v48, %v22809_v8  ;;  %v22566_v46 = vld [vmem:[%s31974_s0 + $0x20] sm:$0x1f] }
  0x13   :  { %20020 = vmatprep.subr.msk.bf16.mxu0 %vm20019_vm1, %v22744_v15  ;;  %vm19925_vm4 = vmpackc.low %vm1744_vm13, %vm1710_vm12  ;;  %vm1820_vm12 = vcmp.eq.s32.totalorder %v22880_v19, %v22827_v14  ;;  %vm1855_vm1 = vcmp.eq.s32.totalorder %v22903_v20, %v22821_v12  ;;  %v23598_v55 = vrot.slane %v38_v52, %v22809_v8  ;;  %v23616_v57 = vrot.slane %v52_v53, %v22809_v8  ;;  %v24522_v48 = vld [vmem:[%s31975_s1] sm:$0xff]  ;;  %v58_v52 = vld [vmem:[%s31974_s0 + $0xf8] sm:$0x1f] }
  0x14   :  { %19926 = vmatpush1.bf16.msk.msra.mxu1 %vm19925_vm4, %v22744_v15  ;;  %vm20021_vm7 = vmpackc.low %vm1752_vm0, %vm1718_vm15  ;;  %vm1881_vm15 = vcmp.eq.s32.totalorder %v22906_v21, %v22818_v11  ;;  %vm1846_vm4 = vcmp.eq.s32.totalorder %v22903_v20, %v22824_v13  ;;  %v23630_v58 = vrot.slane %v37_v54, %v22809_v8  ;;  %v23644_v59 = vrot.slane %v51_v56, %v22809_v8  ;;  %v57_v53 = vld [vmem:[%s31974_s0 + $0xf0] sm:$0x1f] }
  0x15   :  { %20022 = vmatpush1.bf16.msk.msra.mxu0 %vm20021_vm7, %v22744_v15  ;;  %vm19927_vm10 = vmpackc.low %vm1813_vm3, %vm1779_vm2  ;;  %vm1889_vm2 = vcmp.eq.s32.totalorder %v22906_v21, %v22821_v12  ;;  %vm1854_vm7 = vcmp.eq.s32.totalorder %v22903_v20, %v22827_v14  ;;  %v23799_v63 = vrot.slane %v42_v60, %v22809_v8  ;;  %v23817_v1 = vrot.slane %v56_v61, %v22809_v8  ;;  %v22570_v61 = vld [vmem:[%s31974_s0 + $0x68] sm:$0x1f] }
  0x16   :  { %19928 = vmatprep.subr.msk.bf16.mxu1 %vm19927_vm10, %v22744_v15  ;;  %vm20023_vm13 = vmpackc.low %vm1821_vm6, %vm1787_vm5  ;;  %vm1880_vm5 = vcmp.eq.s32.totalorder %v22906_v21, %v22824_v13  ;;  %vm1915_vm10 = vcmp.eq.s32.totalorder %v22929_v22, %v22818_v11  ;;  %v23831_v4 = vrot.slane %v41_v62, %v22809_v8  ;;  %v23845_v5 = vrot.slane %v55_v0, %v22809_v8 }
  0x17   :  { %20024 = vmatprep.subr.msk.bf16.mxu0 %vm20023_vm13, %v22744_v15  ;;  %vm19929_vm0 = vmpackc.low %vm1812_vm9, %vm1778_vm8  ;;  %vm1888_vm8 = vcmp.eq.s32.totalorder %v22906_v21, %v22827_v14  ;;  %vm1923_vm13 = vcmp.eq.s32.totalorder %v22929_v22, %v22821_v12  ;;  %v24691_v54 = vrot.slane %v58_v52, %v22809_v8 }
  0x18   :  { %19930 = vmatpush1.bf16.msk.msra.mxu1 %vm19929_vm0, %v22744_v15  ;;  %vm20025_vm3 = vmpackc.low %vm1820_vm12, %vm1786_vm11  ;;  %vm1949_vm11 = vcmp.eq.s32.totalorder %v22932_v23, %v22818_v11  ;;  %vm1914_vm0 = vcmp.eq.s32.totalorder %v22929_v22, %v22824_v13  ;;  %v60_v11 = vld [vmem:[%s31974_s0 + $0x108] sm:$0x1f] }
  0x19   :  { %20026 = vmatpush1.bf16.msk.msra.mxu0 %vm20025_vm3, %v22744_v15  ;;  %vm19931_vm6 = vmpackc.low %vm1881_vm15, %vm1847_vm14  ;;  %vm1957_vm14 = vcmp.eq.s32.totalorder %v22932_v23, %v22821_v12  ;;  %vm1922_vm3 = vcmp.eq.s32.totalorder %v22929_v22, %v22827_v14  ;;  %v45_v12 = vld [vmem:[%s31974_s0 + $0x90] sm:$0x1f]  ;;  %v24018_v24 = vrot.slane %v60_v11, %v22809_v8 }
  0x1a   :  { %19932 = vmatprep.subr.msk.bf16.mxu1 %vm19931_vm6, %v22744_v15  ;;  %vm20027_vm9 = vmpackc.low %vm1889_vm2, %vm1855_vm1  ;;  %vm1948_vm1 = vcmp.eq.s32.totalorder %v22932_v23, %v22824_v13  ;;  %vm1577_vm6 = vcmp.eq.s32.totalorder %v22792_v2, %v22967_v27  ;;  %v24000_v13 = vrot.slane %v46_v6, %v22809_v8  ;;  %v24032_v25 = vrot.slane %v45_v12, %v22809_v8 }
  0x1b   :  { %20028 = vmatprep.subr.msk.bf16.mxu0 %vm20027_vm9, %v22744_v15  ;;  %vm19933_vm12 = vmpackc.low %vm1880_vm5, %vm1846_vm4  ;;  %vm1956_vm4 = vcmp.eq.s32.totalorder %v22932_v23, %v22827_v14  ;;  %vm1587_vm9 = vcmp.eq.s32.totalorder %v22792_v2, %v22981_v29  ;;  %v59_v14 = vld [vmem:[%s31974_s0 + $0x100] sm:$0x1f] }
  0x1c   :  { %19934 = vmatpush1.bf16.msk.msra.mxu1 %vm19933_vm12, %v22744_v15  ;;  %vm20029_vm15 = vmpackc.low %vm1888_vm8, %vm1854_vm7  ;;  %vm1611_vm7 = vcmp.eq.s32.totalorder %v22806_v7, %v22967_v27  ;;  %vm2803_vm12 = vcmask 785408   ;;  %v24046_v26 = vrot.slane %v59_v14, %v22809_v8 }
  0x1d   :  { %20030 = vmatpush1.bf16.msk.msra.mxu0 %vm20029_vm15, %v22744_v15  ;;  %vm19935_vm2 = vmpackc.low %vm1949_vm11, %vm1915_vm10  ;;  %vm1621_vm10 = vcmp.eq.s32.totalorder %v22806_v7, %v22981_v29 }
  0x1e   :  { %19936 = vmatprep.subr.msk.bf16.mxu1 %vm19935_vm2, %v22744_v15  ;;  %vm20031_vm5 = vmpackc.low %vm1957_vm14, %vm1923_vm13  ;;  %vm1576_vm13 = vcmp.eq.s32.totalorder %v22792_v2, %v22992_v30  ;;  %vm1610_vm14 = vcmp.eq.s32.totalorder %v22806_v7, %v22992_v30 }
  0x1f   :  { %20032 = vmatprep.subr.msk.bf16.mxu0 %vm20031_vm5, %v22744_v15  ;;  %vm19937_vm8 = vmpackc.low %vm1948_vm1, %vm1914_vm0  ;;  %vm1586_vm0 = vcmp.eq.s32.totalorder %v22792_v2, %v23003_v31  ;;  %vm1620_vm1 = vcmp.eq.s32.totalorder %v22806_v7, %v23003_v31 }
  0x20   :  { %19938 = vmatpush1.bf16.msk.msra.mxu1 %vm19937_vm8, %v22744_v15  ;;  %vm20033_vm11 = vmpackc.low %vm1956_vm4, %vm1922_vm3  ;;  %vm1645_vm3 = vcmp.eq.s32.totalorder %v22812_v9, %v22967_v27  ;;  %vm1679_vm4 = vcmp.eq.s32.totalorder %v22815_v10, %v22967_v27 }
  0x21   :  { %20034 = vmatpush1.bf16.msk.msra.mxu0 %vm20033_vm11, %v22744_v15  ;;  %vm19939_vm15 = vmpackc.low %vm1611_vm7, %vm1577_vm6  ;;  %vm1655_vm6 = vcmp.eq.s32.totalorder %v22812_v9, %v22981_v29  ;;  %vm1689_vm7 = vcmp.eq.s32.totalorder %v22815_v10, %v22981_v29 }
  0x22   :  { %19940 = vmatprep.subr.msk.bf16.mxu1 %vm19939_vm15, %v22744_v15  ;;  %vm20059_vm2 = vmpackc.low %vm1621_vm10, %vm1587_vm9  ;;  %vm1644_vm9 = vcmp.eq.s32.totalorder %v22812_v9, %v22992_v30  ;;  %vm1678_vm10 = vcmp.eq.s32.totalorder %v22815_v10, %v22992_v30 }
  0x23   :  { %20060 = vmatprep.subr.msk.bf16.mxu0 %vm20059_vm2, %v22744_v15  ;;  %16307 = vmatmul.mubr.msk.f32.vlgmr.msra.gmra.mrb[0].mxu1 %vm2803_vm12, %v23019_v32  ;;  %vm19941_vm5 = vmpackc.low %vm1610_vm14, %vm1576_vm13  ;;  %vm1654_vm13 = vcmp.eq.s32.totalorder %v22812_v9, %v23003_v31  ;;  %vm1688_vm14 = vcmp.eq.s32.totalorder %v22815_v10, %v23003_v31 }
  0x24   :  { %19942 = vmatpush1.bf16.msk.msra.mxu1 %vm19941_vm5, %v22744_v15  ;;  %16419 = vmatmul.mubr.msk.f32.vlgmr.msra.gmra.mrb[0].mxu0 %vm2803_vm12, %v23019_v32  ;;  %vm20061_vm8 = vmpackc.low %vm1620_vm1, %vm1586_vm0  ;;  %vm1713_vm0 = vcmp.eq.s32.totalorder %v22851_v16, %v22967_v27  ;;  %vm1747_vm1 = vcmp.eq.s32.totalorder %v22854_v17, %v22967_v27 }
  0x25   :  { %20062 = vmatpush1.bf16.msk.msra.mxu0 %vm20061_vm8, %v22744_v15  ;;  %vm19943_vm11 = vmpackc.low %vm1679_vm4, %vm1645_vm3  ;;  %2886 = vmatprep.mubr.f32.mxu1 %v22743_v3  ;;  %vm1723_vm3 = vcmp.eq.s32.totalorder %v22851_v16, %v22981_v29  ;;  %vm1757_vm4 = vcmp.eq.s32.totalorder %v22854_v17, %v22981_v29 }
  0x26   :  { %19944 = vmatprep.subr.msk.bf16.mxu1 %vm19943_vm11, %v22744_v15  ;;  %vm20063_vm15 = vmpackc.low %vm1689_vm7, %vm1655_vm6  ;;  %3242 = vmatprep.mubr.f32.mxu0 %v22743_v3  ;;  %vm1712_vm6 = vcmp.eq.s32.totalorder %v22851_v16, %v22992_v30  ;;  %vm1746_vm7 = vcmp.eq.s32.totalorder %v22854_v17, %v22992_v30 }
  0x27   :  { %20064 = vmatprep.subr.msk.bf16.mxu0 %vm20063_vm15, %v22744_v15  ;;  %vm19945_vm2 = vmpackc.low %vm1678_vm10, %vm1644_vm9  ;;  %16308 = vmatmul.mubr.msk.f32.gmra.mrb[2].mxu1 %vm2803_vm12, %v23052_v33  ;;  %vm1722_vm9 = vcmp.eq.s32.totalorder %v22851_v16, %v23003_v31  ;;  %vm1756_vm10 = vcmp.eq.s32.totalorder %v22854_v17, %v23003_v31 }
  0x28   :  { %19946 = vmatpush1.bf16.msk.msra.mxu1 %vm19945_vm2, %v22744_v15  ;;  %vm20065_vm5 = vmpackc.low %vm1688_vm14, %vm1654_vm13  ;;  %16420 = vmatmul.mubr.msk.f32.gmra.mrb[2].mxu0 %vm2803_vm12, %v23052_v33  ;;  %vm1781_vm13 = vcmp.eq.s32.totalorder %v22877_v18, %v22967_v27  ;;  %vm1815_vm14 = vcmp.eq.s32.totalorder %v22880_v19, %v22967_v27 }
  0x29   :  { %20066 = vmatpush1.bf16.msk.msra.mxu0 %vm20065_vm5, %v22744_v15  ;;  %vm19947_vm8 = vmpackc.low %vm1747_vm1, %vm1713_vm0  ;;  %2892 = vmatprep.mubr.f32.mxu1 %v22743_v3  ;;  %vm1791_vm0 = vcmp.eq.s32.totalorder %v22877_v18, %v22981_v29  ;;  %vm1825_vm1 = vcmp.eq.s32.totalorder %v22880_v19, %v22981_v29 }
  0x2a   :  { %19948 = vmatprep.subr.msk.bf16.mxu1 %vm19947_vm8, %v22744_v15  ;;  %vm20067_vm11 = vmpackc.low %vm1757_vm4, %vm1723_vm3  ;;  %3248 = vmatprep.mubr.f32.mxu0 %v22743_v3  ;;  %vm1780_vm3 = vcmp.eq.s32.totalorder %v22877_v18, %v22992_v30  ;;  %vm1814_vm4 = vcmp.eq.s32.totalorder %v22880_v19, %v22992_v30 }
  0x2b   :  { %20068 = vmatprep.subr.msk.bf16.mxu0 %vm20067_vm11, %v22744_v15  ;;  %vm19949_vm15 = vmpackc.low %vm1746_vm7, %vm1712_vm6  ;;  %16309 = vmatmul.mubr.msk.f32.gmra.mrb[4].mxu1 %vm2803_vm12, %v23083_v34  ;;  %vm1790_vm6 = vcmp.eq.s32.totalorder %v22877_v18, %v23003_v31  ;;  %vm1824_vm7 = vcmp.eq.s32.totalorder %v22880_v19, %v23003_v31 }
  0x2c   :  { %19950 = vmatpush1.bf16.msk.msra.mxu1 %vm19949_vm15, %v22744_v15  ;;  %vm20069_vm2 = vmpackc.low %vm1756_vm10, %vm1722_vm9  ;;  %16421 = vmatmul.mubr.msk.f32.gmra.mrb[4].mxu0 %vm2803_vm12, %v23083_v34  ;;  %vm1849_vm9 = vcmp.eq.s32.totalorder %v22903_v20, %v22967_v27  ;;  %vm1883_vm10 = vcmp.eq.s32.totalorder %v22906_v21, %v22967_v27 }
  0x2d   :  { %20070 = vmatpush1.bf16.msk.msra.mxu0 %vm20069_vm2, %v22744_v15  ;;  %vm19951_vm5 = vmpackc.low %vm1815_vm14, %vm1781_vm13  ;;  %2898 = vmatprep.mubr.f32.mxu1 %v22743_v3  ;;  %vm1859_vm13 = vcmp.eq.s32.totalorder %v22903_v20, %v22981_v29  ;;  %vm1893_vm14 = vcmp.eq.s32.totalorder %v22906_v21, %v22981_v29 }
  0x2e   :  { %19952 = vmatprep.subr.msk.bf16.mxu1 %vm19951_vm5, %v22744_v15  ;;  %vm20071_vm8 = vmpackc.low %vm1825_vm1, %vm1791_vm0  ;;  %3254 = vmatprep.mubr.f32.mxu0 %v22743_v3  ;;  %vm1848_vm0 = vcmp.eq.s32.totalorder %v22903_v20, %v22992_v30  ;;  %vm1882_vm1 = vcmp.eq.s32.totalorder %v22906_v21, %v22992_v30 }
  0x2f   :  { %20072 = vmatprep.subr.msk.bf16.mxu0 %vm20071_vm8, %v22744_v15  ;;  %vm19953_vm11 = vmpackc.low %vm1814_vm4, %vm1780_vm3  ;;  %16310 = vmatmul.mubr.msk.f32.gmra.mrb[6].mxu1 %vm2803_vm12, %v23123_v35  ;;  %vm1858_vm3 = vcmp.eq.s32.totalorder %v22903_v20, %v23003_v31  ;;  %vm1892_vm4 = vcmp.eq.s32.totalorder %v22906_v21, %v23003_v31 }
  0x30   :  { %19954 = vmatpush1.bf16.msk.msra.mxu1 %vm19953_vm11, %v22744_v15  ;;  %vm20073_vm15 = vmpackc.low %vm1824_vm7, %vm1790_vm6  ;;  %16422 = vmatmul.mubr.msk.f32.gmra.mrb[6].mxu0 %vm2803_vm12, %v23123_v35  ;;  %vm1917_vm6 = vcmp.eq.s32.totalorder %v22929_v22, %v22967_v27  ;;  %vm1951_vm7 = vcmp.eq.s32.totalorder %v22932_v23, %v22967_v27  ;;  %v24077_v27 = vld [vmem:[%s31975_s1 + $0x20] sm:$0xff] }
  0x31   :  { %20074 = vmatpush1.bf16.msk.msra.mxu0 %vm20073_vm15, %v22744_v15  ;;  %vm19955_vm2 = vmpackc.low %vm1883_vm10, %vm1849_vm9  ;;  %2969 = vmatprep.mubr.f32.mxu1 %v22743_v3  ;;  %vm1927_vm9 = vcmp.eq.s32.totalorder %v22929_v22, %v22981_v29  ;;  %vm1961_vm10 = vcmp.eq.s32.totalorder %v22932_v23, %v22981_v29  ;;  %v24152_v29 = vld [vmem:[%s31975_s1 + $0x30] sm:$0xff] }
  0x32   :  { %19956 = vmatprep.subr.msk.bf16.mxu1 %vm19955_vm2, %v22744_v15  ;;  %vm20075_vm5 = vmpackc.low %vm1893_vm14, %vm1859_vm13  ;;  %3414 = vmatprep.mubr.f32.mxu0 %v22743_v3  ;;  %vm1916_vm13 = vcmp.eq.s32.totalorder %v22929_v22, %v22992_v30  ;;  %vm1950_vm14 = vcmp.eq.s32.totalorder %v22932_v23, %v22992_v30  ;;  %v24192_v30 = vld [vmem:[%s31975_s1 + $0x38] sm:$0xff] }
  0x33   :  { %20076 = vmatprep.subr.msk.bf16.mxu0 %vm20075_vm5, %v22744_v15  ;;  %vm19957_vm8 = vmpackc.low %vm1882_vm1, %vm1848_vm0  ;;  %vm1926_vm0 = vcmp.eq.s32.totalorder %v22929_v22, %v23003_v31  ;;  %vm1960_vm1 = vcmp.eq.s32.totalorder %v22932_v23, %v23003_v31  ;;  %v50_v31 = vld [vmem:[%s31974_s0 + $0xb8] sm:$0x1f] }
  0x34   :  { %19958 = vmatpush1.bf16.msk.msra.mxu1 %vm19957_vm8, %v22744_v15  ;;  %vm20077_vm11 = vmpackc.low %vm1892_vm4, %vm1858_vm3  ;;  %vm1579_vm3 = vcmp.eq.s32.totalorder %v22792_v2, %v23196_v39  ;;  %vm1613_vm4 = vcmp.eq.s32.totalorder %v22806_v7, %v23196_v39 }
  0x35   :  { %20078 = vmatpush1.bf16.msk.msra.mxu0 %vm20077_vm11, %v22744_v15  ;;  %vm19959_vm15 = vmpackc.low %vm1951_vm7, %vm1917_vm6  ;;  %vm1591_vm6 = vcmp.eq.s32.totalorder %v22792_v2, %v23214_v41  ;;  %vm1625_vm7 = vcmp.eq.s32.totalorder %v22806_v7, %v23214_v41 }
  0x36   :  { %19960 = vmatprep.subr.msk.bf16.mxu1 %vm19959_vm15, %v22744_v15  ;;  %vm20079_vm2 = vmpackc.low %vm1961_vm10, %vm1927_vm9  ;;  %vm1578_vm9 = vcmp.eq.s32.totalorder %v22792_v2, %v23228_v42  ;;  %vm1612_vm10 = vcmp.eq.s32.totalorder %v22806_v7, %v23228_v42 }
  0x37   :  { %20080 = vmatprep.subr.msk.bf16.mxu0 %vm20079_vm2, %v22744_v15  ;;  %vm19961_vm5 = vmpackc.low %vm1950_vm14, %vm1916_vm13  ;;  %vm1590_vm13 = vcmp.eq.s32.totalorder %v22792_v2, %v23242_v43  ;;  %vm1624_vm14 = vcmp.eq.s32.totalorder %v22806_v7, %v23242_v43 }
  0x38   :  { %19962 = vmatpush1.bf16.msk.msra.mxu1 %vm19961_vm5, %v22744_v15  ;;  %vm20081_vm8 = vmpackc.low %vm1960_vm1, %vm1926_vm0  ;;  %vm1647_vm0 = vcmp.eq.s32.totalorder %v22812_v9, %v23196_v39  ;;  %vm1681_vm1 = vcmp.eq.s32.totalorder %v22815_v10, %v23196_v39 }
  0x39   :  { %20082 = vmatpush1.bf16.msk.msra.mxu0 %vm20081_vm8, %v22744_v15  ;;  %vm19963_vm11 = vmpackc.low %vm1613_vm4, %vm1579_vm3  ;;  %vm1659_vm3 = vcmp.eq.s32.totalorder %v22812_v9, %v23214_v41  ;;  %vm1693_vm4 = vcmp.eq.s32.totalorder %v22815_v10, %v23214_v41 }
  0x3a   :  { %19964 = vmatprep.subr.msk.bf16.mxu1 %vm19963_vm11, %v22744_v15  ;;  %vm20107_vm15 = vmpackc.low %vm1625_vm7, %vm1591_vm6  ;;  %vm1646_vm6 = vcmp.eq.s32.totalorder %v22812_v9, %v23228_v42  ;;  %vm1680_vm7 = vcmp.eq.s32.totalorder %v22815_v10, %v23228_v42 }
  0x3b   :  { %20108 = vmatprep.subr.msk.bf16.mxu0 %vm20107_vm15, %v22744_v15  ;;  %16335 = vmatmul.mubr.msk.f32.vlgmr.msra.gmra.mrb[8].mxu1 %vm2803_vm12, %v23019_v32  ;;  %vm19965_vm2 = vmpackc.low %vm1612_vm10, %vm1578_vm9  ;;  %vm1658_vm9 = vcmp.eq.s32.totalorder %v22812_v9, %v23242_v43  ;;  %vm1692_vm10 = vcmp.eq.s32.totalorder %v22815_v10, %v23242_v43 }
  0x3c   :  { %19966 = vmatpush1.bf16.msk.msra.mxu1 %vm19965_vm2, %v22744_v15  ;;  %16475 = vmatmul.mubr.msk.f32.vlgmr.msra.gmra.mrb[8].mxu0 %vm2803_vm12, %v23019_v32  ;;  %vm20109_vm5 = vmpackc.low %vm1624_vm14, %vm1590_vm13  ;;  %vm1715_vm13 = vcmp.eq.s32.totalorder %v22851_v16, %v23196_v39  ;;  %vm1749_vm14 = vcmp.eq.s32.totalorder %v22854_v17, %v23196_v39 }
  0x3d   :  { %20110 = vmatpush1.bf16.msk.msra.mxu0 %vm20109_vm5, %v22744_v15  ;;  %vm19967_vm8 = vmpackc.low %vm1681_vm1, %vm1647_vm0  ;;  %2975 = vmatprep.mubr.f32.mxu1 %v22743_v3  ;;  %vm1727_vm0 = vcmp.eq.s32.totalorder %v22851_v16, %v23214_v41  ;;  %vm1761_vm1 = vcmp.eq.s32.totalorder %v22854_v17, %v23214_v41 }
  0x3e   :  { %19968 = vmatprep.subr.msk.bf16.mxu1 %vm19967_vm8, %v22744_v15  ;;  %vm20111_vm11 = vmpackc.low %vm1693_vm4, %vm1659_vm3  ;;  %3420 = vmatprep.mubr.f32.mxu0 %v22743_v3  ;;  %vm1714_vm3 = vcmp.eq.s32.totalorder %v22851_v16, %v23228_v42  ;;  %vm1748_vm4 = vcmp.eq.s32.totalorder %v22854_v17, %v23228_v42 }
  0x3f   :  { %20112 = vmatprep.subr.msk.bf16.mxu0 %vm20111_vm11, %v22744_v15  ;;  %vm19969_vm15 = vmpackc.low %vm1680_vm7, %vm1646_vm6  ;;  %16336 = vmatmul.mubr.msk.f32.gmra.mrb[10].mxu1 %vm2803_vm12, %v23052_v33  ;;  %vm1726_vm6 = vcmp.eq.s32.totalorder %v22851_v16, %v23242_v43  ;;  %vm1760_vm7 = vcmp.eq.s32.totalorder %v22854_v17, %v23242_v43 }
  0x40   :  { %19970 = vmatpush1.bf16.msk.msra.mxu1 %vm19969_vm15, %v22744_v15  ;;  %vm20113_vm2 = vmpackc.low %vm1692_vm10, %vm1658_vm9  ;;  %16476 = vmatmul.mubr.msk.f32.gmra.mrb[10].mxu0 %vm2803_vm12, %v23052_v33  ;;  %vm1783_vm9 = vcmp.eq.s32.totalorder %v22877_v18, %v23196_v39  ;;  %vm1817_vm10 = vcmp.eq.s32.totalorder %v22880_v19, %v23196_v39 }
  0x41   :  { %20114 = vmatpush1.bf16.msk.msra.mxu0 %vm20113_vm2, %v22744_v15  ;;  %vm19971_vm5 = vmpackc.low %vm1749_vm14, %vm1715_vm13  ;;  %2981 = vmatprep.mubr.f32.mxu1 %v22743_v3  ;;  %vm1795_vm13 = vcmp.eq.s32.totalorder %v22877_v18, %v23214_v41  ;;  %vm1829_vm14 = vcmp.eq.s32.totalorder %v22880_v19, %v23214_v41 }
  0x42   :  { %19972 = vmatprep.subr.msk.bf16.mxu1 %vm19971_vm5, %v22744_v15  ;;  %vm20115_vm8 = vmpackc.low %vm1761_vm1, %vm1727_vm0  ;;  %3426 = vmatprep.mubr.f32.mxu0 %v22743_v3  ;;  %vm1782_vm0 = vcmp.eq.s32.totalorder %v22877_v18, %v23228_v42  ;;  %vm1816_vm1 = vcmp.eq.s32.totalorder %v22880_v19, %v23228_v42 }
  0x43   :  { %20116 = vmatprep.subr.msk.bf16.mxu0 %vm20115_vm8, %v22744_v15  ;;  %vm19973_vm11 = vmpackc.low %vm1748_vm4, %vm1714_vm3  ;;  %16337 = vmatmul.mubr.msk.f32.gmra.mrb[12].mxu1 %vm2803_vm12, %v23083_v34  ;;  %vm1794_vm3 = vcmp.eq.s32.totalorder %v22877_v18, %v23242_v43  ;;  %vm1828_vm4 = vcmp.eq.s32.totalorder %v22880_v19, %v23242_v43 }
  0x44   :  { %19974 = vmatpush1.bf16.msk.msra.mxu1 %vm19973_vm11, %v22744_v15  ;;  %vm20117_vm15 = vmpackc.low %vm1760_vm7, %vm1726_vm6  ;;  %16477 = vmatmul.mubr.msk.f32.gmra.mrb[12].mxu0 %vm2803_vm12, %v23083_v34  ;;  %vm1851_vm6 = vcmp.eq.s32.totalorder %v22903_v20, %v23196_v39  ;;  %vm1885_vm7 = vcmp.eq.s32.totalorder %v22906_v21, %v23196_v39 }
  0x45   :  { %20118 = vmatpush1.bf16.msk.msra.mxu0 %vm20117_vm15, %v22744_v15  ;;  %vm19975_vm2 = vmpackc.low %vm1817_vm10, %vm1783_vm9  ;;  %2987 = vmatprep.mubr.f32.mxu1 %v22743_v3  ;;  %vm1863_vm9 = vcmp.eq.s32.totalorder %v22903_v20, %v23214_v41  ;;  %vm1897_vm10 = vcmp.eq.s32.totalorder %v22906_v21, %v23214_v41 }
  0x46   :  { %19976 = vmatprep.subr.msk.bf16.mxu1 %vm19975_vm2, %v22744_v15  ;;  %vm20119_vm5 = vmpackc.low %vm1829_vm14, %vm1795_vm13  ;;  %3432 = vmatprep.mubr.f32.mxu0 %v22743_v3  ;;  %vm1850_vm13 = vcmp.eq.s32.totalorder %v22903_v20, %v23228_v42  ;;  %vm1884_vm14 = vcmp.eq.s32.totalorder %v22906_v21, %v23228_v42 }
  0x47   :  { %20120 = vmatprep.subr.msk.bf16.mxu0 %vm20119_vm5, %v22744_v15  ;;  %vm19977_vm8 = vmpackc.low %vm1816_vm1, %vm1782_vm0  ;;  %16338 = vmatmul.mubr.msk.f32.gmra.mrb[14].mxu1 %vm2803_vm12, %v23123_v35  ;;  %vm1862_vm0 = vcmp.eq.s32.totalorder %v22903_v20, %v23242_v43  ;;  %vm1896_vm1 = vcmp.eq.s32.totalorder %v22906_v21, %v23242_v43 }
  0x48   :  { %19978 = vmatpush1.bf16.msk.msra.mxu1 %vm19977_vm8, %v22744_v15  ;;  %vm20121_vm11 = vmpackc.low %vm1828_vm4, %vm1794_vm3  ;;  %16478 = vmatmul.mubr.msk.f32.gmra.mrb[14].mxu0 %vm2803_vm12, %v23123_v35  ;;  %vm1919_vm3 = vcmp.eq.s32.totalorder %v22929_v22, %v23196_v39  ;;  %vm1953_vm4 = vcmp.eq.s32.totalorder %v22932_v23, %v23196_v39 }
  0x49   :  { %20122 = vmatpush1.bf16.msk.msra.mxu0 %vm20121_vm11, %v22744_v15  ;;  %vm19979_vm15 = vmpackc.low %vm1885_vm7, %vm1851_vm6  ;;  %3058 = vmatprep.mubr.f32.mxu1 %v22743_v3  ;;  %vm1931_vm6 = vcmp.eq.s32.totalorder %v22929_v22, %v23214_v41  ;;  %vm1965_vm7 = vcmp.eq.s32.totalorder %v22932_v23, %v23214_v41  ;;  %v53_v41 = vld [vmem:[%s31974_s0 + $0xd0] sm:$0x1f] }
  0x4a   :  { %19980 = vmatprep.subr.msk.bf16.mxu1 %vm19979_vm15, %v22744_v15  ;;  %vm20123_vm2 = vmpackc.low %vm1897_vm10, %vm1863_vm9  ;;  %3592 = vmatprep.mubr.f32.mxu0 %v22743_v3  ;;  %vm1918_vm9 = vcmp.eq.s32.totalorder %v22929_v22, %v23228_v42  ;;  %vm1952_vm10 = vcmp.eq.s32.totalorder %v22932_v23, %v23228_v42  ;;  %v24446_v42 = vrot.slane %v54_v40, %v22809_v8 }
  0x4b   :  { %20124 = vmatprep.subr.msk.bf16.mxu0 %vm20123_vm2, %v22744_v15  ;;  %vm19981_vm5 = vmpackc.low %vm1884_vm14, %vm1850_vm13  ;;  %vm1930_vm13 = vcmp.eq.s32.totalorder %v22929_v22, %v23242_v43  ;;  %vm1964_vm14 = vcmp.eq.s32.totalorder %v22932_v23, %v23242_v43  ;;  %v22565_v43 = vld [vmem:[%s31974_s0 + $0x28] sm:$0x1f]  ;;  %v24478_v45 = vrot.slane %v53_v41, %v22809_v8  ;;  %v22580_v41 = vld [vmem:[%s31974_s0 + $0xa0] sm:$0x1f] }
  0x4c   :  { %19982 = vmatpush1.bf16.msk.msra.mxu1 %vm19981_vm5, %v22744_v15  ;;  %vm20125_vm8 = vmpackc.low %vm1896_vm1, %vm1862_vm0  ;;  %vm1581_vm0 = vcmp.eq.s32.totalorder %v22792_v2, %v23397_v47  ;;  %vm1615_vm1 = vcmp.eq.s32.totalorder %v22806_v7, %v23397_v47 }
  0x4d   :  { %20126 = vmatpush1.bf16.msk.msra.mxu0 %vm20125_vm8, %v22744_v15  ;;  %vm19983_vm11 = vmpackc.low %vm1953_vm4, %vm1919_vm3  ;;  %vm1595_vm3 = vcmp.eq.s32.totalorder %v22792_v2, %v23415_v49  ;;  %vm1629_vm4 = vcmp.eq.s32.totalorder %v22806_v7, %v23415_v49 }
  0x4e   :  { %19984 = vmatprep.subr.msk.bf16.mxu1 %vm19983_vm11, %v22744_v15  ;;  %vm20127_vm15 = vmpackc.low %vm1965_vm7, %vm1931_vm6  ;;  %vm1580_vm6 = vcmp.eq.s32.totalorder %v22792_v2, %v23429_v50  ;;  %vm1614_vm7 = vcmp.eq.s32.totalorder %v22806_v7, %v23429_v50 }
  0x4f   :  { %20128 = vmatprep.subr.msk.bf16.mxu0 %vm20127_vm15, %v22744_v15  ;;  %vm19985_vm2 = vmpackc.low %vm1952_vm10, %vm1918_vm9  ;;  %vm1594_vm9 = vcmp.eq.s32.totalorder %v22792_v2, %v23443_v51  ;;  %vm1628_vm10 = vcmp.eq.s32.totalorder %v22806_v7, %v23443_v51 }
  0x50   :  { %19986 = vmatpush1.bf16.msk.msra.mxu1 %vm19985_vm2, %v22744_v15  ;;  %vm20129_vm5 = vmpackc.low %vm1964_vm14, %vm1930_vm13  ;;  %vm1649_vm13 = vcmp.eq.s32.totalorder %v22812_v9, %v23397_v47  ;;  %vm1683_vm14 = vcmp.eq.s32.totalorder %v22815_v10, %v23397_v47 }
  0x51   :  { %20130 = vmatpush1.bf16.msk.msra.mxu0 %vm20129_vm5, %v22744_v15  ;;  %vm19987_vm8 = vmpackc.low %vm1615_vm1, %vm1581_vm0  ;;  %vm1663_vm0 = vcmp.eq.s32.totalorder %v22812_v9, %v23415_v49  ;;  %vm1697_vm1 = vcmp.eq.s32.totalorder %v22815_v10, %v23415_v49 }
  0x52   :  { %19988 = vmatprep.subr.msk.bf16.mxu1 %vm19987_vm8, %v22744_v15  ;;  %vm20155_vm11 = vmpackc.low %vm1629_vm4, %vm1595_vm3  ;;  %vm1648_vm3 = vcmp.eq.s32.totalorder %v22812_v9, %v23429_v50  ;;  %vm1682_vm4 = vcmp.eq.s32.totalorder %v22815_v10, %v23429_v50 }
  0x53   :  { %20156 = vmatprep.subr.msk.bf16.mxu0 %vm20155_vm11, %v22744_v15  ;;  %16363 = vmatmul.mubr.msk.f32.vlgmr.msra.gmra.mrb[16].mxu1 %vm2803_vm12, %v23019_v32  ;;  %vm19989_vm15 = vmpackc.low %vm1614_vm7, %vm1580_vm6  ;;  %vm1662_vm6 = vcmp.eq.s32.totalorder %v22812_v9, %v23443_v51  ;;  %vm1696_vm7 = vcmp.eq.s32.totalorder %v22815_v10, %v23443_v51 }
  0x54   :  { %19990 = vmatpush1.bf16.msk.msra.mxu1 %vm19989_vm15, %v22744_v15  ;;  %16531 = vmatmul.mubr.msk.f32.vlgmr.msra.gmra.mrb[16].mxu0 %vm2803_vm12, %v23019_v32  ;;  %vm20157_vm2 = vmpackc.low %vm1628_vm10, %vm1594_vm9  ;;  %vm1717_vm9 = vcmp.eq.s32.totalorder %v22851_v16, %v23397_v47  ;;  %vm1751_vm10 = vcmp.eq.s32.totalorder %v22854_v17, %v23397_v47 }
  0x55   :  { %20158 = vmatpush1.bf16.msk.msra.mxu0 %vm20157_vm2, %v22744_v15  ;;  %vm19991_vm5 = vmpackc.low %vm1683_vm14, %vm1649_vm13  ;;  %3064 = vmatprep.mubr.f32.mxu1 %v22743_v3  ;;  %vm1731_vm13 = vcmp.eq.s32.totalorder %v22851_v16, %v23415_v49  ;;  %vm1765_vm14 = vcmp.eq.s32.totalorder %v22854_v17, %v23415_v49 }
  0x56   :  { %19992 = vmatprep.subr.msk.bf16.mxu1 %vm19991_vm5, %v22744_v15  ;;  %vm20159_vm8 = vmpackc.low %vm1697_vm1, %vm1663_vm0  ;;  %3598 = vmatprep.mubr.f32.mxu0 %v22743_v3  ;;  %vm1716_vm0 = vcmp.eq.s32.totalorder %v22851_v16, %v23429_v50  ;;  %vm1750_vm1 = vcmp.eq.s32.totalorder %v22854_v17, %v23429_v50 }
  0x57   :  { %20160 = vmatprep.subr.msk.bf16.mxu0 %vm20159_vm8, %v22744_v15  ;;  %vm19993_vm11 = vmpackc.low %vm1682_vm4, %vm1648_vm3  ;;  %16364 = vmatmul.mubr.msk.f32.gmra.mrb[18].mxu1 %vm2803_vm12, %v23052_v33  ;;  %vm1730_vm3 = vcmp.eq.s32.totalorder %v22851_v16, %v23443_v51  ;;  %vm1764_vm4 = vcmp.eq.s32.totalorder %v22854_v17, %v23443_v51 }
  0x58   :  { %19994 = vmatpush1.bf16.msk.msra.mxu1 %vm19993_vm11, %v22744_v15  ;;  %vm20161_vm15 = vmpackc.low %vm1696_vm7, %vm1662_vm6  ;;  %16532 = vmatmul.mubr.msk.f32.gmra.mrb[18].mxu0 %vm2803_vm12, %v23052_v33  ;;  %vm1785_vm6 = vcmp.eq.s32.totalorder %v22877_v18, %v23397_v47  ;;  %vm1819_vm7 = vcmp.eq.s32.totalorder %v22880_v19, %v23397_v47 }
  0x59   :  { %20162 = vmatpush1.bf16.msk.msra.mxu0 %vm20161_vm15, %v22744_v15  ;;  %vm19995_vm2 = vmpackc.low %vm1751_vm10, %vm1717_vm9  ;;  %3070 = vmatprep.mubr.f32.mxu1 %v22743_v3  ;;  %vm1799_vm9 = vcmp.eq.s32.totalorder %v22877_v18, %v23415_v49  ;;  %vm1833_vm10 = vcmp.eq.s32.totalorder %v22880_v19, %v23415_v49 }
  0x5a   :  { %19996 = vmatprep.subr.msk.bf16.mxu1 %vm19995_vm2, %v22744_v15  ;;  %vm20163_vm5 = vmpackc.low %vm1765_vm14, %vm1731_vm13  ;;  %3604 = vmatprep.mubr.f32.mxu0 %v22743_v3  ;;  %vm1784_vm13 = vcmp.eq.s32.totalorder %v22877_v18, %v23429_v50  ;;  %vm1818_vm14 = vcmp.eq.s32.totalorder %v22880_v19, %v23429_v50 }
  0x5b   :  { %20164 = vmatprep.subr.msk.bf16.mxu0 %vm20163_vm5, %v22744_v15  ;;  %vm19997_vm8 = vmpackc.low %vm1750_vm1, %vm1716_vm0  ;;  %16365 = vmatmul.mubr.msk.f32.gmra.mrb[20].mxu1 %vm2803_vm12, %v23083_v34  ;;  %vm1798_vm0 = vcmp.eq.s32.totalorder %v22877_v18, %v23443_v51  ;;  %vm1832_vm1 = vcmp.eq.s32.totalorder %v22880_v19, %v23443_v51 }
  0x5c   :  { %19998 = vmatpush1.bf16.msk.msra.mxu1 %vm19997_vm8, %v22744_v15  ;;  %vm20165_vm11 = vmpackc.low %vm1764_vm4, %vm1730_vm3  ;;  %16533 = vmatmul.mubr.msk.f32.gmra.mrb[20].mxu0 %vm2803_vm12, %v23083_v34  ;;  %vm1853_vm3 = vcmp.eq.s32.totalorder %v22903_v20, %v23397_v47  ;;  %vm1887_vm4 = vcmp.eq.s32.totalorder %v22906_v21, %v23397_v47 }
  0x5d   :  { %20166 = vmatpush1.bf16.msk.msra.mxu0 %vm20165_vm11, %v22744_v15  ;;  %vm19999_vm15 = vmpackc.low %vm1819_vm7, %vm1785_vm6  ;;  %3076 = vmatprep.mubr.f32.mxu1 %v22743_v3  ;;  %vm1867_vm6 = vcmp.eq.s32.totalorder %v22903_v20, %v23415_v49  ;;  %vm1901_vm7 = vcmp.eq.s32.totalorder %v22906_v21, %v23415_v49 }
  0x5e   :  { %20000 = vmatprep.subr.msk.bf16.mxu1 %vm19999_vm15, %v22744_v15  ;;  %vm20167_vm2 = vmpackc.low %vm1833_vm10, %vm1799_vm9  ;;  %3610 = vmatprep.mubr.f32.mxu0 %v22743_v3  ;;  %vm1852_vm9 = vcmp.eq.s32.totalorder %v22903_v20, %v23429_v50  ;;  %vm1886_vm10 = vcmp.eq.s32.totalorder %v22906_v21, %v23429_v50 }
  0x5f   :  { %20168 = vmatprep.subr.msk.bf16.mxu0 %vm20167_vm2, %v22744_v15  ;;  %vm20001_vm5 = vmpackc.low %vm1818_vm14, %vm1784_vm13  ;;  %16366 = vmatmul.mubr.msk.f32.gmra.mrb[22].mxu1 %vm2803_vm12, %v23123_v35  ;;  %vm1866_vm13 = vcmp.eq.s32.totalorder %v22903_v20, %v23443_v51  ;;  %vm1900_vm14 = vcmp.eq.s32.totalorder %v22906_v21, %v23443_v51 }
  0x60   :  { %20002 = vmatpush1.bf16.msk.msra.mxu1 %vm20001_vm5, %v22744_v15  ;;  %vm20169_vm8 = vmpackc.low %vm1832_vm1, %vm1798_vm0  ;;  %16534 = vmatmul.mubr.msk.f32.gmra.mrb[22].mxu0 %vm2803_vm12, %v23123_v35  ;;  %vm1921_vm0 = vcmp.eq.s32.totalorder %v22929_v22, %v23397_v47  ;;  %vm1955_vm1 = vcmp.eq.s32.totalorder %v22932_v23, %v23397_v47 }
  0x61   :  { %20170 = vmatpush1.bf16.msk.msra.mxu0 %vm20169_vm8, %v22744_v15  ;;  %vm20003_vm11 = vmpackc.low %vm1887_vm4, %vm1853_vm3  ;;  %3147 = vmatprep.mubr.f32.mxu1 %v22743_v3  ;;  %vm1935_vm3 = vcmp.eq.s32.totalorder %v22929_v22, %v23415_v49  ;;  %vm1969_vm4 = vcmp.eq.s32.totalorder %v22932_v23, %v23415_v49  ;;  %v24556_v49 = vld [vmem:[%s31975_s1 + $0x8] sm:$0xff] }
  0x62   :  { %20004 = vmatprep.subr.msk.bf16.mxu1 %vm20003_vm11, %v22744_v15  ;;  %vm20171_vm15 = vmpackc.low %vm1901_vm7, %vm1867_vm6  ;;  %3770 = vmatprep.mubr.f32.mxu0 %v22743_v3  ;;  %vm1920_vm6 = vcmp.eq.s32.totalorder %v22929_v22, %v23429_v50  ;;  %vm1954_vm7 = vcmp.eq.s32.totalorder %v22932_v23, %v23429_v50  ;;  %v24590_v50 = vld [vmem:[%s31975_s1 + $0x10] sm:$0xff] }
  0x63   :  { %20172 = vmatprep.subr.msk.bf16.mxu0 %vm20171_vm15, %v22744_v15  ;;  %vm20005_vm2 = vmpackc.low %vm1886_vm10, %vm1852_vm9  ;;  %vm1934_vm9 = vcmp.eq.s32.totalorder %v22929_v22, %v23443_v51  ;;  %vm1968_vm10 = vcmp.eq.s32.totalorder %v22932_v23, %v23443_v51  ;;  %v24630_v51 = vld [vmem:[%s31975_s1 + $0x18] sm:$0xff] }
  0x64   :  { %20006 = vmatpush1.bf16.msk.msra.mxu1 %vm20005_vm2, %v22744_v15  ;;  %vm20173_vm5 = vmpackc.low %vm1900_vm14, %vm1866_vm13  ;;  %vm1585_vm13 = vcmp.eq.s32.totalorder %v22792_v2, %v23598_v55  ;;  %vm1619_vm14 = vcmp.eq.s32.totalorder %v22806_v7, %v23598_v55 }
  0x65   :  { %20174 = vmatpush1.bf16.msk.msra.mxu0 %vm20173_vm5, %v22744_v15  ;;  %vm20007_vm8 = vmpackc.low %vm1955_vm1, %vm1921_vm0  ;;  %vm1599_vm0 = vcmp.eq.s32.totalorder %v22792_v2, %v23616_v57  ;;  %vm1633_vm1 = vcmp.eq.s32.totalorder %v22806_v7, %v23616_v57 }
  0x66   :  { %20008 = vmatprep.subr.msk.bf16.mxu1 %vm20007_vm8, %v22744_v15  ;;  %vm20175_vm11 = vmpackc.low %vm1969_vm4, %vm1935_vm3  ;;  %vm1584_vm3 = vcmp.eq.s32.totalorder %v22792_v2, %v23630_v58  ;;  %vm1618_vm4 = vcmp.eq.s32.totalorder %v22806_v7, %v23630_v58 }
  0x67   :  { %20176 = vmatprep.subr.msk.bf16.mxu0 %vm20175_vm11, %v22744_v15  ;;  %vm20009_vm15 = vmpackc.low %vm1954_vm7, %vm1920_vm6  ;;  %vm1598_vm6 = vcmp.eq.s32.totalorder %v22792_v2, %v23644_v59  ;;  %vm1632_vm7 = vcmp.eq.s32.totalorder %v22806_v7, %v23644_v59 }
  0x68   :  { %20010 = vmatpush1.bf16.msk.msra.mxu1 %vm20009_vm15, %v22744_v15  ;;  %vm20177_vm2 = vmpackc.low %vm1968_vm10, %vm1934_vm9  ;;  %vm1653_vm9 = vcmp.eq.s32.totalorder %v22812_v9, %v23598_v55  ;;  %vm1687_vm10 = vcmp.eq.s32.totalorder %v22815_v10, %v23598_v55 }
  0x69   :  { %20178 = vmatpush1.bf16.msk.msra.mxu0 %vm20177_vm2, %v22744_v15  ;;  %vm20035_vm5 = vmpackc.low %vm1619_vm14, %vm1585_vm13  ;;  %vm1667_vm13 = vcmp.eq.s32.totalorder %v22812_v9, %v23616_v57  ;;  %vm1701_vm14 = vcmp.eq.s32.totalorder %v22815_v10, %v23616_v57 }
  0x6a   :  { %20036 = vmatprep.subr.msk.bf16.mxu1 %vm20035_vm5, %v22744_v15  ;;  %vm20203_vm8 = vmpackc.low %vm1633_vm1, %vm1599_vm0  ;;  %vm1652_vm0 = vcmp.eq.s32.totalorder %v22812_v9, %v23630_v58  ;;  %vm1686_vm1 = vcmp.eq.s32.totalorder %v22815_v10, %v23630_v58 }
  0x6b   :  { %20204 = vmatprep.subr.msk.bf16.mxu0 %vm20203_vm8, %v22744_v15  ;;  %16391 = vmatmul.mubr.msk.f32.vlgmr.msra.gmra.mrb[24].mxu1 %vm2803_vm12, %v23019_v32  ;;  %vm20037_vm11 = vmpackc.low %vm1618_vm4, %vm1584_vm3  ;;  %vm1666_vm3 = vcmp.eq.s32.totalorder %v22812_v9, %v23644_v59  ;;  %vm1700_vm4 = vcmp.eq.s32.totalorder %v22815_v10, %v23644_v59 }
  0x6c   :  { %20038 = vmatpush1.bf16.msk.msra.mxu1 %vm20037_vm11, %v22744_v15  ;;  %16587 = vmatmul.mubr.msk.f32.vlgmr.msra.gmra.mrb[24].mxu0 %vm2803_vm12, %v23019_v32  ;;  %vm20205_vm15 = vmpackc.low %vm1632_vm7, %vm1598_vm6  ;;  %vm1721_vm6 = vcmp.eq.s32.totalorder %v22851_v16, %v23598_v55  ;;  %vm1755_vm7 = vcmp.eq.s32.totalorder %v22854_v17, %v23598_v55 }
  0x6d   :  { %20206 = vmatpush1.bf16.msk.msra.mxu0 %vm20205_vm15, %v22744_v15  ;;  %vm20039_vm2 = vmpackc.low %vm1687_vm10, %vm1653_vm9  ;;  %3153 = vmatprep.mubr.f32.mxu1 %v22743_v3  ;;  %vm1735_vm9 = vcmp.eq.s32.totalorder %v22851_v16, %v23616_v57  ;;  %vm1769_vm10 = vcmp.eq.s32.totalorder %v22854_v17, %v23616_v57 }
  0x6e   :  { %20040 = vmatprep.subr.msk.bf16.mxu1 %vm20039_vm2, %v22744_v15  ;;  %vm20207_vm5 = vmpackc.low %vm1701_vm14, %vm1667_vm13  ;;  %3776 = vmatprep.mubr.f32.mxu0 %v22743_v3  ;;  %vm1720_vm13 = vcmp.eq.s32.totalorder %v22851_v16, %v23630_v58  ;;  %vm1754_vm14 = vcmp.eq.s32.totalorder %v22854_v17, %v23630_v58 }
  0x6f   :  { %20208 = vmatprep.subr.msk.bf16.mxu0 %vm20207_vm5, %v22744_v15  ;;  %vm20041_vm8 = vmpackc.low %vm1686_vm1, %vm1652_vm0  ;;  %16392 = vmatmul.mubr.msk.f32.gmra.mrb[26].mxu1 %vm2803_vm12, %v23052_v33  ;;  %vm1734_vm0 = vcmp.eq.s32.totalorder %v22851_v16, %v23644_v59  ;;  %vm1768_vm1 = vcmp.eq.s32.totalorder %v22854_v17, %v23644_v59 }
  0x70   :  { %20042 = vmatpush1.bf16.msk.msra.mxu1 %vm20041_vm8, %v22744_v15  ;;  %vm20209_vm11 = vmpackc.low %vm1700_vm4, %vm1666_vm3  ;;  %16588 = vmatmul.mubr.msk.f32.gmra.mrb[26].mxu0 %vm2803_vm12, %v23052_v33  ;;  %vm1789_vm3 = vcmp.eq.s32.totalorder %v22877_v18, %v23598_v55  ;;  %vm1823_vm4 = vcmp.eq.s32.totalorder %v22880_v19, %v23598_v55 }
  0x71   :  { %20210 = vmatpush1.bf16.msk.msra.mxu0 %vm20209_vm11, %v22744_v15  ;;  %vm20043_vm15 = vmpackc.low %vm1755_vm7, %vm1721_vm6  ;;  %3159 = vmatprep.mubr.f32.mxu1 %v22743_v3  ;;  %vm1803_vm6 = vcmp.eq.s32.totalorder %v22877_v18, %v23616_v57  ;;  %vm1837_vm7 = vcmp.eq.s32.totalorder %v22880_v19, %v23616_v57 }
  0x72   :  { %20044 = vmatprep.subr.msk.bf16.mxu1 %vm20043_vm15, %v22744_v15  ;;  %vm20211_vm2 = vmpackc.low %vm1769_vm10, %vm1735_vm9  ;;  %3782 = vmatprep.mubr.f32.mxu0 %v22743_v3  ;;  %vm1788_vm9 = vcmp.eq.s32.totalorder %v22877_v18, %v23630_v58  ;;  %vm1822_vm10 = vcmp.eq.s32.totalorder %v22880_v19, %v23630_v58 }
  0x73   :  { %20212 = vmatprep.subr.msk.bf16.mxu0 %vm20211_vm2, %v22744_v15  ;;  %vm20045_vm5 = vmpackc.low %vm1754_vm14, %vm1720_vm13  ;;  %16393 = vmatmul.mubr.msk.f32.gmra.mrb[28].mxu1 %vm2803_vm12, %v23083_v34  ;;  %vm1802_vm13 = vcmp.eq.s32.totalorder %v22877_v18, %v23644_v59  ;;  %vm1836_vm14 = vcmp.eq.s32.totalorder %v22880_v19, %v23644_v59 }
  0x74   :  { %20046 = vmatpush1.bf16.msk.msra.mxu1 %vm20045_vm5, %v22744_v15  ;;  %vm20213_vm8 = vmpackc.low %vm1768_vm1, %vm1734_vm0  ;;  %16589 = vmatmul.mubr.msk.f32.gmra.mrb[28].mxu0 %vm2803_vm12, %v23083_v34  ;;  %vm1857_vm0 = vcmp.eq.s32.totalorder %v22903_v20, %v23598_v55  ;;  %vm1891_vm1 = vcmp.eq.s32.totalorder %v22906_v21, %v23598_v55 }
  0x75   :  { %20214 = vmatpush1.bf16.msk.msra.mxu0 %vm20213_vm8, %v22744_v15  ;;  %vm20047_vm11 = vmpackc.low %vm1823_vm4, %vm1789_vm3  ;;  %3165 = vmatprep.mubr.f32.mxu1 %v22743_v3  ;;  %vm1871_vm3 = vcmp.eq.s32.totalorder %v22903_v20, %v23616_v57  ;;  %vm1905_vm4 = vcmp.eq.s32.totalorder %v22906_v21, %v23616_v57 }
  0x76   :  { %20048 = vmatprep.subr.msk.bf16.mxu1 %vm20047_vm11, %v22744_v15  ;;  %vm20215_vm15 = vmpackc.low %vm1837_vm7, %vm1803_vm6  ;;  %3788 = vmatprep.mubr.f32.mxu0 %v22743_v3  ;;  %vm1856_vm6 = vcmp.eq.s32.totalorder %v22903_v20, %v23630_v58  ;;  %vm1890_vm7 = vcmp.eq.s32.totalorder %v22906_v21, %v23630_v58 }
  0x77   :  { %20216 = vmatprep.subr.msk.bf16.mxu0 %vm20215_vm15, %v22744_v15  ;;  %vm20049_vm2 = vmpackc.low %vm1822_vm10, %vm1788_vm9  ;;  %16394 = vmatmul.mubr.msk.f32.gmra.mrb[30].mxu1 %vm2803_vm12, %v23123_v35  ;;  %vm1870_vm9 = vcmp.eq.s32.totalorder %v22903_v20, %v23644_v59  ;;  %vm1904_vm10 = vcmp.eq.s32.totalorder %v22906_v21, %v23644_v59 }
  0x78   :  { %20050 = vmatpush1.bf16.msk.msra.mxu1 %vm20049_vm2, %v22744_v15  ;;  %vm20217_vm5 = vmpackc.low %vm1836_vm14, %vm1802_vm13  ;;  %16590 = vmatmul.mubr.msk.f32.gmra.mrb[30].mxu0 %vm2803_vm12, %v23123_v35  ;;  %vm1925_vm13 = vcmp.eq.s32.totalorder %v22929_v22, %v23598_v55  ;;  %vm1959_vm14 = vcmp.eq.s32.totalorder %v22932_v23, %v23598_v55  ;;  %v22567_v55 = vld [vmem:[%s31974_s0 + $0x48] sm:$0x1f] }
  0x79   :  { %20218 = vmatpush1.bf16.msk.msra.mxu0 %vm20217_vm5, %v22744_v15  ;;  %vm20051_vm8 = vmpackc.low %vm1891_vm1, %vm1857_vm0  ;;  %3325 = vmatprep.mubr.f32.mxu1 %v22743_v3  ;;  %vm1939_vm0 = vcmp.eq.s32.totalorder %v22929_v22, %v23616_v57  ;;  %vm1973_vm1 = vcmp.eq.s32.totalorder %v22932_v23, %v23616_v57  ;;  %v24723_v57 = vrot.slane %v57_v53, %v22809_v8  ;;  %v22582_v53 = vld [vmem:[%s31974_s0 + $0xc8] sm:$0x1f] }
  0x7a   :  { %20052 = vmatprep.subr.msk.bf16.mxu1 %vm20051_vm8, %v22744_v15  ;;  %vm20219_vm11 = vmpackc.low %vm1905_vm4, %vm1871_vm3  ;;  %3948 = vmatprep.mubr.f32.mxu0 %v22743_v3  ;;  %vm1924_vm3 = vcmp.eq.s32.totalorder %v22929_v22, %v23630_v58  ;;  %vm1958_vm4 = vcmp.eq.s32.totalorder %v22932_v23, %v23630_v58 }
  0x7b   :  { %20220 = vmatprep.subr.msk.bf16.mxu0 %vm20219_vm11, %v22744_v15  ;;  %vm20053_vm15 = vmpackc.low %vm1890_vm7, %vm1856_vm6  ;;  %vm1938_vm6 = vcmp.eq.s32.totalorder %v22929_v22, %v23644_v59  ;;  %vm1972_vm7 = vcmp.eq.s32.totalorder %v22932_v23, %v23644_v59  ;;  %v22569_v59 = vld [vmem:[%s31974_s0 + $0x18] sm:$0x1f] }
  0x7c   :  { %20054 = vmatpush1.bf16.msk.msra.mxu1 %vm20053_vm15, %v22744_v15  ;;  %vm20221_vm2 = vmpackc.low %vm1904_vm10, %vm1870_vm9  ;;  %vm1589_vm9 = vcmp.eq.s32.totalorder %v22792_v2, %v23799_v63  ;;  %vm1623_vm10 = vcmp.eq.s32.totalorder %v22806_v7, %v23799_v63 }
  0x7d   :  { %20222 = vmatpush1.bf16.msk.msra.mxu0 %vm20221_vm2, %v22744_v15  ;;  %vm20055_vm5 = vmpackc.low %vm1959_vm14, %vm1925_vm13  ;;  %vm1603_vm13 = vcmp.eq.s32.totalorder %v22792_v2, %v23817_v1  ;;  %vm1637_vm14 = vcmp.eq.s32.totalorder %v22806_v7, %v23817_v1 }
  0x7e   :  { %20056 = vmatprep.subr.msk.bf16.mxu1 %vm20055_vm5, %v22744_v15  ;;  %vm20223_vm8 = vmpackc.low %vm1973_vm1, %vm1939_vm0  ;;  %vm1588_vm0 = vcmp.eq.s32.totalorder %v22792_v2, %v23831_v4  ;;  %vm1622_vm1 = vcmp.eq.s32.totalorder %v22806_v7, %v23831_v4 }
  0x7f   :  { %20224 = vmatprep.subr.msk.bf16.mxu0 %vm20223_vm8, %v22744_v15  ;;  %vm20057_vm11 = vmpackc.low %vm1958_vm4, %vm1924_vm3  ;;  %vm1602_vm3 = vcmp.eq.s32.totalorder %v22792_v2, %v23845_v5  ;;  %vm1636_vm4 = vcmp.eq.s32.totalorder %v22806_v7, %v23845_v5 }
  0x80   :  { %20058 = vmatpush1.bf16.msk.msra.mxu1 %vm20057_vm11, %v22744_v15  ;;  %vm20225_vm15 = vmpackc.low %vm1972_vm7, %vm1938_vm6  ;;  %vm1657_vm6 = vcmp.eq.s32.totalorder %v22812_v9, %v23799_v63  ;;  %vm1691_vm7 = vcmp.eq.s32.totalorder %v22815_v10, %v23799_v63 }
  0x81   :  { %20226 = vmatpush1.bf16.msk.msra.mxu0 %vm20225_vm15, %v22744_v15  ;;  %vm20083_vm2 = vmpackc.low %vm1623_vm10, %vm1589_vm9  ;;  %vm1671_vm9 = vcmp.eq.s32.totalorder %v22812_v9, %v23817_v1  ;;  %vm1705_vm10 = vcmp.eq.s32.totalorder %v22815_v10, %v23817_v1 }
  0x82   :  { %20084 = vmatprep.subr.msk.bf16.mxu1 %vm20083_vm2, %v22744_v15  ;;  %vm20251_vm5 = vmpackc.low %vm1637_vm14, %vm1603_vm13  ;;  %vm1656_vm13 = vcmp.eq.s32.totalorder %v22812_v9, %v23831_v4  ;;  %vm1690_vm14 = vcmp.eq.s32.totalorder %v22815_v10, %v23831_v4 }
  0x83   :  { %20252 = vmatprep.subr.msk.bf16.mxu0 %vm20251_vm5, %v22744_v15  ;;  %16447 = vmatmul.mubr.msk.f32.vlgmr.msra.gmra.mrb[32].mxu1 %vm2803_vm12, %v23019_v32  ;;  %vm20085_vm8 = vmpackc.low %vm1622_vm1, %vm1588_vm0  ;;  %vm1670_vm0 = vcmp.eq.s32.totalorder %v22812_v9, %v23845_v5  ;;  %vm1704_vm1 = vcmp.eq.s32.totalorder %v22815_v10, %v23845_v5 }
  0x84   :  { %20086 = vmatpush1.bf16.msk.msra.mxu1 %vm20085_vm8, %v22744_v15  ;;  %16643 = vmatmul.mubr.msk.f32.vlgmr.msra.gmra.mrb[32].mxu0 %vm2803_vm12, %v23019_v32  ;;  %vm20253_vm11 = vmpackc.low %vm1636_vm4, %vm1602_vm3  ;;  %vm1725_vm3 = vcmp.eq.s32.totalorder %v22851_v16, %v23799_v63  ;;  %vm1759_vm4 = vcmp.eq.s32.totalorder %v22854_v17, %v23799_v63  ;;  %v24200_v32 = vsub.s32 0, %v22792_v2 }
  0x85   :  { %20254 = vmatpush1.bf16.msk.msra.mxu0 %vm20253_vm11, %v22744_v15  ;;  %vm20087_vm15 = vmpackc.low %vm1691_vm7, %vm1657_vm6  ;;  %3331 = vmatprep.mubr.f32.mxu1 %v22743_v3  ;;  %vm1739_vm6 = vcmp.eq.s32.totalorder %v22851_v16, %v23817_v1  ;;  %vm1773_vm7 = vcmp.eq.s32.totalorder %v22854_v17, %v23817_v1 }
  0x86   :  { %20088 = vmatprep.subr.msk.bf16.mxu1 %vm20087_vm15, %v22744_v15  ;;  %vm20255_vm2 = vmpackc.low %vm1705_vm10, %vm1671_vm9  ;;  %3954 = vmatprep.mubr.f32.mxu0 %v22743_v3  ;;  %vm1724_vm9 = vcmp.eq.s32.totalorder %v22851_v16, %v23831_v4  ;;  %vm1758_vm10 = vcmp.eq.s32.totalorder %v22854_v17, %v23831_v4  ;;  %v24291_v39 = vrot.slane %v22564_v38, %v24200_v32 }
  0x87   :  { %20256 = vmatprep.subr.msk.bf16.mxu0 %vm20255_vm2, %v22744_v15  ;;  %vm20089_vm5 = vmpackc.low %vm1690_vm14, %vm1656_vm13  ;;  %16448 = vmatmul.mubr.msk.f32.gmra.mrb[34].mxu1 %vm2803_vm12, %v23052_v33  ;;  %vm1738_vm13 = vcmp.eq.s32.totalorder %v22851_v16, %v23845_v5  ;;  %vm1772_vm14 = vcmp.eq.s32.totalorder %v22854_v17, %v23845_v5  ;;  %v24464_v44 = vrot.slane %v22565_v43, %v24200_v32 }
  0x88   :  { %20090 = vmatpush1.bf16.msk.msra.mxu1 %vm20089_vm5, %v22744_v15  ;;  %vm20257_vm8 = vmpackc.low %vm1704_vm1, %vm1670_vm0  ;;  %16644 = vmatmul.mubr.msk.f32.gmra.mrb[34].mxu0 %vm2803_vm12, %v23052_v33  ;;  %vm1793_vm0 = vcmp.eq.s32.totalorder %v22877_v18, %v23799_v63  ;;  %vm1827_vm1 = vcmp.eq.s32.totalorder %v22880_v19, %v23799_v63  ;;  %v49_v33 = vld [vmem:[%s31974_s0 + $0xb0] sm:$0x1f]  ;;  %v24495_v47 = vrot.slane %v22566_v46, %v24200_v32 }
  0x89   :  { %20258 = vmatpush1.bf16.msk.msra.mxu0 %vm20257_vm8, %v22744_v15  ;;  %vm20091_vm11 = vmpackc.low %vm1759_vm4, %vm1725_vm3  ;;  %3337 = vmatprep.mubr.f32.mxu1 %v22743_v3  ;;  %vm1807_vm3 = vcmp.eq.s32.totalorder %v22877_v18, %v23817_v1  ;;  %vm1841_vm4 = vcmp.eq.s32.totalorder %v22880_v19, %v23817_v1  ;;  %v24274_v37 = vrot.slane %v49_v33, %v22809_v8  ;;  %v22576_v33 = vld [vmem:[%s31974_s0 + $0x80] sm:$0x1f] }
  0x8a   :  { %20092 = vmatprep.subr.msk.bf16.mxu1 %vm20091_vm11, %v22744_v15  ;;  %vm20259_vm15 = vmpackc.low %vm1773_vm7, %vm1739_vm6  ;;  %3960 = vmatprep.mubr.f32.mxu0 %v22743_v3  ;;  %vm1792_vm6 = vcmp.eq.s32.totalorder %v22877_v18, %v23831_v4  ;;  %vm1826_vm7 = vcmp.eq.s32.totalorder %v22880_v19, %v23831_v4  ;;  %v24709_v56 = vrot.slane %v22567_v55, %v24200_v32  ;;  %v22583_v55 = vld [vmem:[%s31974_s0 + $0x70] sm:$0x1f] }
  0x8b   :  { %20260 = vmatprep.subr.msk.bf16.mxu0 %vm20259_vm15, %v22744_v15  ;;  %vm20093_vm2 = vmpackc.low %vm1758_vm10, %vm1724_vm9  ;;  %16449 = vmatmul.mubr.msk.f32.gmra.mrb[36].mxu1 %vm2803_vm12, %v23083_v34  ;;  %vm1806_vm9 = vcmp.eq.s32.totalorder %v22877_v18, %v23845_v5  ;;  %vm1840_vm10 = vcmp.eq.s32.totalorder %v22880_v19, %v23845_v5  ;;  %v24880_v60 = vrot.slane %v22569_v59, %v24200_v32  ;;  %v25714_v59 = vld [vmem:[%s31975_s1 + $0x8] sm:$0xff] }
  0x8c   :  { %20094 = vmatpush1.bf16.msk.msra.mxu1 %vm20093_vm2, %v22744_v15  ;;  %vm20261_vm5 = vmpackc.low %vm1772_vm14, %vm1738_vm13  ;;  %16645 = vmatmul.mubr.msk.f32.gmra.mrb[36].mxu0 %vm2803_vm12, %v23083_v34  ;;  %vm1861_vm13 = vcmp.eq.s32.totalorder %v22903_v20, %v23799_v63  ;;  %vm1895_vm14 = vcmp.eq.s32.totalorder %v22906_v21, %v23799_v63  ;;  %v24242_v34 = vrot.slane %v50_v31, %v22809_v8  ;;  %v22568_v8 = vld [vmem:[%s31974_s0 + $0x40] sm:$0x1f] }
  0x8d   :  { %20262 = vmatpush1.bf16.msk.msra.mxu0 %vm20261_vm5, %v22744_v15  ;;  %vm20095_vm8 = vmpackc.low %vm1827_vm1, %vm1793_vm0  ;;  %3343 = vmatprep.mubr.f32.mxu1 %v22743_v3  ;;  %vm1875_vm0 = vcmp.eq.s32.totalorder %v22903_v20, %v23817_v1  ;;  %vm1909_vm1 = vcmp.eq.s32.totalorder %v22906_v21, %v23817_v1  ;;  %v24740_v58 = vrot.slane %v22568_v8, %v24200_v32 }
  0x8e   :  { %20096 = vmatprep.subr.msk.bf16.mxu1 %vm20095_vm8, %v22744_v15  ;;  %vm20263_vm11 = vmpackc.low %vm1841_vm4, %vm1807_vm3  ;;  %3966 = vmatprep.mubr.f32.mxu0 %v22743_v3  ;;  %vm1860_vm3 = vcmp.eq.s32.totalorder %v22903_v20, %v23831_v4  ;;  %vm1894_vm4 = vcmp.eq.s32.totalorder %v22906_v21, %v23831_v4  ;;  %v24898_v62 = vrot.slane %v22570_v61, %v24200_v32  ;;  %v25794_v61 = vld [vmem:[%s31975_s1 + $0x18] sm:$0xff] }
  0x8f   :  { %20264 = vmatprep.subr.msk.bf16.mxu0 %vm20263_vm11, %v22744_v15  ;;  %vm20097_vm15 = vmpackc.low %vm1826_vm7, %vm1792_vm6  ;;  %16450 = vmatmul.mubr.msk.f32.gmra.mrb[38].mxu1 %vm2803_vm12, %v23123_v35  ;;  %vm1874_vm6 = vcmp.eq.s32.totalorder %v22903_v20, %v23845_v5  ;;  %vm1908_vm7 = vcmp.eq.s32.totalorder %v22906_v21, %v23845_v5 }
  0x90   :  { %20098 = vmatpush1.bf16.msk.msra.mxu1 %vm20097_vm15, %v22744_v15  ;;  %vm20265_vm2 = vmpackc.low %vm1840_vm10, %vm1806_vm9  ;;  %16646 = vmatmul.mubr.msk.f32.gmra.mrb[38].mxu0 %vm2803_vm12, %v23123_v35  ;;  %vm1929_vm9 = vcmp.eq.s32.totalorder %v22929_v22, %v23799_v63  ;;  %vm1963_vm10 = vcmp.eq.s32.totalorder %v22932_v23, %v23799_v63  ;;  %v22563_v35 = vld [vmem:[%s31974_s0 + $0x8] sm:$0x1f]  ;;  %v22571_v63 = vld [vmem:[%s31974_s0 + $0x10] sm:$0x1f] }
  0x91   :  { %20266 = vmatpush1.bf16.msk.msra.mxu0 %vm20265_vm2, %v22744_v15  ;;  %vm20099_vm5 = vmpackc.low %vm1895_vm14, %vm1861_vm13  ;;  %3503 = vmatprep.mubr.f32.mxu1 %v22743_v3  ;;  %vm1943_vm13 = vcmp.eq.s32.totalorder %v22929_v22, %v23817_v1  ;;  %vm1977_vm14 = vcmp.eq.s32.totalorder %v22932_v23, %v23817_v1  ;;  %v24260_v36 = vrot.slane %v22563_v35, %v24200_v32  ;;  %v22572_v1 = vld [vmem:[%s31974_s0 + $0x60] sm:$0x1f]  ;;  %v22577_v35 = vld [vmem:[%s31974_s0 + $0x58] sm:$0x1f] }
  0x92   :  { %20100 = vmatprep.subr.msk.bf16.mxu1 %vm20099_vm5, %v22744_v15  ;;  %vm20267_vm8 = vmpackc.low %vm1909_vm1, %vm1875_vm0  ;;  %4126 = vmatprep.mubr.f32.mxu0 %v22743_v3  ;;  %vm1928_vm0 = vcmp.eq.s32.totalorder %v22929_v22, %v23831_v4  ;;  %vm1962_vm1 = vcmp.eq.s32.totalorder %v22932_v23, %v23831_v4  ;;  %v24915_v0 = vrot.slane %v22571_v63, %v24200_v32 }
  0x93   :  { %20268 = vmatprep.subr.msk.bf16.mxu0 %vm20267_vm8, %v22744_v15  ;;  %vm20101_vm11 = vmpackc.low %vm1894_vm4, %vm1860_vm3  ;;  %vm1942_vm3 = vcmp.eq.s32.totalorder %v22929_v22, %v23845_v5  ;;  %vm1976_vm4 = vcmp.eq.s32.totalorder %v22932_v23, %v23845_v5  ;;  %v24932_v4 = vrot.slane %v22572_v1, %v24200_v32 }
  0x94   :  { %20102 = vmatpush1.bf16.msk.msra.mxu1 %vm20101_vm11, %v22744_v15  ;;  %vm20269_vm15 = vmpackc.low %vm1908_vm7, %vm1874_vm6  ;;  %vm1593_vm6 = vcmp.eq.s32.totalorder %v22792_v2, %v24000_v13  ;;  %vm1627_vm7 = vcmp.eq.s32.totalorder %v22806_v7, %v24000_v13 }
  0x95   :  { %20270 = vmatpush1.bf16.msk.msra.mxu0 %vm20269_vm15, %v22744_v15  ;;  %vm20103_vm2 = vmpackc.low %vm1963_vm10, %vm1929_vm9  ;;  %vm1607_vm9 = vcmp.eq.s32.totalorder %v22792_v2, %v24018_v24  ;;  %vm1641_vm10 = vcmp.eq.s32.totalorder %v22806_v7, %v24018_v24 }
  0x96   :  { %20104 = vmatprep.subr.msk.bf16.mxu1 %vm20103_vm2, %v22744_v15  ;;  %vm20271_vm5 = vmpackc.low %vm1977_vm14, %vm1943_vm13  ;;  %vm1592_vm13 = vcmp.eq.s32.totalorder %v22792_v2, %v24032_v25  ;;  %vm1626_vm14 = vcmp.eq.s32.totalorder %v22806_v7, %v24032_v25 }
  0x97   :  { %20272 = vmatprep.subr.msk.bf16.mxu0 %vm20271_vm5, %v22744_v15  ;;  %vm20105_vm8 = vmpackc.low %vm1962_vm1, %vm1928_vm0  ;;  %vm1606_vm0 = vcmp.eq.s32.totalorder %v22792_v2, %v24046_v26  ;;  %vm1640_vm1 = vcmp.eq.s32.totalorder %v22806_v7, %v24046_v26 }
  0x98   :  { %20106 = vmatpush1.bf16.msk.msra.mxu1 %vm20105_vm8, %v22744_v15  ;;  %vm20273_vm11 = vmpackc.low %vm1976_vm4, %vm1942_vm3  ;;  %vm1661_vm3 = vcmp.eq.s32.totalorder %v22812_v9, %v24000_v13  ;;  %vm1695_vm4 = vcmp.eq.s32.totalorder %v22815_v10, %v24000_v13 }
  0x99   :  { %20274 = vmatpush1.bf16.msk.msra.mxu0 %vm20273_vm11, %v22744_v15  ;;  %vm20131_vm15 = vmpackc.low %vm1627_vm7, %vm1593_vm6  ;;  %vm1675_vm6 = vcmp.eq.s32.totalorder %v22812_v9, %v24018_v24  ;;  %vm1709_vm7 = vcmp.eq.s32.totalorder %v22815_v10, %v24018_v24 }
  0x9a   :  { %20132 = vmatprep.subr.msk.bf16.mxu1 %vm20131_vm15, %v22744_v15  ;;  %vm20299_vm2 = vmpackc.low %vm1641_vm10, %vm1607_vm9  ;;  %vm1660_vm9 = vcmp.eq.s32.totalorder %v22812_v9, %v24032_v25  ;;  %vm1694_vm10 = vcmp.eq.s32.totalorder %v22815_v10, %v24032_v25 }
  0x9b   :  { %20300 = vmatprep.subr.msk.bf16.mxu0 %vm20299_vm2, %v22744_v15  ;;  %16503 = vmatmul.mubr.msk.f32.vlgmr.msra.gmra.mrb[40].mxu1 %vm2803_vm12, %v24077_v27  ;;  %vm20133_vm5 = vmpackc.low %vm1626_vm14, %vm1592_vm13  ;;  %vm1674_vm13 = vcmp.eq.s32.totalorder %v22812_v9, %v24046_v26  ;;  %vm1708_vm14 = vcmp.eq.s32.totalorder %v22815_v10, %v24046_v26 }
  0x9c   :  { %20134 = vmatpush1.bf16.msk.msra.mxu1 %vm20133_vm5, %v22744_v15  ;;  %16699 = vmatmul.mubr.msk.f32.vlgmr.msra.gmra.mrb[40].mxu0 %vm2803_vm12, %v24077_v27  ;;  %vm20301_vm8 = vmpackc.low %vm1640_vm1, %vm1606_vm0  ;;  %vm1729_vm0 = vcmp.eq.s32.totalorder %v22851_v16, %v24000_v13  ;;  %vm1763_vm1 = vcmp.eq.s32.totalorder %v22854_v17, %v24000_v13 }
  0x9d   :  { %20302 = vmatpush1.bf16.msk.msra.mxu0 %vm20301_vm8, %v22744_v15  ;;  %vm20135_vm11 = vmpackc.low %vm1695_vm4, %vm1661_vm3  ;;  %3509 = vmatprep.mubr.f32.mxu1 %v22743_v3  ;;  %vm1743_vm3 = vcmp.eq.s32.totalorder %v22851_v16, %v24018_v24  ;;  %vm1777_vm4 = vcmp.eq.s32.totalorder %v22854_v17, %v24018_v24 }
  0x9e   :  { %20136 = vmatprep.subr.msk.bf16.mxu1 %vm20135_vm11, %v22744_v15  ;;  %vm20303_vm15 = vmpackc.low %vm1709_vm7, %vm1675_vm6  ;;  %4132 = vmatprep.mubr.f32.mxu0 %v22743_v3  ;;  %vm1728_vm6 = vcmp.eq.s32.totalorder %v22851_v16, %v24032_v25  ;;  %vm1762_vm7 = vcmp.eq.s32.totalorder %v22854_v17, %v24032_v25 }
  0x9f   :  { %20304 = vmatprep.subr.msk.bf16.mxu0 %vm20303_vm15, %v22744_v15  ;;  %vm20137_vm2 = vmpackc.low %vm1694_vm10, %vm1660_vm9  ;;  %16504 = vmatmul.mubr.msk.f32.gmra.mrb[42].mxu1 %vm2803_vm12, %v24112_v28  ;;  %vm1742_vm9 = vcmp.eq.s32.totalorder %v22851_v16, %v24046_v26  ;;  %vm1776_vm10 = vcmp.eq.s32.totalorder %v22854_v17, %v24046_v26 }
  0xa0   :  { %20138 = vmatpush1.bf16.msk.msra.mxu1 %vm20137_vm2, %v22744_v15  ;;  %vm20305_vm5 = vmpackc.low %vm1708_vm14, %vm1674_vm13  ;;  %16700 = vmatmul.mubr.msk.f32.gmra.mrb[42].mxu0 %vm2803_vm12, %v24112_v28  ;;  %vm1797_vm13 = vcmp.eq.s32.totalorder %v22877_v18, %v24000_v13  ;;  %vm1831_vm14 = vcmp.eq.s32.totalorder %v22880_v19, %v24000_v13 }
  0xa1   :  { %20306 = vmatpush1.bf16.msk.msra.mxu0 %vm20305_vm5, %v22744_v15  ;;  %vm20139_vm8 = vmpackc.low %vm1763_vm1, %vm1729_vm0  ;;  %3515 = vmatprep.mubr.f32.mxu1 %v22743_v3  ;;  %vm1811_vm0 = vcmp.eq.s32.totalorder %v22877_v18, %v24018_v24  ;;  %vm1845_vm1 = vcmp.eq.s32.totalorder %v22880_v19, %v24018_v24 }
  0xa2   :  { %20140 = vmatprep.subr.msk.bf16.mxu1 %vm20139_vm8, %v22744_v15  ;;  %vm20307_vm11 = vmpackc.low %vm1777_vm4, %vm1743_vm3  ;;  %4138 = vmatprep.mubr.f32.mxu0 %v22743_v3  ;;  %vm1796_vm3 = vcmp.eq.s32.totalorder %v22877_v18, %v24032_v25  ;;  %vm1830_vm4 = vcmp.eq.s32.totalorder %v22880_v19, %v24032_v25 }
  0xa3   :  { %20308 = vmatprep.subr.msk.bf16.mxu0 %vm20307_vm11, %v22744_v15  ;;  %vm20141_vm15 = vmpackc.low %vm1762_vm7, %vm1728_vm6  ;;  %16505 = vmatmul.mubr.msk.f32.gmra.mrb[44].mxu1 %vm2803_vm12, %v24152_v29  ;;  %vm1810_vm6 = vcmp.eq.s32.totalorder %v22877_v18, %v24046_v26  ;;  %vm1844_vm7 = vcmp.eq.s32.totalorder %v22880_v19, %v24046_v26 }
  0xa4   :  { %20142 = vmatpush1.bf16.msk.msra.mxu1 %vm20141_vm15, %v22744_v15  ;;  %vm20309_vm2 = vmpackc.low %vm1776_vm10, %vm1742_vm9  ;;  %16701 = vmatmul.mubr.msk.f32.gmra.mrb[44].mxu0 %vm2803_vm12, %v24152_v29  ;;  %vm1865_vm9 = vcmp.eq.s32.totalorder %v22903_v20, %v24000_v13  ;;  %vm1899_vm10 = vcmp.eq.s32.totalorder %v22906_v21, %v24000_v13 }
  0xa5   :  { %20310 = vmatpush1.bf16.msk.msra.mxu0 %vm20309_vm2, %v22744_v15  ;;  %vm20143_vm5 = vmpackc.low %vm1831_vm14, %vm1797_vm13  ;;  %3521 = vmatprep.mubr.f32.mxu1 %v22743_v3  ;;  %vm1879_vm13 = vcmp.eq.s32.totalorder %v22903_v20, %v24018_v24  ;;  %vm1913_vm14 = vcmp.eq.s32.totalorder %v22906_v21, %v24018_v24 }
  0xa6   :  { %20144 = vmatprep.subr.msk.bf16.mxu1 %vm20143_vm5, %v22744_v15  ;;  %vm20311_vm8 = vmpackc.low %vm1845_vm1, %vm1811_vm0  ;;  %4144 = vmatprep.mubr.f32.mxu0 %v22743_v3  ;;  %vm1864_vm0 = vcmp.eq.s32.totalorder %v22903_v20, %v24032_v25  ;;  %vm1898_vm1 = vcmp.eq.s32.totalorder %v22906_v21, %v24032_v25 }
  0xa7   :  { %20312 = vmatprep.subr.msk.bf16.mxu0 %vm20311_vm8, %v22744_v15  ;;  %vm20145_vm11 = vmpackc.low %vm1830_vm4, %vm1796_vm3  ;;  %16506 = vmatmul.mubr.msk.f32.gmra.mrb[46].mxu1 %vm2803_vm12, %v24192_v30  ;;  %vm1878_vm3 = vcmp.eq.s32.totalorder %v22903_v20, %v24046_v26  ;;  %vm1912_vm4 = vcmp.eq.s32.totalorder %v22906_v21, %v24046_v26 }
  0xa8   :  { %20146 = vmatpush1.bf16.msk.msra.mxu1 %vm20145_vm11, %v22744_v15  ;;  %vm20313_vm15 = vmpackc.low %vm1844_vm7, %vm1810_vm6  ;;  %16702 = vmatmul.mubr.msk.f32.gmra.mrb[46].mxu0 %vm2803_vm12, %v24192_v30  ;;  %vm1933_vm6 = vcmp.eq.s32.totalorder %v22929_v22, %v24000_v13  ;;  %vm1967_vm7 = vcmp.eq.s32.totalorder %v22932_v23, %v24000_v13 }
  0xa9   :  { %20314 = vmatpush1.bf16.msk.msra.mxu0 %vm20313_vm15, %v22744_v15  ;;  %vm20147_vm2 = vmpackc.low %vm1899_vm10, %vm1865_vm9  ;;  %3681 = vmatprep.mubr.f32.mxu1 %v22743_v3  ;;  %vm1947_vm9 = vcmp.eq.s32.totalorder %v22929_v22, %v24018_v24  ;;  %vm1981_vm10 = vcmp.eq.s32.totalorder %v22932_v23, %v24018_v24 }
  0xaa   :  { %20148 = vmatprep.subr.msk.bf16.mxu1 %vm20147_vm2, %v22744_v15  ;;  %vm20315_vm5 = vmpackc.low %vm1913_vm14, %vm1879_vm13  ;;  %4304 = vmatprep.mubr.f32.mxu0 %v22743_v3  ;;  %vm1932_vm13 = vcmp.eq.s32.totalorder %v22929_v22, %v24032_v25  ;;  %vm1966_vm14 = vcmp.eq.s32.totalorder %v22932_v23, %v24032_v25 }
  0xab   :  { %20316 = vmatprep.subr.msk.bf16.mxu0 %vm20315_vm5, %v22744_v15  ;;  %vm20149_vm8 = vmpackc.low %vm1898_vm1, %vm1864_vm0  ;;  %vm1946_vm0 = vcmp.eq.s32.totalorder %v22929_v22, %v24046_v26  ;;  %vm1980_vm1 = vcmp.eq.s32.totalorder %v22932_v23, %v24046_v26  ;;  %v22573_v26 = vld [vmem:[%s31974_s0 + $0x38] sm:$0x1f] }
  0xac   :  { %20150 = vmatpush1.bf16.msk.msra.mxu1 %vm20149_vm8, %v22744_v15  ;;  %vm20317_vm11 = vmpackc.low %vm1912_vm4, %vm1878_vm3  ;;  %vm1597_vm3 = vcmp.eq.s32.totalorder %v22792_v2, %v24242_v34  ;;  %vm1631_vm4 = vcmp.eq.s32.totalorder %v22806_v7, %v24242_v34 }
  0xad   :  { %20318 = vmatpush1.bf16.msk.msra.mxu0 %vm20317_vm11, %v22744_v15  ;;  %vm20151_vm15 = vmpackc.low %vm1967_vm7, %vm1933_vm6  ;;  %vm211_vm6 = vcmp.eq.s32.totalorder %v22792_v2, %v24260_v36  ;;  %vm245_vm7 = vcmp.eq.s32.totalorder %v22806_v7, %v24260_v36 }
  0xae   :  { %20152 = vmatprep.subr.msk.bf16.mxu1 %vm20151_vm15, %v22744_v15  ;;  %vm20319_vm2 = vmpackc.low %vm1981_vm10, %vm1947_vm9  ;;  %vm1596_vm9 = vcmp.eq.s32.totalorder %v22792_v2, %v24274_v37  ;;  %vm1630_vm10 = vcmp.eq.s32.totalorder %v22806_v7, %v24274_v37 }
  0xaf   :  { %20320 = vmatprep.subr.msk.bf16.mxu0 %vm20319_vm2, %v22744_v15  ;;  %vm20153_vm5 = vmpackc.low %vm1966_vm14, %vm1932_vm13  ;;  %vm210_vm13 = vcmp.eq.s32.totalorder %v22792_v2, %v24291_v39  ;;  %vm244_vm14 = vcmp.eq.s32.totalorder %v22806_v7, %v24291_v39 }
  0xb0   :  { %20154 = vmatpush1.bf16.msk.msra.mxu1 %vm20153_vm5, %v22744_v15  ;;  %vm20321_vm8 = vmpackc.low %vm1980_vm1, %vm1946_vm0  ;;  %vm1665_vm0 = vcmp.eq.s32.totalorder %v22812_v9, %v24242_v34  ;;  %vm1699_vm1 = vcmp.eq.s32.totalorder %v22815_v10, %v24242_v34 }
  0xb1   :  { %20322 = vmatpush1.bf16.msk.msra.mxu0 %vm20321_vm8, %v22744_v15  ;;  %vm20179_vm11 = vmpackc.low %vm1631_vm4, %vm1597_vm3  ;;  %vm279_vm3 = vcmp.eq.s32.totalorder %v22812_v9, %v24260_v36  ;;  %vm313_vm4 = vcmp.eq.s32.totalorder %v22815_v10, %v24260_v36 }
  0xb2   :  { %20180 = vmatprep.subr.msk.bf16.mxu1 %vm20179_vm11, %v22744_v15  ;;  %vm20323_vm15 = vmpackc.low %vm245_vm7, %vm211_vm6  ;;  %vm1664_vm6 = vcmp.eq.s32.totalorder %v22812_v9, %v24274_v37  ;;  %vm1698_vm7 = vcmp.eq.s32.totalorder %v22815_v10, %v24274_v37 }
  0xb3   :  { %20324 = vmatprep.subr.msk.bf16.mxu0 %vm20323_vm15, %v22744_v15  ;;  %16559 = vmatmul.mubr.msk.f32.vlgmr.msra.gmra.mrb[48].mxu1 %vm2803_vm12, %v24077_v27  ;;  %vm20181_vm2 = vmpackc.low %vm1630_vm10, %vm1596_vm9  ;;  %vm278_vm9 = vcmp.eq.s32.totalorder %v22812_v9, %v24291_v39  ;;  %vm312_vm10 = vcmp.eq.s32.totalorder %v22815_v10, %v24291_v39 }
  0xb4   :  { %20182 = vmatpush1.bf16.msk.msra.mxu1 %vm20181_vm2, %v22744_v15  ;;  %16755 = vmatmul.mubr.msk.f32.vlgmr.msra.gmra.mrb[48].mxu0 %vm2803_vm12, %v24077_v27  ;;  %vm20325_vm5 = vmpackc.low %vm244_vm14, %vm210_vm13  ;;  %vm1733_vm13 = vcmp.eq.s32.totalorder %v22851_v16, %v24242_v34  ;;  %vm1767_vm14 = vcmp.eq.s32.totalorder %v22854_v17, %v24242_v34 }
  0xb5   :  { %20326 = vmatpush1.bf16.msk.msra.mxu0 %vm20325_vm5, %v22744_v15  ;;  %vm20183_vm8 = vmpackc.low %vm1699_vm1, %vm1665_vm0  ;;  %3687 = vmatprep.mubr.f32.mxu1 %v22743_v3  ;;  %vm347_vm0 = vcmp.eq.s32.totalorder %v22851_v16, %v24260_v36  ;;  %vm381_vm1 = vcmp.eq.s32.totalorder %v22854_v17, %v24260_v36 }
  0xb6   :  { %20184 = vmatprep.subr.msk.bf16.mxu1 %vm20183_vm8, %v22744_v15  ;;  %vm20327_vm11 = vmpackc.low %vm313_vm4, %vm279_vm3  ;;  %4310 = vmatprep.mubr.f32.mxu0 %v22743_v3  ;;  %vm1732_vm3 = vcmp.eq.s32.totalorder %v22851_v16, %v24274_v37  ;;  %vm1766_vm4 = vcmp.eq.s32.totalorder %v22854_v17, %v24274_v37 }
  0xb7   :  { %20328 = vmatprep.subr.msk.bf16.mxu0 %vm20327_vm11, %v22744_v15  ;;  %vm20185_vm15 = vmpackc.low %vm1698_vm7, %vm1664_vm6  ;;  %16560 = vmatmul.mubr.msk.f32.gmra.mrb[50].mxu1 %vm2803_vm12, %v24112_v28  ;;  %vm346_vm6 = vcmp.eq.s32.totalorder %v22851_v16, %v24291_v39  ;;  %vm380_vm7 = vcmp.eq.s32.totalorder %v22854_v17, %v24291_v39 }
  0xb8   :  { %20186 = vmatpush1.bf16.msk.msra.mxu1 %vm20185_vm15, %v22744_v15  ;;  %vm20329_vm2 = vmpackc.low %vm312_vm10, %vm278_vm9  ;;  %16756 = vmatmul.mubr.msk.f32.gmra.mrb[50].mxu0 %vm2803_vm12, %v24112_v28  ;;  %vm1801_vm9 = vcmp.eq.s32.totalorder %v22877_v18, %v24242_v34  ;;  %vm1835_vm10 = vcmp.eq.s32.totalorder %v22880_v19, %v24242_v34 }
  0xb9   :  { %20330 = vmatpush1.bf16.msk.msra.mxu0 %vm20329_vm2, %v22744_v15  ;;  %vm20187_vm5 = vmpackc.low %vm1767_vm14, %vm1733_vm13  ;;  %3693 = vmatprep.mubr.f32.mxu1 %v22743_v3  ;;  %vm415_vm13 = vcmp.eq.s32.totalorder %v22877_v18, %v24260_v36  ;;  %vm449_vm14 = vcmp.eq.s32.totalorder %v22880_v19, %v24260_v36 }
  0xba   :  { %20188 = vmatprep.subr.msk.bf16.mxu1 %vm20187_vm5, %v22744_v15  ;;  %vm20331_vm8 = vmpackc.low %vm381_vm1, %vm347_vm0  ;;  %4316 = vmatprep.mubr.f32.mxu0 %v22743_v3  ;;  %vm1800_vm0 = vcmp.eq.s32.totalorder %v22877_v18, %v24274_v37  ;;  %vm1834_vm1 = vcmp.eq.s32.totalorder %v22880_v19, %v24274_v37 }
  0xbb   :  { %20332 = vmatprep.subr.msk.bf16.mxu0 %vm20331_vm8, %v22744_v15  ;;  %vm20189_vm11 = vmpackc.low %vm1766_vm4, %vm1732_vm3  ;;  %16561 = vmatmul.mubr.msk.f32.gmra.mrb[52].mxu1 %vm2803_vm12, %v24152_v29  ;;  %vm414_vm3 = vcmp.eq.s32.totalorder %v22877_v18, %v24291_v39  ;;  %vm448_vm4 = vcmp.eq.s32.totalorder %v22880_v19, %v24291_v39 }
  0xbc   :  { %20190 = vmatpush1.bf16.msk.msra.mxu1 %vm20189_vm11, %v22744_v15  ;;  %vm20333_vm15 = vmpackc.low %vm380_vm7, %vm346_vm6  ;;  %16757 = vmatmul.mubr.msk.f32.gmra.mrb[52].mxu0 %vm2803_vm12, %v24152_v29  ;;  %vm1869_vm6 = vcmp.eq.s32.totalorder %v22903_v20, %v24242_v34  ;;  %vm1903_vm7 = vcmp.eq.s32.totalorder %v22906_v21, %v24242_v34 }
  0xbd   :  { %20334 = vmatpush1.bf16.msk.msra.mxu0 %vm20333_vm15, %v22744_v15  ;;  %vm20191_vm2 = vmpackc.low %vm1835_vm10, %vm1801_vm9  ;;  %3699 = vmatprep.mubr.f32.mxu1 %v22743_v3  ;;  %vm483_vm9 = vcmp.eq.s32.totalorder %v22903_v20, %v24260_v36  ;;  %vm517_vm10 = vcmp.eq.s32.totalorder %v22906_v21, %v24260_v36 }
  0xbe   :  { %20192 = vmatprep.subr.msk.bf16.mxu1 %vm20191_vm2, %v22744_v15  ;;  %vm20335_vm5 = vmpackc.low %vm449_vm14, %vm415_vm13  ;;  %4322 = vmatprep.mubr.f32.mxu0 %v22743_v3  ;;  %vm1868_vm13 = vcmp.eq.s32.totalorder %v22903_v20, %v24274_v37  ;;  %vm1902_vm14 = vcmp.eq.s32.totalorder %v22906_v21, %v24274_v37 }
  0xbf   :  { %20336 = vmatprep.subr.msk.bf16.mxu0 %vm20335_vm5, %v22744_v15  ;;  %vm20193_vm8 = vmpackc.low %vm1834_vm1, %vm1800_vm0  ;;  %16562 = vmatmul.mubr.msk.f32.gmra.mrb[54].mxu1 %vm2803_vm12, %v24192_v30  ;;  %vm482_vm0 = vcmp.eq.s32.totalorder %v22903_v20, %v24291_v39  ;;  %vm516_vm1 = vcmp.eq.s32.totalorder %v22906_v21, %v24291_v39 }
  0xc0   :  { %20194 = vmatpush1.bf16.msk.msra.mxu1 %vm20193_vm8, %v22744_v15  ;;  %vm20337_vm11 = vmpackc.low %vm448_vm4, %vm414_vm3  ;;  %16758 = vmatmul.mubr.msk.f32.gmra.mrb[54].mxu0 %vm2803_vm12, %v24192_v30  ;;  %vm1937_vm3 = vcmp.eq.s32.totalorder %v22929_v22, %v24242_v34  ;;  %vm1971_vm4 = vcmp.eq.s32.totalorder %v22932_v23, %v24242_v34  ;;  %v25188_v34 = vrot.slane %v22576_v33, %v24200_v32 }
  0xc1   :  { %20338 = vmatpush1.bf16.msk.msra.mxu0 %vm20337_vm11, %v22744_v15  ;;  %vm20195_vm15 = vmpackc.low %vm1903_vm7, %vm1869_vm6  ;;  %3859 = vmatprep.mubr.f32.mxu1 %v22743_v3  ;;  %vm551_vm6 = vcmp.eq.s32.totalorder %v22929_v22, %v24260_v36  ;;  %vm585_vm7 = vcmp.eq.s32.totalorder %v22932_v23, %v24260_v36  ;;  %v25331_v36 = vrot.slane %v22577_v35, %v24200_v32 }
  0xc2   :  { %20196 = vmatprep.subr.msk.bf16.mxu1 %vm20195_vm15, %v22744_v15  ;;  %vm20339_vm2 = vmpackc.low %vm517_vm10, %vm483_vm9  ;;  %4405 = vmatprep.mubr.f32.mxu0 %v22743_v3  ;;  %vm1936_vm9 = vcmp.eq.s32.totalorder %v22929_v22, %v24274_v37  ;;  %vm1970_vm10 = vcmp.eq.s32.totalorder %v22932_v23, %v24274_v37  ;;  %v22578_v37 = vld [vmem:[%s31974_s0 + $0xa8] sm:$0x1f] }
  0xc3   :  { %20340 = vmatprep.subr.msk.bf16.mxu0 %vm20339_vm2, %v22744_v15  ;;  %vm20197_vm5 = vmpackc.low %vm1902_vm14, %vm1868_vm13  ;;  %vm550_vm13 = vcmp.eq.s32.totalorder %v22929_v22, %v24291_v39  ;;  %vm584_vm14 = vcmp.eq.s32.totalorder %v22932_v23, %v24291_v39  ;;  %v25349_v38 = vrot.slane %v22578_v37, %v24200_v32  ;;  %v22579_v39 = vld [vmem:[%s31974_s0 + $0x50] sm:$0x1f] }
  0xc4   :  { %20198 = vmatpush1.bf16.msk.msra.mxu1 %vm20197_vm5, %v22744_v15  ;;  %vm20341_vm8 = vmpackc.low %vm516_vm1, %vm482_vm0  ;;  %vm1601_vm0 = vcmp.eq.s32.totalorder %v22792_v2, %v24446_v42  ;;  %vm1635_vm1 = vcmp.eq.s32.totalorder %v22806_v7, %v24446_v42  ;;  %v25366_v40 = vrot.slane %v22579_v39, %v24200_v32  ;;  %v22597_v39 = vld [vmem:[%s31974_s0 + $0xd8] sm:$0x1f] }
  0xc5   :  { %20342 = vmatpush1.bf16.msk.msra.mxu0 %vm20341_vm8, %v22744_v15  ;;  %vm20199_vm11 = vmpackc.low %vm1971_vm4, %vm1937_vm3  ;;  %vm215_vm3 = vcmp.eq.s32.totalorder %v22792_v2, %v24464_v44  ;;  %vm249_vm4 = vcmp.eq.s32.totalorder %v22806_v7, %v24464_v44 }
  0xc6   :  { %20200 = vmatprep.subr.msk.bf16.mxu1 %vm20199_vm11, %v22744_v15  ;;  %vm20343_vm15 = vmpackc.low %vm585_vm7, %vm551_vm6  ;;  %vm1600_vm6 = vcmp.eq.s32.totalorder %v22792_v2, %v24478_v45  ;;  %vm1634_vm7 = vcmp.eq.s32.totalorder %v22806_v7, %v24478_v45 }
  0xc7   :  { %20344 = vmatprep.subr.msk.bf16.mxu0 %vm20343_vm15, %v22744_v15  ;;  %vm20201_vm2 = vmpackc.low %vm1970_vm10, %vm1936_vm9  ;;  %vm214_vm9 = vcmp.eq.s32.totalorder %v22792_v2, %v24495_v47  ;;  %vm248_vm10 = vcmp.eq.s32.totalorder %v22806_v7, %v24495_v47 }
  0xc8   :  { %20202 = vmatpush1.bf16.msk.msra.mxu1 %vm20201_vm2, %v22744_v15  ;;  %vm20345_vm5 = vmpackc.low %vm584_vm14, %vm550_vm13  ;;  %vm1669_vm13 = vcmp.eq.s32.totalorder %v22812_v9, %v24446_v42  ;;  %vm1703_vm14 = vcmp.eq.s32.totalorder %v22815_v10, %v24446_v42 }
  0xc9   :  { %20346 = vmatpush1.bf16.msk.msra.mxu0 %vm20345_vm5, %v22744_v15  ;;  %vm20227_vm8 = vmpackc.low %vm1635_vm1, %vm1601_vm0  ;;  %vm283_vm0 = vcmp.eq.s32.totalorder %v22812_v9, %v24464_v44  ;;  %vm317_vm1 = vcmp.eq.s32.totalorder %v22815_v10, %v24464_v44 }
  0xca   :  { %20228 = vmatprep.subr.msk.bf16.mxu1 %vm20227_vm8, %v22744_v15  ;;  %vm20371_vm11 = vmpackc.low %vm249_vm4, %vm215_vm3  ;;  %vm1668_vm3 = vcmp.eq.s32.totalorder %v22812_v9, %v24478_v45  ;;  %vm1702_vm4 = vcmp.eq.s32.totalorder %v22815_v10, %v24478_v45 }
  0xcb   :  { %20372 = vmatprep.subr.msk.bf16.mxu0 %vm20371_vm11, %v22744_v15  ;;  %16615 = vmatmul.mubr.msk.f32.vlgmr.msra.gmra.mrb[56].mxu1 %vm2803_vm12, %v24077_v27  ;;  %vm20229_vm15 = vmpackc.low %vm1634_vm7, %vm1600_vm6  ;;  %vm282_vm6 = vcmp.eq.s32.totalorder %v22812_v9, %v24495_v47  ;;  %vm316_vm7 = vcmp.eq.s32.totalorder %v22815_v10, %v24495_v47 }
  0xcc   :  { %20230 = vmatpush1.bf16.msk.msra.mxu1 %vm20229_vm15, %v22744_v15  ;;  %16783 = vmatmul.mubr.msk.f32.vlgmr.msra.gmra.mrb[56].mxu0 %vm2803_vm12, %v24522_v48  ;;  %vm20373_vm2 = vmpackc.low %vm248_vm10, %vm214_vm9  ;;  %vm1737_vm9 = vcmp.eq.s32.totalorder %v22851_v16, %v24446_v42  ;;  %vm1771_vm10 = vcmp.eq.s32.totalorder %v22854_v17, %v24446_v42 }
  0xcd   :  { %20374 = vmatpush1.bf16.msk.msra.mxu0 %vm20373_vm2, %v22744_v15  ;;  %vm20231_vm5 = vmpackc.low %vm1703_vm14, %vm1669_vm13  ;;  %3865 = vmatprep.mubr.f32.mxu1 %v22743_v3  ;;  %vm351_vm13 = vcmp.eq.s32.totalorder %v22851_v16, %v24464_v44  ;;  %vm385_vm14 = vcmp.eq.s32.totalorder %v22854_v17, %v24464_v44 }
  0xce   :  { %20232 = vmatprep.subr.msk.bf16.mxu1 %vm20231_vm5, %v22744_v15  ;;  %vm20375_vm8 = vmpackc.low %vm317_vm1, %vm283_vm0  ;;  %4411 = vmatprep.mubr.f32.mxu0 %v22743_v3  ;;  %vm1736_vm0 = vcmp.eq.s32.totalorder %v22851_v16, %v24478_v45  ;;  %vm1770_vm1 = vcmp.eq.s32.totalorder %v22854_v17, %v24478_v45 }
  0xcf   :  { %20376 = vmatprep.subr.msk.bf16.mxu0 %vm20375_vm8, %v22744_v15  ;;  %vm20233_vm11 = vmpackc.low %vm1702_vm4, %vm1668_vm3  ;;  %16616 = vmatmul.mubr.msk.f32.gmra.mrb[58].mxu1 %vm2803_vm12, %v24112_v28  ;;  %vm350_vm3 = vcmp.eq.s32.totalorder %v22851_v16, %v24495_v47  ;;  %vm384_vm4 = vcmp.eq.s32.totalorder %v22854_v17, %v24495_v47 }
  0xd0   :  { %20234 = vmatpush1.bf16.msk.msra.mxu1 %vm20233_vm11, %v22744_v15  ;;  %vm20377_vm15 = vmpackc.low %vm316_vm7, %vm282_vm6  ;;  %16784 = vmatmul.mubr.msk.f32.gmra.mrb[58].mxu0 %vm2803_vm12, %v24556_v49  ;;  %vm1805_vm6 = vcmp.eq.s32.totalorder %v22877_v18, %v24446_v42  ;;  %vm1839_vm7 = vcmp.eq.s32.totalorder %v22880_v19, %v24446_v42 }
  0xd1   :  { %20378 = vmatpush1.bf16.msk.msra.mxu0 %vm20377_vm15, %v22744_v15  ;;  %vm20235_vm2 = vmpackc.low %vm1771_vm10, %vm1737_vm9  ;;  %3871 = vmatprep.mubr.f32.mxu1 %v22743_v3  ;;  %vm419_vm9 = vcmp.eq.s32.totalorder %v22877_v18, %v24464_v44  ;;  %vm453_vm10 = vcmp.eq.s32.totalorder %v22880_v19, %v24464_v44 }
  0xd2   :  { %20236 = vmatprep.subr.msk.bf16.mxu1 %vm20235_vm2, %v22744_v15  ;;  %vm20379_vm5 = vmpackc.low %vm385_vm14, %vm351_vm13  ;;  %4417 = vmatprep.mubr.f32.mxu0 %v22743_v3  ;;  %vm1804_vm13 = vcmp.eq.s32.totalorder %v22877_v18, %v24478_v45  ;;  %vm1838_vm14 = vcmp.eq.s32.totalorder %v22880_v19, %v24478_v45 }
  0xd3   :  { %20380 = vmatprep.subr.msk.bf16.mxu0 %vm20379_vm5, %v22744_v15  ;;  %vm20237_vm8 = vmpackc.low %vm1770_vm1, %vm1736_vm0  ;;  %16617 = vmatmul.mubr.msk.f32.gmra.mrb[60].mxu1 %vm2803_vm12, %v24152_v29  ;;  %vm418_vm0 = vcmp.eq.s32.totalorder %v22877_v18, %v24495_v47  ;;  %vm452_vm1 = vcmp.eq.s32.totalorder %v22880_v19, %v24495_v47 }
  0xd4   :  { %20238 = vmatpush1.bf16.msk.msra.mxu1 %vm20237_vm8, %v22744_v15  ;;  %vm20381_vm11 = vmpackc.low %vm384_vm4, %vm350_vm3  ;;  %16785 = vmatmul.mubr.msk.f32.gmra.mrb[60].mxu0 %vm2803_vm12, %v24590_v50  ;;  %vm1873_vm3 = vcmp.eq.s32.totalorder %v22903_v20, %v24446_v42  ;;  %vm1907_vm4 = vcmp.eq.s32.totalorder %v22906_v21, %v24446_v42 }
  0xd5   :  { %20382 = vmatpush1.bf16.msk.msra.mxu0 %vm20381_vm11, %v22744_v15  ;;  %vm20239_vm15 = vmpackc.low %vm1839_vm7, %vm1805_vm6  ;;  %3877 = vmatprep.mubr.f32.mxu1 %v22743_v3  ;;  %vm487_vm6 = vcmp.eq.s32.totalorder %v22903_v20, %v24464_v44  ;;  %vm521_vm7 = vcmp.eq.s32.totalorder %v22906_v21, %v24464_v44 }
  0xd6   :  { %20240 = vmatprep.subr.msk.bf16.mxu1 %vm20239_vm15, %v22744_v15  ;;  %vm20383_vm2 = vmpackc.low %vm453_vm10, %vm419_vm9  ;;  %4423 = vmatprep.mubr.f32.mxu0 %v22743_v3  ;;  %vm1872_vm9 = vcmp.eq.s32.totalorder %v22903_v20, %v24478_v45  ;;  %vm1906_vm10 = vcmp.eq.s32.totalorder %v22906_v21, %v24478_v45 }
  0xd7   :  { %20384 = vmatprep.subr.msk.bf16.mxu0 %vm20383_vm2, %v22744_v15  ;;  %vm20241_vm5 = vmpackc.low %vm1838_vm14, %vm1804_vm13  ;;  %16618 = vmatmul.mubr.msk.f32.gmra.mrb[62].mxu1 %vm2803_vm12, %v24192_v30  ;;  %vm486_vm13 = vcmp.eq.s32.totalorder %v22903_v20, %v24495_v47  ;;  %vm520_vm14 = vcmp.eq.s32.totalorder %v22906_v21, %v24495_v47 }
  0xd8   :  { %20242 = vmatpush1.bf16.msk.msra.mxu1 %vm20241_vm5, %v22744_v15  ;;  %vm20385_vm8 = vmpackc.low %vm452_vm1, %vm418_vm0  ;;  %16786 = vmatmul.mubr.msk.f32.gmra.mrb[62].mxu0 %vm2803_vm12, %v24630_v51  ;;  %vm1941_vm0 = vcmp.eq.s32.totalorder %v22929_v22, %v24446_v42  ;;  %vm1975_vm1 = vcmp.eq.s32.totalorder %v22932_v23, %v24446_v42  ;;  %v25383_v42 = vrot.slane %v22580_v41, %v24200_v32  ;;  %v22598_v41 = vld [vmem:[%s31974_s0 + $0x8] sm:$0x1f] }
  0xd9   :  { %20386 = vmatpush1.bf16.msk.msra.mxu0 %vm20385_vm8, %v22744_v15  ;;  %vm20243_vm11 = vmpackc.low %vm1907_vm4, %vm1873_vm3  ;;  %4037 = vmatprep.mubr.f32.mxu1 %v22743_v3  ;;  %vm555_vm3 = vcmp.eq.s32.totalorder %v22929_v22, %v24464_v44  ;;  %vm589_vm4 = vcmp.eq.s32.totalorder %v22932_v23, %v24464_v44 }
  0xda   :  { %20244 = vmatprep.subr.msk.bf16.mxu1 %vm20243_vm11, %v22744_v15  ;;  %vm20387_vm15 = vmpackc.low %vm521_vm7, %vm487_vm6  ;;  %4583 = vmatprep.mubr.f32.mxu0 %v22743_v3  ;;  %vm1940_vm6 = vcmp.eq.s32.totalorder %v22929_v22, %v24478_v45  ;;  %vm1974_vm7 = vcmp.eq.s32.totalorder %v22932_v23, %v24478_v45 }
  0xdb   :  { %20388 = vmatprep.subr.msk.bf16.mxu0 %vm20387_vm15, %v22744_v15  ;;  %vm20245_vm2 = vmpackc.low %vm1906_vm10, %vm1872_vm9  ;;  %vm554_vm9 = vcmp.eq.s32.totalorder %v22929_v22, %v24495_v47  ;;  %vm588_vm10 = vcmp.eq.s32.totalorder %v22932_v23, %v24495_v47 }
  0xdc   :  { %20246 = vmatpush1.bf16.msk.msra.mxu1 %vm20245_vm2, %v22744_v15  ;;  %vm20389_vm5 = vmpackc.low %vm520_vm14, %vm486_vm13  ;;  %vm1605_vm13 = vcmp.eq.s32.totalorder %v22792_v2, %v24691_v54  ;;  %vm1639_vm14 = vcmp.eq.s32.totalorder %v22806_v7, %v24691_v54 }
  0xdd   :  { %20390 = vmatpush1.bf16.msk.msra.mxu0 %vm20389_vm5, %v22744_v15  ;;  %vm20247_vm8 = vmpackc.low %vm1975_vm1, %vm1941_vm0  ;;  %vm219_vm0 = vcmp.eq.s32.totalorder %v22792_v2, %v24709_v56  ;;  %vm253_vm1 = vcmp.eq.s32.totalorder %v22806_v7, %v24709_v56 }
  0xde   :  { %20248 = vmatprep.subr.msk.bf16.mxu1 %vm20247_vm8, %v22744_v15  ;;  %vm20391_vm11 = vmpackc.low %vm589_vm4, %vm555_vm3  ;;  %vm1604_vm3 = vcmp.eq.s32.totalorder %v22792_v2, %v24723_v57  ;;  %vm1638_vm4 = vcmp.eq.s32.totalorder %v22806_v7, %v24723_v57 }
  0xdf   :  { %20392 = vmatprep.subr.msk.bf16.mxu0 %vm20391_vm11, %v22744_v15  ;;  %vm20249_vm15 = vmpackc.low %vm1974_vm7, %vm1940_vm6  ;;  %vm218_vm6 = vcmp.eq.s32.totalorder %v22792_v2, %v24740_v58  ;;  %vm252_vm7 = vcmp.eq.s32.totalorder %v22806_v7, %v24740_v58 }
  0xe0   :  { %20250 = vmatpush1.bf16.msk.msra.mxu1 %vm20249_vm15, %v22744_v15  ;;  %vm20393_vm2 = vmpackc.low %vm588_vm10, %vm554_vm9  ;;  %vm1673_vm9 = vcmp.eq.s32.totalorder %v22812_v9, %v24691_v54  ;;  %vm1707_vm10 = vcmp.eq.s32.totalorder %v22815_v10, %v24691_v54 }
  0xe1   :  { %20394 = vmatpush1.bf16.msk.msra.mxu0 %vm20393_vm2, %v22744_v15  ;;  %vm20275_vm5 = vmpackc.low %vm1639_vm14, %vm1605_vm13  ;;  %vm287_vm13 = vcmp.eq.s32.totalorder %v22812_v9, %v24709_v56  ;;  %vm321_vm14 = vcmp.eq.s32.totalorder %v22815_v10, %v24709_v56 }
  0xe2   :  { %20276 = vmatprep.subr.msk.bf16.mxu1 %vm20275_vm5, %v22744_v15  ;;  %vm20419_vm8 = vmpackc.low %vm253_vm1, %vm219_vm0  ;;  %vm1672_vm0 = vcmp.eq.s32.totalorder %v22812_v9, %v24723_v57  ;;  %vm1706_vm1 = vcmp.eq.s32.totalorder %v22815_v10, %v24723_v57 }
  0xe3   :  { %20420 = vmatprep.subr.msk.bf16.mxu0 %vm20419_vm8, %v22744_v15  ;;  %16671 = vmatmul.mubr.msk.f32.vlgmr.msra.gmra.mrb[64].mxu1 %vm2803_vm12, %v24077_v27  ;;  %vm20277_vm11 = vmpackc.low %vm1638_vm4, %vm1604_vm3  ;;  %vm286_vm3 = vcmp.eq.s32.totalorder %v22812_v9, %v24740_v58  ;;  %vm320_vm4 = vcmp.eq.s32.totalorder %v22815_v10, %v24740_v58 }
  0xe4   :  { %20278 = vmatpush1.bf16.msk.msra.mxu1 %vm20277_vm11, %v22744_v15  ;;  %16839 = vmatmul.mubr.msk.f32.vlgmr.msra.gmra.mrb[64].mxu0 %vm2803_vm12, %v24522_v48  ;;  %vm20421_vm15 = vmpackc.low %vm252_vm7, %vm218_vm6  ;;  %vm1741_vm6 = vcmp.eq.s32.totalorder %v22851_v16, %v24691_v54  ;;  %vm1775_vm7 = vcmp.eq.s32.totalorder %v22854_v17, %v24691_v54 }
  0xe5   :  { %20422 = vmatpush1.bf16.msk.msra.mxu0 %vm20421_vm15, %v22744_v15  ;;  %vm20279_vm2 = vmpackc.low %vm1707_vm10, %vm1673_vm9  ;;  %4043 = vmatprep.mubr.f32.mxu1 %v22743_v3  ;;  %vm355_vm9 = vcmp.eq.s32.totalorder %v22851_v16, %v24709_v56  ;;  %vm389_vm10 = vcmp.eq.s32.totalorder %v22854_v17, %v24709_v56 }
  0xe6   :  { %20280 = vmatprep.subr.msk.bf16.mxu1 %vm20279_vm2, %v22744_v15  ;;  %vm20423_vm5 = vmpackc.low %vm321_vm14, %vm287_vm13  ;;  %4589 = vmatprep.mubr.f32.mxu0 %v22743_v3  ;;  %vm1740_vm13 = vcmp.eq.s32.totalorder %v22851_v16, %v24723_v57  ;;  %vm1774_vm14 = vcmp.eq.s32.totalorder %v22854_v17, %v24723_v57 }
  0xe7   :  { %20424 = vmatprep.subr.msk.bf16.mxu0 %vm20423_vm5, %v22744_v15  ;;  %vm20281_vm8 = vmpackc.low %vm1706_vm1, %vm1672_vm0  ;;  %16672 = vmatmul.mubr.msk.f32.gmra.mrb[66].mxu1 %vm2803_vm12, %v24112_v28  ;;  %vm354_vm0 = vcmp.eq.s32.totalorder %v22851_v16, %v24740_v58  ;;  %vm388_vm1 = vcmp.eq.s32.totalorder %v22854_v17, %v24740_v58 }
  0xe8   :  { %20282 = vmatpush1.bf16.msk.msra.mxu1 %vm20281_vm8, %v22744_v15  ;;  %vm20425_vm11 = vmpackc.low %vm320_vm4, %vm286_vm3  ;;  %16840 = vmatmul.mubr.msk.f32.gmra.mrb[66].mxu0 %vm2803_vm12, %v24556_v49  ;;  %vm1809_vm3 = vcmp.eq.s32.totalorder %v22877_v18, %v24691_v54  ;;  %vm1843_vm4 = vcmp.eq.s32.totalorder %v22880_v19, %v24691_v54 }
  0xe9   :  { %20426 = vmatpush1.bf16.msk.msra.mxu0 %vm20425_vm11, %v22744_v15  ;;  %vm20283_vm15 = vmpackc.low %vm1775_vm7, %vm1741_vm6  ;;  %4049 = vmatprep.mubr.f32.mxu1 %v22743_v3  ;;  %vm423_vm6 = vcmp.eq.s32.totalorder %v22877_v18, %v24709_v56  ;;  %vm457_vm7 = vcmp.eq.s32.totalorder %v22880_v19, %v24709_v56 }
  0xea   :  { %20284 = vmatprep.subr.msk.bf16.mxu1 %vm20283_vm15, %v22744_v15  ;;  %vm20427_vm2 = vmpackc.low %vm389_vm10, %vm355_vm9  ;;  %4595 = vmatprep.mubr.f32.mxu0 %v22743_v3  ;;  %vm1808_vm9 = vcmp.eq.s32.totalorder %v22877_v18, %v24723_v57  ;;  %vm1842_vm10 = vcmp.eq.s32.totalorder %v22880_v19, %v24723_v57 }
  0xeb   :  { %20428 = vmatprep.subr.msk.bf16.mxu0 %vm20427_vm2, %v22744_v15  ;;  %vm20285_vm5 = vmpackc.low %vm1774_vm14, %vm1740_vm13  ;;  %16673 = vmatmul.mubr.msk.f32.gmra.mrb[68].mxu1 %vm2803_vm12, %v24152_v29  ;;  %vm422_vm13 = vcmp.eq.s32.totalorder %v22877_v18, %v24740_v58  ;;  %vm456_vm14 = vcmp.eq.s32.totalorder %v22880_v19, %v24740_v58 }
  0xec   :  { %20286 = vmatpush1.bf16.msk.msra.mxu1 %vm20285_vm5, %v22744_v15  ;;  %vm20429_vm8 = vmpackc.low %vm388_vm1, %vm354_vm0  ;;  %16841 = vmatmul.mubr.msk.f32.gmra.mrb[68].mxu0 %vm2803_vm12, %v24590_v50  ;;  %vm1877_vm0 = vcmp.eq.s32.totalorder %v22903_v20, %v24691_v54  ;;  %vm1911_vm1 = vcmp.eq.s32.totalorder %v22906_v21, %v24691_v54 }
  0xed   :  { %20430 = vmatpush1.bf16.msk.msra.mxu0 %vm20429_vm8, %v22744_v15  ;;  %vm20287_vm11 = vmpackc.low %vm1843_vm4, %vm1809_vm3  ;;  %4055 = vmatprep.mubr.f32.mxu1 %v22743_v3  ;;  %vm491_vm3 = vcmp.eq.s32.totalorder %v22903_v20, %v24709_v56  ;;  %vm525_vm4 = vcmp.eq.s32.totalorder %v22906_v21, %v24709_v56 }
  0xee   :  { %20288 = vmatprep.subr.msk.bf16.mxu1 %vm20287_vm11, %v22744_v15  ;;  %vm20431_vm15 = vmpackc.low %vm457_vm7, %vm423_vm6  ;;  %4601 = vmatprep.mubr.f32.mxu0 %v22743_v3  ;;  %vm1876_vm6 = vcmp.eq.s32.totalorder %v22903_v20, %v24723_v57  ;;  %vm1910_vm7 = vcmp.eq.s32.totalorder %v22906_v21, %v24723_v57 }
  0xef   :  { %20432 = vmatprep.subr.msk.bf16.mxu0 %vm20431_vm15, %v22744_v15  ;;  %vm20289_vm2 = vmpackc.low %vm1842_vm10, %vm1808_vm9  ;;  %16674 = vmatmul.mubr.msk.f32.gmra.mrb[70].mxu1 %vm2803_vm12, %v24192_v30  ;;  %vm490_vm9 = vcmp.eq.s32.totalorder %v22903_v20, %v24740_v58  ;;  %vm524_vm10 = vcmp.eq.s32.totalorder %v22906_v21, %v24740_v58 }
  0xf0   :  { %20290 = vmatpush1.bf16.msk.msra.mxu1 %vm20289_vm2, %v22744_v15  ;;  %vm20433_vm5 = vmpackc.low %vm456_vm14, %vm422_vm13  ;;  %16842 = vmatmul.mubr.msk.f32.gmra.mrb[70].mxu0 %vm2803_vm12, %v24630_v51  ;;  %vm1945_vm13 = vcmp.eq.s32.totalorder %v22929_v22, %v24691_v54  ;;  %vm1979_vm14 = vcmp.eq.s32.totalorder %v22932_v23, %v24691_v54  ;;  %v25605_v54 = vrot.slane %v22582_v53, %v24200_v32  ;;  %v22600_v53 = vld [vmem:[%s31974_s0] sm:$0x1f] }
  0xf1   :  { %20434 = vmatpush1.bf16.msk.msra.mxu0 %vm20433_vm5, %v22744_v15  ;;  %vm20291_vm8 = vmpackc.low %vm1911_vm1, %vm1877_vm0  ;;  %4215 = vmatprep.mubr.f32.mxu1 %v22743_v3  ;;  %vm559_vm0 = vcmp.eq.s32.totalorder %v22929_v22, %v24709_v56  ;;  %vm593_vm1 = vcmp.eq.s32.totalorder %v22932_v23, %v24709_v56  ;;  %v25622_v56 = vrot.slane %v22583_v55, %v24200_v32  ;;  %v22601_v55 = vld [vmem:[%s31974_s0 + $0xf8] sm:$0x1f] }
  0xf2   :  { %20292 = vmatprep.subr.msk.bf16.mxu1 %vm20291_vm8, %v22744_v15  ;;  %vm20435_vm11 = vmpackc.low %vm525_vm4, %vm491_vm3  ;;  %4761 = vmatprep.mubr.f32.mxu0 %v22743_v3  ;;  %vm1944_vm3 = vcmp.eq.s32.totalorder %v22929_v22, %v24723_v57  ;;  %vm1978_vm4 = vcmp.eq.s32.totalorder %v22932_v23, %v24723_v57  ;;  %v22584_v57 = vld [vmem:[%s31974_s0 + $0xc0] sm:$0x1f] }
  0xf3   :  { %20436 = vmatprep.subr.msk.bf16.mxu0 %vm20435_vm11, %v22744_v15  ;;  %vm20293_vm15 = vmpackc.low %vm1910_vm7, %vm1876_vm6  ;;  %vm558_vm6 = vcmp.eq.s32.totalorder %v22929_v22, %v24740_v58  ;;  %vm592_vm7 = vcmp.eq.s32.totalorder %v22932_v23, %v24740_v58  ;;  %v25639_v8 = vrot.slane %v22584_v57, %v24200_v32  ;;  %v25679_v58 = vld [vmem:[%s31975_s1] sm:$0xff]  ;;  %v22602_v57 = vld [vmem:[%s31974_s0 + $0x28] sm:$0x1f] }
  0xf4   :  { %20294 = vmatpush1.bf16.msk.msra.mxu1 %vm20293_vm15, %v22744_v15  ;;  %vm20437_vm2 = vmpackc.low %vm524_vm10, %vm490_vm9  ;;  %vm213_vm9 = vcmp.eq.s32.totalorder %v22792_v2, %v24880_v60  ;;  %vm247_vm10 = vcmp.eq.s32.totalorder %v22806_v7, %v24880_v60 }
  0xf5   :  { %20438 = vmatpush1.bf16.msk.msra.mxu0 %vm20437_vm2, %v22744_v15  ;;  %vm20295_vm5 = vmpackc.low %vm1979_vm14, %vm1945_vm13  ;;  %vm223_vm13 = vcmp.eq.s32.totalorder %v22792_v2, %v24898_v62  ;;  %vm257_vm14 = vcmp.eq.s32.totalorder %v22806_v7, %v24898_v62 }
  0xf6   :  { %20296 = vmatprep.subr.msk.bf16.mxu1 %vm20295_vm5, %v22744_v15  ;;  %vm20439_vm8 = vmpackc.low %vm593_vm1, %vm559_vm0  ;;  %v24945_v5 = vpop.f32.mrb[0].mxu1  ;;  %vm212_vm0 = vcmp.eq.s32.totalorder %v22792_v2, %v24915_v0  ;;  %vm246_vm1 = vcmp.eq.s32.totalorder %v22806_v7, %v24915_v0 }
  0xf7   :  { %20440 = vmatprep.subr.msk.bf16.mxu0 %vm20439_vm8, %v22744_v15  ;;  %vm20297_vm11 = vmpackc.low %vm1978_vm4, %vm1944_vm3  ;;  %v24958_v6 = vpop.f32.mrb[1].mxu1  ;;  %vm222_vm3 = vcmp.eq.s32.totalorder %v22792_v2, %v24932_v4  ;;  %vm256_vm4 = vcmp.eq.s32.totalorder %v22806_v7, %v24932_v4 }
  0xf8   :  { %20298 = vmatpush1.bf16.msk.msra.mxu1 %vm20297_vm11, %v22744_v15  ;;  %vm20441_vm15 = vmpackc.low %vm592_vm7, %vm558_vm6  ;;  %vm281_vm6 = vcmp.eq.s32.totalorder %v22812_v9, %v24880_v60  ;;  %vm315_vm7 = vcmp.eq.s32.totalorder %v22815_v10, %v24880_v60 }
  0xf9   :  { %20442 = vmatpush1.bf16.msk.msra.mxu0 %vm20441_vm15, %v22744_v15  ;;  %vm20347_vm2 = vmpackc.low %vm247_vm10, %vm213_vm9  ;;  %vm291_vm9 = vcmp.eq.s32.totalorder %v22812_v9, %v24898_v62  ;;  %vm325_vm10 = vcmp.eq.s32.totalorder %v22815_v10, %v24898_v62 }
  0xfa   :  { %20348 = vmatprep.subr.msk.bf16.mxu1 %vm20347_vm2, %v22744_v15  ;;  %vm20467_vm5 = vmpackc.low %vm257_vm14, %vm223_vm13  ;;  %v24978_v11 = vpop.f32.mrb[2].mxu1  ;;  %vm280_vm13 = vcmp.eq.s32.totalorder %v22812_v9, %v24915_v0  ;;  %vm314_vm14 = vcmp.eq.s32.totalorder %v22815_v10, %v24915_v0 }
  0xfb   :  { %20468 = vmatprep.subr.msk.bf16.mxu0 %vm20467_vm5, %v22744_v15  ;;  %16727 = vmatmul.mubr.msk.f32.vlgmr.msra.gmra.mrb[72].mxu1 %vm2803_vm12, %v24077_v27  ;;  %vm20349_vm8 = vmpackc.low %vm246_vm1, %vm212_vm0  ;;  %v24987_v12 = vpop.f32.mrb[3].mxu1  ;;  %vm290_vm0 = vcmp.eq.s32.totalorder %v22812_v9, %v24932_v4  ;;  %vm324_vm1 = vcmp.eq.s32.totalorder %v22815_v10, %v24932_v4  ;;  %v25136_v27 = vrot.slane %v22573_v26, %v24200_v32 }
  0xfc   :  { %20350 = vmatpush1.bf16.msk.msra.mxu1 %vm20349_vm8, %v22744_v15  ;;  %16895 = vmatmul.mubr.msk.f32.vlgmr.msra.gmra.mrb[0].mxu0 %vm2803_vm12, %v24522_v48  ;;  %vm20469_vm11 = vmpackc.low %vm256_vm4, %vm222_vm3  ;;  %vm349_vm3 = vcmp.eq.s32.totalorder %v22851_v16, %v24880_v60  ;;  %vm383_vm4 = vcmp.eq.s32.totalorder %v22854_v17, %v24880_v60 }
  0xfd   :  { %20470 = vmatpush1.bf16.msk.msra.mxu0 %vm20469_vm11, %v22744_v15  ;;  %vm20351_vm15 = vmpackc.low %vm315_vm7, %vm281_vm6  ;;  %4221 = vmatprep.mubr.f32.mxu1 %v22743_v3  ;;  %vm359_vm6 = vcmp.eq.s32.totalorder %v22851_v16, %v24898_v62  ;;  %vm393_vm7 = vcmp.eq.s32.totalorder %v22854_v17, %v24898_v62 }
  0xfe   :  { %20352 = vmatprep.subr.msk.bf16.mxu1 %vm20351_vm15, %v22744_v15  ;;  %vm20471_vm2 = vmpackc.low %vm325_vm10, %vm291_vm9  ;;  %4767 = vmatprep.mubr.f32.mxu0 %v22743_v3  ;;  %v25014_v13 = vpop.f32.mrb[4].mxu1  ;;  %vm348_vm9 = vcmp.eq.s32.totalorder %v22851_v16, %v24915_v0  ;;  %vm382_vm10 = vcmp.eq.s32.totalorder %v22854_v17, %v24915_v0 }
  0xff   :  { %20472 = vmatprep.subr.msk.bf16.mxu0 %vm20471_vm2, %v22744_v15  ;;  %vm20353_vm5 = vmpackc.low %vm314_vm14, %vm280_vm13  ;;  %16728 = vmatmul.mubr.msk.f32.gmra.mrb[74].mxu1 %vm2803_vm12, %v24112_v28  ;;  %v25023_v14 = vpop.f32.mrb[5].mxu1  ;;  %vm358_vm13 = vcmp.eq.s32.totalorder %v22851_v16, %v24932_v4  ;;  %vm392_vm14 = vcmp.eq.s32.totalorder %v22854_v17, %v24932_v4  ;;  %v22574_v28 = vld [vmem:[%s31974_s0 + $0x88] sm:$0x1f] }
 0x100   :  { %20354 = vmatpush1.bf16.msk.msra.mxu1 %vm20353_vm5, %v22744_v15  ;;  %vm20473_vm8 = vmpackc.low %vm324_vm1, %vm290_vm0  ;;  %16896 = vmatmul.mubr.msk.f32.gmra.mrb[2].mxu0 %vm2803_vm12, %v24556_v49  ;;  %vm417_vm0 = vcmp.eq.s32.totalorder %v22877_v18, %v24880_v60  ;;  %vm451_vm1 = vcmp.eq.s32.totalorder %v22880_v19, %v24880_v60 }
 0x101   :  { %20474 = vmatpush1.bf16.msk.msra.mxu0 %vm20473_vm8, %v22744_v15  ;;  %vm20355_vm11 = vmpackc.low %vm383_vm4, %vm349_vm3  ;;  %4227 = vmatprep.mubr.f32.mxu1 %v22743_v3  ;;  %vm427_vm3 = vcmp.eq.s32.totalorder %v22877_v18, %v24898_v62  ;;  %vm461_vm4 = vcmp.eq.s32.totalorder %v22880_v19, %v24898_v62 }
 0x102   :  { %20356 = vmatprep.subr.msk.bf16.mxu1 %vm20355_vm11, %v22744_v15  ;;  %vm20475_vm15 = vmpackc.low %vm393_vm7, %vm359_vm6  ;;  %4773 = vmatprep.mubr.f32.mxu0 %v22743_v3  ;;  %v25059_v24 = vpop.f32.mrb[6].mxu1  ;;  %vm416_vm6 = vcmp.eq.s32.totalorder %v22877_v18, %v24915_v0  ;;  %vm450_vm7 = vcmp.eq.s32.totalorder %v22880_v19, %v24915_v0 }
 0x103   :  { %20476 = vmatprep.subr.msk.bf16.mxu0 %vm20475_vm15, %v22744_v15  ;;  %vm20357_vm2 = vmpackc.low %vm382_vm10, %vm348_vm9  ;;  %16729 = vmatmul.mubr.msk.f32.gmra.mrb[76].mxu1 %vm2803_vm12, %v24152_v29  ;;  %v25071_v25 = vpop.f32.mrb[7].mxu1  ;;  %vm426_vm9 = vcmp.eq.s32.totalorder %v22877_v18, %v24932_v4  ;;  %vm460_vm10 = vcmp.eq.s32.totalorder %v22880_v19, %v24932_v4  ;;  %v25154_v29 = vrot.slane %v22574_v28, %v24200_v32 }
 0x104   :  { %20358 = vmatpush1.bf16.msk.msra.mxu1 %vm20357_vm2, %v22744_v15  ;;  %vm20477_vm5 = vmpackc.low %vm392_vm14, %vm358_vm13  ;;  %16897 = vmatmul.mubr.msk.f32.gmra.mrb[4].mxu0 %vm2803_vm12, %v24590_v50  ;;  %vm485_vm13 = vcmp.eq.s32.totalorder %v22903_v20, %v24880_v60  ;;  %vm519_vm14 = vcmp.eq.s32.totalorder %v22906_v21, %v24880_v60 }
 0x105   :  { %20478 = vmatpush1.bf16.msk.msra.mxu0 %vm20477_vm5, %v22744_v15  ;;  %vm20359_vm8 = vmpackc.low %vm451_vm1, %vm417_vm0  ;;  %4233 = vmatprep.mubr.f32.mxu1 %v22743_v3  ;;  %vm495_vm0 = vcmp.eq.s32.totalorder %v22903_v20, %v24898_v62  ;;  %vm529_vm1 = vcmp.eq.s32.totalorder %v22906_v21, %v24898_v62 }
 0x106   :  { %20360 = vmatprep.subr.msk.bf16.mxu1 %vm20359_vm8, %v22744_v15  ;;  %vm20479_vm11 = vmpackc.low %vm461_vm4, %vm427_vm3  ;;  %4779 = vmatprep.mubr.f32.mxu0 %v22743_v3  ;;  %vm484_vm3 = vcmp.eq.s32.totalorder %v22903_v20, %v24915_v0  ;;  %vm518_vm4 = vcmp.eq.s32.totalorder %v22906_v21, %v24915_v0 }
 0x107   :  { %20480 = vmatprep.subr.msk.bf16.mxu0 %vm20479_vm11, %v22744_v15  ;;  %vm20361_vm15 = vmpackc.low %vm450_vm7, %vm416_vm6  ;;  %16730 = vmatmul.mubr.msk.f32.gmra.mrb[78].mxu1 %vm2803_vm12, %v24192_v30  ;;  %vm494_vm6 = vcmp.eq.s32.totalorder %v22903_v20, %v24932_v4  ;;  %vm528_vm7 = vcmp.eq.s32.totalorder %v22906_v21, %v24932_v4  ;;  %v22575_v30 = vld [vmem:[%s31974_s0 + $0x30] sm:$0x1f] }
 0x108   :  { %20362 = vmatpush1.bf16.msk.msra.mxu1 %vm20361_vm15, %v22744_v15  ;;  %vm20481_vm2 = vmpackc.low %vm460_vm10, %vm426_vm9  ;;  %16898 = vmatmul.mubr.msk.f32.gmra.mrb[6].mxu0 %vm2803_vm12, %v24630_v51  ;;  %vm553_vm9 = vcmp.eq.s32.totalorder %v22929_v22, %v24880_v60  ;;  %vm587_vm10 = vcmp.eq.s32.totalorder %v22932_v23, %v24880_v60  ;;  %v25171_v31 = vrot.slane %v22575_v30, %v24200_v32  ;;  %v25754_v60 = vld [vmem:[%s31975_s1 + $0x10] sm:$0xff] }
 0x109   :  { %20482 = vmatpush1.bf16.msk.msra.mxu0 %vm20481_vm2, %v22744_v15  ;;  %vm20363_vm5 = vmpackc.low %vm519_vm14, %vm485_vm13  ;;  %4494 = vmatprep.mubr.f32.mxu1 %v22743_v3  ;;  %vm563_vm13 = vcmp.eq.s32.totalorder %v22929_v22, %v24898_v62  ;;  %vm597_vm14 = vcmp.eq.s32.totalorder %v22932_v23, %v24898_v62  ;;  %v22589_v62 = vld [vmem:[%s31974_s0 + $0x98] sm:$0x1f] }
 0x10a   :  { %20364 = vmatprep.subr.msk.bf16.mxu1 %vm20363_vm5, %v22744_v15  ;;  %vm20483_vm8 = vmpackc.low %vm529_vm1, %vm495_vm0  ;;  %4939 = vmatprep.mubr.f32.mxu0 %v22743_v3  ;;  %vm552_vm0 = vcmp.eq.s32.totalorder %v22929_v22, %v24915_v0  ;;  %vm586_vm1 = vcmp.eq.s32.totalorder %v22932_v23, %v24915_v0  ;;  %v25829_v63 = vrot.slane %v22589_v62, %v24200_v32  ;;  %v22590_v0 = vld [vmem:[%s31974_s0 + $0xe8] sm:$0x1f]  ;;  %v22603_v62 = vld [vmem:[%s31974_s0 + $0xf0] sm:$0x1f] }
 0x10b   :  { %20484 = vmatprep.subr.msk.bf16.mxu0 %vm20483_vm8, %v22744_v15  ;;  %vm20365_vm11 = vmpackc.low %vm518_vm4, %vm484_vm3  ;;  %vm562_vm3 = vcmp.eq.s32.totalorder %v22929_v22, %v24932_v4  ;;  %vm596_vm4 = vcmp.eq.s32.totalorder %v22932_v23, %v24932_v4  ;;  %v25847_v1 = vrot.slane %v22590_v0, %v24200_v32  ;;  %v22591_v4 = vld [vmem:[%s31974_s0 + $0x90] sm:$0x1f] }
 0x10c   :  { %20366 = vmatpush1.bf16.msk.msra.mxu1 %vm20365_vm11, %v22744_v15  ;;  %vm20485_vm15 = vmpackc.low %vm528_vm7, %vm494_vm6  ;;  %vm217_vm6 = vcmp.eq.s32.totalorder %v22792_v2, %v25136_v27  ;;  %vm251_vm7 = vcmp.eq.s32.totalorder %v22806_v7, %v25136_v27  ;;  %v25864_v26 = vrot.slane %v22591_v4, %v24200_v32 }
 0x10d   :  { %20486 = vmatpush1.bf16.msk.msra.mxu0 %vm20485_vm15, %v22744_v15  ;;  %vm20367_vm2 = vmpackc.low %vm587_vm10, %vm553_vm9  ;;  %vm227_vm9 = vcmp.eq.s32.totalorder %v22792_v2, %v25154_v29  ;;  %vm261_vm10 = vcmp.eq.s32.totalorder %v22806_v7, %v25154_v29 }
 0x10e   :  { %20368 = vmatprep.subr.msk.bf16.mxu1 %vm20367_vm2, %v22744_v15  ;;  %vm20487_vm5 = vmpackc.low %vm597_vm14, %vm563_vm13  ;;  %vm216_vm13 = vcmp.eq.s32.totalorder %v22792_v2, %v25171_v31  ;;  %vm250_vm14 = vcmp.eq.s32.totalorder %v22806_v7, %v25171_v31 }
 0x10f   :  { %20488 = vmatprep.subr.msk.bf16.mxu0 %vm20487_vm5, %v22744_v15  ;;  %vm20369_vm8 = vmpackc.low %vm586_vm1, %vm552_vm0  ;;  %vm226_vm0 = vcmp.eq.s32.totalorder %v22792_v2, %v25188_v34  ;;  %vm260_vm1 = vcmp.eq.s32.totalorder %v22806_v7, %v25188_v34 }
 0x110   :  { %20370 = vmatpush1.bf16.msk.msra.mxu1 %vm20369_vm8, %v22744_v15  ;;  %vm20489_vm11 = vmpackc.low %vm596_vm4, %vm562_vm3  ;;  %vm285_vm3 = vcmp.eq.s32.totalorder %v22812_v9, %v25136_v27  ;;  %vm319_vm4 = vcmp.eq.s32.totalorder %v22815_v10, %v25136_v27 }
 0x111   :  { %20490 = vmatpush1.bf16.msk.msra.mxu0 %vm20489_vm11, %v22744_v15  ;;  %vm20395_vm15 = vmpackc.low %vm251_vm7, %vm217_vm6  ;;  %vm295_vm6 = vcmp.eq.s32.totalorder %v22812_v9, %v25154_v29  ;;  %vm329_vm7 = vcmp.eq.s32.totalorder %v22815_v10, %v25154_v29 }
 0x112   :  { %20396 = vmatprep.subr.msk.bf16.mxu1 %vm20395_vm15, %v22744_v15  ;;  %vm20515_vm2 = vmpackc.low %vm261_vm10, %vm227_vm9  ;;  %vm284_vm9 = vcmp.eq.s32.totalorder %v22812_v9, %v25171_v31  ;;  %vm318_vm10 = vcmp.eq.s32.totalorder %v22815_v10, %v25171_v31 }
 0x113   :  { %20516 = vmatprep.subr.msk.bf16.mxu0 %vm20515_vm2, %v22744_v15  ;;  %16811 = vmatmul.mubr.msk.f32.vlgmr.msra.gmra.mrb[8].mxu1 %vm2803_vm12, %v24522_v48  ;;  %vm20397_vm5 = vmpackc.low %vm250_vm14, %vm216_vm13  ;;  %vm294_vm13 = vcmp.eq.s32.totalorder %v22812_v9, %v25188_v34  ;;  %vm328_vm14 = vcmp.eq.s32.totalorder %v22815_v10, %v25188_v34 }
 0x114   :  { %20398 = vmatpush1.bf16.msk.msra.mxu1 %vm20397_vm5, %v22744_v15  ;;  %16951 = vmatmul.mubr.msk.f32.vlgmr.msra.gmra.mrb[8].mxu0 %vm2803_vm12, %v24522_v48  ;;  %vm20517_vm8 = vmpackc.low %vm260_vm1, %vm226_vm0  ;;  %vm353_vm0 = vcmp.eq.s32.totalorder %v22851_v16, %v25136_v27  ;;  %vm387_vm1 = vcmp.eq.s32.totalorder %v22854_v17, %v25136_v27 }
 0x115   :  { %20518 = vmatpush1.bf16.msk.msra.mxu0 %vm20517_vm8, %v22744_v15  ;;  %vm20399_vm11 = vmpackc.low %vm319_vm4, %vm285_vm3  ;;  %4500 = vmatprep.mubr.f32.mxu1 %v22743_v3  ;;  %vm363_vm3 = vcmp.eq.s32.totalorder %v22851_v16, %v25154_v29  ;;  %vm397_vm4 = vcmp.eq.s32.totalorder %v22854_v17, %v25154_v29 }
 0x116   :  { %20400 = vmatprep.subr.msk.bf16.mxu1 %vm20399_vm11, %v22744_v15  ;;  %vm20519_vm15 = vmpackc.low %vm329_vm7, %vm295_vm6  ;;  %4945 = vmatprep.mubr.f32.mxu0 %v22743_v3  ;;  %vm352_vm6 = vcmp.eq.s32.totalorder %v22851_v16, %v25171_v31  ;;  %vm386_vm7 = vcmp.eq.s32.totalorder %v22854_v17, %v25171_v31 }
 0x117   :  { %20520 = vmatprep.subr.msk.bf16.mxu0 %vm20519_vm15, %v22744_v15  ;;  %vm20401_vm2 = vmpackc.low %vm318_vm10, %vm284_vm9  ;;  %16812 = vmatmul.mubr.msk.f32.gmra.mrb[10].mxu1 %vm2803_vm12, %v24556_v49  ;;  %vm362_vm9 = vcmp.eq.s32.totalorder %v22851_v16, %v25188_v34  ;;  %vm396_vm10 = vcmp.eq.s32.totalorder %v22854_v17, %v25188_v34 }
 0x118   :  { %20402 = vmatpush1.bf16.msk.msra.mxu1 %vm20401_vm2, %v22744_v15  ;;  %vm20521_vm5 = vmpackc.low %vm328_vm14, %vm294_vm13  ;;  %16952 = vmatmul.mubr.msk.f32.gmra.mrb[10].mxu0 %vm2803_vm12, %v24556_v49  ;;  %vm421_vm13 = vcmp.eq.s32.totalorder %v22877_v18, %v25136_v27  ;;  %vm455_vm14 = vcmp.eq.s32.totalorder %v22880_v19, %v25136_v27 }
 0x119   :  { %20522 = vmatpush1.bf16.msk.msra.mxu0 %vm20521_vm5, %v22744_v15  ;;  %vm20403_vm8 = vmpackc.low %vm387_vm1, %vm353_vm0  ;;  %4506 = vmatprep.mubr.f32.mxu1 %v22743_v3  ;;  %vm431_vm0 = vcmp.eq.s32.totalorder %v22877_v18, %v25154_v29  ;;  %vm465_vm1 = vcmp.eq.s32.totalorder %v22880_v19, %v25154_v29 }
 0x11a   :  { %20404 = vmatprep.subr.msk.bf16.mxu1 %vm20403_vm8, %v22744_v15  ;;  %vm20523_vm11 = vmpackc.low %vm397_vm4, %vm363_vm3  ;;  %4951 = vmatprep.mubr.f32.mxu0 %v22743_v3  ;;  %vm420_vm3 = vcmp.eq.s32.totalorder %v22877_v18, %v25171_v31  ;;  %vm454_vm4 = vcmp.eq.s32.totalorder %v22880_v19, %v25171_v31 }
 0x11b   :  { %20524 = vmatprep.subr.msk.bf16.mxu0 %vm20523_vm11, %v22744_v15  ;;  %vm20405_vm15 = vmpackc.low %vm386_vm7, %vm352_vm6  ;;  %16813 = vmatmul.mubr.msk.f32.gmra.mrb[12].mxu1 %vm2803_vm12, %v24590_v50  ;;  %vm430_vm6 = vcmp.eq.s32.totalorder %v22877_v18, %v25188_v34  ;;  %vm464_vm7 = vcmp.eq.s32.totalorder %v22880_v19, %v25188_v34 }
 0x11c   :  { %20406 = vmatpush1.bf16.msk.msra.mxu1 %vm20405_vm15, %v22744_v15  ;;  %vm20525_vm2 = vmpackc.low %vm396_vm10, %vm362_vm9  ;;  %16953 = vmatmul.mubr.msk.f32.gmra.mrb[12].mxu0 %vm2803_vm12, %v24590_v50  ;;  %vm489_vm9 = vcmp.eq.s32.totalorder %v22903_v20, %v25136_v27  ;;  %vm523_vm10 = vcmp.eq.s32.totalorder %v22906_v21, %v25136_v27 }
 0x11d   :  { %20526 = vmatpush1.bf16.msk.msra.mxu0 %vm20525_vm2, %v22744_v15  ;;  %vm20407_vm5 = vmpackc.low %vm455_vm14, %vm421_vm13  ;;  %4512 = vmatprep.mubr.f32.mxu1 %v22743_v3  ;;  %vm499_vm13 = vcmp.eq.s32.totalorder %v22903_v20, %v25154_v29  ;;  %vm533_vm14 = vcmp.eq.s32.totalorder %v22906_v21, %v25154_v29 }
 0x11e   :  { %20408 = vmatprep.subr.msk.bf16.mxu1 %vm20407_vm5, %v22744_v15  ;;  %vm20527_vm8 = vmpackc.low %vm465_vm1, %vm431_vm0  ;;  %4957 = vmatprep.mubr.f32.mxu0 %v22743_v3  ;;  %vm488_vm0 = vcmp.eq.s32.totalorder %v22903_v20, %v25171_v31  ;;  %vm522_vm1 = vcmp.eq.s32.totalorder %v22906_v21, %v25171_v31 }
 0x11f   :  { %20528 = vmatprep.subr.msk.bf16.mxu0 %vm20527_vm8, %v22744_v15  ;;  %vm20409_vm11 = vmpackc.low %vm454_vm4, %vm420_vm3  ;;  %16814 = vmatmul.mubr.msk.f32.gmra.mrb[14].mxu1 %vm2803_vm12, %v24630_v51  ;;  %vm498_vm3 = vcmp.eq.s32.totalorder %v22903_v20, %v25188_v34  ;;  %vm532_vm4 = vcmp.eq.s32.totalorder %v22906_v21, %v25188_v34 }
 0x120   :  { %20410 = vmatpush1.bf16.msk.msra.mxu1 %vm20409_vm11, %v22744_v15  ;;  %vm20529_vm15 = vmpackc.low %vm464_vm7, %vm430_vm6  ;;  %16954 = vmatmul.mubr.msk.f32.gmra.mrb[14].mxu0 %vm2803_vm12, %v24630_v51  ;;  %vm557_vm6 = vcmp.eq.s32.totalorder %v22929_v22, %v25136_v27  ;;  %vm591_vm7 = vcmp.eq.s32.totalorder %v22932_v23, %v25136_v27  ;;  %v22592_v27 = vld [vmem:[%s31974_s0 + $0xe0] sm:$0x1f] }
 0x121   :  { %20530 = vmatpush1.bf16.msk.msra.mxu0 %vm20529_vm15, %v22744_v15  ;;  %vm20411_vm2 = vmpackc.low %vm523_vm10, %vm489_vm9  ;;  %4672 = vmatprep.mubr.f32.mxu1 %v22743_v3  ;;  %vm567_vm9 = vcmp.eq.s32.totalorder %v22929_v22, %v25154_v29  ;;  %vm601_vm10 = vcmp.eq.s32.totalorder %v22932_v23, %v25154_v29  ;;  %v25881_v28 = vrot.slane %v22592_v27, %v24200_v32  ;;  %v22593_v29 = vld [vmem:[%s31974_s0 + $0xb8] sm:$0x1f] }
 0x122   :  { %20412 = vmatprep.subr.msk.bf16.mxu1 %vm20411_vm2, %v22744_v15  ;;  %vm20531_vm5 = vmpackc.low %vm533_vm14, %vm499_vm13  ;;  %5117 = vmatprep.mubr.f32.mxu0 %v22743_v3  ;;  %vm556_vm13 = vcmp.eq.s32.totalorder %v22929_v22, %v25171_v31  ;;  %vm590_vm14 = vcmp.eq.s32.totalorder %v22932_v23, %v25171_v31  ;;  %v26024_v30 = vrot.slane %v22593_v29, %v24200_v32  ;;  %v22594_v31 = vld [vmem:[%s31974_s0 + $0x108] sm:$0x1f] }
 0x123   :  { %20532 = vmatprep.subr.msk.bf16.mxu0 %vm20531_vm5, %v22744_v15  ;;  %vm20413_vm8 = vmpackc.low %vm522_vm1, %vm488_vm0  ;;  %vm566_vm0 = vcmp.eq.s32.totalorder %v22929_v22, %v25188_v34  ;;  %vm600_vm1 = vcmp.eq.s32.totalorder %v22932_v23, %v25188_v34  ;;  %v26042_v33 = vrot.slane %v22594_v31, %v24200_v32  ;;  %v22595_v34 = vld [vmem:[%s31974_s0 + $0xb0] sm:$0x1f] }
 0x124   :  { %20414 = vmatpush1.bf16.msk.msra.mxu1 %vm20413_vm8, %v22744_v15  ;;  %vm20533_vm11 = vmpackc.low %vm532_vm4, %vm498_vm3  ;;  %vm221_vm3 = vcmp.eq.s32.totalorder %v22792_v2, %v25331_v36  ;;  %vm255_vm4 = vcmp.eq.s32.totalorder %v22806_v7, %v25331_v36  ;;  %v26059_v35 = vrot.slane %v22595_v34, %v24200_v32  ;;  %v22610_v34 = vld [vmem:[%s31975_s1 + $0x8] sm:$0xff] }
 0x125   :  { %20534 = vmatpush1.bf16.msk.msra.mxu0 %vm20533_vm11, %v22744_v15  ;;  %vm20415_vm15 = vmpackc.low %vm591_vm7, %vm557_vm6  ;;  %vm231_vm6 = vcmp.eq.s32.totalorder %v22792_v2, %v25349_v38  ;;  %vm265_vm7 = vcmp.eq.s32.totalorder %v22806_v7, %v25349_v38 }
 0x126   :  { %20416 = vmatprep.subr.msk.bf16.mxu1 %vm20415_vm15, %v22744_v15  ;;  %vm20535_vm2 = vmpackc.low %vm601_vm10, %vm567_vm9  ;;  %v25396_v43 = vpop.f32.mrb[16].mxu1  ;;  %vm220_vm9 = vcmp.eq.s32.totalorder %v22792_v2, %v25366_v40  ;;  %vm254_vm10 = vcmp.eq.s32.totalorder %v22806_v7, %v25366_v40 }
 0x127   :  { %20536 = vmatprep.subr.msk.bf16.mxu0 %vm20535_vm2, %v22744_v15  ;;  %vm20417_vm5 = vmpackc.low %vm590_vm14, %vm556_vm13  ;;  %v25409_v44 = vpop.f32.mrb[17].mxu1  ;;  %vm230_vm13 = vcmp.eq.s32.totalorder %v22792_v2, %v25383_v42  ;;  %vm264_vm14 = vcmp.eq.s32.totalorder %v22806_v7, %v25383_v42 }
 0x128   :  { %20418 = vmatpush1.bf16.msk.msra.mxu1 %vm20417_vm5, %v22744_v15  ;;  %vm20537_vm8 = vmpackc.low %vm600_vm1, %vm566_vm0  ;;  %vm289_vm0 = vcmp.eq.s32.totalorder %v22812_v9, %v25331_v36  ;;  %vm323_vm1 = vcmp.eq.s32.totalorder %v22815_v10, %v25331_v36 }
 0x129   :  { %20538 = vmatpush1.bf16.msk.msra.mxu0 %vm20537_vm8, %v22744_v15  ;;  %vm20443_vm11 = vmpackc.low %vm255_vm4, %vm221_vm3  ;;  %vm299_vm3 = vcmp.eq.s32.totalorder %v22812_v9, %v25349_v38  ;;  %vm333_vm4 = vcmp.eq.s32.totalorder %v22815_v10, %v25349_v38 }
 0x12a   :  { %20444 = vmatprep.subr.msk.bf16.mxu1 %vm20443_vm11, %v22744_v15  ;;  %vm20563_vm15 = vmpackc.low %vm265_vm7, %vm231_vm6  ;;  %v25429_v45 = vpop.f32.mrb[18].mxu1  ;;  %vm288_vm6 = vcmp.eq.s32.totalorder %v22812_v9, %v25366_v40  ;;  %vm322_vm7 = vcmp.eq.s32.totalorder %v22815_v10, %v25366_v40 }
 0x12b   :  { %20564 = vmatprep.subr.msk.bf16.mxu0 %vm20563_vm15, %v22744_v15  ;;  %16867 = vmatmul.mubr.msk.f32.vlgmr.msra.gmra.mrb[24].mxu1 %vm2803_vm12, %v24522_v48  ;;  %vm20445_vm2 = vmpackc.low %vm254_vm10, %vm220_vm9  ;;  %v25438_v46 = vpop.f32.mrb[19].mxu1  ;;  %vm298_vm9 = vcmp.eq.s32.totalorder %v22812_v9, %v25383_v42  ;;  %vm332_vm10 = vcmp.eq.s32.totalorder %v22815_v10, %v25383_v42 }
 0x12c   :  { %20446 = vmatpush1.bf16.msk.msra.mxu1 %vm20445_vm2, %v22744_v15  ;;  %17007 = vmatmul.mubr.msk.f32.vlgmr.msra.gmra.mrb[16].mxu0 %vm2803_vm12, %v24522_v48  ;;  %vm20565_vm5 = vmpackc.low %vm264_vm14, %vm230_vm13  ;;  %vm357_vm13 = vcmp.eq.s32.totalorder %v22851_v16, %v25331_v36  ;;  %vm391_vm14 = vcmp.eq.s32.totalorder %v22854_v17, %v25331_v36 }
 0x12d   :  { %20566 = vmatpush1.bf16.msk.msra.mxu0 %vm20565_vm5, %v22744_v15  ;;  %vm20447_vm8 = vmpackc.low %vm323_vm1, %vm289_vm0  ;;  %4678 = vmatprep.mubr.f32.mxu1 %v22743_v3  ;;  %vm367_vm0 = vcmp.eq.s32.totalorder %v22851_v16, %v25349_v38  ;;  %vm401_vm1 = vcmp.eq.s32.totalorder %v22854_v17, %v25349_v38 }
 0x12e   :  { %20448 = vmatprep.subr.msk.bf16.mxu1 %vm20447_vm8, %v22744_v15  ;;  %vm20567_vm11 = vmpackc.low %vm333_vm4, %vm299_vm3  ;;  %5123 = vmatprep.mubr.f32.mxu0 %v22743_v3  ;;  %v25465_v47 = vpop.f32.mrb[20].mxu1  ;;  %vm356_vm3 = vcmp.eq.s32.totalorder %v22851_v16, %v25366_v40  ;;  %vm390_vm4 = vcmp.eq.s32.totalorder %v22854_v17, %v25366_v40 }
 0x12f   :  { %20568 = vmatprep.subr.msk.bf16.mxu0 %vm20567_vm11, %v22744_v15  ;;  %vm20449_vm15 = vmpackc.low %vm322_vm7, %vm288_vm6  ;;  %16868 = vmatmul.mubr.msk.f32.gmra.mrb[26].mxu1 %vm2803_vm12, %v24556_v49  ;;  %v25474_v48 = vpop.f32.mrb[21].mxu1  ;;  %vm366_vm6 = vcmp.eq.s32.totalorder %v22851_v16, %v25383_v42  ;;  %vm400_vm7 = vcmp.eq.s32.totalorder %v22854_v17, %v25383_v42 }
 0x130   :  { %20450 = vmatpush1.bf16.msk.msra.mxu1 %vm20449_vm15, %v22744_v15  ;;  %vm20569_vm2 = vmpackc.low %vm332_vm10, %vm298_vm9  ;;  %17008 = vmatmul.mubr.msk.f32.gmra.mrb[18].mxu0 %vm2803_vm12, %v24556_v49  ;;  %vm425_vm9 = vcmp.eq.s32.totalorder %v22877_v18, %v25331_v36  ;;  %vm459_vm10 = vcmp.eq.s32.totalorder %v22880_v19, %v25331_v36 }
 0x131   :  { %20570 = vmatpush1.bf16.msk.msra.mxu0 %vm20569_vm2, %v22744_v15  ;;  %vm20451_vm5 = vmpackc.low %vm391_vm14, %vm357_vm13  ;;  %4684 = vmatprep.mubr.f32.mxu1 %v22743_v3  ;;  %vm435_vm13 = vcmp.eq.s32.totalorder %v22877_v18, %v25349_v38  ;;  %vm469_vm14 = vcmp.eq.s32.totalorder %v22880_v19, %v25349_v38 }
 0x132   :  { %20452 = vmatprep.subr.msk.bf16.mxu1 %vm20451_vm5, %v22744_v15  ;;  %vm20571_vm8 = vmpackc.low %vm401_vm1, %vm367_vm0  ;;  %5129 = vmatprep.mubr.f32.mxu0 %v22743_v3  ;;  %v25510_v49 = vpop.f32.mrb[22].mxu1  ;;  %vm424_vm0 = vcmp.eq.s32.totalorder %v22877_v18, %v25366_v40  ;;  %vm458_vm1 = vcmp.eq.s32.totalorder %v22880_v19, %v25366_v40 }
 0x133   :  { %20572 = vmatprep.subr.msk.bf16.mxu0 %vm20571_vm8, %v22744_v15  ;;  %vm20453_vm11 = vmpackc.low %vm390_vm4, %vm356_vm3  ;;  %16869 = vmatmul.mubr.msk.f32.gmra.mrb[28].mxu1 %vm2803_vm12, %v24590_v50  ;;  %v25522_v52 = vpop.f32.mrb[23].mxu1  ;;  %vm434_vm3 = vcmp.eq.s32.totalorder %v22877_v18, %v25383_v42  ;;  %vm468_vm4 = vcmp.eq.s32.totalorder %v22880_v19, %v25383_v42 }
 0x134   :  { %20454 = vmatpush1.bf16.msk.msra.mxu1 %vm20453_vm11, %v22744_v15  ;;  %vm20573_vm15 = vmpackc.low %vm400_vm7, %vm366_vm6  ;;  %17009 = vmatmul.mubr.msk.f32.gmra.mrb[20].mxu0 %vm2803_vm12, %v24590_v50  ;;  %vm493_vm6 = vcmp.eq.s32.totalorder %v22903_v20, %v25331_v36  ;;  %vm527_vm7 = vcmp.eq.s32.totalorder %v22906_v21, %v25331_v36  ;;  %v22581_v50 = vld [vmem:[%s31974_s0 + $0x78] sm:$0x1f] }
 0x135   :  { %20574 = vmatpush1.bf16.msk.msra.mxu0 %vm20573_vm15, %v22744_v15  ;;  %vm20455_vm2 = vmpackc.low %vm459_vm10, %vm425_vm9  ;;  %4690 = vmatprep.mubr.f32.mxu1 %v22743_v3  ;;  %vm503_vm9 = vcmp.eq.s32.totalorder %v22903_v20, %v25349_v38  ;;  %vm537_vm10 = vcmp.eq.s32.totalorder %v22906_v21, %v25349_v38 }
 0x136   :  { %20456 = vmatprep.subr.msk.bf16.mxu1 %vm20455_vm2, %v22744_v15  ;;  %vm20575_vm5 = vmpackc.low %vm469_vm14, %vm435_vm13  ;;  %5135 = vmatprep.mubr.f32.mxu0 %v22743_v3  ;;  %vm492_vm13 = vcmp.eq.s32.totalorder %v22903_v20, %v25366_v40  ;;  %vm526_vm14 = vcmp.eq.s32.totalorder %v22906_v21, %v25366_v40 }
 0x137   :  { %20576 = vmatprep.subr.msk.bf16.mxu0 %vm20575_vm5, %v22744_v15  ;;  %vm20457_vm8 = vmpackc.low %vm458_vm1, %vm424_vm0  ;;  %16870 = vmatmul.mubr.msk.f32.gmra.mrb[30].mxu1 %vm2803_vm12, %v24630_v51  ;;  %vm502_vm0 = vcmp.eq.s32.totalorder %v22903_v20, %v25383_v42  ;;  %vm536_vm1 = vcmp.eq.s32.totalorder %v22906_v21, %v25383_v42 }
 0x138   :  { %20458 = vmatpush1.bf16.msk.msra.mxu1 %vm20457_vm8, %v22744_v15  ;;  %vm20577_vm11 = vmpackc.low %vm468_vm4, %vm434_vm3  ;;  %17010 = vmatmul.mubr.msk.f32.gmra.mrb[22].mxu0 %vm2803_vm12, %v24630_v51  ;;  %vm561_vm3 = vcmp.eq.s32.totalorder %v22929_v22, %v25331_v36  ;;  %vm595_vm4 = vcmp.eq.s32.totalorder %v22932_v23, %v25331_v36  ;;  %v25587_v51 = vrot.slane %v22581_v50, %v24200_v32  ;;  %v22596_v36 = vld [vmem:[%s31974_s0 + $0x100] sm:$0x1f]  ;;  %v22599_v50 = vld [vmem:[%s31974_s0 + $0xd0] sm:$0x1f] }
 0x139   :  { %20578 = vmatpush1.bf16.msk.msra.mxu0 %vm20577_vm11, %v22744_v15  ;;  %vm20459_vm15 = vmpackc.low %vm527_vm7, %vm493_vm6  ;;  %4850 = vmatprep.mubr.f32.mxu1 %v22743_v3  ;;  %vm571_vm6 = vcmp.eq.s32.totalorder %v22929_v22, %v25349_v38  ;;  %vm605_vm7 = vcmp.eq.s32.totalorder %v22932_v23, %v25349_v38  ;;  %v26076_v37 = vrot.slane %v22596_v36, %v24200_v32  ;;  %v26198_v38 = vsub.s32 2, %v22792_v2  ;;  %v22612_v36 = vld [vmem:[%s31975_s1 + $0x18] sm:$0xff] }
 0x13a   :  { %20460 = vmatprep.subr.msk.bf16.mxu1 %vm20459_vm15, %v22744_v15  ;;  %vm20579_vm2 = vmpackc.low %vm537_vm10, %vm503_vm9  ;;  %5295 = vmatprep.mubr.f32.mxu0 %v22743_v3  ;;  %vm560_vm9 = vcmp.eq.s32.totalorder %v22929_v22, %v25366_v40  ;;  %vm594_vm10 = vcmp.eq.s32.totalorder %v22932_v23, %v25366_v40  ;;  %v26231_v40 = vrot.slane %v22597_v39, %v24200_v32 }
 0x13b   :  { %20580 = vmatprep.subr.msk.bf16.mxu0 %vm20579_vm2, %v22744_v15  ;;  %vm20461_vm5 = vmpackc.low %vm526_vm14, %vm492_vm13  ;;  %vm570_vm13 = vcmp.eq.s32.totalorder %v22929_v22, %v25383_v42  ;;  %vm604_vm14 = vcmp.eq.s32.totalorder %v22932_v23, %v25383_v42  ;;  %v26249_v42 = vrot.slane %v22598_v41, %v26198_v38 }
 0x13c   :  { %20462 = vmatpush1.bf16.msk.msra.mxu1 %vm20461_vm5, %v22744_v15  ;;  %vm20581_vm8 = vmpackc.low %vm536_vm1, %vm502_vm0  ;;  %vm225_vm0 = vcmp.eq.s32.totalorder %v22792_v2, %v25587_v51  ;;  %vm259_vm1 = vcmp.eq.s32.totalorder %v22806_v7, %v25587_v51 }
 0x13d   :  { %20582 = vmatpush1.bf16.msk.msra.mxu0 %vm20581_vm8, %v22744_v15  ;;  %vm20463_vm11 = vmpackc.low %vm595_vm4, %vm561_vm3  ;;  %vm235_vm3 = vcmp.eq.s32.totalorder %v22792_v2, %v25605_v54  ;;  %vm269_vm4 = vcmp.eq.s32.totalorder %v22806_v7, %v25605_v54 }
 0x13e   :  { %20464 = vmatprep.subr.msk.bf16.mxu1 %vm20463_vm11, %v22744_v15  ;;  %vm20583_vm15 = vmpackc.low %vm605_vm7, %vm571_vm6  ;;  %vm224_vm6 = vcmp.eq.s32.totalorder %v22792_v2, %v25622_v56  ;;  %vm258_vm7 = vcmp.eq.s32.totalorder %v22806_v7, %v25622_v56 }
 0x13f   :  { %20584 = vmatprep.subr.msk.bf16.mxu0 %vm20583_vm15, %v22744_v15  ;;  %vm20465_vm2 = vmpackc.low %vm594_vm10, %vm560_vm9  ;;  %vm234_vm9 = vcmp.eq.s32.totalorder %v22792_v2, %v25639_v8  ;;  %vm268_vm10 = vcmp.eq.s32.totalorder %v22806_v7, %v25639_v8 }
 0x140   :  { %20466 = vmatpush1.bf16.msk.msra.mxu1 %vm20465_vm2, %v22744_v15  ;;  %vm20585_vm5 = vmpackc.low %vm604_vm14, %vm570_vm13  ;;  %vm293_vm13 = vcmp.eq.s32.totalorder %v22812_v9, %v25587_v51  ;;  %vm327_vm14 = vcmp.eq.s32.totalorder %v22815_v10, %v25587_v51 }
 0x141   :  { %20586 = vmatpush1.bf16.msk.msra.mxu0 %vm20585_vm5, %v22744_v15  ;;  %vm20491_vm8 = vmpackc.low %vm259_vm1, %vm225_vm0  ;;  %vm303_vm0 = vcmp.eq.s32.totalorder %v22812_v9, %v25605_v54  ;;  %vm337_vm1 = vcmp.eq.s32.totalorder %v22815_v10, %v25605_v54 }
 0x142   :  { %20492 = vmatprep.subr.msk.bf16.mxu1 %vm20491_vm8, %v22744_v15  ;;  %vm20611_vm11 = vmpackc.low %vm269_vm4, %vm235_vm3  ;;  %vm292_vm3 = vcmp.eq.s32.totalorder %v22812_v9, %v25622_v56  ;;  %vm326_vm4 = vcmp.eq.s32.totalorder %v22815_v10, %v25622_v56 }
 0x143   :  { %20612 = vmatprep.subr.msk.bf16.mxu0 %vm20611_vm11, %v22744_v15  ;;  %16923 = vmatmul.mubr.msk.f32.vlgmr.msra.gmra.mrb[32].mxu1 %vm2803_vm12, %v25679_v58  ;;  %vm20493_vm15 = vmpackc.low %vm258_vm7, %vm224_vm6  ;;  %vm302_vm6 = vcmp.eq.s32.totalorder %v22812_v9, %v25639_v8  ;;  %vm336_vm7 = vcmp.eq.s32.totalorder %v22815_v10, %v25639_v8 }
 0x144   :  { %20494 = vmatpush1.bf16.msk.msra.mxu1 %vm20493_vm15, %v22744_v15  ;;  %17063 = vmatmul.mubr.msk.f32.vlgmr.msra.gmra.mrb[24].mxu0 %vm2803_vm12, %v25679_v58  ;;  %vm20613_vm2 = vmpackc.low %vm268_vm10, %vm234_vm9  ;;  %vm361_vm9 = vcmp.eq.s32.totalorder %v22851_v16, %v25587_v51  ;;  %vm395_vm10 = vcmp.eq.s32.totalorder %v22854_v17, %v25587_v51 }
 0x145   :  { %20614 = vmatpush1.bf16.msk.msra.mxu0 %vm20613_vm2, %v22744_v15  ;;  %vm20495_vm5 = vmpackc.low %vm327_vm14, %vm293_vm13  ;;  %4856 = vmatprep.mubr.f32.mxu1 %v22743_v3  ;;  %vm371_vm13 = vcmp.eq.s32.totalorder %v22851_v16, %v25605_v54  ;;  %vm405_vm14 = vcmp.eq.s32.totalorder %v22854_v17, %v25605_v54 }
 0x146   :  { %20496 = vmatprep.subr.msk.bf16.mxu1 %vm20495_vm5, %v22744_v15  ;;  %vm20615_vm8 = vmpackc.low %vm337_vm1, %vm303_vm0  ;;  %5301 = vmatprep.mubr.f32.mxu0 %v22743_v3  ;;  %vm360_vm0 = vcmp.eq.s32.totalorder %v22851_v16, %v25622_v56  ;;  %vm394_vm1 = vcmp.eq.s32.totalorder %v22854_v17, %v25622_v56 }
 0x147   :  { %20616 = vmatprep.subr.msk.bf16.mxu0 %vm20615_vm8, %v22744_v15  ;;  %vm20497_vm11 = vmpackc.low %vm326_vm4, %vm292_vm3  ;;  %16924 = vmatmul.mubr.msk.f32.gmra.mrb[34].mxu1 %vm2803_vm12, %v25714_v59  ;;  %vm370_vm3 = vcmp.eq.s32.totalorder %v22851_v16, %v25639_v8  ;;  %vm404_vm4 = vcmp.eq.s32.totalorder %v22854_v17, %v25639_v8 }
 0x148   :  { %20498 = vmatpush1.bf16.msk.msra.mxu1 %vm20497_vm11, %v22744_v15  ;;  %vm20617_vm15 = vmpackc.low %vm336_vm7, %vm302_vm6  ;;  %17064 = vmatmul.mubr.msk.f32.gmra.mrb[26].mxu0 %vm2803_vm12, %v25714_v59  ;;  %vm429_vm6 = vcmp.eq.s32.totalorder %v22877_v18, %v25587_v51  ;;  %vm463_vm7 = vcmp.eq.s32.totalorder %v22880_v19, %v25587_v51 }
 0x149   :  { %20618 = vmatpush1.bf16.msk.msra.mxu0 %vm20617_vm15, %v22744_v15  ;;  %vm20499_vm2 = vmpackc.low %vm395_vm10, %vm361_vm9  ;;  %4862 = vmatprep.mubr.f32.mxu1 %v22743_v3  ;;  %vm439_vm9 = vcmp.eq.s32.totalorder %v22877_v18, %v25605_v54  ;;  %vm473_vm10 = vcmp.eq.s32.totalorder %v22880_v19, %v25605_v54 }
 0x14a   :  { %20500 = vmatprep.subr.msk.bf16.mxu1 %vm20499_vm2, %v22744_v15  ;;  %vm20619_vm5 = vmpackc.low %vm405_vm14, %vm371_vm13  ;;  %5307 = vmatprep.mubr.f32.mxu0 %v22743_v3  ;;  %vm428_vm13 = vcmp.eq.s32.totalorder %v22877_v18, %v25622_v56  ;;  %vm462_vm14 = vcmp.eq.s32.totalorder %v22880_v19, %v25622_v56 }
 0x14b   :  { %20620 = vmatprep.subr.msk.bf16.mxu0 %vm20619_vm5, %v22744_v15  ;;  %vm20501_vm8 = vmpackc.low %vm394_vm1, %vm360_vm0  ;;  %16925 = vmatmul.mubr.msk.f32.gmra.mrb[36].mxu1 %vm2803_vm12, %v25754_v60  ;;  %vm438_vm0 = vcmp.eq.s32.totalorder %v22877_v18, %v25639_v8  ;;  %vm472_vm1 = vcmp.eq.s32.totalorder %v22880_v19, %v25639_v8 }
 0x14c   :  { %20502 = vmatpush1.bf16.msk.msra.mxu1 %vm20501_vm8, %v22744_v15  ;;  %vm20621_vm11 = vmpackc.low %vm404_vm4, %vm370_vm3  ;;  %17065 = vmatmul.mubr.msk.f32.gmra.mrb[28].mxu0 %vm2803_vm12, %v25754_v60  ;;  %vm497_vm3 = vcmp.eq.s32.totalorder %v22903_v20, %v25587_v51  ;;  %vm531_vm4 = vcmp.eq.s32.totalorder %v22906_v21, %v25587_v51 }
 0x14d   :  { %20622 = vmatpush1.bf16.msk.msra.mxu0 %vm20621_vm11, %v22744_v15  ;;  %vm20503_vm15 = vmpackc.low %vm463_vm7, %vm429_vm6  ;;  %4868 = vmatprep.mubr.f32.mxu1 %v22743_v3  ;;  %vm507_vm6 = vcmp.eq.s32.totalorder %v22903_v20, %v25605_v54  ;;  %vm541_vm7 = vcmp.eq.s32.totalorder %v22906_v21, %v25605_v54 }
 0x14e   :  { %20504 = vmatprep.subr.msk.bf16.mxu1 %vm20503_vm15, %v22744_v15  ;;  %vm20623_vm2 = vmpackc.low %vm473_vm10, %vm439_vm9  ;;  %5313 = vmatprep.mubr.f32.mxu0 %v22743_v3  ;;  %vm496_vm9 = vcmp.eq.s32.totalorder %v22903_v20, %v25622_v56  ;;  %vm530_vm10 = vcmp.eq.s32.totalorder %v22906_v21, %v25622_v56 }
 0x14f   :  { %20624 = vmatprep.subr.msk.bf16.mxu0 %vm20623_vm2, %v22744_v15  ;;  %vm20505_vm5 = vmpackc.low %vm462_vm14, %vm428_vm13  ;;  %16926 = vmatmul.mubr.msk.f32.gmra.mrb[38].mxu1 %vm2803_vm12, %v25794_v61  ;;  %vm506_vm13 = vcmp.eq.s32.totalorder %v22903_v20, %v25639_v8  ;;  %vm540_vm14 = vcmp.eq.s32.totalorder %v22906_v21, %v25639_v8 }
 0x150   :  { %20506 = vmatpush1.bf16.msk.msra.mxu1 %vm20505_vm5, %v22744_v15  ;;  %vm20625_vm8 = vmpackc.low %vm472_vm1, %vm438_vm0  ;;  %17066 = vmatmul.mubr.msk.f32.gmra.mrb[30].mxu0 %vm2803_vm12, %v25794_v61  ;;  %vm565_vm0 = vcmp.eq.s32.totalorder %v22929_v22, %v25587_v51  ;;  %vm599_vm1 = vcmp.eq.s32.totalorder %v22932_v23, %v25587_v51  ;;  %v26266_v51 = vrot.slane %v22599_v50, %v24200_v32 }
 0x151   :  { %20626 = vmatpush1.bf16.msk.msra.mxu0 %vm20625_vm8, %v22744_v15  ;;  %vm20507_vm11 = vmpackc.low %vm531_vm4, %vm497_vm3  ;;  %5028 = vmatprep.mubr.f32.mxu1 %v22743_v3  ;;  %vm575_vm3 = vcmp.eq.s32.totalorder %v22929_v22, %v25605_v54  ;;  %vm609_vm4 = vcmp.eq.s32.totalorder %v22932_v23, %v25605_v54  ;;  %v26283_v54 = vrot.slane %v22600_v53, %v26198_v38 }
 0x152   :  { %20508 = vmatprep.subr.msk.bf16.mxu1 %vm20507_vm11, %v22744_v15  ;;  %vm20627_vm15 = vmpackc.low %vm541_vm7, %vm507_vm6  ;;  %5473 = vmatprep.mubr.f32.mxu0 %v22743_v3  ;;  %vm564_vm6 = vcmp.eq.s32.totalorder %v22929_v22, %v25622_v56  ;;  %vm598_vm7 = vcmp.eq.s32.totalorder %v22932_v23, %v25622_v56  ;;  %v26426_v56 = vrot.slane %v22601_v55, %v24200_v32 }
 0x153   :  { %20628 = vmatprep.subr.msk.bf16.mxu0 %vm20627_vm15, %v22744_v15  ;;  %vm20509_vm2 = vmpackc.low %vm530_vm10, %vm496_vm9  ;;  %vm574_vm9 = vcmp.eq.s32.totalorder %v22929_v22, %v25639_v8  ;;  %vm608_vm10 = vcmp.eq.s32.totalorder %v22932_v23, %v25639_v8  ;;  %v26444_v8 = vrot.slane %v22602_v57, %v26198_v38 }
 0x154   :  { %20510 = vmatpush1.bf16.msk.msra.mxu1 %vm20509_vm2, %v22744_v15  ;;  %vm20629_vm5 = vmpackc.low %vm540_vm14, %vm506_vm13  ;;  %vm229_vm13 = vcmp.eq.s32.totalorder %v22792_v2, %v25829_v63  ;;  %vm263_vm14 = vcmp.eq.s32.totalorder %v22806_v7, %v25829_v63 }
 0x155   :  { %20630 = vmatpush1.bf16.msk.msra.mxu0 %vm20629_vm5, %v22744_v15  ;;  %vm20511_vm8 = vmpackc.low %vm599_vm1, %vm565_vm0  ;;  %vm239_vm0 = vcmp.eq.s32.totalorder %v22792_v2, %v25847_v1  ;;  %vm273_vm1 = vcmp.eq.s32.totalorder %v22806_v7, %v25847_v1 }
 0x156   :  { %20512 = vmatprep.subr.msk.bf16.mxu1 %vm20511_vm8, %v22744_v15  ;;  %vm20631_vm11 = vmpackc.low %vm609_vm4, %vm575_vm3  ;;  %vm228_vm3 = vcmp.eq.s32.totalorder %v22792_v2, %v25864_v26  ;;  %vm262_vm4 = vcmp.eq.s32.totalorder %v22806_v7, %v25864_v26 }
 0x157   :  { %20632 = vmatprep.subr.msk.bf16.mxu0 %vm20631_vm11, %v22744_v15  ;;  %vm20513_vm15 = vmpackc.low %vm598_vm7, %vm564_vm6  ;;  %vm238_vm6 = vcmp.eq.s32.totalorder %v22792_v2, %v25881_v28  ;;  %vm272_vm7 = vcmp.eq.s32.totalorder %v22806_v7, %v25881_v28 }
 0x158   :  { %20514 = vmatpush1.bf16.msk.msra.mxu1 %vm20513_vm15, %v22744_v15  ;;  %vm20633_vm2 = vmpackc.low %vm608_vm10, %vm574_vm9  ;;  %vm297_vm9 = vcmp.eq.s32.totalorder %v22812_v9, %v25829_v63  ;;  %vm331_vm10 = vcmp.eq.s32.totalorder %v22815_v10, %v25829_v63 }
 0x159   :  { %20634 = vmatpush1.bf16.msk.msra.mxu0 %vm20633_vm2, %v22744_v15  ;;  %vm20539_vm5 = vmpackc.low %vm263_vm14, %vm229_vm13  ;;  %vm307_vm13 = vcmp.eq.s32.totalorder %v22812_v9, %v25847_v1  ;;  %vm341_vm14 = vcmp.eq.s32.totalorder %v22815_v10, %v25847_v1 }
 0x15a   :  { %20540 = vmatprep.subr.msk.bf16.mxu1 %vm20539_vm5, %v22744_v15  ;;  %vm20659_vm8 = vmpackc.low %vm273_vm1, %vm239_vm0  ;;  %vm296_vm0 = vcmp.eq.s32.totalorder %v22812_v9, %v25864_v26  ;;  %vm330_vm1 = vcmp.eq.s32.totalorder %v22815_v10, %v25864_v26 }
 0x15b   :  { %20660 = vmatprep.subr.msk.bf16.mxu0 %vm20659_vm8, %v22744_v15  ;;  %16979 = vmatmul.mubr.msk.f32.vlgmr.msra.gmra.mrb[40].mxu1 %vm2803_vm12, %v25679_v58  ;;  %vm20541_vm11 = vmpackc.low %vm262_vm4, %vm228_vm3  ;;  %vm306_vm3 = vcmp.eq.s32.totalorder %v22812_v9, %v25881_v28  ;;  %vm340_vm4 = vcmp.eq.s32.totalorder %v22815_v10, %v25881_v28 }
 0x15c   :  { %20542 = vmatpush1.bf16.msk.msra.mxu1 %vm20541_vm11, %v22744_v15  ;;  %17119 = vmatmul.mubr.msk.f32.vlgmr.msra.gmra.mrb[32].mxu0 %vm2803_vm12, %v25679_v58  ;;  %vm20661_vm15 = vmpackc.low %vm272_vm7, %vm238_vm6  ;;  %vm365_vm6 = vcmp.eq.s32.totalorder %v22851_v16, %v25829_v63  ;;  %vm399_vm7 = vcmp.eq.s32.totalorder %v22854_v17, %v25829_v63 }
 0x15d   :  { %20662 = vmatpush1.bf16.msk.msra.mxu0 %vm20661_vm15, %v22744_v15  ;;  %vm20543_vm2 = vmpackc.low %vm331_vm10, %vm297_vm9  ;;  %5034 = vmatprep.mubr.f32.mxu1 %v22743_v3  ;;  %vm375_vm9 = vcmp.eq.s32.totalorder %v22851_v16, %v25847_v1  ;;  %vm409_vm10 = vcmp.eq.s32.totalorder %v22854_v17, %v25847_v1 }
 0x15e   :  { %20544 = vmatprep.subr.msk.bf16.mxu1 %vm20543_vm2, %v22744_v15  ;;  %vm20663_vm5 = vmpackc.low %vm341_vm14, %vm307_vm13  ;;  %5479 = vmatprep.mubr.f32.mxu0 %v22743_v3  ;;  %vm364_vm13 = vcmp.eq.s32.totalorder %v22851_v16, %v25864_v26  ;;  %vm398_vm14 = vcmp.eq.s32.totalorder %v22854_v17, %v25864_v26 }
 0x15f   :  { %20664 = vmatprep.subr.msk.bf16.mxu0 %vm20663_vm5, %v22744_v15  ;;  %vm20545_vm8 = vmpackc.low %vm330_vm1, %vm296_vm0  ;;  %16980 = vmatmul.mubr.msk.f32.gmra.mrb[42].mxu1 %vm2803_vm12, %v25714_v59  ;;  %vm374_vm0 = vcmp.eq.s32.totalorder %v22851_v16, %v25881_v28  ;;  %vm408_vm1 = vcmp.eq.s32.totalorder %v22854_v17, %v25881_v28 }
 0x160   :  { %20546 = vmatpush1.bf16.msk.msra.mxu1 %vm20545_vm8, %v22744_v15  ;;  %vm20665_vm11 = vmpackc.low %vm340_vm4, %vm306_vm3  ;;  %17120 = vmatmul.mubr.msk.f32.gmra.mrb[34].mxu0 %vm2803_vm12, %v25714_v59  ;;  %vm433_vm3 = vcmp.eq.s32.totalorder %v22877_v18, %v25829_v63  ;;  %vm467_vm4 = vcmp.eq.s32.totalorder %v22880_v19, %v25829_v63 }
 0x161   :  { %20666 = vmatpush1.bf16.msk.msra.mxu0 %vm20665_vm11, %v22744_v15  ;;  %vm20547_vm15 = vmpackc.low %vm399_vm7, %vm365_vm6  ;;  %5040 = vmatprep.mubr.f32.mxu1 %v22743_v3  ;;  %vm443_vm6 = vcmp.eq.s32.totalorder %v22877_v18, %v25847_v1  ;;  %vm477_vm7 = vcmp.eq.s32.totalorder %v22880_v19, %v25847_v1 }
 0x162   :  { %20548 = vmatprep.subr.msk.bf16.mxu1 %vm20547_vm15, %v22744_v15  ;;  %vm20667_vm2 = vmpackc.low %vm409_vm10, %vm375_vm9  ;;  %5485 = vmatprep.mubr.f32.mxu0 %v22743_v3  ;;  %vm432_vm9 = vcmp.eq.s32.totalorder %v22877_v18, %v25864_v26  ;;  %vm466_vm10 = vcmp.eq.s32.totalorder %v22880_v19, %v25864_v26 }
 0x163   :  { %20668 = vmatprep.subr.msk.bf16.mxu0 %vm20667_vm2, %v22744_v15  ;;  %vm20549_vm5 = vmpackc.low %vm398_vm14, %vm364_vm13  ;;  %16981 = vmatmul.mubr.msk.f32.gmra.mrb[44].mxu1 %vm2803_vm12, %v25754_v60  ;;  %vm442_vm13 = vcmp.eq.s32.totalorder %v22877_v18, %v25881_v28  ;;  %vm476_vm14 = vcmp.eq.s32.totalorder %v22880_v19, %v25881_v28 }
 0x164   :  { %20550 = vmatpush1.bf16.msk.msra.mxu1 %vm20549_vm5, %v22744_v15  ;;  %vm20669_vm8 = vmpackc.low %vm408_vm1, %vm374_vm0  ;;  %17121 = vmatmul.mubr.msk.f32.gmra.mrb[36].mxu0 %vm2803_vm12, %v25754_v60  ;;  %vm501_vm0 = vcmp.eq.s32.totalorder %v22903_v20, %v25829_v63  ;;  %vm535_vm1 = vcmp.eq.s32.totalorder %v22906_v21, %v25829_v63 }
 0x165   :  { %20670 = vmatpush1.bf16.msk.msra.mxu0 %vm20669_vm8, %v22744_v15  ;;  %vm20551_vm11 = vmpackc.low %vm467_vm4, %vm433_vm3  ;;  %5046 = vmatprep.mubr.f32.mxu1 %v22743_v3  ;;  %vm511_vm3 = vcmp.eq.s32.totalorder %v22903_v20, %v25847_v1  ;;  %vm545_vm4 = vcmp.eq.s32.totalorder %v22906_v21, %v25847_v1 }
 0x166   :  { %20552 = vmatprep.subr.msk.bf16.mxu1 %vm20551_vm11, %v22744_v15  ;;  %vm20671_vm15 = vmpackc.low %vm477_vm7, %vm443_vm6  ;;  %5491 = vmatprep.mubr.f32.mxu0 %v22743_v3  ;;  %vm500_vm6 = vcmp.eq.s32.totalorder %v22903_v20, %v25864_v26  ;;  %vm534_vm7 = vcmp.eq.s32.totalorder %v22906_v21, %v25864_v26 }
 0x167   :  { %20672 = vmatprep.subr.msk.bf16.mxu0 %vm20671_vm15, %v22744_v15  ;;  %vm20553_vm2 = vmpackc.low %vm466_vm10, %vm432_vm9  ;;  %16982 = vmatmul.mubr.msk.f32.gmra.mrb[46].mxu1 %vm2803_vm12, %v25794_v61  ;;  %vm510_vm9 = vcmp.eq.s32.totalorder %v22903_v20, %v25881_v28  ;;  %vm544_vm10 = vcmp.eq.s32.totalorder %v22906_v21, %v25881_v28 }
 0x168   :  { %20554 = vmatpush1.bf16.msk.msra.mxu1 %vm20553_vm2, %v22744_v15  ;;  %vm20673_vm5 = vmpackc.low %vm476_vm14, %vm442_vm13  ;;  %17122 = vmatmul.mubr.msk.f32.gmra.mrb[38].mxu0 %vm2803_vm12, %v25794_v61  ;;  %vm569_vm13 = vcmp.eq.s32.totalorder %v22929_v22, %v25829_v63  ;;  %vm603_vm14 = vcmp.eq.s32.totalorder %v22932_v23, %v25829_v63  ;;  %v26461_v63 = vrot.slane %v22603_v62, %v24200_v32  ;;  %v22604_v32 = vld [vmem:[%s31974_s0 + $0x20] sm:$0x1f] }
 0x169   :  { %20674 = vmatpush1.bf16.msk.msra.mxu0 %vm20673_vm5, %v22744_v15  ;;  %vm20555_vm8 = vmpackc.low %vm535_vm1, %vm501_vm0  ;;  %5206 = vmatprep.mubr.f32.mxu1 %v22743_v3  ;;  %vm579_vm0 = vcmp.eq.s32.totalorder %v22929_v22, %v25847_v1  ;;  %vm613_vm1 = vcmp.eq.s32.totalorder %v22932_v23, %v25847_v1  ;;  %v26478_v0 = vrot.slane %v22604_v32, %v26198_v38  ;;  %v26508_v1 = vld [vmem:[%s31975_s1 + $0x40] sm:$0xff] }
 0x16a   :  { %20556 = vmatprep.subr.msk.bf16.mxu1 %vm20555_vm8, %v22744_v15  ;;  %vm20675_vm11 = vmpackc.low %vm545_vm4, %vm511_vm3  ;;  %5651 = vmatprep.mubr.f32.mxu0 %v22743_v3  ;;  %vm568_vm3 = vcmp.eq.s32.totalorder %v22929_v22, %v25864_v26  ;;  %vm602_vm4 = vcmp.eq.s32.totalorder %v22932_v23, %v25864_v26  ;;  %v22606_v26 = vld [vmem:[%s31974_s0 + $0x48] sm:$0x1f] }
 0x16b   :  { %20676 = vmatprep.subr.msk.bf16.mxu0 %vm20675_vm11, %v22744_v15  ;;  %vm20557_vm15 = vmpackc.low %vm534_vm7, %vm500_vm6  ;;  %vm578_vm6 = vcmp.eq.s32.totalorder %v22929_v22, %v25881_v28  ;;  %vm612_vm7 = vcmp.eq.s32.totalorder %v22932_v23, %v25881_v28  ;;  %v26680_v27 = vrot.slane %v22606_v26, %v26198_v38  ;;  %v22607_v28 = vld [vmem:[%s31974_s0 + $0x10] sm:$0x1f] }
 0x16c   :  { %20558 = vmatpush1.bf16.msk.msra.mxu1 %vm20557_vm15, %v22744_v15  ;;  %vm20677_vm2 = vmpackc.low %vm544_vm10, %vm510_vm9  ;;  %vm233_vm9 = vcmp.eq.s32.totalorder %v22792_v2, %v26024_v30  ;;  %vm267_vm10 = vcmp.eq.s32.totalorder %v22806_v7, %v26024_v30  ;;  %v26697_v29 = vrot.slane %v22607_v28, %v26198_v38 }
 0x16d   :  { %20678 = vmatpush1.bf16.msk.msra.mxu0 %vm20677_vm2, %v22744_v15  ;;  %vm20559_vm5 = vmpackc.low %vm603_vm14, %vm569_vm13  ;;  %vm243_vm13 = vcmp.eq.s32.totalorder %v22792_v2, %v26042_v33  ;;  %vm277_vm14 = vcmp.eq.s32.totalorder %v22806_v7, %v26042_v33 }
 0x16e   :  { %20560 = vmatprep.subr.msk.bf16.mxu1 %vm20559_vm5, %v22744_v15  ;;  %vm20679_vm8 = vmpackc.low %vm613_vm1, %vm579_vm0  ;;  %vm232_vm0 = vcmp.eq.s32.totalorder %v22792_v2, %v26059_v35  ;;  %vm266_vm1 = vcmp.eq.s32.totalorder %v22806_v7, %v26059_v35 }
 0x16f   :  { %20680 = vmatprep.subr.msk.bf16.mxu0 %vm20679_vm8, %v22744_v15  ;;  %vm20561_vm11 = vmpackc.low %vm602_vm4, %vm568_vm3  ;;  %vm242_vm3 = vcmp.eq.s32.totalorder %v22792_v2, %v26076_v37  ;;  %vm276_vm4 = vcmp.eq.s32.totalorder %v22806_v7, %v26076_v37 }
 0x170   :  { %20562 = vmatpush1.bf16.msk.msra.mxu1 %vm20561_vm11, %v22744_v15  ;;  %vm20681_vm15 = vmpackc.low %vm612_vm7, %vm578_vm6  ;;  %vm301_vm6 = vcmp.eq.s32.totalorder %v22812_v9, %v26024_v30  ;;  %vm335_vm7 = vcmp.eq.s32.totalorder %v22815_v10, %v26024_v30 }
 0x171   :  { %20682 = vmatpush1.bf16.msk.msra.mxu0 %vm20681_vm15, %v22744_v15  ;;  %vm20587_vm2 = vmpackc.low %vm267_vm10, %vm233_vm9  ;;  %vm311_vm9 = vcmp.eq.s32.totalorder %v22812_v9, %v26042_v33  ;;  %vm345_vm10 = vcmp.eq.s32.totalorder %v22815_v10, %v26042_v33 }
 0x172   :  { %20588 = vmatprep.subr.msk.bf16.mxu1 %vm20587_vm2, %v22744_v15  ;;  %vm20707_vm5 = vmpackc.low %vm277_vm14, %vm243_vm13  ;;  %vm300_vm13 = vcmp.eq.s32.totalorder %v22812_v9, %v26059_v35  ;;  %vm334_vm14 = vcmp.eq.s32.totalorder %v22815_v10, %v26059_v35 }
 0x173   :  { %20708 = vmatprep.subr.msk.bf16.mxu0 %vm20707_vm5, %v22744_v15  ;;  %17035 = vmatmul.mubr.msk.f32.vlgmr.msra.gmra.mrb[48].mxu1 %vm2803_vm12, %v25679_v58  ;;  %vm20589_vm8 = vmpackc.low %vm266_vm1, %vm232_vm0  ;;  %vm310_vm0 = vcmp.eq.s32.totalorder %v22812_v9, %v26076_v37  ;;  %vm344_vm1 = vcmp.eq.s32.totalorder %v22815_v10, %v26076_v37 }
 0x174   :  { %20590 = vmatpush1.bf16.msk.msra.mxu1 %vm20589_vm8, %v22744_v15  ;;  %17175 = vmatmul.mubr.msk.f32.vlgmr.msra.gmra.mrb[40].mxu0 %vm2803_vm12, %v25679_v58  ;;  %vm20709_vm11 = vmpackc.low %vm276_vm4, %vm242_vm3  ;;  %vm369_vm3 = vcmp.eq.s32.totalorder %v22851_v16, %v26024_v30  ;;  %vm403_vm4 = vcmp.eq.s32.totalorder %v22854_v17, %v26024_v30 }
 0x175   :  { %20710 = vmatpush1.bf16.msk.msra.mxu0 %vm20709_vm11, %v22744_v15  ;;  %vm20591_vm15 = vmpackc.low %vm335_vm7, %vm301_vm6  ;;  %5212 = vmatprep.mubr.f32.mxu1 %v22743_v3  ;;  %vm379_vm6 = vcmp.eq.s32.totalorder %v22851_v16, %v26042_v33  ;;  %vm413_vm7 = vcmp.eq.s32.totalorder %v22854_v17, %v26042_v33 }
 0x176   :  { %20592 = vmatprep.subr.msk.bf16.mxu1 %vm20591_vm15, %v22744_v15  ;;  %vm20711_vm2 = vmpackc.low %vm345_vm10, %vm311_vm9  ;;  %5657 = vmatprep.mubr.f32.mxu0 %v22743_v3  ;;  %vm368_vm9 = vcmp.eq.s32.totalorder %v22851_v16, %v26059_v35  ;;  %vm402_vm10 = vcmp.eq.s32.totalorder %v22854_v17, %v26059_v35 }
 0x177   :  { %20712 = vmatprep.subr.msk.bf16.mxu0 %vm20711_vm2, %v22744_v15  ;;  %vm20593_vm5 = vmpackc.low %vm334_vm14, %vm300_vm13  ;;  %17036 = vmatmul.mubr.msk.f32.gmra.mrb[50].mxu1 %vm2803_vm12, %v25714_v59  ;;  %vm378_vm13 = vcmp.eq.s32.totalorder %v22851_v16, %v26076_v37  ;;  %vm412_vm14 = vcmp.eq.s32.totalorder %v22854_v17, %v26076_v37 }
 0x178   :  { %20594 = vmatpush1.bf16.msk.msra.mxu1 %vm20593_vm5, %v22744_v15  ;;  %vm20713_vm8 = vmpackc.low %vm344_vm1, %vm310_vm0  ;;  %17176 = vmatmul.mubr.msk.f32.gmra.mrb[42].mxu0 %vm2803_vm12, %v25714_v59  ;;  %vm437_vm0 = vcmp.eq.s32.totalorder %v22877_v18, %v26024_v30  ;;  %vm471_vm1 = vcmp.eq.s32.totalorder %v22880_v19, %v26024_v30 }
 0x179   :  { %20714 = vmatpush1.bf16.msk.msra.mxu0 %vm20713_vm8, %v22744_v15  ;;  %vm20595_vm11 = vmpackc.low %vm403_vm4, %vm369_vm3  ;;  %5218 = vmatprep.mubr.f32.mxu1 %v22743_v3  ;;  %vm447_vm3 = vcmp.eq.s32.totalorder %v22877_v18, %v26042_v33  ;;  %vm481_vm4 = vcmp.eq.s32.totalorder %v22880_v19, %v26042_v33 }
 0x17a   :  { %20596 = vmatprep.subr.msk.bf16.mxu1 %vm20595_vm11, %v22744_v15  ;;  %vm20715_vm15 = vmpackc.low %vm413_vm7, %vm379_vm6  ;;  %5663 = vmatprep.mubr.f32.mxu0 %v22743_v3  ;;  %vm436_vm6 = vcmp.eq.s32.totalorder %v22877_v18, %v26059_v35  ;;  %vm470_vm7 = vcmp.eq.s32.totalorder %v22880_v19, %v26059_v35 }
 0x17b   :  { %20716 = vmatprep.subr.msk.bf16.mxu0 %vm20715_vm15, %v22744_v15  ;;  %vm20597_vm2 = vmpackc.low %vm402_vm10, %vm368_vm9  ;;  %17037 = vmatmul.mubr.msk.f32.gmra.mrb[52].mxu1 %vm2803_vm12, %v25754_v60  ;;  %vm446_vm9 = vcmp.eq.s32.totalorder %v22877_v18, %v26076_v37  ;;  %vm480_vm10 = vcmp.eq.s32.totalorder %v22880_v19, %v26076_v37 }
 0x17c   :  { %20598 = vmatpush1.bf16.msk.msra.mxu1 %vm20597_vm2, %v22744_v15  ;;  %vm20717_vm5 = vmpackc.low %vm412_vm14, %vm378_vm13  ;;  %17177 = vmatmul.mubr.msk.f32.gmra.mrb[44].mxu0 %vm2803_vm12, %v25754_v60  ;;  %vm505_vm13 = vcmp.eq.s32.totalorder %v22903_v20, %v26024_v30  ;;  %vm539_vm14 = vcmp.eq.s32.totalorder %v22906_v21, %v26024_v30 }
 0x17d   :  { %20718 = vmatpush1.bf16.msk.msra.mxu0 %vm20717_vm5, %v22744_v15  ;;  %vm20599_vm8 = vmpackc.low %vm471_vm1, %vm437_vm0  ;;  %5224 = vmatprep.mubr.f32.mxu1 %v22743_v3  ;;  %vm515_vm0 = vcmp.eq.s32.totalorder %v22903_v20, %v26042_v33  ;;  %vm549_vm1 = vcmp.eq.s32.totalorder %v22906_v21, %v26042_v33 }
 0x17e   :  { %20600 = vmatprep.subr.msk.bf16.mxu1 %vm20599_vm8, %v22744_v15  ;;  %vm20719_vm11 = vmpackc.low %vm481_vm4, %vm447_vm3  ;;  %5669 = vmatprep.mubr.f32.mxu0 %v22743_v3  ;;  %vm504_vm3 = vcmp.eq.s32.totalorder %v22903_v20, %v26059_v35  ;;  %vm538_vm4 = vcmp.eq.s32.totalorder %v22906_v21, %v26059_v35 }
 0x17f   :  { %20720 = vmatprep.subr.msk.bf16.mxu0 %vm20719_vm11, %v22744_v15  ;;  %vm20601_vm15 = vmpackc.low %vm470_vm7, %vm436_vm6  ;;  %17038 = vmatmul.mubr.msk.f32.gmra.mrb[54].mxu1 %vm2803_vm12, %v25794_v61  ;;  %vm514_vm6 = vcmp.eq.s32.totalorder %v22903_v20, %v26076_v37  ;;  %vm548_vm7 = vcmp.eq.s32.totalorder %v22906_v21, %v26076_v37 }
 0x180   :  { %20602 = vmatpush1.bf16.msk.msra.mxu1 %vm20601_vm15, %v22744_v15  ;;  %vm20721_vm2 = vmpackc.low %vm480_vm10, %vm446_vm9  ;;  %17178 = vmatmul.mubr.msk.f32.gmra.mrb[46].mxu0 %vm2803_vm12, %v25794_v61  ;;  %vm573_vm9 = vcmp.eq.s32.totalorder %v22929_v22, %v26024_v30  ;;  %vm607_vm10 = vcmp.eq.s32.totalorder %v22932_v23, %v26024_v30  ;;  %v22608_v30 = vld [vmem:[%s31974_s0 + $0x40] sm:$0x1f] }
 0x181   :  { %20722 = vmatpush1.bf16.msk.msra.mxu0 %vm20721_vm2, %v22744_v15  ;;  %vm20603_vm5 = vmpackc.low %vm539_vm14, %vm505_vm13  ;;  %5384 = vmatprep.mubr.f32.mxu1 %v22743_v3  ;;  %vm583_vm13 = vcmp.eq.s32.totalorder %v22929_v22, %v26042_v33  ;;  %vm617_vm14 = vcmp.eq.s32.totalorder %v22932_v23, %v26042_v33  ;;  %v26714_v31 = vrot.slane %v22608_v30, %v26198_v38  ;;  %v22609_v33 = vld [vmem:[%s31975_s1] sm:$0xff] }
 0x182   :  { %20604 = vmatprep.subr.msk.bf16.mxu1 %vm20603_vm5, %v22744_v15  ;;  %vm20723_vm8 = vmpackc.low %vm549_vm1, %vm515_vm0  ;;  %5829 = vmatprep.mubr.f32.mxu0 %v22743_v3  ;;  %vm572_vm0 = vcmp.eq.s32.totalorder %v22929_v22, %v26059_v35  ;;  %vm606_vm1 = vcmp.eq.s32.totalorder %v22932_v23, %v26059_v35  ;;  %v22611_v35 = vld [vmem:[%s31975_s1 + $0x10] sm:$0xff] }
 0x183   :  { %20724 = vmatprep.subr.msk.bf16.mxu0 %vm20723_vm8, %v22744_v15  ;;  %vm20605_vm11 = vmpackc.low %vm538_vm4, %vm504_vm3  ;;  %vm582_vm3 = vcmp.eq.s32.totalorder %v22929_v22, %v26076_v37  ;;  %vm616_vm4 = vcmp.eq.s32.totalorder %v22932_v23, %v26076_v37  ;;  %v22613_v37 = vld [vmem:[%s31974_s0 + $0x38] sm:$0x1f] }
 0x184   :  { %20606 = vmatpush1.bf16.msk.msra.mxu1 %vm20605_vm11, %v22744_v15  ;;  %vm20725_vm15 = vmpackc.low %vm548_vm7, %vm514_vm6  ;;  %vm237_vm6 = vcmp.eq.s32.totalorder %v22792_v2, %v26231_v40  ;;  %vm271_vm7 = vcmp.eq.s32.totalorder %v22806_v7, %v26231_v40  ;;  %v26892_v39 = vrot.slane %v22613_v37, %v26198_v38  ;;  %v27604_v37 = vld [vmem:[%s31975_s1 + $0x48] sm:$0xff] }
 0x185   :  { %20726 = vmatpush1.bf16.msk.msra.mxu0 %vm20725_vm15, %v22744_v15  ;;  %vm20607_vm2 = vmpackc.low %vm607_vm10, %vm573_vm9  ;;  %vm5991_vm9 = vcmp.eq.s32.totalorder %v22792_v2, %v26249_v42  ;;  %vm6025_vm10 = vcmp.eq.s32.totalorder %v22806_v7, %v26249_v42 }
 0x186   :  { %20608 = vmatprep.subr.msk.bf16.mxu1 %vm20607_vm2, %v22744_v15  ;;  %vm20727_vm5 = vmpackc.low %vm617_vm14, %vm583_vm13  ;;  %vm236_vm13 = vcmp.eq.s32.totalorder %v22792_v2, %v26266_v51  ;;  %vm270_vm14 = vcmp.eq.s32.totalorder %v22806_v7, %v26266_v51 }
 0x187   :  { %20728 = vmatprep.subr.msk.bf16.mxu0 %vm20727_vm5, %v22744_v15  ;;  %vm20609_vm8 = vmpackc.low %vm606_vm1, %vm572_vm0  ;;  %vm5990_vm0 = vcmp.eq.s32.totalorder %v22792_v2, %v26283_v54  ;;  %vm6024_vm1 = vcmp.eq.s32.totalorder %v22806_v7, %v26283_v54 }
 0x188   :  { %20610 = vmatpush1.bf16.msk.msra.mxu1 %vm20609_vm8, %v22744_v15  ;;  %vm20729_vm11 = vmpackc.low %vm616_vm4, %vm582_vm3  ;;  %vm305_vm3 = vcmp.eq.s32.totalorder %v22812_v9, %v26231_v40  ;;  %vm339_vm4 = vcmp.eq.s32.totalorder %v22815_v10, %v26231_v40 }
 0x189   :  { %20730 = vmatpush1.bf16.msk.msra.mxu0 %vm20729_vm11, %v22744_v15  ;;  %vm20635_vm15 = vmpackc.low %vm271_vm7, %vm237_vm6  ;;  %vm6059_vm6 = vcmp.eq.s32.totalorder %v22812_v9, %v26249_v42  ;;  %vm6093_vm7 = vcmp.eq.s32.totalorder %v22815_v10, %v26249_v42 }
 0x18a   :  { %20636 = vmatprep.subr.msk.bf16.mxu1 %vm20635_vm15, %v22744_v15  ;;  %vm20731_vm2 = vmpackc.low %vm6025_vm10, %vm5991_vm9  ;;  %vm304_vm9 = vcmp.eq.s32.totalorder %v22812_v9, %v26266_v51  ;;  %vm338_vm10 = vcmp.eq.s32.totalorder %v22815_v10, %v26266_v51 }
 0x18b   :  { %20732 = vmatprep.subr.msk.bf16.mxu0 %vm20731_vm2, %v22744_v15  ;;  %17091 = vmatmul.mubr.msk.f32.vlgmr.msra.gmra.mrb[56].mxu1 %vm2803_vm12, %v25679_v58  ;;  %vm20637_vm5 = vmpackc.low %vm270_vm14, %vm236_vm13  ;;  %vm6058_vm13 = vcmp.eq.s32.totalorder %v22812_v9, %v26283_v54  ;;  %vm6092_vm14 = vcmp.eq.s32.totalorder %v22815_v10, %v26283_v54 }
 0x18c   :  { %20638 = vmatpush1.bf16.msk.msra.mxu1 %vm20637_vm5, %v22744_v15  ;;  %17231 = vmatmul.mubr.msk.f32.vlgmr.msra.gmra.mrb[48].mxu0 %vm2803_vm12, %v25679_v58  ;;  %vm20733_vm8 = vmpackc.low %vm6024_vm1, %vm5990_vm0  ;;  %vm373_vm0 = vcmp.eq.s32.totalorder %v22851_v16, %v26231_v40  ;;  %vm407_vm1 = vcmp.eq.s32.totalorder %v22854_v17, %v26231_v40 }
 0x18d   :  { %20734 = vmatpush1.bf16.msk.msra.mxu0 %vm20733_vm8, %v22744_v15  ;;  %vm20639_vm11 = vmpackc.low %vm339_vm4, %vm305_vm3  ;;  %5390 = vmatprep.mubr.f32.mxu1 %v22743_v3  ;;  %vm6127_vm3 = vcmp.eq.s32.totalorder %v22851_v16, %v26249_v42  ;;  %vm6161_vm4 = vcmp.eq.s32.totalorder %v22854_v17, %v26249_v42 }
 0x18e   :  { %20640 = vmatprep.subr.msk.bf16.mxu1 %vm20639_vm11, %v22744_v15  ;;  %vm20735_vm15 = vmpackc.low %vm6093_vm7, %vm6059_vm6  ;;  %5835 = vmatprep.mubr.f32.mxu0 %v22743_v3  ;;  %vm372_vm6 = vcmp.eq.s32.totalorder %v22851_v16, %v26266_v51  ;;  %vm406_vm7 = vcmp.eq.s32.totalorder %v22854_v17, %v26266_v51 }
 0x18f   :  { %20736 = vmatprep.subr.msk.bf16.mxu0 %vm20735_vm15, %v22744_v15  ;;  %vm20641_vm2 = vmpackc.low %vm338_vm10, %vm304_vm9  ;;  %17092 = vmatmul.mubr.msk.f32.gmra.mrb[58].mxu1 %vm2803_vm12, %v25714_v59  ;;  %vm6126_vm9 = vcmp.eq.s32.totalorder %v22851_v16, %v26283_v54  ;;  %vm6160_vm10 = vcmp.eq.s32.totalorder %v22854_v17, %v26283_v54 }
 0x190   :  { %20642 = vmatpush1.bf16.msk.msra.mxu1 %vm20641_vm2, %v22744_v15  ;;  %vm20737_vm5 = vmpackc.low %vm6092_vm14, %vm6058_vm13  ;;  %17232 = vmatmul.mubr.msk.f32.gmra.mrb[50].mxu0 %vm2803_vm12, %v25714_v59  ;;  %vm441_vm13 = vcmp.eq.s32.totalorder %v22877_v18, %v26231_v40  ;;  %vm475_vm14 = vcmp.eq.s32.totalorder %v22880_v19, %v26231_v40 }
 0x191   :  { %20738 = vmatpush1.bf16.msk.msra.mxu0 %vm20737_vm5, %v22744_v15  ;;  %vm20643_vm8 = vmpackc.low %vm407_vm1, %vm373_vm0  ;;  %5396 = vmatprep.mubr.f32.mxu1 %v22743_v3  ;;  %vm6195_vm0 = vcmp.eq.s32.totalorder %v22877_v18, %v26249_v42  ;;  %vm6229_vm1 = vcmp.eq.s32.totalorder %v22880_v19, %v26249_v42 }
 0x192   :  { %20644 = vmatprep.subr.msk.bf16.mxu1 %vm20643_vm8, %v22744_v15  ;;  %vm20739_vm11 = vmpackc.low %vm6161_vm4, %vm6127_vm3  ;;  %5841 = vmatprep.mubr.f32.mxu0 %v22743_v3  ;;  %vm440_vm3 = vcmp.eq.s32.totalorder %v22877_v18, %v26266_v51  ;;  %vm474_vm4 = vcmp.eq.s32.totalorder %v22880_v19, %v26266_v51 }
 0x193   :  { %20740 = vmatprep.subr.msk.bf16.mxu0 %vm20739_vm11, %v22744_v15  ;;  %vm20645_vm15 = vmpackc.low %vm406_vm7, %vm372_vm6  ;;  %17093 = vmatmul.mubr.msk.f32.gmra.mrb[60].mxu1 %vm2803_vm12, %v25754_v60  ;;  %vm6194_vm6 = vcmp.eq.s32.totalorder %v22877_v18, %v26283_v54  ;;  %vm6228_vm7 = vcmp.eq.s32.totalorder %v22880_v19, %v26283_v54 }
 0x194   :  { %20646 = vmatpush1.bf16.msk.msra.mxu1 %vm20645_vm15, %v22744_v15  ;;  %vm20741_vm2 = vmpackc.low %vm6160_vm10, %vm6126_vm9  ;;  %17233 = vmatmul.mubr.msk.f32.gmra.mrb[52].mxu0 %vm2803_vm12, %v25754_v60  ;;  %vm509_vm9 = vcmp.eq.s32.totalorder %v22903_v20, %v26231_v40  ;;  %vm543_vm10 = vcmp.eq.s32.totalorder %v22906_v21, %v26231_v40 }
 0x195   :  { %20742 = vmatpush1.bf16.msk.msra.mxu0 %vm20741_vm2, %v22744_v15  ;;  %vm20647_vm5 = vmpackc.low %vm475_vm14, %vm441_vm13  ;;  %5402 = vmatprep.mubr.f32.mxu1 %v22743_v3  ;;  %vm6263_vm13 = vcmp.eq.s32.totalorder %v22903_v20, %v26249_v42  ;;  %vm6297_vm14 = vcmp.eq.s32.totalorder %v22906_v21, %v26249_v42 }
 0x196   :  { %20648 = vmatprep.subr.msk.bf16.mxu1 %vm20647_vm5, %v22744_v15  ;;  %vm20743_vm8 = vmpackc.low %vm6229_vm1, %vm6195_vm0  ;;  %5847 = vmatprep.mubr.f32.mxu0 %v22743_v3  ;;  %vm508_vm0 = vcmp.eq.s32.totalorder %v22903_v20, %v26266_v51  ;;  %vm542_vm1 = vcmp.eq.s32.totalorder %v22906_v21, %v26266_v51 }
 0x197   :  { %20744 = vmatprep.subr.msk.bf16.mxu0 %vm20743_vm8, %v22744_v15  ;;  %vm20649_vm11 = vmpackc.low %vm474_vm4, %vm440_vm3  ;;  %17094 = vmatmul.mubr.msk.f32.gmra.mrb[62].mxu1 %vm2803_vm12, %v25794_v61  ;;  %vm6262_vm3 = vcmp.eq.s32.totalorder %v22903_v20, %v26283_v54  ;;  %vm6296_vm4 = vcmp.eq.s32.totalorder %v22906_v21, %v26283_v54 }
 0x198   :  { %20650 = vmatpush1.bf16.msk.msra.mxu1 %vm20649_vm11, %v22744_v15  ;;  %vm20745_vm15 = vmpackc.low %vm6228_vm7, %vm6194_vm6  ;;  %17234 = vmatmul.mubr.msk.f32.gmra.mrb[54].mxu0 %vm2803_vm12, %v25794_v61  ;;  %vm577_vm6 = vcmp.eq.s32.totalorder %v22929_v22, %v26231_v40  ;;  %vm611_vm7 = vcmp.eq.s32.totalorder %v22932_v23, %v26231_v40  ;;  %v22614_v40 = vld [vmem:[%s31974_s0 + $0x68] sm:$0x1f] }
 0x199   :  { %20746 = vmatpush1.bf16.msk.msra.mxu0 %vm20745_vm15, %v22744_v15  ;;  %vm20651_vm2 = vmpackc.low %vm543_vm10, %vm509_vm9  ;;  %5562 = vmatprep.mubr.f32.mxu1 %v22743_v3  ;;  %vm6331_vm9 = vcmp.eq.s32.totalorder %v22929_v22, %v26249_v42  ;;  %vm6365_vm10 = vcmp.eq.s32.totalorder %v22932_v23, %v26249_v42  ;;  %v26910_v41 = vrot.slane %v22614_v40, %v26198_v38  ;;  %v22615_v42 = vld [vmem:[%s31974_s0 + $0x30] sm:$0x1f]  ;;  %v27684_v40 = vld [vmem:[%s31975_s1 + $0x58] sm:$0xff] }
 0x19a   :  { %20652 = vmatprep.subr.msk.bf16.mxu1 %vm20651_vm2, %v22744_v15  ;;  %vm20747_vm5 = vmpackc.low %vm6297_vm14, %vm6263_vm13  ;;  %7295 = vmatprep.mubr.f32.mxu0 %v22743_v3  ;;  %vm576_vm13 = vcmp.eq.s32.totalorder %v22929_v22, %v26266_v51  ;;  %vm610_vm14 = vcmp.eq.s32.totalorder %v22932_v23, %v26266_v51  ;;  %v26927_v50 = vrot.slane %v22615_v42, %v26198_v38  ;;  %v22616_v51 = vld [vmem:[%s31974_s0 + $0x60] sm:$0x1f] }
 0x19b   :  { %20748 = vmatprep.subr.msk.bf16.mxu0 %vm20747_vm5, %v22744_v15  ;;  %vm20653_vm8 = vmpackc.low %vm542_vm1, %vm508_vm0  ;;  %vm6330_vm0 = vcmp.eq.s32.totalorder %v22929_v22, %v26283_v54  ;;  %vm6364_vm1 = vcmp.eq.s32.totalorder %v22932_v23, %v26283_v54  ;;  %v26944_v53 = vrot.slane %v22616_v51, %v26198_v38  ;;  %v22617_v54 = vld [vmem:[%s31974_s0 + $0x58] sm:$0x1f] }
 0x19c   :  { %20654 = vmatpush1.bf16.msk.msra.mxu1 %vm20653_vm8, %v22744_v15  ;;  %vm20749_vm11 = vmpackc.low %vm6296_vm4, %vm6262_vm3  ;;  %vm241_vm3 = vcmp.eq.s32.totalorder %v22792_v2, %v26426_v56  ;;  %vm275_vm4 = vcmp.eq.s32.totalorder %v22806_v7, %v26426_v56  ;;  %v27087_v55 = vrot.slane %v22617_v54, %v26198_v38 }
 0x19d   :  { %20750 = vmatpush1.bf16.msk.msra.mxu0 %vm20749_vm11, %v22744_v15  ;;  %vm20655_vm15 = vmpackc.low %vm611_vm7, %vm577_vm6  ;;  %vm5995_vm6 = vcmp.eq.s32.totalorder %v22792_v2, %v26444_v8  ;;  %vm6029_vm7 = vcmp.eq.s32.totalorder %v22806_v7, %v26444_v8 }
 0x19e   :  { %20656 = vmatprep.subr.msk.bf16.mxu1 %vm20655_vm15, %v22744_v15  ;;  %vm20751_vm2 = vmpackc.low %vm6365_vm10, %vm6331_vm9  ;;  %vm240_vm9 = vcmp.eq.s32.totalorder %v22792_v2, %v26461_v63  ;;  %vm274_vm10 = vcmp.eq.s32.totalorder %v22806_v7, %v26461_v63 }
 0x19f   :  { %20752 = vmatprep.subr.msk.bf16.mxu0 %vm20751_vm2, %v22744_v15  ;;  %vm20657_vm5 = vmpackc.low %vm610_vm14, %vm576_vm13  ;;  %vm5994_vm13 = vcmp.eq.s32.totalorder %v22792_v2, %v26478_v0  ;;  %vm6028_vm14 = vcmp.eq.s32.totalorder %v22806_v7, %v26478_v0 }
 0x1a0   :  { %20658 = vmatpush1.bf16.msk.msra.mxu1 %vm20657_vm5, %v22744_v15  ;;  %vm20753_vm8 = vmpackc.low %vm6364_vm1, %vm6330_vm0  ;;  %vm309_vm0 = vcmp.eq.s32.totalorder %v22812_v9, %v26426_v56  ;;  %vm343_vm1 = vcmp.eq.s32.totalorder %v22815_v10, %v26426_v56 }
 0x1a1   :  { %20754 = vmatpush1.bf16.msk.msra.mxu0 %vm20753_vm8, %v22744_v15  ;;  %vm20683_vm11 = vmpackc.low %vm275_vm4, %vm241_vm3  ;;  %vm6063_vm3 = vcmp.eq.s32.totalorder %v22812_v9, %v26444_v8  ;;  %vm6097_vm4 = vcmp.eq.s32.totalorder %v22815_v10, %v26444_v8 }
 0x1a2   :  { %20684 = vmatprep.subr.msk.bf16.mxu1 %vm20683_vm11, %v22744_v15  ;;  %vm20779_vm15 = vmpackc.low %vm6029_vm7, %vm5995_vm6  ;;  %vm308_vm6 = vcmp.eq.s32.totalorder %v22812_v9, %v26461_v63  ;;  %vm342_vm7 = vcmp.eq.s32.totalorder %v22815_v10, %v26461_v63 }
 0x1a3   :  { %20780 = vmatprep.subr.msk.bf16.mxu0 %vm20779_vm15, %v22744_v15  ;;  %17147 = vmatmul.mubr.msk.f32.vlgmr.msra.gmra.mrb[64].mxu1 %vm2803_vm12, %v25679_v58  ;;  %vm20685_vm2 = vmpackc.low %vm274_vm10, %vm240_vm9  ;;  %vm6062_vm9 = vcmp.eq.s32.totalorder %v22812_v9, %v26478_v0  ;;  %vm6096_vm10 = vcmp.eq.s32.totalorder %v22815_v10, %v26478_v0  ;;  %v26542_v58 = vld [vmem:[%s31975_s1 + $0x48] sm:$0xff] }
 0x1a4   :  { %20686 = vmatpush1.bf16.msk.msra.mxu1 %vm20685_vm2, %v22744_v15  ;;  %17671 = vmatmul.mubr.msk.f32.vlgmr.msra.gmra.mrb[56].mxu0 %vm2803_vm12, %v26508_v1  ;;  %vm20781_vm5 = vmpackc.low %vm6028_vm14, %vm5994_vm13  ;;  %vm377_vm13 = vcmp.eq.s32.totalorder %v22851_v16, %v26426_v56  ;;  %vm411_vm14 = vcmp.eq.s32.totalorder %v22854_v17, %v26426_v56 }
 0x1a5   :  { %20782 = vmatpush1.bf16.msk.msra.mxu0 %vm20781_vm5, %v22744_v15  ;;  %vm20687_vm8 = vmpackc.low %vm343_vm1, %vm309_vm0  ;;  %5568 = vmatprep.mubr.f32.mxu1 %v22743_v3  ;;  %vm6131_vm0 = vcmp.eq.s32.totalorder %v22851_v16, %v26444_v8  ;;  %vm6165_vm1 = vcmp.eq.s32.totalorder %v22854_v17, %v26444_v8 }
 0x1a6   :  { %20688 = vmatprep.subr.msk.bf16.mxu1 %vm20687_vm8, %v22744_v15  ;;  %vm20783_vm11 = vmpackc.low %vm6097_vm4, %vm6063_vm3  ;;  %7301 = vmatprep.mubr.f32.mxu0 %v22743_v3  ;;  %vm376_vm3 = vcmp.eq.s32.totalorder %v22851_v16, %v26461_v63  ;;  %vm410_vm4 = vcmp.eq.s32.totalorder %v22854_v17, %v26461_v63 }
 0x1a7   :  { %20784 = vmatprep.subr.msk.bf16.mxu0 %vm20783_vm11, %v22744_v15  ;;  %vm20689_vm15 = vmpackc.low %vm342_vm7, %vm308_vm6  ;;  %17148 = vmatmul.mubr.msk.f32.gmra.mrb[66].mxu1 %vm2803_vm12, %v25714_v59  ;;  %vm6130_vm6 = vcmp.eq.s32.totalorder %v22851_v16, %v26478_v0  ;;  %vm6164_vm7 = vcmp.eq.s32.totalorder %v22854_v17, %v26478_v0  ;;  %v26576_v59 = vld [vmem:[%s31975_s1 + $0x50] sm:$0xff] }
 0x1a8   :  { %20690 = vmatpush1.bf16.msk.msra.mxu1 %vm20689_vm15, %v22744_v15  ;;  %vm20785_vm2 = vmpackc.low %vm6096_vm10, %vm6062_vm9  ;;  %17672 = vmatmul.mubr.msk.f32.gmra.mrb[58].mxu0 %vm2803_vm12, %v26542_v58  ;;  %vm445_vm9 = vcmp.eq.s32.totalorder %v22877_v18, %v26426_v56  ;;  %vm479_vm10 = vcmp.eq.s32.totalorder %v22880_v19, %v26426_v56 }
 0x1a9   :  { %20786 = vmatpush1.bf16.msk.msra.mxu0 %vm20785_vm2, %v22744_v15  ;;  %vm20691_vm5 = vmpackc.low %vm411_vm14, %vm377_vm13  ;;  %5574 = vmatprep.mubr.f32.mxu1 %v22743_v3  ;;  %vm6199_vm13 = vcmp.eq.s32.totalorder %v22877_v18, %v26444_v8  ;;  %vm6233_vm14 = vcmp.eq.s32.totalorder %v22880_v19, %v26444_v8 }
 0x1aa   :  { %20692 = vmatprep.subr.msk.bf16.mxu1 %vm20691_vm5, %v22744_v15  ;;  %vm20787_vm8 = vmpackc.low %vm6165_vm1, %vm6131_vm0  ;;  %7307 = vmatprep.mubr.f32.mxu0 %v22743_v3  ;;  %vm444_vm0 = vcmp.eq.s32.totalorder %v22877_v18, %v26461_v63  ;;  %vm478_vm1 = vcmp.eq.s32.totalorder %v22880_v19, %v26461_v63 }
 0x1ab   :  { %20788 = vmatprep.subr.msk.bf16.mxu0 %vm20787_vm8, %v22744_v15  ;;  %vm20693_vm11 = vmpackc.low %vm410_vm4, %vm376_vm3  ;;  %17149 = vmatmul.mubr.msk.f32.gmra.mrb[68].mxu1 %vm2803_vm12, %v25754_v60  ;;  %vm6198_vm3 = vcmp.eq.s32.totalorder %v22877_v18, %v26478_v0  ;;  %vm6232_vm4 = vcmp.eq.s32.totalorder %v22880_v19, %v26478_v0  ;;  %v26616_v60 = vld [vmem:[%s31975_s1 + $0x58] sm:$0xff] }
 0x1ac   :  { %20694 = vmatpush1.bf16.msk.msra.mxu1 %vm20693_vm11, %v22744_v15  ;;  %vm20789_vm15 = vmpackc.low %vm6164_vm7, %vm6130_vm6  ;;  %17673 = vmatmul.mubr.msk.f32.gmra.mrb[60].mxu0 %vm2803_vm12, %v26576_v59  ;;  %vm513_vm6 = vcmp.eq.s32.totalorder %v22903_v20, %v26426_v56  ;;  %vm547_vm7 = vcmp.eq.s32.totalorder %v22906_v21, %v26426_v56 }
 0x1ad   :  { %20790 = vmatpush1.bf16.msk.msra.mxu0 %vm20789_vm15, %v22744_v15  ;;  %vm20695_vm2 = vmpackc.low %vm479_vm10, %vm445_vm9  ;;  %5580 = vmatprep.mubr.f32.mxu1 %v22743_v3  ;;  %vm6267_vm9 = vcmp.eq.s32.totalorder %v22903_v20, %v26444_v8  ;;  %vm6301_vm10 = vcmp.eq.s32.totalorder %v22906_v21, %v26444_v8 }
 0x1ae   :  { %20696 = vmatprep.subr.msk.bf16.mxu1 %vm20695_vm2, %v22744_v15  ;;  %vm20791_vm5 = vmpackc.low %vm6233_vm14, %vm6199_vm13  ;;  %7313 = vmatprep.mubr.f32.mxu0 %v22743_v3  ;;  %vm512_vm13 = vcmp.eq.s32.totalorder %v22903_v20, %v26461_v63  ;;  %vm546_vm14 = vcmp.eq.s32.totalorder %v22906_v21, %v26461_v63 }
 0x1af   :  { %20792 = vmatprep.subr.msk.bf16.mxu0 %vm20791_vm5, %v22744_v15  ;;  %vm20697_vm8 = vmpackc.low %vm478_vm1, %vm444_vm0  ;;  %17150 = vmatmul.mubr.msk.f32.gmra.mrb[70].mxu1 %vm2803_vm12, %v25794_v61  ;;  %vm6266_vm0 = vcmp.eq.s32.totalorder %v22903_v20, %v26478_v0  ;;  %vm6300_vm1 = vcmp.eq.s32.totalorder %v22906_v21, %v26478_v0  ;;  %v22605_v61 = vld [vmem:[%s31974_s0 + $0x18] sm:$0x1f] }
 0x1b0   :  { %20698 = vmatpush1.bf16.msk.msra.mxu1 %vm20697_vm8, %v22744_v15  ;;  %vm20793_vm11 = vmpackc.low %vm6232_vm4, %vm6198_vm3  ;;  %17674 = vmatmul.mubr.msk.f32.gmra.mrb[62].mxu0 %vm2803_vm12, %v26616_v60  ;;  %vm581_vm3 = vcmp.eq.s32.totalorder %v22929_v22, %v26426_v56  ;;  %vm615_vm4 = vcmp.eq.s32.totalorder %v22932_v23, %v26426_v56  ;;  %v26662_v4 = vrot.slane %v22605_v61, %v26198_v38  ;;  %v22618_v56 = vld [vmem:[%s31974_s0 + $0x88] sm:$0x1f] }
 0x1b1   :  { %20794 = vmatpush1.bf16.msk.msra.mxu0 %vm20793_vm11, %v22744_v15  ;;  %vm20699_vm15 = vmpackc.low %vm547_vm7, %vm513_vm6  ;;  %5740 = vmatprep.mubr.f32.mxu1 %v22743_v3  ;;  %vm6335_vm6 = vcmp.eq.s32.totalorder %v22929_v22, %v26444_v8  ;;  %vm6369_vm7 = vcmp.eq.s32.totalorder %v22932_v23, %v26444_v8  ;;  %v27105_v57 = vrot.slane %v22618_v56, %v26198_v38  ;;  %v22619_v8 = vld [vmem:[%s31974_s0 + $0x50] sm:$0x1f] }
 0x1b2   :  { %20700 = vmatprep.subr.msk.bf16.mxu1 %vm20699_vm15, %v22744_v15  ;;  %vm20795_vm2 = vmpackc.low %vm6301_vm10, %vm6267_vm9  ;;  %7473 = vmatprep.mubr.f32.mxu0 %v22743_v3  ;;  %vm580_vm9 = vcmp.eq.s32.totalorder %v22929_v22, %v26461_v63  ;;  %vm614_vm10 = vcmp.eq.s32.totalorder %v22932_v23, %v26461_v63  ;;  %v27122_v62 = vrot.slane %v22619_v8, %v26198_v38  ;;  %v22620_v63 = vld [vmem:[%s31974_s0 + $0x80] sm:$0x1f] }
 0x1b3   :  { %20796 = vmatprep.subr.msk.bf16.mxu0 %vm20795_vm2, %v22744_v15  ;;  %vm20701_vm5 = vmpackc.low %vm546_vm14, %vm512_vm13  ;;  %vm6334_vm13 = vcmp.eq.s32.totalorder %v22929_v22, %v26478_v0  ;;  %vm6368_vm14 = vcmp.eq.s32.totalorder %v22932_v23, %v26478_v0  ;;  %v27139_v32 = vrot.slane %v22620_v63, %v26198_v38  ;;  %v22621_v0 = vld [vmem:[%s31974_s0 + $0x78] sm:$0x1f] }
 0x1b4   :  { %20702 = vmatpush1.bf16.msk.msra.mxu1 %vm20701_vm5, %v22744_v15  ;;  %vm20797_vm8 = vmpackc.low %vm6300_vm1, %vm6266_vm0  ;;  %vm5993_vm0 = vcmp.eq.s32.totalorder %v22792_v2, %v26662_v4  ;;  %vm6027_vm1 = vcmp.eq.s32.totalorder %v22806_v7, %v26662_v4  ;;  %v27282_v61 = vrot.slane %v22621_v0, %v26198_v38 }
 0x1b5   :  { %20798 = vmatpush1.bf16.msk.msra.mxu0 %vm20797_vm8, %v22744_v15  ;;  %vm20703_vm11 = vmpackc.low %vm615_vm4, %vm581_vm3  ;;  %vm5999_vm3 = vcmp.eq.s32.totalorder %v22792_v2, %v26680_v27  ;;  %vm6033_vm4 = vcmp.eq.s32.totalorder %v22806_v7, %v26680_v27 }
 0x1b6   :  { %20704 = vmatprep.subr.msk.bf16.mxu1 %vm20703_vm11, %v22744_v15  ;;  %vm20799_vm15 = vmpackc.low %vm6369_vm7, %vm6335_vm6  ;;  %vm5992_vm6 = vcmp.eq.s32.totalorder %v22792_v2, %v26697_v29  ;;  %vm6026_vm7 = vcmp.eq.s32.totalorder %v22806_v7, %v26697_v29 }
 0x1b7   :  { %20800 = vmatprep.subr.msk.bf16.mxu0 %vm20799_vm15, %v22744_v15  ;;  %vm20705_vm2 = vmpackc.low %vm614_vm10, %vm580_vm9  ;;  %vm5998_vm9 = vcmp.eq.s32.totalorder %v22792_v2, %v26714_v31  ;;  %vm6032_vm10 = vcmp.eq.s32.totalorder %v22806_v7, %v26714_v31 }
 0x1b8   :  { %20706 = vmatpush1.bf16.msk.msra.mxu1 %vm20705_vm2, %v22744_v15  ;;  %vm20801_vm5 = vmpackc.low %vm6368_vm14, %vm6334_vm13  ;;  %vm6061_vm13 = vcmp.eq.s32.totalorder %v22812_v9, %v26662_v4  ;;  %vm6095_vm14 = vcmp.eq.s32.totalorder %v22815_v10, %v26662_v4 }
 0x1b9   :  { %20802 = vmatpush1.bf16.msk.msra.mxu0 %vm20801_vm5, %v22744_v15  ;;  %vm20755_vm8 = vmpackc.low %vm6027_vm1, %vm5993_vm0  ;;  %vm6067_vm0 = vcmp.eq.s32.totalorder %v22812_v9, %v26680_v27  ;;  %vm6101_vm1 = vcmp.eq.s32.totalorder %v22815_v10, %v26680_v27 }
 0x1ba   :  { %20756 = vmatprep.subr.msk.bf16.mxu1 %vm20755_vm8, %v22744_v15  ;;  %vm20827_vm11 = vmpackc.low %vm6033_vm4, %vm5999_vm3  ;;  %vm6060_vm3 = vcmp.eq.s32.totalorder %v22812_v9, %v26697_v29  ;;  %vm6094_vm4 = vcmp.eq.s32.totalorder %v22815_v10, %v26697_v29 }
 0x1bb   :  { %20828 = vmatprep.subr.msk.bf16.mxu0 %vm20827_vm11, %v22744_v15  ;;  %17203 = vmatmul.mubr.msk.f32.vlgmr.msra.gmra.mrb[72].mxu1 %vm2803_vm12, %v22609_v33  ;;  %vm20757_vm15 = vmpackc.low %vm6026_vm7, %vm5992_vm6  ;;  %vm6066_vm6 = vcmp.eq.s32.totalorder %v22812_v9, %v26714_v31  ;;  %vm6100_vm7 = vcmp.eq.s32.totalorder %v22815_v10, %v26714_v31 }
 0x1bc   :  { %20758 = vmatpush1.bf16.msk.msra.mxu1 %vm20757_vm15, %v22744_v15  ;;  %17727 = vmatmul.mubr.msk.f32.vlgmr.msra.gmra.mrb[64].mxu0 %vm2803_vm12, %v26508_v1  ;;  %vm20829_vm2 = vmpackc.low %vm6032_vm10, %vm5998_vm9  ;;  %vm6129_vm9 = vcmp.eq.s32.totalorder %v22851_v16, %v26662_v4  ;;  %vm6163_vm10 = vcmp.eq.s32.totalorder %v22854_v17, %v26662_v4 }
 0x1bd   :  { %20830 = vmatpush1.bf16.msk.msra.mxu0 %vm20829_vm2, %v22744_v15  ;;  %vm20759_vm5 = vmpackc.low %vm6095_vm14, %vm6061_vm13  ;;  %5746 = vmatprep.mubr.f32.mxu1 %v22743_v3  ;;  %vm6135_vm13 = vcmp.eq.s32.totalorder %v22851_v16, %v26680_v27  ;;  %vm6169_vm14 = vcmp.eq.s32.totalorder %v22854_v17, %v26680_v27 }
 0x1be   :  { %20760 = vmatprep.subr.msk.bf16.mxu1 %vm20759_vm5, %v22744_v15  ;;  %vm20831_vm8 = vmpackc.low %vm6101_vm1, %vm6067_vm0  ;;  %7479 = vmatprep.mubr.f32.mxu0 %v22743_v3  ;;  %vm6128_vm0 = vcmp.eq.s32.totalorder %v22851_v16, %v26697_v29  ;;  %vm6162_vm1 = vcmp.eq.s32.totalorder %v22854_v17, %v26697_v29 }
 0x1bf   :  { %20832 = vmatprep.subr.msk.bf16.mxu0 %vm20831_vm8, %v22744_v15  ;;  %vm20761_vm11 = vmpackc.low %vm6094_vm4, %vm6060_vm3  ;;  %17204 = vmatmul.mubr.msk.f32.gmra.mrb[74].mxu1 %vm2803_vm12, %v22610_v34  ;;  %vm6134_vm3 = vcmp.eq.s32.totalorder %v22851_v16, %v26714_v31  ;;  %vm6168_vm4 = vcmp.eq.s32.totalorder %v22854_v17, %v26714_v31  ;;  %v22628_v34 = vld [vmem:[%s31974_s0 + $0xc0] sm:$0x1f] }
 0x1c0   :  { %20762 = vmatpush1.bf16.msk.msra.mxu1 %vm20761_vm11, %v22744_v15  ;;  %vm20833_vm15 = vmpackc.low %vm6100_vm7, %vm6066_vm6  ;;  %17728 = vmatmul.mubr.msk.f32.gmra.mrb[66].mxu0 %vm2803_vm12, %v26542_v58  ;;  %vm6197_vm6 = vcmp.eq.s32.totalorder %v22877_v18, %v26662_v4  ;;  %vm6231_vm7 = vcmp.eq.s32.totalorder %v22880_v19, %v26662_v4 }
 0x1c1   :  { %20834 = vmatpush1.bf16.msk.msra.mxu0 %vm20833_vm15, %v22744_v15  ;;  %vm20763_vm2 = vmpackc.low %vm6163_vm10, %vm6129_vm9  ;;  %5752 = vmatprep.mubr.f32.mxu1 %v22743_v3  ;;  %vm6203_vm9 = vcmp.eq.s32.totalorder %v22877_v18, %v26680_v27  ;;  %vm6237_vm10 = vcmp.eq.s32.totalorder %v22880_v19, %v26680_v27 }
 0x1c2   :  { %20764 = vmatprep.subr.msk.bf16.mxu1 %vm20763_vm2, %v22744_v15  ;;  %vm20835_vm5 = vmpackc.low %vm6169_vm14, %vm6135_vm13  ;;  %7485 = vmatprep.mubr.f32.mxu0 %v22743_v3  ;;  %vm6196_vm13 = vcmp.eq.s32.totalorder %v22877_v18, %v26697_v29  ;;  %vm6230_vm14 = vcmp.eq.s32.totalorder %v22880_v19, %v26697_v29 }
 0x1c3   :  { %20836 = vmatprep.subr.msk.bf16.mxu0 %vm20835_vm5, %v22744_v15  ;;  %vm20765_vm8 = vmpackc.low %vm6162_vm1, %vm6128_vm0  ;;  %17205 = vmatmul.mubr.msk.f32.gmra.mrb[76].mxu1 %vm2803_vm12, %v22611_v35  ;;  %vm6202_vm0 = vcmp.eq.s32.totalorder %v22877_v18, %v26714_v31  ;;  %vm6236_vm1 = vcmp.eq.s32.totalorder %v22880_v19, %v26714_v31  ;;  %v27529_v35 = vrot.slane %v22628_v34, %v26198_v38 }
 0x1c4   :  { %20766 = vmatpush1.bf16.msk.msra.mxu1 %vm20765_vm8, %v22744_v15  ;;  %vm20837_vm11 = vmpackc.low %vm6168_vm4, %vm6134_vm3  ;;  %17729 = vmatmul.mubr.msk.f32.gmra.mrb[68].mxu0 %vm2803_vm12, %v26576_v59  ;;  %vm6265_vm3 = vcmp.eq.s32.totalorder %v22903_v20, %v26662_v4  ;;  %vm6299_vm4 = vcmp.eq.s32.totalorder %v22906_v21, %v26662_v4 }
 0x1c5   :  { %20838 = vmatpush1.bf16.msk.msra.mxu0 %vm20837_vm11, %v22744_v15  ;;  %vm20767_vm15 = vmpackc.low %vm6231_vm7, %vm6197_vm6  ;;  %5758 = vmatprep.mubr.f32.mxu1 %v22743_v3  ;;  %vm6271_vm6 = vcmp.eq.s32.totalorder %v22903_v20, %v26680_v27  ;;  %vm6305_vm7 = vcmp.eq.s32.totalorder %v22906_v21, %v26680_v27 }
 0x1c6   :  { %20768 = vmatprep.subr.msk.bf16.mxu1 %vm20767_vm15, %v22744_v15  ;;  %vm20839_vm2 = vmpackc.low %vm6237_vm10, %vm6203_vm9  ;;  %7491 = vmatprep.mubr.f32.mxu0 %v22743_v3  ;;  %vm6264_vm9 = vcmp.eq.s32.totalorder %v22903_v20, %v26697_v29  ;;  %vm6298_vm10 = vcmp.eq.s32.totalorder %v22906_v21, %v26697_v29 }
 0x1c7   :  { %20840 = vmatprep.subr.msk.bf16.mxu0 %vm20839_vm2, %v22744_v15  ;;  %vm20769_vm5 = vmpackc.low %vm6230_vm14, %vm6196_vm13  ;;  %17206 = vmatmul.mubr.msk.f32.gmra.mrb[78].mxu1 %vm2803_vm12, %v22612_v36  ;;  %vm6270_vm13 = vcmp.eq.s32.totalorder %v22903_v20, %v26714_v31  ;;  %vm6304_vm14 = vcmp.eq.s32.totalorder %v22906_v21, %v26714_v31  ;;  %v27569_v36 = vld [vmem:[%s31975_s1 + $0x40] sm:$0xff] }
 0x1c8   :  { %20770 = vmatpush1.bf16.msk.msra.mxu1 %vm20769_vm5, %v22744_v15  ;;  %vm20841_vm8 = vmpackc.low %vm6236_vm1, %vm6202_vm0  ;;  %17730 = vmatmul.mubr.msk.f32.gmra.mrb[70].mxu0 %vm2803_vm12, %v26616_v60  ;;  %vm6333_vm0 = vcmp.eq.s32.totalorder %v22929_v22, %v26662_v4  ;;  %vm6367_vm1 = vcmp.eq.s32.totalorder %v22932_v23, %v26662_v4  ;;  %v22622_v4 = vld [vmem:[%s31974_s0 + $0xa8] sm:$0x1f] }
 0x1c9   :  { %20842 = vmatpush1.bf16.msk.msra.mxu0 %vm20841_vm8, %v22744_v15  ;;  %vm20771_vm11 = vmpackc.low %vm6299_vm4, %vm6265_vm3  ;;  %7384 = vmatprep.mubr.f32.mxu1 %v22743_v3  ;;  %vm6339_vm3 = vcmp.eq.s32.totalorder %v22929_v22, %v26680_v27  ;;  %vm6373_vm4 = vcmp.eq.s32.totalorder %v22932_v23, %v26680_v27  ;;  %v27300_v26 = vrot.slane %v22622_v4, %v26198_v38  ;;  %v22623_v27 = vld [vmem:[%s31974_s0 + $0x70] sm:$0x1f] }
 0x1ca   :  { %20772 = vmatprep.subr.msk.bf16.mxu1 %vm20771_vm11, %v22744_v15  ;;  %vm20843_vm15 = vmpackc.low %vm6305_vm7, %vm6271_vm6  ;;  %7651 = vmatprep.mubr.f32.mxu0 %v22743_v3  ;;  %vm6332_vm6 = vcmp.eq.s32.totalorder %v22929_v22, %v26697_v29  ;;  %vm6366_vm7 = vcmp.eq.s32.totalorder %v22932_v23, %v26697_v29  ;;  %v27317_v28 = vrot.slane %v22623_v27, %v26198_v38  ;;  %v22624_v29 = vld [vmem:[%s31974_s0 + $0xa0] sm:$0x1f]  ;;  %v22641_v27 = vld [vmem:[%s31974_s0 + $0xf8] sm:$0x1f] }
 0x1cb   :  { %20844 = vmatprep.subr.msk.bf16.mxu0 %vm20843_vm15, %v22744_v15  ;;  %vm20773_vm2 = vmpackc.low %vm6298_vm10, %vm6264_vm9  ;;  %vm6338_vm9 = vcmp.eq.s32.totalorder %v22929_v22, %v26714_v31  ;;  %vm6372_vm10 = vcmp.eq.s32.totalorder %v22932_v23, %v26714_v31  ;;  %v27334_v30 = vrot.slane %v22624_v29, %v26198_v38  ;;  %v22627_v31 = vld [vmem:[%s31974_s0 + $0x90] sm:$0x1f]  ;;  %v22642_v29 = vld [vmem:[%s31974_s0 + $0x8] sm:$0x1f] }
 0x1cc   :  { %20774 = vmatpush1.bf16.msk.msra.mxu1 %vm20773_vm2, %v22744_v15  ;;  %vm20845_vm5 = vmpackc.low %vm6304_vm14, %vm6270_vm13  ;;  %vm5997_vm13 = vcmp.eq.s32.totalorder %v22792_v2, %v26892_v39  ;;  %vm6031_vm14 = vcmp.eq.s32.totalorder %v22806_v7, %v26892_v39  ;;  %v27512_v33 = vrot.slane %v22627_v31, %v26198_v38 }
 0x1cd   :  { %20846 = vmatpush1.bf16.msk.msra.mxu0 %vm20845_vm5, %v22744_v15  ;;  %vm20775_vm8 = vmpackc.low %vm6367_vm1, %vm6333_vm0  ;;  %vm6003_vm0 = vcmp.eq.s32.totalorder %v22792_v2, %v26910_v41  ;;  %vm6037_vm1 = vcmp.eq.s32.totalorder %v22806_v7, %v26910_v41 }
 0x1ce   :  { %20776 = vmatprep.subr.msk.bf16.mxu1 %vm20775_vm8, %v22744_v15  ;;  %vm20847_vm11 = vmpackc.low %vm6373_vm4, %vm6339_vm3  ;;  %vm5996_vm3 = vcmp.eq.s32.totalorder %v22792_v2, %v26927_v50  ;;  %vm6030_vm4 = vcmp.eq.s32.totalorder %v22806_v7, %v26927_v50 }
 0x1cf   :  { %20848 = vmatprep.subr.msk.bf16.mxu0 %vm20847_vm11, %v22744_v15  ;;  %vm20777_vm15 = vmpackc.low %vm6366_vm7, %vm6332_vm6  ;;  %vm6002_vm6 = vcmp.eq.s32.totalorder %v22792_v2, %v26944_v53  ;;  %vm6036_vm7 = vcmp.eq.s32.totalorder %v22806_v7, %v26944_v53 }
 0x1d0   :  { %20778 = vmatpush1.bf16.msk.msra.mxu1 %vm20777_vm15, %v22744_v15  ;;  %vm20849_vm2 = vmpackc.low %vm6372_vm10, %vm6338_vm9  ;;  %vm6065_vm9 = vcmp.eq.s32.totalorder %v22812_v9, %v26892_v39  ;;  %vm6099_vm10 = vcmp.eq.s32.totalorder %v22815_v10, %v26892_v39 }
 0x1d1   :  { %20850 = vmatpush1.bf16.msk.msra.mxu0 %vm20849_vm2, %v22744_v15  ;;  %vm20803_vm5 = vmpackc.low %vm6031_vm14, %vm5997_vm13  ;;  %vm6071_vm13 = vcmp.eq.s32.totalorder %v22812_v9, %v26910_v41  ;;  %vm6105_vm14 = vcmp.eq.s32.totalorder %v22815_v10, %v26910_v41 }
 0x1d2   :  { %20804 = vmatprep.subr.msk.bf16.mxu1 %vm20803_vm5, %v22744_v15  ;;  %vm20875_vm8 = vmpackc.low %vm6037_vm1, %vm6003_vm0  ;;  %vm6064_vm0 = vcmp.eq.s32.totalorder %v22812_v9, %v26927_v50  ;;  %vm6098_vm1 = vcmp.eq.s32.totalorder %v22815_v10, %v26927_v50 }
 0x1d3   :  { %20876 = vmatprep.subr.msk.bf16.mxu0 %vm20875_vm8, %v22744_v15  ;;  %17699 = vmatmul.mubr.msk.f32.vlgmr.msra.gmra.mrb[8].mxu1 %vm2803_vm12, %v26508_v1  ;;  %vm20805_vm11 = vmpackc.low %vm6030_vm4, %vm5996_vm3  ;;  %vm6070_vm3 = vcmp.eq.s32.totalorder %v22812_v9, %v26944_v53  ;;  %vm6104_vm4 = vcmp.eq.s32.totalorder %v22815_v10, %v26944_v53 }
 0x1d4   :  { %20806 = vmatpush1.bf16.msk.msra.mxu1 %vm20805_vm11, %v22744_v15  ;;  %17783 = vmatmul.mubr.msk.f32.vlgmr.msra.gmra.mrb[0].mxu0 %vm2803_vm12, %v26508_v1  ;;  %vm20877_vm15 = vmpackc.low %vm6036_vm7, %vm6002_vm6  ;;  %vm6133_vm6 = vcmp.eq.s32.totalorder %v22851_v16, %v26892_v39  ;;  %vm6167_vm7 = vcmp.eq.s32.totalorder %v22854_v17, %v26892_v39 }
 0x1d5   :  { %20878 = vmatpush1.bf16.msk.msra.mxu0 %vm20877_vm15, %v22744_v15  ;;  %vm20807_vm2 = vmpackc.low %vm6099_vm10, %vm6065_vm9  ;;  %7390 = vmatprep.mubr.f32.mxu1 %v22743_v3  ;;  %vm6139_vm9 = vcmp.eq.s32.totalorder %v22851_v16, %v26910_v41  ;;  %vm6173_vm10 = vcmp.eq.s32.totalorder %v22854_v17, %v26910_v41 }
 0x1d6   :  { %20808 = vmatprep.subr.msk.bf16.mxu1 %vm20807_vm2, %v22744_v15  ;;  %vm20879_vm5 = vmpackc.low %vm6105_vm14, %vm6071_vm13  ;;  %7657 = vmatprep.mubr.f32.mxu0 %v22743_v3  ;;  %vm6132_vm13 = vcmp.eq.s32.totalorder %v22851_v16, %v26927_v50  ;;  %vm6166_vm14 = vcmp.eq.s32.totalorder %v22854_v17, %v26927_v50 }
 0x1d7   :  { %20880 = vmatprep.subr.msk.bf16.mxu0 %vm20879_vm5, %v22744_v15  ;;  %vm20809_vm8 = vmpackc.low %vm6098_vm1, %vm6064_vm0  ;;  %17700 = vmatmul.mubr.msk.f32.gmra.mrb[10].mxu1 %vm2803_vm12, %v26542_v58  ;;  %vm6138_vm0 = vcmp.eq.s32.totalorder %v22851_v16, %v26944_v53  ;;  %vm6172_vm1 = vcmp.eq.s32.totalorder %v22854_v17, %v26944_v53 }
 0x1d8   :  { %20810 = vmatpush1.bf16.msk.msra.mxu1 %vm20809_vm8, %v22744_v15  ;;  %vm20881_vm11 = vmpackc.low %vm6104_vm4, %vm6070_vm3  ;;  %17784 = vmatmul.mubr.msk.f32.gmra.mrb[2].mxu0 %vm2803_vm12, %v26542_v58  ;;  %vm6201_vm3 = vcmp.eq.s32.totalorder %v22877_v18, %v26892_v39  ;;  %vm6235_vm4 = vcmp.eq.s32.totalorder %v22880_v19, %v26892_v39 }
 0x1d9   :  { %20882 = vmatpush1.bf16.msk.msra.mxu0 %vm20881_vm11, %v22744_v15  ;;  %vm20811_vm15 = vmpackc.low %vm6167_vm7, %vm6133_vm6  ;;  %7396 = vmatprep.mubr.f32.mxu1 %v22743_v3  ;;  %vm6207_vm6 = vcmp.eq.s32.totalorder %v22877_v18, %v26910_v41  ;;  %vm6241_vm7 = vcmp.eq.s32.totalorder %v22880_v19, %v26910_v41 }
 0x1da   :  { %20812 = vmatprep.subr.msk.bf16.mxu1 %vm20811_vm15, %v22744_v15  ;;  %vm20883_vm2 = vmpackc.low %vm6173_vm10, %vm6139_vm9  ;;  %7663 = vmatprep.mubr.f32.mxu0 %v22743_v3  ;;  %vm6200_vm9 = vcmp.eq.s32.totalorder %v22877_v18, %v26927_v50  ;;  %vm6234_vm10 = vcmp.eq.s32.totalorder %v22880_v19, %v26927_v50 }
 0x1db   :  { %20884 = vmatprep.subr.msk.bf16.mxu0 %vm20883_vm2, %v22744_v15  ;;  %vm20813_vm5 = vmpackc.low %vm6166_vm14, %vm6132_vm13  ;;  %17701 = vmatmul.mubr.msk.f32.gmra.mrb[12].mxu1 %vm2803_vm12, %v26576_v59  ;;  %vm6206_vm13 = vcmp.eq.s32.totalorder %v22877_v18, %v26944_v53  ;;  %vm6240_vm14 = vcmp.eq.s32.totalorder %v22880_v19, %v26944_v53 }
 0x1dc   :  { %20814 = vmatpush1.bf16.msk.msra.mxu1 %vm20813_vm5, %v22744_v15  ;;  %vm20885_vm8 = vmpackc.low %vm6172_vm1, %vm6138_vm0  ;;  %17785 = vmatmul.mubr.msk.f32.gmra.mrb[4].mxu0 %vm2803_vm12, %v26576_v59  ;;  %vm6269_vm0 = vcmp.eq.s32.totalorder %v22903_v20, %v26892_v39  ;;  %vm6303_vm1 = vcmp.eq.s32.totalorder %v22906_v21, %v26892_v39 }
 0x1dd   :  { %20886 = vmatpush1.bf16.msk.msra.mxu0 %vm20885_vm8, %v22744_v15  ;;  %vm20815_vm11 = vmpackc.low %vm6235_vm4, %vm6201_vm3  ;;  %7402 = vmatprep.mubr.f32.mxu1 %v22743_v3  ;;  %vm6275_vm3 = vcmp.eq.s32.totalorder %v22903_v20, %v26910_v41  ;;  %vm6309_vm4 = vcmp.eq.s32.totalorder %v22906_v21, %v26910_v41 }
 0x1de   :  { %20816 = vmatprep.subr.msk.bf16.mxu1 %vm20815_vm11, %v22744_v15  ;;  %vm20887_vm15 = vmpackc.low %vm6241_vm7, %vm6207_vm6  ;;  %7669 = vmatprep.mubr.f32.mxu0 %v22743_v3  ;;  %vm6268_vm6 = vcmp.eq.s32.totalorder %v22903_v20, %v26927_v50  ;;  %vm6302_vm7 = vcmp.eq.s32.totalorder %v22906_v21, %v26927_v50 }
 0x1df   :  { %20888 = vmatprep.subr.msk.bf16.mxu0 %vm20887_vm15, %v22744_v15  ;;  %vm20817_vm2 = vmpackc.low %vm6234_vm10, %vm6200_vm9  ;;  %17702 = vmatmul.mubr.msk.f32.gmra.mrb[14].mxu1 %vm2803_vm12, %v26616_v60  ;;  %vm6274_vm9 = vcmp.eq.s32.totalorder %v22903_v20, %v26944_v53  ;;  %vm6308_vm10 = vcmp.eq.s32.totalorder %v22906_v21, %v26944_v53 }
 0x1e0   :  { %20818 = vmatpush1.bf16.msk.msra.mxu1 %vm20817_vm2, %v22744_v15  ;;  %vm20889_vm5 = vmpackc.low %vm6240_vm14, %vm6206_vm13  ;;  %17786 = vmatmul.mubr.msk.f32.gmra.mrb[6].mxu0 %vm2803_vm12, %v26616_v60  ;;  %vm6337_vm13 = vcmp.eq.s32.totalorder %v22929_v22, %v26892_v39  ;;  %vm6371_vm14 = vcmp.eq.s32.totalorder %v22932_v23, %v26892_v39  ;;  %v27644_v39 = vld [vmem:[%s31975_s1 + $0x50] sm:$0xff] }
 0x1e1   :  { %20890 = vmatpush1.bf16.msk.msra.mxu0 %vm20889_vm5, %v22744_v15  ;;  %vm20819_vm8 = vmpackc.low %vm6303_vm1, %vm6269_vm0  ;;  %7562 = vmatprep.mubr.f32.mxu1 %v22743_v3  ;;  %vm6343_vm0 = vcmp.eq.s32.totalorder %v22929_v22, %v26910_v41  ;;  %vm6377_vm1 = vcmp.eq.s32.totalorder %v22932_v23, %v26910_v41  ;;  %v22633_v41 = vld [vmem:[%s31974_s0 + $0xb8] sm:$0x1f] }
 0x1e2   :  { %20820 = vmatprep.subr.msk.bf16.mxu1 %vm20819_vm8, %v22744_v15  ;;  %vm20891_vm11 = vmpackc.low %vm6309_vm4, %vm6275_vm3  ;;  %7829 = vmatprep.mubr.f32.mxu0 %v22743_v3  ;;  %vm6336_vm3 = vcmp.eq.s32.totalorder %v22929_v22, %v26927_v50  ;;  %vm6370_vm4 = vcmp.eq.s32.totalorder %v22932_v23, %v26927_v50  ;;  %v27719_v42 = vrot.slane %v22633_v41, %v26198_v38  ;;  %v22634_v50 = vld [vmem:[%s31974_s0 + $0xe8] sm:$0x1f] }
 0x1e3   :  { %20892 = vmatprep.subr.msk.bf16.mxu0 %vm20891_vm11, %v22744_v15  ;;  %vm20821_vm15 = vmpackc.low %vm6302_vm7, %vm6268_vm6  ;;  %vm6342_vm6 = vcmp.eq.s32.totalorder %v22929_v22, %v26944_v53  ;;  %vm6376_vm7 = vcmp.eq.s32.totalorder %v22932_v23, %v26944_v53  ;;  %v27737_v51 = vrot.slane %v22634_v50, %v26198_v38  ;;  %v22635_v53 = vld [vmem:[%s31974_s0 + $0xb0] sm:$0x1f] }
 0x1e4   :  { %20822 = vmatpush1.bf16.msk.msra.mxu1 %vm20821_vm15, %v22744_v15  ;;  %vm20893_vm2 = vmpackc.low %vm6308_vm10, %vm6274_vm9  ;;  %vm6001_vm9 = vcmp.eq.s32.totalorder %v22792_v2, %v27087_v55  ;;  %vm6035_vm10 = vcmp.eq.s32.totalorder %v22806_v7, %v27087_v55  ;;  %v27754_v54 = vrot.slane %v22635_v53, %v26198_v38 }
 0x1e5   :  { %20894 = vmatpush1.bf16.msk.msra.mxu0 %vm20893_vm2, %v22744_v15  ;;  %vm20823_vm5 = vmpackc.low %vm6371_vm14, %vm6337_vm13  ;;  %vm6007_vm13 = vcmp.eq.s32.totalorder %v22792_v2, %v27105_v57  ;;  %vm6041_vm14 = vcmp.eq.s32.totalorder %v22806_v7, %v27105_v57 }
 0x1e6   :  { %20824 = vmatprep.subr.msk.bf16.mxu1 %vm20823_vm5, %v22744_v15  ;;  %vm20895_vm8 = vmpackc.low %vm6377_vm1, %vm6343_vm0  ;;  %vm6000_vm0 = vcmp.eq.s32.totalorder %v22792_v2, %v27122_v62  ;;  %vm6034_vm1 = vcmp.eq.s32.totalorder %v22806_v7, %v27122_v62 }
 0x1e7   :  { %20896 = vmatprep.subr.msk.bf16.mxu0 %vm20895_vm8, %v22744_v15  ;;  %vm20825_vm11 = vmpackc.low %vm6370_vm4, %vm6336_vm3  ;;  %vm6006_vm3 = vcmp.eq.s32.totalorder %v22792_v2, %v27139_v32  ;;  %vm6040_vm4 = vcmp.eq.s32.totalorder %v22806_v7, %v27139_v32 }
 0x1e8   :  { %20826 = vmatpush1.bf16.msk.msra.mxu1 %vm20825_vm11, %v22744_v15  ;;  %vm20897_vm15 = vmpackc.low %vm6376_vm7, %vm6342_vm6  ;;  %vm6069_vm6 = vcmp.eq.s32.totalorder %v22812_v9, %v27087_v55  ;;  %vm6103_vm7 = vcmp.eq.s32.totalorder %v22815_v10, %v27087_v55 }
 0x1e9   :  { %20898 = vmatpush1.bf16.msk.msra.mxu0 %vm20897_vm15, %v22744_v15  ;;  %vm20851_vm2 = vmpackc.low %vm6035_vm10, %vm6001_vm9  ;;  %vm6075_vm9 = vcmp.eq.s32.totalorder %v22812_v9, %v27105_v57  ;;  %vm6109_vm10 = vcmp.eq.s32.totalorder %v22815_v10, %v27105_v57 }
 0x1ea   :  { %20852 = vmatprep.subr.msk.bf16.mxu1 %vm20851_vm2, %v22744_v15  ;;  %vm20923_vm5 = vmpackc.low %vm6041_vm14, %vm6007_vm13  ;;  %vm6068_vm13 = vcmp.eq.s32.totalorder %v22812_v9, %v27122_v62  ;;  %vm6102_vm14 = vcmp.eq.s32.totalorder %v22815_v10, %v27122_v62 }
 0x1eb   :  { %20924 = vmatprep.subr.msk.bf16.mxu0 %vm20923_vm5, %v22744_v15  ;;  %17755 = vmatmul.mubr.msk.f32.vlgmr.msra.gmra.mrb[24].mxu1 %vm2803_vm12, %v26508_v1  ;;  %vm20853_vm8 = vmpackc.low %vm6034_vm1, %vm6000_vm0  ;;  %vm6074_vm0 = vcmp.eq.s32.totalorder %v22812_v9, %v27139_v32  ;;  %vm6108_vm1 = vcmp.eq.s32.totalorder %v22815_v10, %v27139_v32 }
 0x1ec   :  { %20854 = vmatpush1.bf16.msk.msra.mxu1 %vm20853_vm8, %v22744_v15  ;;  %17839 = vmatmul.mubr.msk.f32.vlgmr.msra.gmra.mrb[8].mxu0 %vm2803_vm12, %v26508_v1  ;;  %vm20925_vm11 = vmpackc.low %vm6040_vm4, %vm6006_vm3  ;;  %vm6137_vm3 = vcmp.eq.s32.totalorder %v22851_v16, %v27087_v55  ;;  %vm6171_vm4 = vcmp.eq.s32.totalorder %v22854_v17, %v27087_v55 }
 0x1ed   :  { %20926 = vmatpush1.bf16.msk.msra.mxu0 %vm20925_vm11, %v22744_v15  ;;  %vm20855_vm15 = vmpackc.low %vm6103_vm7, %vm6069_vm6  ;;  %7568 = vmatprep.mubr.f32.mxu1 %v22743_v3  ;;  %vm6143_vm6 = vcmp.eq.s32.totalorder %v22851_v16, %v27105_v57  ;;  %vm6177_vm7 = vcmp.eq.s32.totalorder %v22854_v17, %v27105_v57 }
 0x1ee   :  { %20856 = vmatprep.subr.msk.bf16.mxu1 %vm20855_vm15, %v22744_v15  ;;  %vm20927_vm2 = vmpackc.low %vm6109_vm10, %vm6075_vm9  ;;  %7835 = vmatprep.mubr.f32.mxu0 %v22743_v3  ;;  %vm6136_vm9 = vcmp.eq.s32.totalorder %v22851_v16, %v27122_v62  ;;  %vm6170_vm10 = vcmp.eq.s32.totalorder %v22854_v17, %v27122_v62 }
 0x1ef   :  { %20928 = vmatprep.subr.msk.bf16.mxu0 %vm20927_vm2, %v22744_v15  ;;  %vm20857_vm5 = vmpackc.low %vm6102_vm14, %vm6068_vm13  ;;  %17756 = vmatmul.mubr.msk.f32.gmra.mrb[26].mxu1 %vm2803_vm12, %v26542_v58  ;;  %vm6142_vm13 = vcmp.eq.s32.totalorder %v22851_v16, %v27139_v32  ;;  %vm6176_vm14 = vcmp.eq.s32.totalorder %v22854_v17, %v27139_v32 }
 0x1f0   :  { %20858 = vmatpush1.bf16.msk.msra.mxu1 %vm20857_vm5, %v22744_v15  ;;  %vm20929_vm8 = vmpackc.low %vm6108_vm1, %vm6074_vm0  ;;  %17840 = vmatmul.mubr.msk.f32.gmra.mrb[10].mxu0 %vm2803_vm12, %v26542_v58  ;;  %vm6205_vm0 = vcmp.eq.s32.totalorder %v22877_v18, %v27087_v55  ;;  %vm6239_vm1 = vcmp.eq.s32.totalorder %v22880_v19, %v27087_v55 }
 0x1f1   :  { %20930 = vmatpush1.bf16.msk.msra.mxu0 %vm20929_vm8, %v22744_v15  ;;  %vm20859_vm11 = vmpackc.low %vm6171_vm4, %vm6137_vm3  ;;  %7574 = vmatprep.mubr.f32.mxu1 %v22743_v3  ;;  %vm6211_vm3 = vcmp.eq.s32.totalorder %v22877_v18, %v27105_v57  ;;  %vm6245_vm4 = vcmp.eq.s32.totalorder %v22880_v19, %v27105_v57 }
 0x1f2   :  { %20860 = vmatprep.subr.msk.bf16.mxu1 %vm20859_vm11, %v22744_v15  ;;  %vm20931_vm15 = vmpackc.low %vm6177_vm7, %vm6143_vm6  ;;  %7841 = vmatprep.mubr.f32.mxu0 %v22743_v3  ;;  %vm6204_vm6 = vcmp.eq.s32.totalorder %v22877_v18, %v27122_v62  ;;  %vm6238_vm7 = vcmp.eq.s32.totalorder %v22880_v19, %v27122_v62 }
 0x1f3   :  { %20932 = vmatprep.subr.msk.bf16.mxu0 %vm20931_vm15, %v22744_v15  ;;  %vm20861_vm2 = vmpackc.low %vm6170_vm10, %vm6136_vm9  ;;  %17757 = vmatmul.mubr.msk.f32.gmra.mrb[28].mxu1 %vm2803_vm12, %v26576_v59  ;;  %vm6210_vm9 = vcmp.eq.s32.totalorder %v22877_v18, %v27139_v32  ;;  %vm6244_vm10 = vcmp.eq.s32.totalorder %v22880_v19, %v27139_v32 }
 0x1f4   :  { %20862 = vmatpush1.bf16.msk.msra.mxu1 %vm20861_vm2, %v22744_v15  ;;  %vm20933_vm5 = vmpackc.low %vm6176_vm14, %vm6142_vm13  ;;  %17841 = vmatmul.mubr.msk.f32.gmra.mrb[12].mxu0 %vm2803_vm12, %v26576_v59  ;;  %vm6273_vm13 = vcmp.eq.s32.totalorder %v22903_v20, %v27087_v55  ;;  %vm6307_vm14 = vcmp.eq.s32.totalorder %v22906_v21, %v27087_v55 }
 0x1f5   :  { %20934 = vmatpush1.bf16.msk.msra.mxu0 %vm20933_vm5, %v22744_v15  ;;  %vm20863_vm8 = vmpackc.low %vm6239_vm1, %vm6205_vm0  ;;  %7580 = vmatprep.mubr.f32.mxu1 %v22743_v3  ;;  %vm6279_vm0 = vcmp.eq.s32.totalorder %v22903_v20, %v27105_v57  ;;  %vm6313_vm1 = vcmp.eq.s32.totalorder %v22906_v21, %v27105_v57 }
 0x1f6   :  { %20864 = vmatprep.subr.msk.bf16.mxu1 %vm20863_vm8, %v22744_v15  ;;  %vm20935_vm11 = vmpackc.low %vm6245_vm4, %vm6211_vm3  ;;  %7847 = vmatprep.mubr.f32.mxu0 %v22743_v3  ;;  %vm6272_vm3 = vcmp.eq.s32.totalorder %v22903_v20, %v27122_v62  ;;  %vm6306_vm4 = vcmp.eq.s32.totalorder %v22906_v21, %v27122_v62 }
 0x1f7   :  { %20936 = vmatprep.subr.msk.bf16.mxu0 %vm20935_vm11, %v22744_v15  ;;  %vm20865_vm15 = vmpackc.low %vm6238_vm7, %vm6204_vm6  ;;  %17758 = vmatmul.mubr.msk.f32.gmra.mrb[30].mxu1 %vm2803_vm12, %v26616_v60  ;;  %vm6278_vm6 = vcmp.eq.s32.totalorder %v22903_v20, %v27139_v32  ;;  %vm6312_vm7 = vcmp.eq.s32.totalorder %v22906_v21, %v27139_v32 }
 0x1f8   :  { %20866 = vmatpush1.bf16.msk.msra.mxu1 %vm20865_vm15, %v22744_v15  ;;  %vm20937_vm2 = vmpackc.low %vm6244_vm10, %vm6210_vm9  ;;  %17842 = vmatmul.mubr.msk.f32.gmra.mrb[14].mxu0 %vm2803_vm12, %v26616_v60  ;;  %vm6341_vm9 = vcmp.eq.s32.totalorder %v22929_v22, %v27087_v55  ;;  %vm6375_vm10 = vcmp.eq.s32.totalorder %v22932_v23, %v27087_v55  ;;  %v22636_v55 = vld [vmem:[%s31974_s0 + $0xe0] sm:$0x1f] }
 0x1f9   :  { %20938 = vmatpush1.bf16.msk.msra.mxu0 %vm20937_vm2, %v22744_v15  ;;  %vm20867_vm5 = vmpackc.low %vm6307_vm14, %vm6273_vm13  ;;  %7740 = vmatprep.mubr.f32.mxu1 %v22743_v3  ;;  %vm6347_vm13 = vcmp.eq.s32.totalorder %v22929_v22, %v27105_v57  ;;  %vm6381_vm14 = vcmp.eq.s32.totalorder %v22932_v23, %v27105_v57  ;;  %v27771_v56 = vrot.slane %v22636_v55, %v26198_v38  ;;  %v22637_v57 = vld [vmem:[%s31974_s0 + $0xd8] sm:$0x1f] }
 0x1fa   :  { %20868 = vmatprep.subr.msk.bf16.mxu1 %vm20867_vm5, %v22744_v15  ;;  %vm20939_vm8 = vmpackc.low %vm6313_vm1, %vm6279_vm0  ;;  %8007 = vmatprep.mubr.f32.mxu0 %v22743_v3  ;;  %vm6340_vm0 = vcmp.eq.s32.totalorder %v22929_v22, %v27122_v62  ;;  %vm6374_vm1 = vcmp.eq.s32.totalorder %v22932_v23, %v27122_v62  ;;  %v27914_v8 = vrot.slane %v22637_v57, %v26198_v38  ;;  %v22638_v62 = vld [vmem:[%s31974_s0 + $0x108] sm:$0x1f] }
 0x1fb   :  { %20940 = vmatprep.subr.msk.bf16.mxu0 %vm20939_vm8, %v22744_v15  ;;  %vm20869_vm11 = vmpackc.low %vm6306_vm4, %vm6272_vm3  ;;  %vm6346_vm3 = vcmp.eq.s32.totalorder %v22929_v22, %v27139_v32  ;;  %vm6380_vm4 = vcmp.eq.s32.totalorder %v22932_v23, %v27139_v32  ;;  %v27932_v63 = vrot.slane %v22638_v62, %v26198_v38  ;;  %v22639_v32 = vld [vmem:[%s31974_s0 + $0xd0] sm:$0x1f] }
 0x1fc   :  { %20870 = vmatpush1.bf16.msk.msra.mxu1 %vm20869_vm11, %v22744_v15  ;;  %vm20941_vm15 = vmpackc.low %vm6312_vm7, %vm6278_vm6  ;;  %vm6005_vm6 = vcmp.eq.s32.totalorder %v22792_v2, %v27282_v61  ;;  %vm6039_vm7 = vcmp.eq.s32.totalorder %v22806_v7, %v27282_v61  ;;  %v27949_v0 = vrot.slane %v22639_v32, %v26198_v38 }
 0x1fd   :  { %20942 = vmatpush1.bf16.msk.msra.mxu0 %vm20941_vm15, %v22744_v15  ;;  %vm20871_vm2 = vmpackc.low %vm6375_vm10, %vm6341_vm9  ;;  %vm6011_vm9 = vcmp.eq.s32.totalorder %v22792_v2, %v27300_v26  ;;  %vm6045_vm10 = vcmp.eq.s32.totalorder %v22806_v7, %v27300_v26 }
 0x1fe   :  { %20872 = vmatprep.subr.msk.bf16.mxu1 %vm20871_vm2, %v22744_v15  ;;  %vm20943_vm5 = vmpackc.low %vm6381_vm14, %vm6347_vm13  ;;  %vm6004_vm13 = vcmp.eq.s32.totalorder %v22792_v2, %v27317_v28  ;;  %vm6038_vm14 = vcmp.eq.s32.totalorder %v22806_v7, %v27317_v28 }
 0x1ff   :  { %20944 = vmatprep.subr.msk.bf16.mxu0 %vm20943_vm5, %v22744_v15  ;;  %vm20873_vm8 = vmpackc.low %vm6374_vm1, %vm6340_vm0  ;;  %vm6010_vm0 = vcmp.eq.s32.totalorder %v22792_v2, %v27334_v30  ;;  %vm6044_vm1 = vcmp.eq.s32.totalorder %v22806_v7, %v27334_v30 }
 0x200   :  { %20874 = vmatpush1.bf16.msk.msra.mxu1 %vm20873_vm8, %v22744_v15  ;;  %vm20945_vm11 = vmpackc.low %vm6380_vm4, %vm6346_vm3  ;;  %vm6073_vm3 = vcmp.eq.s32.totalorder %v22812_v9, %v27282_v61  ;;  %vm6107_vm4 = vcmp.eq.s32.totalorder %v22815_v10, %v27282_v61 }
 0x201   :  { %20946 = vmatpush1.bf16.msk.msra.mxu0 %vm20945_vm11, %v22744_v15  ;;  %vm20899_vm15 = vmpackc.low %vm6039_vm7, %vm6005_vm6  ;;  %vm6079_vm6 = vcmp.eq.s32.totalorder %v22812_v9, %v27300_v26  ;;  %vm6113_vm7 = vcmp.eq.s32.totalorder %v22815_v10, %v27300_v26 }
 0x202   :  { %20900 = vmatprep.subr.msk.bf16.mxu1 %vm20899_vm15, %v22744_v15  ;;  %vm20971_vm2 = vmpackc.low %vm6045_vm10, %vm6011_vm9  ;;  %vm6072_vm9 = vcmp.eq.s32.totalorder %v22812_v9, %v27317_v28  ;;  %vm6106_vm10 = vcmp.eq.s32.totalorder %v22815_v10, %v27317_v28 }
 0x203   :  { %20972 = vmatprep.subr.msk.bf16.mxu0 %vm20971_vm2, %v22744_v15  ;;  %17811 = vmatmul.mubr.msk.f32.vlgmr.msra.gmra.mrb[32].mxu1 %vm2803_vm12, %v26508_v1  ;;  %vm20901_vm5 = vmpackc.low %vm6038_vm14, %vm6004_vm13  ;;  %vm6078_vm13 = vcmp.eq.s32.totalorder %v22812_v9, %v27334_v30  ;;  %vm6112_vm14 = vcmp.eq.s32.totalorder %v22815_v10, %v27334_v30 }
 0x204   :  { %20902 = vmatpush1.bf16.msk.msra.mxu1 %vm20901_vm5, %v22744_v15  ;;  %17895 = vmatmul.mubr.msk.f32.vlgmr.msra.gmra.mrb[16].mxu0 %vm2803_vm12, %v26508_v1  ;;  %vm20973_vm8 = vmpackc.low %vm6044_vm1, %vm6010_vm0  ;;  %vm6141_vm0 = vcmp.eq.s32.totalorder %v22851_v16, %v27282_v61  ;;  %vm6175_vm1 = vcmp.eq.s32.totalorder %v22854_v17, %v27282_v61  ;;  %v22625_v1 = vld [vmem:[%s31974_s0 + $0x98] sm:$0x1f] }
 0x205   :  { %20974 = vmatpush1.bf16.msk.msra.mxu0 %vm20973_vm8, %v22744_v15  ;;  %vm20903_vm11 = vmpackc.low %vm6107_vm4, %vm6073_vm3  ;;  %7746 = vmatprep.mubr.f32.mxu1 %v22743_v3  ;;  %vm6147_vm3 = vcmp.eq.s32.totalorder %v22851_v16, %v27300_v26  ;;  %vm6181_vm4 = vcmp.eq.s32.totalorder %v22854_v17, %v27300_v26 }
 0x206   :  { %20904 = vmatprep.subr.msk.bf16.mxu1 %vm20903_vm11, %v22744_v15  ;;  %vm20975_vm15 = vmpackc.low %vm6113_vm7, %vm6079_vm6  ;;  %8013 = vmatprep.mubr.f32.mxu0 %v22743_v3  ;;  %vm6140_vm6 = vcmp.eq.s32.totalorder %v22851_v16, %v27317_v28  ;;  %vm6174_vm7 = vcmp.eq.s32.totalorder %v22854_v17, %v27317_v28 }
 0x207   :  { %20976 = vmatprep.subr.msk.bf16.mxu0 %vm20975_vm15, %v22744_v15  ;;  %vm20905_vm2 = vmpackc.low %vm6106_vm10, %vm6072_vm9  ;;  %17812 = vmatmul.mubr.msk.f32.gmra.mrb[34].mxu1 %vm2803_vm12, %v26542_v58  ;;  %vm6146_vm9 = vcmp.eq.s32.totalorder %v22851_v16, %v27334_v30  ;;  %vm6180_vm10 = vcmp.eq.s32.totalorder %v22854_v17, %v27334_v30 }
 0x208   :  { %20906 = vmatpush1.bf16.msk.msra.mxu1 %vm20905_vm2, %v22744_v15  ;;  %vm20977_vm5 = vmpackc.low %vm6112_vm14, %vm6078_vm13  ;;  %17896 = vmatmul.mubr.msk.f32.gmra.mrb[18].mxu0 %vm2803_vm12, %v26542_v58  ;;  %vm6209_vm13 = vcmp.eq.s32.totalorder %v22877_v18, %v27282_v61  ;;  %vm6243_vm14 = vcmp.eq.s32.totalorder %v22880_v19, %v27282_v61  ;;  %v27477_v58 = vrot.slane %v22625_v1, %v26198_v38  ;;  %v22643_v1 = vld [vmem:[%s31974_s0 + $0xf0] sm:$0x1f] }
 0x209   :  { %20978 = vmatpush1.bf16.msk.msra.mxu0 %vm20977_vm5, %v22744_v15  ;;  %vm20907_vm8 = vmpackc.low %vm6175_vm1, %vm6141_vm0  ;;  %7752 = vmatprep.mubr.f32.mxu1 %v22743_v3  ;;  %vm6215_vm0 = vcmp.eq.s32.totalorder %v22877_v18, %v27300_v26  ;;  %vm6249_vm1 = vcmp.eq.s32.totalorder %v22880_v19, %v27300_v26 }
 0x20a   :  { %20908 = vmatprep.subr.msk.bf16.mxu1 %vm20907_vm8, %v22744_v15  ;;  %vm20979_vm11 = vmpackc.low %vm6181_vm4, %vm6147_vm3  ;;  %8019 = vmatprep.mubr.f32.mxu0 %v22743_v3  ;;  %vm6208_vm3 = vcmp.eq.s32.totalorder %v22877_v18, %v27317_v28  ;;  %vm6242_vm4 = vcmp.eq.s32.totalorder %v22880_v19, %v27317_v28 }
 0x20b   :  { %20980 = vmatprep.subr.msk.bf16.mxu0 %vm20979_vm11, %v22744_v15  ;;  %vm20909_vm15 = vmpackc.low %vm6174_vm7, %vm6140_vm6  ;;  %17813 = vmatmul.mubr.msk.f32.gmra.mrb[36].mxu1 %vm2803_vm12, %v26576_v59  ;;  %vm6214_vm6 = vcmp.eq.s32.totalorder %v22877_v18, %v27334_v30  ;;  %vm6248_vm7 = vcmp.eq.s32.totalorder %v22880_v19, %v27334_v30 }
 0x20c   :  { %20910 = vmatpush1.bf16.msk.msra.mxu1 %vm20909_vm15, %v22744_v15  ;;  %vm20981_vm2 = vmpackc.low %vm6180_vm10, %vm6146_vm9  ;;  %17897 = vmatmul.mubr.msk.f32.gmra.mrb[20].mxu0 %vm2803_vm12, %v26576_v59  ;;  %vm6277_vm9 = vcmp.eq.s32.totalorder %v22903_v20, %v27282_v61  ;;  %vm6311_vm10 = vcmp.eq.s32.totalorder %v22906_v21, %v27282_v61  ;;  %v22626_v59 = vld [vmem:[%s31974_s0 + $0xc8] sm:$0x1f] }
 0x20d   :  { %20982 = vmatpush1.bf16.msk.msra.mxu0 %vm20981_vm2, %v22744_v15  ;;  %vm20911_vm5 = vmpackc.low %vm6243_vm14, %vm6209_vm13  ;;  %7758 = vmatprep.mubr.f32.mxu1 %v22743_v3  ;;  %vm6283_vm13 = vcmp.eq.s32.totalorder %v22903_v20, %v27300_v26  ;;  %vm6317_vm14 = vcmp.eq.s32.totalorder %v22906_v21, %v27300_v26 }
 0x20e   :  { %20912 = vmatprep.subr.msk.bf16.mxu1 %vm20911_vm5, %v22744_v15  ;;  %vm20983_vm8 = vmpackc.low %vm6249_vm1, %vm6215_vm0  ;;  %8025 = vmatprep.mubr.f32.mxu0 %v22743_v3  ;;  %vm6276_vm0 = vcmp.eq.s32.totalorder %v22903_v20, %v27317_v28  ;;  %vm6310_vm1 = vcmp.eq.s32.totalorder %v22906_v21, %v27317_v28 }
 0x20f   :  { %20984 = vmatprep.subr.msk.bf16.mxu0 %vm20983_vm8, %v22744_v15  ;;  %vm20913_vm11 = vmpackc.low %vm6242_vm4, %vm6208_vm3  ;;  %17814 = vmatmul.mubr.msk.f32.gmra.mrb[38].mxu1 %vm2803_vm12, %v26616_v60  ;;  %vm6282_vm3 = vcmp.eq.s32.totalorder %v22903_v20, %v27334_v30  ;;  %vm6316_vm4 = vcmp.eq.s32.totalorder %v22906_v21, %v27334_v30 }
 0x210   :  { %20914 = vmatpush1.bf16.msk.msra.mxu1 %vm20913_vm11, %v22744_v15  ;;  %vm20985_vm15 = vmpackc.low %vm6248_vm7, %vm6214_vm6  ;;  %17898 = vmatmul.mubr.msk.f32.gmra.mrb[22].mxu0 %vm2803_vm12, %v26616_v60  ;;  %vm6345_vm6 = vcmp.eq.s32.totalorder %v22929_v22, %v27282_v61  ;;  %vm6379_vm7 = vcmp.eq.s32.totalorder %v22932_v23, %v27282_v61  ;;  %v27495_v60 = vrot.slane %v22626_v59, %v26198_v38  ;;  %v22640_v61 = vld [vmem:[%s31974_s0 + $0x100] sm:$0x1f] }
 0x211   :  { %20986 = vmatpush1.bf16.msk.msra.mxu0 %vm20985_vm15, %v22744_v15  ;;  %vm20915_vm2 = vmpackc.low %vm6311_vm10, %vm6277_vm9  ;;  %7918 = vmatprep.mubr.f32.mxu1 %v22743_v3  ;;  %vm6351_vm9 = vcmp.eq.s32.totalorder %v22929_v22, %v27300_v26  ;;  %vm6385_vm10 = vcmp.eq.s32.totalorder %v22932_v23, %v27300_v26  ;;  %v27966_v4 = vrot.slane %v22640_v61, %v26198_v38  ;;  %v28088_v26 = vsub.s32 3, %v22792_v2 }
 0x212   :  { %20916 = vmatprep.subr.msk.bf16.mxu1 %vm20915_vm2, %v22744_v15  ;;  %vm20987_vm5 = vmpackc.low %vm6317_vm14, %vm6283_vm13  ;;  %8185 = vmatprep.mubr.f32.mxu0 %v22743_v3  ;;  %vm6344_vm13 = vcmp.eq.s32.totalorder %v22929_v22, %v27317_v28  ;;  %vm6378_vm14 = vcmp.eq.s32.totalorder %v22932_v23, %v27317_v28  ;;  %v28121_v28 = vrot.slane %v22641_v27, %v26198_v38 }
 0x213   :  { %20988 = vmatprep.subr.msk.bf16.mxu0 %vm20987_vm5, %v22744_v15  ;;  %vm20917_vm8 = vmpackc.low %vm6310_vm1, %vm6276_vm0  ;;  %vm6350_vm0 = vcmp.eq.s32.totalorder %v22929_v22, %v27334_v30  ;;  %vm6384_vm1 = vcmp.eq.s32.totalorder %v22932_v23, %v27334_v30  ;;  %v28139_v30 = vrot.slane %v22642_v29, %v28088_v26 }
 0x214   :  { %20918 = vmatpush1.bf16.msk.msra.mxu1 %vm20917_vm8, %v22744_v15  ;;  %vm20989_vm11 = vmpackc.low %vm6316_vm4, %vm6282_vm3  ;;  %vm6009_vm3 = vcmp.eq.s32.totalorder %v22792_v2, %v27477_v58  ;;  %vm6043_vm4 = vcmp.eq.s32.totalorder %v22806_v7, %v27477_v58 }
 0x215   :  { %20990 = vmatpush1.bf16.msk.msra.mxu0 %vm20989_vm11, %v22744_v15  ;;  %vm20919_vm15 = vmpackc.low %vm6379_vm7, %vm6345_vm6  ;;  %vm6015_vm6 = vcmp.eq.s32.totalorder %v22792_v2, %v27495_v60  ;;  %vm6049_vm7 = vcmp.eq.s32.totalorder %v22806_v7, %v27495_v60 }
 0x216   :  { %20920 = vmatprep.subr.msk.bf16.mxu1 %vm20919_vm15, %v22744_v15  ;;  %vm20991_vm2 = vmpackc.low %vm6385_vm10, %vm6351_vm9  ;;  %vm6008_vm9 = vcmp.eq.s32.totalorder %v22792_v2, %v27512_v33  ;;  %vm6042_vm10 = vcmp.eq.s32.totalorder %v22806_v7, %v27512_v33 }
 0x217   :  { %20992 = vmatprep.subr.msk.bf16.mxu0 %vm20991_vm2, %v22744_v15  ;;  %vm20921_vm5 = vmpackc.low %vm6378_vm14, %vm6344_vm13  ;;  %vm6014_vm13 = vcmp.eq.s32.totalorder %v22792_v2, %v27529_v35  ;;  %vm6048_vm14 = vcmp.eq.s32.totalorder %v22806_v7, %v27529_v35 }
 0x218   :  { %20922 = vmatpush1.bf16.msk.msra.mxu1 %vm20921_vm5, %v22744_v15  ;;  %vm20993_vm8 = vmpackc.low %vm6384_vm1, %vm6350_vm0  ;;  %vm6077_vm0 = vcmp.eq.s32.totalorder %v22812_v9, %v27477_v58  ;;  %vm6111_vm1 = vcmp.eq.s32.totalorder %v22815_v10, %v27477_v58 }
 0x219   :  { %20994 = vmatpush1.bf16.msk.msra.mxu0 %vm20993_vm8, %v22744_v15  ;;  %vm20947_vm11 = vmpackc.low %vm6043_vm4, %vm6009_vm3  ;;  %vm6083_vm3 = vcmp.eq.s32.totalorder %v22812_v9, %v27495_v60  ;;  %vm6117_vm4 = vcmp.eq.s32.totalorder %v22815_v10, %v27495_v60 }
 0x21a   :  { %20948 = vmatprep.subr.msk.bf16.mxu1 %vm20947_vm11, %v22744_v15  ;;  %vm21019_vm15 = vmpackc.low %vm6049_vm7, %vm6015_vm6  ;;  %vm6076_vm6 = vcmp.eq.s32.totalorder %v22812_v9, %v27512_v33  ;;  %vm6110_vm7 = vcmp.eq.s32.totalorder %v22815_v10, %v27512_v33 }
 0x21b   :  { %21020 = vmatprep.subr.msk.bf16.mxu0 %vm21019_vm15, %v22744_v15  ;;  %17867 = vmatmul.mubr.msk.f32.vlgmr.msra.gmra.mrb[40].mxu1 %vm2803_vm12, %v27569_v36  ;;  %vm20949_vm2 = vmpackc.low %vm6042_vm10, %vm6008_vm9  ;;  %vm6082_vm9 = vcmp.eq.s32.totalorder %v22812_v9, %v27529_v35  ;;  %vm6116_vm10 = vcmp.eq.s32.totalorder %v22815_v10, %v27529_v35 }
 0x21c   :  { %20950 = vmatpush1.bf16.msk.msra.mxu1 %vm20949_vm2, %v22744_v15  ;;  %17951 = vmatmul.mubr.msk.f32.vlgmr.msra.gmra.mrb[24].mxu0 %vm2803_vm12, %v27569_v36  ;;  %vm21021_vm5 = vmpackc.low %vm6048_vm14, %vm6014_vm13  ;;  %vm6145_vm13 = vcmp.eq.s32.totalorder %v22851_v16, %v27477_v58  ;;  %vm6179_vm14 = vcmp.eq.s32.totalorder %v22854_v17, %v27477_v58 }
 0x21d   :  { %21022 = vmatpush1.bf16.msk.msra.mxu0 %vm21021_vm5, %v22744_v15  ;;  %vm20951_vm8 = vmpackc.low %vm6111_vm1, %vm6077_vm0  ;;  %7924 = vmatprep.mubr.f32.mxu1 %v22743_v3  ;;  %vm6151_vm0 = vcmp.eq.s32.totalorder %v22851_v16, %v27495_v60  ;;  %vm6185_vm1 = vcmp.eq.s32.totalorder %v22854_v17, %v27495_v60 }
 0x21e   :  { %20952 = vmatprep.subr.msk.bf16.mxu1 %vm20951_vm8, %v22744_v15  ;;  %vm21023_vm11 = vmpackc.low %vm6117_vm4, %vm6083_vm3  ;;  %8191 = vmatprep.mubr.f32.mxu0 %v22743_v3  ;;  %vm6144_vm3 = vcmp.eq.s32.totalorder %v22851_v16, %v27512_v33  ;;  %vm6178_vm4 = vcmp.eq.s32.totalorder %v22854_v17, %v27512_v33 }
 0x21f   :  { %21024 = vmatprep.subr.msk.bf16.mxu0 %vm21023_vm11, %v22744_v15  ;;  %vm20953_vm15 = vmpackc.low %vm6110_vm7, %vm6076_vm6  ;;  %17868 = vmatmul.mubr.msk.f32.gmra.mrb[42].mxu1 %vm2803_vm12, %v27604_v37  ;;  %vm6150_vm6 = vcmp.eq.s32.totalorder %v22851_v16, %v27529_v35  ;;  %vm6184_vm7 = vcmp.eq.s32.totalorder %v22854_v17, %v27529_v35 }
 0x220   :  { %20954 = vmatpush1.bf16.msk.msra.mxu1 %vm20953_vm15, %v22744_v15  ;;  %vm21025_vm2 = vmpackc.low %vm6116_vm10, %vm6082_vm9  ;;  %17952 = vmatmul.mubr.msk.f32.gmra.mrb[26].mxu0 %vm2803_vm12, %v27604_v37  ;;  %vm6213_vm9 = vcmp.eq.s32.totalorder %v22877_v18, %v27477_v58  ;;  %vm6247_vm10 = vcmp.eq.s32.totalorder %v22880_v19, %v27477_v58 }
 0x221   :  { %21026 = vmatpush1.bf16.msk.msra.mxu0 %vm21025_vm2, %v22744_v15  ;;  %vm20955_vm5 = vmpackc.low %vm6179_vm14, %vm6145_vm13  ;;  %7930 = vmatprep.mubr.f32.mxu1 %v22743_v3  ;;  %vm6219_vm13 = vcmp.eq.s32.totalorder %v22877_v18, %v27495_v60  ;;  %vm6253_vm14 = vcmp.eq.s32.totalorder %v22880_v19, %v27495_v60 }
 0x222   :  { %20956 = vmatprep.subr.msk.bf16.mxu1 %vm20955_vm5, %v22744_v15  ;;  %vm21027_vm8 = vmpackc.low %vm6185_vm1, %vm6151_vm0  ;;  %8197 = vmatprep.mubr.f32.mxu0 %v22743_v3  ;;  %vm6212_vm0 = vcmp.eq.s32.totalorder %v22877_v18, %v27512_v33  ;;  %vm6246_vm1 = vcmp.eq.s32.totalorder %v22880_v19, %v27512_v33 }
 0x223   :  { %21028 = vmatprep.subr.msk.bf16.mxu0 %vm21027_vm8, %v22744_v15  ;;  %vm20957_vm11 = vmpackc.low %vm6178_vm4, %vm6144_vm3  ;;  %17869 = vmatmul.mubr.msk.f32.gmra.mrb[44].mxu1 %vm2803_vm12, %v27644_v39  ;;  %vm6218_vm3 = vcmp.eq.s32.totalorder %v22877_v18, %v27529_v35  ;;  %vm6252_vm4 = vcmp.eq.s32.totalorder %v22880_v19, %v27529_v35 }
 0x224   :  { %20958 = vmatpush1.bf16.msk.msra.mxu1 %vm20957_vm11, %v22744_v15  ;;  %vm21029_vm15 = vmpackc.low %vm6184_vm7, %vm6150_vm6  ;;  %17953 = vmatmul.mubr.msk.f32.gmra.mrb[28].mxu0 %vm2803_vm12, %v27644_v39  ;;  %vm6281_vm6 = vcmp.eq.s32.totalorder %v22903_v20, %v27477_v58  ;;  %vm6315_vm7 = vcmp.eq.s32.totalorder %v22906_v21, %v27477_v58 }
 0x225   :  { %21030 = vmatpush1.bf16.msk.msra.mxu0 %vm21029_vm15, %v22744_v15  ;;  %vm20959_vm2 = vmpackc.low %vm6247_vm10, %vm6213_vm9  ;;  %7936 = vmatprep.mubr.f32.mxu1 %v22743_v3  ;;  %vm6287_vm9 = vcmp.eq.s32.totalorder %v22903_v20, %v27495_v60  ;;  %vm6321_vm10 = vcmp.eq.s32.totalorder %v22906_v21, %v27495_v60 }
 0x226   :  { %20960 = vmatprep.subr.msk.bf16.mxu1 %vm20959_vm2, %v22744_v15  ;;  %vm21031_vm5 = vmpackc.low %vm6253_vm14, %vm6219_vm13  ;;  %8203 = vmatprep.mubr.f32.mxu0 %v22743_v3  ;;  %vm6280_vm13 = vcmp.eq.s32.totalorder %v22903_v20, %v27512_v33  ;;  %vm6314_vm14 = vcmp.eq.s32.totalorder %v22906_v21, %v27512_v33 }
 0x227   :  { %21032 = vmatprep.subr.msk.bf16.mxu0 %vm21031_vm5, %v22744_v15  ;;  %vm20961_vm8 = vmpackc.low %vm6246_vm1, %vm6212_vm0  ;;  %17870 = vmatmul.mubr.msk.f32.gmra.mrb[46].mxu1 %vm2803_vm12, %v27684_v40  ;;  %vm6286_vm0 = vcmp.eq.s32.totalorder %v22903_v20, %v27529_v35  ;;  %vm6320_vm1 = vcmp.eq.s32.totalorder %v22906_v21, %v27529_v35 }
 0x228   :  { %20962 = vmatpush1.bf16.msk.msra.mxu1 %vm20961_vm8, %v22744_v15  ;;  %vm21033_vm11 = vmpackc.low %vm6252_vm4, %vm6218_vm3  ;;  %17954 = vmatmul.mubr.msk.f32.gmra.mrb[30].mxu0 %vm2803_vm12, %v27684_v40  ;;  %vm6349_vm3 = vcmp.eq.s32.totalorder %v22929_v22, %v27477_v58  ;;  %vm6383_vm4 = vcmp.eq.s32.totalorder %v22932_v23, %v27477_v58  ;;  %v28156_v58 = vrot.slane %v22643_v1, %v26198_v38  ;;  %v22644_v38 = vld [vmem:[%s31974_s0] sm:$0x1f] }
 0x229   :  { %21034 = vmatpush1.bf16.msk.msra.mxu0 %vm21033_vm11, %v22744_v15  ;;  %vm20963_vm15 = vmpackc.low %vm6315_vm7, %vm6281_vm6  ;;  %8096 = vmatprep.mubr.f32.mxu1 %v22743_v3  ;;  %vm6355_vm6 = vcmp.eq.s32.totalorder %v22929_v22, %v27495_v60  ;;  %vm6389_vm7 = vcmp.eq.s32.totalorder %v22932_v23, %v27495_v60  ;;  %v28173_v59 = vrot.slane %v22644_v38, %v28088_v26  ;;  %v22645_v60 = vld [vmem:[%s31974_s0 + $0x18] sm:$0x1f] }
 0x22a   :  { %20964 = vmatprep.subr.msk.bf16.mxu1 %vm20963_vm15, %v22744_v15  ;;  %vm21035_vm2 = vmpackc.low %vm6321_vm10, %vm6287_vm9  ;;  %8363 = vmatprep.mubr.f32.mxu0 %v22743_v3  ;;  %vm6348_vm9 = vcmp.eq.s32.totalorder %v22929_v22, %v27512_v33  ;;  %vm6382_vm10 = vcmp.eq.s32.totalorder %v22932_v23, %v27512_v33  ;;  %v28317_v31 = vrot.slane %v22645_v60, %v28088_v26  ;;  %v22646_v33 = vld [vmem:[%s31974_s0 + $0x28] sm:$0x1f] }
 0x22b   :  { %21036 = vmatprep.subr.msk.bf16.mxu0 %vm21035_vm2, %v22744_v15  ;;  %vm20965_vm5 = vmpackc.low %vm6314_vm14, %vm6280_vm13  ;;  %vm6354_vm13 = vcmp.eq.s32.totalorder %v22929_v22, %v27529_v35  ;;  %vm6388_vm14 = vcmp.eq.s32.totalorder %v22932_v23, %v27529_v35  ;;  %v28334_v34 = vrot.slane %v22646_v33, %v28088_v26  ;;  %v22647_v35 = vld [vmem:[%s31974_s0 + $0x10] sm:$0x1f] }
 0x22c   :  { %20966 = vmatpush1.bf16.msk.msra.mxu1 %vm20965_vm5, %v22744_v15  ;;  %vm21037_vm8 = vmpackc.low %vm6320_vm1, %vm6286_vm0  ;;  %vm6013_vm0 = vcmp.eq.s32.totalorder %v22792_v2, %v27719_v42  ;;  %vm6047_vm1 = vcmp.eq.s32.totalorder %v22806_v7, %v27719_v42  ;;  %v28351_v41 = vrot.slane %v22647_v35, %v28088_v26 }
 0x22d   :  { %21038 = vmatpush1.bf16.msk.msra.mxu0 %vm21037_vm8, %v22744_v15  ;;  %vm20967_vm11 = vmpackc.low %vm6383_vm4, %vm6349_vm3  ;;  %vm6019_vm3 = vcmp.eq.s32.totalorder %v22792_v2, %v27737_v51  ;;  %vm6053_vm4 = vcmp.eq.s32.totalorder %v22806_v7, %v27737_v51 }
 0x22e   :  { %20968 = vmatprep.subr.msk.bf16.mxu1 %vm20967_vm11, %v22744_v15  ;;  %vm21039_vm15 = vmpackc.low %vm6389_vm7, %vm6355_vm6  ;;  %vm6012_vm6 = vcmp.eq.s32.totalorder %v22792_v2, %v27754_v54  ;;  %vm6046_vm7 = vcmp.eq.s32.totalorder %v22806_v7, %v27754_v54 }
 0x22f   :  { %21040 = vmatprep.subr.msk.bf16.mxu0 %vm21039_vm15, %v22744_v15  ;;  %vm20969_vm2 = vmpackc.low %vm6382_vm10, %vm6348_vm9  ;;  %vm6018_vm9 = vcmp.eq.s32.totalorder %v22792_v2, %v27771_v56  ;;  %vm6052_vm10 = vcmp.eq.s32.totalorder %v22806_v7, %v27771_v56 }
 0x230   :  { %20970 = vmatpush1.bf16.msk.msra.mxu1 %vm20969_vm2, %v22744_v15  ;;  %vm21041_vm5 = vmpackc.low %vm6388_vm14, %vm6354_vm13  ;;  %vm6081_vm13 = vcmp.eq.s32.totalorder %v22812_v9, %v27719_v42  ;;  %vm6115_vm14 = vcmp.eq.s32.totalorder %v22815_v10, %v27719_v42 }
 0x231   :  { %21042 = vmatpush1.bf16.msk.msra.mxu0 %vm21041_vm5, %v22744_v15  ;;  %vm20995_vm8 = vmpackc.low %vm6047_vm1, %vm6013_vm0  ;;  %vm6087_vm0 = vcmp.eq.s32.totalorder %v22812_v9, %v27737_v51  ;;  %vm6121_vm1 = vcmp.eq.s32.totalorder %v22815_v10, %v27737_v51 }
 0x232   :  { %20996 = vmatprep.subr.msk.bf16.mxu1 %vm20995_vm8, %v22744_v15  ;;  %vm21067_vm11 = vmpackc.low %vm6053_vm4, %vm6019_vm3  ;;  %vm6080_vm3 = vcmp.eq.s32.totalorder %v22812_v9, %v27754_v54  ;;  %vm6114_vm4 = vcmp.eq.s32.totalorder %v22815_v10, %v27754_v54 }
 0x233   :  { %21068 = vmatprep.subr.msk.bf16.mxu0 %vm21067_vm11, %v22744_v15  ;;  %17923 = vmatmul.mubr.msk.f32.vlgmr.msra.gmra.mrb[48].mxu1 %vm2803_vm12, %v27569_v36  ;;  %vm20997_vm15 = vmpackc.low %vm6046_vm7, %vm6012_vm6  ;;  %vm6086_vm6 = vcmp.eq.s32.totalorder %v22812_v9, %v27771_v56  ;;  %vm6120_vm7 = vcmp.eq.s32.totalorder %v22815_v10, %v27771_v56 }
 0x234   :  { %20998 = vmatpush1.bf16.msk.msra.mxu1 %vm20997_vm15, %v22744_v15  ;;  %18007 = vmatmul.mubr.msk.f32.vlgmr.msra.gmra.mrb[32].mxu0 %vm2803_vm12, %v27569_v36  ;;  %vm21069_vm2 = vmpackc.low %vm6052_vm10, %vm6018_vm9  ;;  %vm6149_vm9 = vcmp.eq.s32.totalorder %v22851_v16, %v27719_v42  ;;  %vm6183_vm10 = vcmp.eq.s32.totalorder %v22854_v17, %v27719_v42 }
 0x235   :  { %21070 = vmatpush1.bf16.msk.msra.mxu0 %vm21069_vm2, %v22744_v15  ;;  %vm20999_vm5 = vmpackc.low %vm6115_vm14, %vm6081_vm13  ;;  %8102 = vmatprep.mubr.f32.mxu1 %v22743_v3  ;;  %vm6155_vm13 = vcmp.eq.s32.totalorder %v22851_v16, %v27737_v51  ;;  %vm6189_vm14 = vcmp.eq.s32.totalorder %v22854_v17, %v27737_v51 }
 0x236   :  { %21000 = vmatprep.subr.msk.bf16.mxu1 %vm20999_vm5, %v22744_v15  ;;  %vm21071_vm8 = vmpackc.low %vm6121_vm1, %vm6087_vm0  ;;  %8369 = vmatprep.mubr.f32.mxu0 %v22743_v3  ;;  %vm6148_vm0 = vcmp.eq.s32.totalorder %v22851_v16, %v27754_v54  ;;  %vm6182_vm1 = vcmp.eq.s32.totalorder %v22854_v17, %v27754_v54 }
 0x237   :  { %21072 = vmatprep.subr.msk.bf16.mxu0 %vm21071_vm8, %v22744_v15  ;;  %vm21001_vm11 = vmpackc.low %vm6114_vm4, %vm6080_vm3  ;;  %17924 = vmatmul.mubr.msk.f32.gmra.mrb[50].mxu1 %vm2803_vm12, %v27604_v37  ;;  %vm6154_vm3 = vcmp.eq.s32.totalorder %v22851_v16, %v27771_v56  ;;  %vm6188_vm4 = vcmp.eq.s32.totalorder %v22854_v17, %v27771_v56 }
 0x238   :  { %21002 = vmatpush1.bf16.msk.msra.mxu1 %vm21001_vm11, %v22744_v15  ;;  %vm21073_vm15 = vmpackc.low %vm6120_vm7, %vm6086_vm6  ;;  %18008 = vmatmul.mubr.msk.f32.gmra.mrb[34].mxu0 %vm2803_vm12, %v27604_v37  ;;  %vm6217_vm6 = vcmp.eq.s32.totalorder %v22877_v18, %v27719_v42  ;;  %vm6251_vm7 = vcmp.eq.s32.totalorder %v22880_v19, %v27719_v42 }
 0x239   :  { %21074 = vmatpush1.bf16.msk.msra.mxu0 %vm21073_vm15, %v22744_v15  ;;  %vm21003_vm2 = vmpackc.low %vm6183_vm10, %vm6149_vm9  ;;  %8108 = vmatprep.mubr.f32.mxu1 %v22743_v3  ;;  %vm6223_vm9 = vcmp.eq.s32.totalorder %v22877_v18, %v27737_v51  ;;  %vm6257_vm10 = vcmp.eq.s32.totalorder %v22880_v19, %v27737_v51 }
 0x23a   :  { %21004 = vmatprep.subr.msk.bf16.mxu1 %vm21003_vm2, %v22744_v15  ;;  %vm21075_vm5 = vmpackc.low %vm6189_vm14, %vm6155_vm13  ;;  %8375 = vmatprep.mubr.f32.mxu0 %v22743_v3  ;;  %vm6216_vm13 = vcmp.eq.s32.totalorder %v22877_v18, %v27754_v54  ;;  %vm6250_vm14 = vcmp.eq.s32.totalorder %v22880_v19, %v27754_v54 }
 0x23b   :  { %21076 = vmatprep.subr.msk.bf16.mxu0 %vm21075_vm5, %v22744_v15  ;;  %vm21005_vm8 = vmpackc.low %vm6182_vm1, %vm6148_vm0  ;;  %17925 = vmatmul.mubr.msk.f32.gmra.mrb[52].mxu1 %vm2803_vm12, %v27644_v39  ;;  %vm6222_vm0 = vcmp.eq.s32.totalorder %v22877_v18, %v27771_v56  ;;  %vm6256_vm1 = vcmp.eq.s32.totalorder %v22880_v19, %v27771_v56 }
 0x23c   :  { %21006 = vmatpush1.bf16.msk.msra.mxu1 %vm21005_vm8, %v22744_v15  ;;  %vm21077_vm11 = vmpackc.low %vm6188_vm4, %vm6154_vm3  ;;  %18009 = vmatmul.mubr.msk.f32.gmra.mrb[36].mxu0 %vm2803_vm12, %v27644_v39  ;;  %vm6285_vm3 = vcmp.eq.s32.totalorder %v22903_v20, %v27719_v42  ;;  %vm6319_vm4 = vcmp.eq.s32.totalorder %v22906_v21, %v27719_v42 }
 0x23d   :  { %21078 = vmatpush1.bf16.msk.msra.mxu0 %vm21077_vm11, %v22744_v15  ;;  %vm21007_vm15 = vmpackc.low %vm6251_vm7, %vm6217_vm6  ;;  %8114 = vmatprep.mubr.f32.mxu1 %v22743_v3  ;;  %vm6291_vm6 = vcmp.eq.s32.totalorder %v22903_v20, %v27737_v51  ;;  %vm6325_vm7 = vcmp.eq.s32.totalorder %v22906_v21, %v27737_v51 }
 0x23e   :  { %21008 = vmatprep.subr.msk.bf16.mxu1 %vm21007_vm15, %v22744_v15  ;;  %vm21079_vm2 = vmpackc.low %vm6257_vm10, %vm6223_vm9  ;;  %8381 = vmatprep.mubr.f32.mxu0 %v22743_v3  ;;  %vm6284_vm9 = vcmp.eq.s32.totalorder %v22903_v20, %v27754_v54  ;;  %vm6318_vm10 = vcmp.eq.s32.totalorder %v22906_v21, %v27754_v54 }
 0x23f   :  { %21080 = vmatprep.subr.msk.bf16.mxu0 %vm21079_vm2, %v22744_v15  ;;  %vm21009_vm5 = vmpackc.low %vm6250_vm14, %vm6216_vm13  ;;  %17926 = vmatmul.mubr.msk.f32.gmra.mrb[54].mxu1 %vm2803_vm12, %v27684_v40  ;;  %vm6290_vm13 = vcmp.eq.s32.totalorder %v22903_v20, %v27771_v56  ;;  %vm6324_vm14 = vcmp.eq.s32.totalorder %v22906_v21, %v27771_v56 }
 0x240   :  { %21010 = vmatpush1.bf16.msk.msra.mxu1 %vm21009_vm5, %v22744_v15  ;;  %vm21081_vm8 = vmpackc.low %vm6256_vm1, %vm6222_vm0  ;;  %18010 = vmatmul.mubr.msk.f32.gmra.mrb[38].mxu0 %vm2803_vm12, %v27684_v40  ;;  %vm6353_vm0 = vcmp.eq.s32.totalorder %v22929_v22, %v27719_v42  ;;  %vm6387_vm1 = vcmp.eq.s32.totalorder %v22932_v23, %v27719_v42  ;;  %v22648_v42 = vld [vmem:[%s31974_s0 + $0x20] sm:$0x1f] }
 0x241   :  { %21082 = vmatpush1.bf16.msk.msra.mxu0 %vm21081_vm8, %v22744_v15  ;;  %vm21011_vm11 = vmpackc.low %vm6319_vm4, %vm6285_vm3  ;;  %8274 = vmatprep.mubr.f32.mxu1 %v22743_v3  ;;  %vm6359_vm3 = vcmp.eq.s32.totalorder %v22929_v22, %v27737_v51  ;;  %vm6393_vm4 = vcmp.eq.s32.totalorder %v22932_v23, %v27737_v51  ;;  %v28368_v50 = vrot.slane %v22648_v42, %v28088_v26  ;;  %v28398_v51 = vld [vmem:[%s31975_s1 + $0x60] sm:$0xff] }
 0x242   :  { %21012 = vmatprep.subr.msk.bf16.mxu1 %vm21011_vm11, %v22744_v15  ;;  %vm21083_vm15 = vmpackc.low %vm6325_vm7, %vm6291_vm6  ;;  %8541 = vmatprep.mubr.f32.mxu0 %v22743_v3  ;;  %vm6352_vm6 = vcmp.eq.s32.totalorder %v22929_v22, %v27754_v54  ;;  %vm6386_vm7 = vcmp.eq.s32.totalorder %v22932_v23, %v27754_v54  ;;  %v22650_v54 = vld [vmem:[%s31974_s0 + $0x48] sm:$0x1f] }
 0x243   :  { %21084 = vmatprep.subr.msk.bf16.mxu0 %vm21083_vm15, %v22744_v15  ;;  %vm21013_vm2 = vmpackc.low %vm6318_vm10, %vm6284_vm9  ;;  %vm6358_vm9 = vcmp.eq.s32.totalorder %v22929_v22, %v27771_v56  ;;  %vm6392_vm10 = vcmp.eq.s32.totalorder %v22932_v23, %v27771_v56  ;;  %v28570_v55 = vrot.slane %v22650_v54, %v28088_v26  ;;  %v22651_v56 = vld [vmem:[%s31974_s0 + $0x30] sm:$0x1f] }
 0x244   :  { %21014 = vmatpush1.bf16.msk.msra.mxu1 %vm21013_vm2, %v22744_v15  ;;  %vm21085_vm5 = vmpackc.low %vm6324_vm14, %vm6290_vm13  ;;  %vm6017_vm13 = vcmp.eq.s32.totalorder %v22792_v2, %v27914_v8  ;;  %vm6051_vm14 = vcmp.eq.s32.totalorder %v22806_v7, %v27914_v8  ;;  %v28587_v57 = vrot.slane %v22651_v56, %v28088_v26 }
 0x245   :  { %21086 = vmatpush1.bf16.msk.msra.mxu0 %vm21085_vm5, %v22744_v15  ;;  %vm21015_vm8 = vmpackc.low %vm6387_vm1, %vm6353_vm0  ;;  %vm6023_vm0 = vcmp.eq.s32.totalorder %v22792_v2, %v27932_v63  ;;  %vm6057_vm1 = vcmp.eq.s32.totalorder %v22806_v7, %v27932_v63 }
 0x246   :  { %21016 = vmatprep.subr.msk.bf16.mxu1 %vm21015_vm8, %v22744_v15  ;;  %vm21087_vm11 = vmpackc.low %vm6393_vm4, %vm6359_vm3  ;;  %vm6016_vm3 = vcmp.eq.s32.totalorder %v22792_v2, %v27949_v0  ;;  %vm6050_vm4 = vcmp.eq.s32.totalorder %v22806_v7, %v27949_v0 }
 0x247   :  { %21088 = vmatprep.subr.msk.bf16.mxu0 %vm21087_vm11, %v22744_v15  ;;  %vm21017_vm15 = vmpackc.low %vm6386_vm7, %vm6352_vm6  ;;  %vm6022_vm6 = vcmp.eq.s32.totalorder %v22792_v2, %v27966_v4  ;;  %vm6056_vm7 = vcmp.eq.s32.totalorder %v22806_v7, %v27966_v4 }
 0x248   :  { %21018 = vmatpush1.bf16.msk.msra.mxu1 %vm21017_vm15, %v22744_v15  ;;  %vm21089_vm2 = vmpackc.low %vm6392_vm10, %vm6358_vm9  ;;  %vm6085_vm9 = vcmp.eq.s32.totalorder %v22812_v9, %v27914_v8  ;;  %vm6119_vm10 = vcmp.eq.s32.totalorder %v22815_v10, %v27914_v8 }
 0x249   :  { %21090 = vmatpush1.bf16.msk.msra.mxu0 %vm21089_vm2, %v22744_v15  ;;  %vm21043_vm5 = vmpackc.low %vm6051_vm14, %vm6017_vm13  ;;  %vm6091_vm13 = vcmp.eq.s32.totalorder %v22812_v9, %v27932_v63  ;;  %vm6125_vm14 = vcmp.eq.s32.totalorder %v22815_v10, %v27932_v63 }
 0x24a   :  { %21044 = vmatprep.subr.msk.bf16.mxu1 %vm21043_vm5, %v22744_v15  ;;  %vm21115_vm8 = vmpackc.low %vm6057_vm1, %vm6023_vm0  ;;  %vm6084_vm0 = vcmp.eq.s32.totalorder %v22812_v9, %v27949_v0  ;;  %vm6118_vm1 = vcmp.eq.s32.totalorder %v22815_v10, %v27949_v0 }
 0x24b   :  { %21116 = vmatprep.subr.msk.bf16.mxu0 %vm21115_vm8, %v22744_v15  ;;  %17979 = vmatmul.mubr.msk.f32.vlgmr.msra.gmra.mrb[56].mxu1 %vm2803_vm12, %v27569_v36  ;;  %vm21045_vm11 = vmpackc.low %vm6050_vm4, %vm6016_vm3  ;;  %vm6090_vm3 = vcmp.eq.s32.totalorder %v22812_v9, %v27966_v4  ;;  %vm6124_vm4 = vcmp.eq.s32.totalorder %v22815_v10, %v27966_v4 }
 0x24c   :  { %21046 = vmatpush1.bf16.msk.msra.mxu1 %vm21045_vm11, %v22744_v15  ;;  %18063 = vmatmul.mubr.msk.f32.vlgmr.msra.gmra.mrb[40].mxu0 %vm2803_vm12, %v27569_v36  ;;  %vm21117_vm15 = vmpackc.low %vm6056_vm7, %vm6022_vm6  ;;  %vm6153_vm6 = vcmp.eq.s32.totalorder %v22851_v16, %v27914_v8  ;;  %vm6187_vm7 = vcmp.eq.s32.totalorder %v22854_v17, %v27914_v8 }
 0x24d   :  { %21118 = vmatpush1.bf16.msk.msra.mxu0 %vm21117_vm15, %v22744_v15  ;;  %vm21047_vm2 = vmpackc.low %vm6119_vm10, %vm6085_vm9  ;;  %8280 = vmatprep.mubr.f32.mxu1 %v22743_v3  ;;  %vm6159_vm9 = vcmp.eq.s32.totalorder %v22851_v16, %v27932_v63  ;;  %vm6193_vm10 = vcmp.eq.s32.totalorder %v22854_v17, %v27932_v63 }
 0x24e   :  { %21048 = vmatprep.subr.msk.bf16.mxu1 %vm21047_vm2, %v22744_v15  ;;  %vm21119_vm5 = vmpackc.low %vm6125_vm14, %vm6091_vm13  ;;  %8547 = vmatprep.mubr.f32.mxu0 %v22743_v3  ;;  %vm6152_vm13 = vcmp.eq.s32.totalorder %v22851_v16, %v27949_v0  ;;  %vm6186_vm14 = vcmp.eq.s32.totalorder %v22854_v17, %v27949_v0 }
 0x24f   :  { %21120 = vmatprep.subr.msk.bf16.mxu0 %vm21119_vm5, %v22744_v15  ;;  %vm21049_vm8 = vmpackc.low %vm6118_vm1, %vm6084_vm0  ;;  %17980 = vmatmul.mubr.msk.f32.gmra.mrb[58].mxu1 %vm2803_vm12, %v27604_v37  ;;  %vm6158_vm0 = vcmp.eq.s32.totalorder %v22851_v16, %v27966_v4  ;;  %vm6192_vm1 = vcmp.eq.s32.totalorder %v22854_v17, %v27966_v4 }
 0x250   :  { %21050 = vmatpush1.bf16.msk.msra.mxu1 %vm21049_vm8, %v22744_v15  ;;  %vm21121_vm11 = vmpackc.low %vm6124_vm4, %vm6090_vm3  ;;  %18064 = vmatmul.mubr.msk.f32.gmra.mrb[42].mxu0 %vm2803_vm12, %v27604_v37  ;;  %vm6221_vm3 = vcmp.eq.s32.totalorder %v22877_v18, %v27914_v8  ;;  %vm6255_vm4 = vcmp.eq.s32.totalorder %v22880_v19, %v27914_v8 }
 0x251   :  { %21122 = vmatpush1.bf16.msk.msra.mxu0 %vm21121_vm11, %v22744_v15  ;;  %vm21051_vm15 = vmpackc.low %vm6187_vm7, %vm6153_vm6  ;;  %8286 = vmatprep.mubr.f32.mxu1 %v22743_v3  ;;  %vm6227_vm6 = vcmp.eq.s32.totalorder %v22877_v18, %v27932_v63  ;;  %vm6261_vm7 = vcmp.eq.s32.totalorder %v22880_v19, %v27932_v63 }
 0x252   :  { %21052 = vmatprep.subr.msk.bf16.mxu1 %vm21051_vm15, %v22744_v15  ;;  %vm21123_vm2 = vmpackc.low %vm6193_vm10, %vm6159_vm9  ;;  %8553 = vmatprep.mubr.f32.mxu0 %v22743_v3  ;;  %vm6220_vm9 = vcmp.eq.s32.totalorder %v22877_v18, %v27949_v0  ;;  %vm6254_vm10 = vcmp.eq.s32.totalorder %v22880_v19, %v27949_v0 }
 0x253   :  { %21124 = vmatprep.subr.msk.bf16.mxu0 %vm21123_vm2, %v22744_v15  ;;  %vm21053_vm5 = vmpackc.low %vm6186_vm14, %vm6152_vm13  ;;  %17981 = vmatmul.mubr.msk.f32.gmra.mrb[60].mxu1 %vm2803_vm12, %v27644_v39  ;;  %vm6226_vm13 = vcmp.eq.s32.totalorder %v22877_v18, %v27966_v4  ;;  %vm6260_vm14 = vcmp.eq.s32.totalorder %v22880_v19, %v27966_v4 }
 0x254   :  { %21054 = vmatpush1.bf16.msk.msra.mxu1 %vm21053_vm5, %v22744_v15  ;;  %vm21125_vm8 = vmpackc.low %vm6192_vm1, %vm6158_vm0  ;;  %18065 = vmatmul.mubr.msk.f32.gmra.mrb[44].mxu0 %vm2803_vm12, %v27644_v39  ;;  %vm6289_vm0 = vcmp.eq.s32.totalorder %v22903_v20, %v27914_v8  ;;  %vm6323_vm1 = vcmp.eq.s32.totalorder %v22906_v21, %v27914_v8 }
 0x255   :  { %21126 = vmatpush1.bf16.msk.msra.mxu0 %vm21125_vm8, %v22744_v15  ;;  %vm21055_vm11 = vmpackc.low %vm6255_vm4, %vm6221_vm3  ;;  %8292 = vmatprep.mubr.f32.mxu1 %v22743_v3  ;;  %vm6295_vm3 = vcmp.eq.s32.totalorder %v22903_v20, %v27932_v63  ;;  %vm6329_vm4 = vcmp.eq.s32.totalorder %v22906_v21, %v27932_v63 }
 0x256   :  { %21056 = vmatprep.subr.msk.bf16.mxu1 %vm21055_vm11, %v22744_v15  ;;  %vm21127_vm15 = vmpackc.low %vm6261_vm7, %vm6227_vm6  ;;  %8559 = vmatprep.mubr.f32.mxu0 %v22743_v3  ;;  %vm6288_vm6 = vcmp.eq.s32.totalorder %v22903_v20, %v27949_v0  ;;  %vm6322_vm7 = vcmp.eq.s32.totalorder %v22906_v21, %v27949_v0 }
 0x257   :  { %21128 = vmatprep.subr.msk.bf16.mxu0 %vm21127_vm15, %v22744_v15  ;;  %vm21057_vm2 = vmpackc.low %vm6254_vm10, %vm6220_vm9  ;;  %17982 = vmatmul.mubr.msk.f32.gmra.mrb[62].mxu1 %vm2803_vm12, %v27684_v40  ;;  %vm6294_vm9 = vcmp.eq.s32.totalorder %v22903_v20, %v27966_v4  ;;  %vm6328_vm10 = vcmp.eq.s32.totalorder %v22906_v21, %v27966_v4 }
 0x258   :  { %21058 = vmatpush1.bf16.msk.msra.mxu1 %vm21057_vm2, %v22744_v15  ;;  %vm21129_vm5 = vmpackc.low %vm6260_vm14, %vm6226_vm13  ;;  %18066 = vmatmul.mubr.msk.f32.gmra.mrb[46].mxu0 %vm2803_vm12, %v27684_v40  ;;  %vm6357_vm13 = vcmp.eq.s32.totalorder %v22929_v22, %v27914_v8  ;;  %vm6391_vm14 = vcmp.eq.s32.totalorder %v22932_v23, %v27914_v8  ;;  %v22652_v8 = vld [vmem:[%s31974_s0 + $0x40] sm:$0x1f] }
 0x259   :  { %21130 = vmatpush1.bf16.msk.msra.mxu0 %vm21129_vm5, %v22744_v15  ;;  %vm21059_vm8 = vmpackc.low %vm6323_vm1, %vm6289_vm0  ;;  %8452 = vmatprep.mubr.f32.mxu1 %v22743_v3  ;;  %vm6363_vm0 = vcmp.eq.s32.totalorder %v22929_v22, %v27932_v63  ;;  %vm6397_vm1 = vcmp.eq.s32.totalorder %v22932_v23, %v27932_v63  ;;  %v28604_v62 = vrot.slane %v22652_v8, %v28088_v26  ;;  %v22653_v63 = vld [vmem:[%s31974_s0 + $0x58] sm:$0x1f] }
 0x25a   :  { %21060 = vmatprep.subr.msk.bf16.mxu1 %vm21059_vm8, %v22744_v15  ;;  %vm21131_vm11 = vmpackc.low %vm6329_vm4, %vm6295_vm3  ;;  %8719 = vmatprep.mubr.f32.mxu0 %v22743_v3  ;;  %vm6356_vm3 = vcmp.eq.s32.totalorder %v22929_v22, %v27949_v0  ;;  %vm6390_vm4 = vcmp.eq.s32.totalorder %v22932_v23, %v27949_v0  ;;  %v28748_v32 = vrot.slane %v22653_v63, %v28088_v26  ;;  %v22654_v0 = vld [vmem:[%s31974_s0 + $0x68] sm:$0x1f] }
 0x25b   :  { %21132 = vmatprep.subr.msk.bf16.mxu0 %vm21131_vm11, %v22744_v15  ;;  %vm21061_vm15 = vmpackc.low %vm6322_vm7, %vm6288_vm6  ;;  %vm6362_vm6 = vcmp.eq.s32.totalorder %v22929_v22, %v27966_v4  ;;  %vm6396_vm7 = vcmp.eq.s32.totalorder %v22932_v23, %v27966_v4  ;;  %v28765_v61 = vrot.slane %v22654_v0, %v28088_v26  ;;  %v22655_v4 = vld [vmem:[%s31974_s0 + $0x50] sm:$0x1f]  ;;  %v29459_v63 = vld [vmem:[%s31975_s1 + $0x68] sm:$0xff] }
 0x25c   :  { %21062 = vmatpush1.bf16.msk.msra.mxu1 %vm21061_vm15, %v22744_v15  ;;  %vm21133_vm2 = vmpackc.low %vm6328_vm10, %vm6294_vm9  ;;  %vm6021_vm9 = vcmp.eq.s32.totalorder %v22792_v2, %v28121_v28  ;;  %vm6055_vm10 = vcmp.eq.s32.totalorder %v22806_v7, %v28121_v28  ;;  %v28782_v27 = vrot.slane %v22655_v4, %v28088_v26  ;;  %v29539_v0 = vld [vmem:[%s31975_s1 + $0x78] sm:$0xff] }
 0x25d   :  { %21134 = vmatpush1.bf16.msk.msra.mxu0 %vm21133_vm2, %v22744_v15  ;;  %vm21063_vm5 = vmpackc.low %vm6391_vm14, %vm6357_vm13  ;;  %vm9017_vm13 = vcmp.eq.s32.totalorder %v22792_v2, %v28139_v30  ;;  %vm9051_vm14 = vcmp.eq.s32.totalorder %v22806_v7, %v28139_v30 }
 0x25e   :  { %21064 = vmatprep.subr.msk.bf16.mxu1 %vm21063_vm5, %v22744_v15  ;;  %vm21135_vm8 = vmpackc.low %vm6397_vm1, %vm6363_vm0  ;;  %vm6020_vm0 = vcmp.eq.s32.totalorder %v22792_v2, %v28156_v58  ;;  %vm6054_vm1 = vcmp.eq.s32.totalorder %v22806_v7, %v28156_v58 }
 0x25f   :  { %21136 = vmatprep.subr.msk.bf16.mxu0 %vm21135_vm8, %v22744_v15  ;;  %vm21065_vm11 = vmpackc.low %vm6390_vm4, %vm6356_vm3  ;;  %vm9016_vm3 = vcmp.eq.s32.totalorder %v22792_v2, %v28173_v59  ;;  %vm9050_vm4 = vcmp.eq.s32.totalorder %v22806_v7, %v28173_v59 }
 0x260   :  { %21066 = vmatpush1.bf16.msk.msra.mxu1 %vm21065_vm11, %v22744_v15  ;;  %vm21137_vm15 = vmpackc.low %vm6396_vm7, %vm6362_vm6  ;;  %vm6089_vm6 = vcmp.eq.s32.totalorder %v22812_v9, %v28121_v28  ;;  %vm6123_vm7 = vcmp.eq.s32.totalorder %v22815_v10, %v28121_v28 }
 0x261   :  { %21138 = vmatpush1.bf16.msk.msra.mxu0 %vm21137_vm15, %v22744_v15  ;;  %vm21091_vm2 = vmpackc.low %vm6055_vm10, %vm6021_vm9  ;;  %vm9085_vm9 = vcmp.eq.s32.totalorder %v22812_v9, %v28139_v30  ;;  %vm9119_vm10 = vcmp.eq.s32.totalorder %v22815_v10, %v28139_v30 }
 0x262   :  { %21092 = vmatprep.subr.msk.bf16.mxu1 %vm21091_vm2, %v22744_v15  ;;  %vm21139_vm5 = vmpackc.low %vm9051_vm14, %vm9017_vm13  ;;  %vm6088_vm13 = vcmp.eq.s32.totalorder %v22812_v9, %v28156_v58  ;;  %vm6122_vm14 = vcmp.eq.s32.totalorder %v22815_v10, %v28156_v58 }
 0x263   :  { %21140 = vmatprep.subr.msk.bf16.mxu0 %vm21139_vm5, %v22744_v15  ;;  %18035 = vmatmul.mubr.msk.f32.vlgmr.msra.gmra.mrb[64].mxu1 %vm2803_vm12, %v27569_v36  ;;  %vm21093_vm8 = vmpackc.low %vm6054_vm1, %vm6020_vm0  ;;  %vm9084_vm0 = vcmp.eq.s32.totalorder %v22812_v9, %v28173_v59  ;;  %vm9118_vm1 = vcmp.eq.s32.totalorder %v22815_v10, %v28173_v59 }
 0x264   :  { %21094 = vmatpush1.bf16.msk.msra.mxu1 %vm21093_vm8, %v22744_v15  ;;  %18119 = vmatmul.mubr.msk.f32.vlgmr.msra.gmra.mrb[48].mxu0 %vm2803_vm12, %v27569_v36  ;;  %vm21141_vm11 = vmpackc.low %vm9050_vm4, %vm9016_vm3  ;;  %vm6157_vm3 = vcmp.eq.s32.totalorder %v22851_v16, %v28121_v28  ;;  %vm6191_vm4 = vcmp.eq.s32.totalorder %v22854_v17, %v28121_v28 }
 0x265   :  { %21142 = vmatpush1.bf16.msk.msra.mxu0 %vm21141_vm11, %v22744_v15  ;;  %vm21095_vm15 = vmpackc.low %vm6123_vm7, %vm6089_vm6  ;;  %8458 = vmatprep.mubr.f32.mxu1 %v22743_v3  ;;  %vm9153_vm6 = vcmp.eq.s32.totalorder %v22851_v16, %v28139_v30  ;;  %vm9187_vm7 = vcmp.eq.s32.totalorder %v22854_v17, %v28139_v30 }
 0x266   :  { %21096 = vmatprep.subr.msk.bf16.mxu1 %vm21095_vm15, %v22744_v15  ;;  %vm21143_vm2 = vmpackc.low %vm9119_vm10, %vm9085_vm9  ;;  %8725 = vmatprep.mubr.f32.mxu0 %v22743_v3  ;;  %vm6156_vm9 = vcmp.eq.s32.totalorder %v22851_v16, %v28156_v58  ;;  %vm6190_vm10 = vcmp.eq.s32.totalorder %v22854_v17, %v28156_v58 }
 0x267   :  { %21144 = vmatprep.subr.msk.bf16.mxu0 %vm21143_vm2, %v22744_v15  ;;  %vm21097_vm5 = vmpackc.low %vm6122_vm14, %vm6088_vm13  ;;  %18036 = vmatmul.mubr.msk.f32.gmra.mrb[66].mxu1 %vm2803_vm12, %v27604_v37  ;;  %vm9152_vm13 = vcmp.eq.s32.totalorder %v22851_v16, %v28173_v59  ;;  %vm9186_vm14 = vcmp.eq.s32.totalorder %v22854_v17, %v28173_v59 }
 0x268   :  { %21098 = vmatpush1.bf16.msk.msra.mxu1 %vm21097_vm5, %v22744_v15  ;;  %vm21145_vm8 = vmpackc.low %vm9118_vm1, %vm9084_vm0  ;;  %18120 = vmatmul.mubr.msk.f32.gmra.mrb[50].mxu0 %vm2803_vm12, %v27604_v37  ;;  %vm6225_vm0 = vcmp.eq.s32.totalorder %v22877_v18, %v28121_v28  ;;  %vm6259_vm1 = vcmp.eq.s32.totalorder %v22880_v19, %v28121_v28 }
 0x269   :  { %21146 = vmatpush1.bf16.msk.msra.mxu0 %vm21145_vm8, %v22744_v15  ;;  %vm21099_vm11 = vmpackc.low %vm6191_vm4, %vm6157_vm3  ;;  %8464 = vmatprep.mubr.f32.mxu1 %v22743_v3  ;;  %vm9221_vm3 = vcmp.eq.s32.totalorder %v22877_v18, %v28139_v30  ;;  %vm9255_vm4 = vcmp.eq.s32.totalorder %v22880_v19, %v28139_v30 }
 0x26a   :  { %21100 = vmatprep.subr.msk.bf16.mxu1 %vm21099_vm11, %v22744_v15  ;;  %vm21147_vm15 = vmpackc.low %vm9187_vm7, %vm9153_vm6  ;;  %8731 = vmatprep.mubr.f32.mxu0 %v22743_v3  ;;  %vm6224_vm6 = vcmp.eq.s32.totalorder %v22877_v18, %v28156_v58  ;;  %vm6258_vm7 = vcmp.eq.s32.totalorder %v22880_v19, %v28156_v58 }
 0x26b   :  { %21148 = vmatprep.subr.msk.bf16.mxu0 %vm21147_vm15, %v22744_v15  ;;  %vm21101_vm2 = vmpackc.low %vm6190_vm10, %vm6156_vm9  ;;  %18037 = vmatmul.mubr.msk.f32.gmra.mrb[68].mxu1 %vm2803_vm12, %v27644_v39  ;;  %vm9220_vm9 = vcmp.eq.s32.totalorder %v22877_v18, %v28173_v59  ;;  %vm9254_vm10 = vcmp.eq.s32.totalorder %v22880_v19, %v28173_v59 }
 0x26c   :  { %21102 = vmatpush1.bf16.msk.msra.mxu1 %vm21101_vm2, %v22744_v15  ;;  %vm21149_vm5 = vmpackc.low %vm9186_vm14, %vm9152_vm13  ;;  %18121 = vmatmul.mubr.msk.f32.gmra.mrb[52].mxu0 %vm2803_vm12, %v27644_v39  ;;  %vm6293_vm13 = vcmp.eq.s32.totalorder %v22903_v20, %v28121_v28  ;;  %vm6327_vm14 = vcmp.eq.s32.totalorder %v22906_v21, %v28121_v28 }
 0x26d   :  { %21150 = vmatpush1.bf16.msk.msra.mxu0 %vm21149_vm5, %v22744_v15  ;;  %vm21103_vm8 = vmpackc.low %vm6259_vm1, %vm6225_vm0  ;;  %8470 = vmatprep.mubr.f32.mxu1 %v22743_v3  ;;  %vm9289_vm0 = vcmp.eq.s32.totalorder %v22903_v20, %v28139_v30  ;;  %vm9323_vm1 = vcmp.eq.s32.totalorder %v22906_v21, %v28139_v30 }
 0x26e   :  { %21104 = vmatprep.subr.msk.bf16.mxu1 %vm21103_vm8, %v22744_v15  ;;  %vm21151_vm11 = vmpackc.low %vm9255_vm4, %vm9221_vm3  ;;  %8737 = vmatprep.mubr.f32.mxu0 %v22743_v3  ;;  %vm6292_vm3 = vcmp.eq.s32.totalorder %v22903_v20, %v28156_v58  ;;  %vm6326_vm4 = vcmp.eq.s32.totalorder %v22906_v21, %v28156_v58 }
 0x26f   :  { %21152 = vmatprep.subr.msk.bf16.mxu0 %vm21151_vm11, %v22744_v15  ;;  %vm21105_vm15 = vmpackc.low %vm6258_vm7, %vm6224_vm6  ;;  %18038 = vmatmul.mubr.msk.f32.gmra.mrb[70].mxu1 %vm2803_vm12, %v27684_v40  ;;  %vm9288_vm6 = vcmp.eq.s32.totalorder %v22903_v20, %v28173_v59  ;;  %vm9322_vm7 = vcmp.eq.s32.totalorder %v22906_v21, %v28173_v59 }
 0x270   :  { %21106 = vmatpush1.bf16.msk.msra.mxu1 %vm21105_vm15, %v22744_v15  ;;  %vm21153_vm2 = vmpackc.low %vm9254_vm10, %vm9220_vm9  ;;  %18122 = vmatmul.mubr.msk.f32.gmra.mrb[54].mxu0 %vm2803_vm12, %v27684_v40  ;;  %vm6361_vm9 = vcmp.eq.s32.totalorder %v22929_v22, %v28121_v28  ;;  %vm6395_vm10 = vcmp.eq.s32.totalorder %v22932_v23, %v28121_v28  ;;  %v22656_v28 = vld [vmem:[%s31974_s0 + $0x60] sm:$0x1f] }
 0x271   :  { %21154 = vmatpush1.bf16.msk.msra.mxu0 %vm21153_vm2, %v22744_v15  ;;  %vm21107_vm5 = vmpackc.low %vm6327_vm14, %vm6293_vm13  ;;  %8630 = vmatprep.mubr.f32.mxu1 %v22743_v3  ;;  %vm9357_vm13 = vcmp.eq.s32.totalorder %v22929_v22, %v28139_v30  ;;  %vm9391_vm14 = vcmp.eq.s32.totalorder %v22932_v23, %v28139_v30  ;;  %v28799_v29 = vrot.slane %v22656_v28, %v28088_v26  ;;  %v22657_v30 = vld [vmem:[%s31974_s0 + $0x78] sm:$0x1f] }
 0x272   :  { %21108 = vmatprep.subr.msk.bf16.mxu1 %vm21107_vm5, %v22744_v15  ;;  %vm21155_vm8 = vmpackc.low %vm9323_vm1, %vm9289_vm0  ;;  %10321 = vmatprep.mubr.f32.mxu0 %v22743_v3  ;;  %vm6360_vm0 = vcmp.eq.s32.totalorder %v22929_v22, %v28156_v58  ;;  %vm6394_vm1 = vcmp.eq.s32.totalorder %v22932_v23, %v28156_v58  ;;  %v28943_v1 = vrot.slane %v22657_v30, %v28088_v26  ;;  %v22658_v58 = vld [vmem:[%s31974_s0 + $0x88] sm:$0x1f] }
 0x273   :  { %21156 = vmatprep.subr.msk.bf16.mxu0 %vm21155_vm8, %v22744_v15  ;;  %vm21109_vm11 = vmpackc.low %vm6326_vm4, %vm6292_vm3  ;;  %vm9356_vm3 = vcmp.eq.s32.totalorder %v22929_v22, %v28173_v59  ;;  %vm9390_vm4 = vcmp.eq.s32.totalorder %v22932_v23, %v28173_v59  ;;  %v28960_v38 = vrot.slane %v22658_v58, %v28088_v26  ;;  %v22659_v59 = vld [vmem:[%s31974_s0 + $0x70] sm:$0x1f] }
 0x274   :  { %21110 = vmatpush1.bf16.msk.msra.mxu1 %vm21109_vm11, %v22744_v15  ;;  %vm21157_vm15 = vmpackc.low %vm9322_vm7, %vm9288_vm6  ;;  %vm9019_vm6 = vcmp.eq.s32.totalorder %v22792_v2, %v28317_v31  ;;  %vm9053_vm7 = vcmp.eq.s32.totalorder %v22806_v7, %v28317_v31  ;;  %v28977_v60 = vrot.slane %v22659_v59, %v28088_v26 }
 0x275   :  { %21158 = vmatpush1.bf16.msk.msra.mxu0 %vm21157_vm15, %v22744_v15  ;;  %vm21111_vm2 = vmpackc.low %vm6395_vm10, %vm6361_vm9  ;;  %vm9021_vm9 = vcmp.eq.s32.totalorder %v22792_v2, %v28334_v34  ;;  %vm9055_vm10 = vcmp.eq.s32.totalorder %v22806_v7, %v28334_v34 }
 0x276   :  { %21112 = vmatprep.subr.msk.bf16.mxu1 %vm21111_vm2, %v22744_v15  ;;  %vm21159_vm5 = vmpackc.low %vm9391_vm14, %vm9357_vm13  ;;  %vm9018_vm13 = vcmp.eq.s32.totalorder %v22792_v2, %v28351_v41  ;;  %vm9052_vm14 = vcmp.eq.s32.totalorder %v22806_v7, %v28351_v41 }
 0x277   :  { %21160 = vmatprep.subr.msk.bf16.mxu0 %vm21159_vm5, %v22744_v15  ;;  %vm21113_vm8 = vmpackc.low %vm6394_vm1, %vm6360_vm0  ;;  %vm9020_vm0 = vcmp.eq.s32.totalorder %v22792_v2, %v28368_v50  ;;  %vm9054_vm1 = vcmp.eq.s32.totalorder %v22806_v7, %v28368_v50 }
 0x278   :  { %21114 = vmatpush1.bf16.msk.msra.mxu1 %vm21113_vm8, %v22744_v15  ;;  %vm21161_vm11 = vmpackc.low %vm9390_vm4, %vm9356_vm3  ;;  %vm9087_vm3 = vcmp.eq.s32.totalorder %v22812_v9, %v28317_v31  ;;  %vm9121_vm4 = vcmp.eq.s32.totalorder %v22815_v10, %v28317_v31 }
 0x279   :  { %21162 = vmatpush1.bf16.msk.msra.mxu0 %vm21161_vm11, %v22744_v15  ;;  %vm21163_vm15 = vmpackc.low %vm9053_vm7, %vm9019_vm6  ;;  %vm9089_vm6 = vcmp.eq.s32.totalorder %v22812_v9, %v28334_v34  ;;  %vm9123_vm7 = vcmp.eq.s32.totalorder %v22815_v10, %v28334_v34 }
 0x27a   :  { %21164 = vmatprep.subr.msk.bf16.mxu1 %vm21163_vm15, %v22744_v15  ;;  %vm21187_vm2 = vmpackc.low %vm9055_vm10, %vm9021_vm9  ;;  %vm9086_vm9 = vcmp.eq.s32.totalorder %v22812_v9, %v28351_v41  ;;  %vm9120_vm10 = vcmp.eq.s32.totalorder %v22815_v10, %v28351_v41 }
 0x27b   :  { %21188 = vmatprep.subr.msk.bf16.mxu0 %vm21187_vm2, %v22744_v15  ;;  %18091 = vmatmul.mubr.msk.f32.vlgmr.msra.gmra.mrb[72].mxu1 %vm2803_vm12, %v27569_v36  ;;  %vm21165_vm5 = vmpackc.low %vm9052_vm14, %vm9018_vm13  ;;  %vm9088_vm13 = vcmp.eq.s32.totalorder %v22812_v9, %v28368_v50  ;;  %vm9122_vm14 = vcmp.eq.s32.totalorder %v22815_v10, %v28368_v50  ;;  %v28432_v36 = vld [vmem:[%s31975_s1 + $0x68] sm:$0xff] }
 0x27c   :  { %18559 = vmatmul.mubr.msk.f32.vlgmr.msra.gmra.mrb[56].mxu0 %vm2803_vm12, %v28398_v51  ;;  %21166 = vmatpush1.bf16.msk.msra.mxu1 %vm21165_vm5, %v22744_v15  ;;  %vm21189_vm8 = vmpackc.low %vm9054_vm1, %vm9020_vm0  ;;  %vm9155_vm0 = vcmp.eq.s32.totalorder %v22851_v16, %v28317_v31  ;;  %vm9189_vm1 = vcmp.eq.s32.totalorder %v22854_v17, %v28317_v31 }
 0x27d   :  { %21190 = vmatpush1.bf16.msk.msra.mxu0 %vm21189_vm8, %v22744_v15  ;;  %vm21167_vm11 = vmpackc.low %vm9121_vm4, %vm9087_vm3  ;;  %8636 = vmatprep.mubr.f32.mxu1 %v22743_v3  ;;  %vm9157_vm3 = vcmp.eq.s32.totalorder %v22851_v16, %v28334_v34  ;;  %vm9191_vm4 = vcmp.eq.s32.totalorder %v22854_v17, %v28334_v34 }
 0x27e   :  { %21168 = vmatprep.subr.msk.bf16.mxu1 %vm21167_vm11, %v22744_v15  ;;  %vm21191_vm15 = vmpackc.low %vm9123_vm7, %vm9089_vm6  ;;  %10327 = vmatprep.mubr.f32.mxu0 %v22743_v3  ;;  %vm9154_vm6 = vcmp.eq.s32.totalorder %v22851_v16, %v28351_v41  ;;  %vm9188_vm7 = vcmp.eq.s32.totalorder %v22854_v17, %v28351_v41 }
 0x27f   :  { %21192 = vmatprep.subr.msk.bf16.mxu0 %vm21191_vm15, %v22744_v15  ;;  %vm21169_vm2 = vmpackc.low %vm9120_vm10, %vm9086_vm9  ;;  %18092 = vmatmul.mubr.msk.f32.gmra.mrb[74].mxu1 %vm2803_vm12, %v27604_v37  ;;  %vm9156_vm9 = vcmp.eq.s32.totalorder %v22851_v16, %v28368_v50  ;;  %vm9190_vm10 = vcmp.eq.s32.totalorder %v22854_v17, %v28368_v50  ;;  %v28466_v37 = vld [vmem:[%s31975_s1 + $0x70] sm:$0xff] }
 0x280   :  { %21170 = vmatpush1.bf16.msk.msra.mxu1 %vm21169_vm2, %v22744_v15  ;;  %vm21193_vm5 = vmpackc.low %vm9122_vm14, %vm9088_vm13  ;;  %18560 = vmatmul.mubr.msk.f32.gmra.mrb[58].mxu0 %vm2803_vm12, %v28432_v36  ;;  %vm9223_vm13 = vcmp.eq.s32.totalorder %v22877_v18, %v28317_v31  ;;  %vm9257_vm14 = vcmp.eq.s32.totalorder %v22880_v19, %v28317_v31 }
 0x281   :  { %21194 = vmatpush1.bf16.msk.msra.mxu0 %vm21193_vm5, %v22744_v15  ;;  %vm21171_vm8 = vmpackc.low %vm9189_vm1, %vm9155_vm0  ;;  %8642 = vmatprep.mubr.f32.mxu1 %v22743_v3  ;;  %vm9225_vm0 = vcmp.eq.s32.totalorder %v22877_v18, %v28334_v34  ;;  %vm9259_vm1 = vcmp.eq.s32.totalorder %v22880_v19, %v28334_v34 }
 0x282   :  { %21172 = vmatprep.subr.msk.bf16.mxu1 %vm21171_vm8, %v22744_v15  ;;  %vm21195_vm11 = vmpackc.low %vm9191_vm4, %vm9157_vm3  ;;  %10333 = vmatprep.mubr.f32.mxu0 %v22743_v3  ;;  %vm9222_vm3 = vcmp.eq.s32.totalorder %v22877_v18, %v28351_v41  ;;  %vm9256_vm4 = vcmp.eq.s32.totalorder %v22880_v19, %v28351_v41 }
 0x283   :  { %21196 = vmatprep.subr.msk.bf16.mxu0 %vm21195_vm11, %v22744_v15  ;;  %vm21173_vm15 = vmpackc.low %vm9188_vm7, %vm9154_vm6  ;;  %18093 = vmatmul.mubr.msk.f32.gmra.mrb[76].mxu1 %vm2803_vm12, %v27644_v39  ;;  %vm9224_vm6 = vcmp.eq.s32.totalorder %v22877_v18, %v28368_v50  ;;  %vm9258_vm7 = vcmp.eq.s32.totalorder %v22880_v19, %v28368_v50  ;;  %v28506_v39 = vld [vmem:[%s31975_s1 + $0x78] sm:$0xff] }
 0x284   :  { %21174 = vmatpush1.bf16.msk.msra.mxu1 %vm21173_vm15, %v22744_v15  ;;  %vm21197_vm2 = vmpackc.low %vm9190_vm10, %vm9156_vm9  ;;  %18561 = vmatmul.mubr.msk.f32.gmra.mrb[60].mxu0 %vm2803_vm12, %v28466_v37  ;;  %vm9291_vm9 = vcmp.eq.s32.totalorder %v22903_v20, %v28317_v31  ;;  %vm9325_vm10 = vcmp.eq.s32.totalorder %v22906_v21, %v28317_v31 }
 0x285   :  { %21198 = vmatpush1.bf16.msk.msra.mxu0 %vm21197_vm2, %v22744_v15  ;;  %vm21175_vm5 = vmpackc.low %vm9257_vm14, %vm9223_vm13  ;;  %8648 = vmatprep.mubr.f32.mxu1 %v22743_v3  ;;  %vm9293_vm13 = vcmp.eq.s32.totalorder %v22903_v20, %v28334_v34  ;;  %vm9327_vm14 = vcmp.eq.s32.totalorder %v22906_v21, %v28334_v34 }
 0x286   :  { %21176 = vmatprep.subr.msk.bf16.mxu1 %vm21175_vm5, %v22744_v15  ;;  %vm21199_vm8 = vmpackc.low %vm9259_vm1, %vm9225_vm0  ;;  %10339 = vmatprep.mubr.f32.mxu0 %v22743_v3  ;;  %vm9290_vm0 = vcmp.eq.s32.totalorder %v22903_v20, %v28351_v41  ;;  %vm9324_vm1 = vcmp.eq.s32.totalorder %v22906_v21, %v28351_v41 }
 0x287   :  { %21200 = vmatprep.subr.msk.bf16.mxu0 %vm21199_vm8, %v22744_v15  ;;  %vm21177_vm11 = vmpackc.low %vm9256_vm4, %vm9222_vm3  ;;  %18094 = vmatmul.mubr.msk.f32.gmra.mrb[78].mxu1 %vm2803_vm12, %v27684_v40  ;;  %vm9292_vm3 = vcmp.eq.s32.totalorder %v22903_v20, %v28368_v50  ;;  %vm9326_vm4 = vcmp.eq.s32.totalorder %v22906_v21, %v28368_v50  ;;  %v22649_v40 = vld [vmem:[%s31974_s0 + $0x38] sm:$0x1f] }
 0x288   :  { %21178 = vmatpush1.bf16.msk.msra.mxu1 %vm21177_vm11, %v22744_v15  ;;  %vm21201_vm15 = vmpackc.low %vm9258_vm7, %vm9224_vm6  ;;  %18562 = vmatmul.mubr.msk.f32.gmra.mrb[62].mxu0 %vm2803_vm12, %v28506_v39  ;;  %vm9359_vm6 = vcmp.eq.s32.totalorder %v22929_v22, %v28317_v31  ;;  %vm9393_vm7 = vcmp.eq.s32.totalorder %v22932_v23, %v28317_v31  ;;  %v28553_v53 = vrot.slane %v22649_v40, %v28088_v26  ;;  %v22660_v31 = vld [vmem:[%s31974_s0 + $0x80] sm:$0x1f] }
 0x289   :  { %21202 = vmatpush1.bf16.msk.msra.mxu0 %vm21201_vm15, %v22744_v15  ;;  %vm21179_vm2 = vmpackc.low %vm9325_vm10, %vm9291_vm9  ;;  %10410 = vmatprep.mubr.f32.mxu1 %v22743_v3  ;;  %vm9361_vm9 = vcmp.eq.s32.totalorder %v22929_v22, %v28334_v34  ;;  %vm9395_vm10 = vcmp.eq.s32.totalorder %v22932_v23, %v28334_v34  ;;  %v28994_v33 = vrot.slane %v22660_v31, %v28088_v26  ;;  %v22661_v34 = vld [vmem:[%s31974_s0 + $0x98] sm:$0x1f] }
 0x28a   :  { %21180 = vmatprep.subr.msk.bf16.mxu1 %vm21179_vm2, %v22744_v15  ;;  %vm21203_vm5 = vmpackc.low %vm9327_vm14, %vm9293_vm13  ;;  %10499 = vmatprep.mubr.f32.mxu0 %v22743_v3  ;;  %vm9358_vm13 = vcmp.eq.s32.totalorder %v22929_v22, %v28351_v41  ;;  %vm9392_vm14 = vcmp.eq.s32.totalorder %v22932_v23, %v28351_v41  ;;  %v29138_v35 = vrot.slane %v22661_v34, %v28088_v26  ;;  %v22662_v41 = vld [vmem:[%s31974_s0 + $0xa8] sm:$0x1f] }
 0x28b   :  { %21204 = vmatprep.subr.msk.bf16.mxu0 %vm21203_vm5, %v22744_v15  ;;  %vm21181_vm8 = vmpackc.low %vm9324_vm1, %vm9290_vm0  ;;  %vm9360_vm0 = vcmp.eq.s32.totalorder %v22929_v22, %v28368_v50  ;;  %vm9394_vm1 = vcmp.eq.s32.totalorder %v22932_v23, %v28368_v50  ;;  %v29155_v42 = vrot.slane %v22662_v41, %v28088_v26  ;;  %v22663_v50 = vld [vmem:[%s31974_s0 + $0x90] sm:$0x1f] }
 0x28c   :  { %21182 = vmatpush1.bf16.msk.msra.mxu1 %vm21181_vm8, %v22744_v15  ;;  %vm21205_vm11 = vmpackc.low %vm9326_vm4, %vm9292_vm3  ;;  %vm9023_vm3 = vcmp.eq.s32.totalorder %v22792_v2, %v28553_v53  ;;  %vm9057_vm4 = vcmp.eq.s32.totalorder %v22806_v7, %v28553_v53  ;;  %v29172_v40 = vrot.slane %v22663_v50, %v28088_v26 }
 0x28d   :  { %21206 = vmatpush1.bf16.msk.msra.mxu0 %vm21205_vm11, %v22744_v15  ;;  %vm21183_vm15 = vmpackc.low %vm9393_vm7, %vm9359_vm6  ;;  %vm9025_vm6 = vcmp.eq.s32.totalorder %v22792_v2, %v28570_v55  ;;  %vm9059_vm7 = vcmp.eq.s32.totalorder %v22806_v7, %v28570_v55 }
 0x28e   :  { %21184 = vmatprep.subr.msk.bf16.mxu1 %vm21183_vm15, %v22744_v15  ;;  %vm21207_vm2 = vmpackc.low %vm9395_vm10, %vm9361_vm9  ;;  %vm9022_vm9 = vcmp.eq.s32.totalorder %v22792_v2, %v28587_v57  ;;  %vm9056_vm10 = vcmp.eq.s32.totalorder %v22806_v7, %v28587_v57 }
 0x28f   :  { %21208 = vmatprep.subr.msk.bf16.mxu0 %vm21207_vm2, %v22744_v15  ;;  %vm21185_vm5 = vmpackc.low %vm9392_vm14, %vm9358_vm13  ;;  %vm9024_vm13 = vcmp.eq.s32.totalorder %v22792_v2, %v28604_v62  ;;  %vm9058_vm14 = vcmp.eq.s32.totalorder %v22806_v7, %v28604_v62 }
 0x290   :  { %21186 = vmatpush1.bf16.msk.msra.mxu1 %vm21185_vm5, %v22744_v15  ;;  %vm21209_vm8 = vmpackc.low %vm9394_vm1, %vm9360_vm0  ;;  %vm9091_vm0 = vcmp.eq.s32.totalorder %v22812_v9, %v28553_v53  ;;  %vm9125_vm1 = vcmp.eq.s32.totalorder %v22815_v10, %v28553_v53 }
 0x291   :  { %21210 = vmatpush1.bf16.msk.msra.mxu0 %vm21209_vm8, %v22744_v15  ;;  %vm21211_vm11 = vmpackc.low %vm9057_vm4, %vm9023_vm3  ;;  %vm9093_vm3 = vcmp.eq.s32.totalorder %v22812_v9, %v28570_v55  ;;  %vm9127_vm4 = vcmp.eq.s32.totalorder %v22815_v10, %v28570_v55 }
 0x292   :  { %21212 = vmatprep.subr.msk.bf16.mxu1 %vm21211_vm11, %v22744_v15  ;;  %vm21235_vm15 = vmpackc.low %vm9059_vm7, %vm9025_vm6  ;;  %vm9090_vm6 = vcmp.eq.s32.totalorder %v22812_v9, %v28587_v57  ;;  %vm9124_vm7 = vcmp.eq.s32.totalorder %v22815_v10, %v28587_v57 }
 0x293   :  { %21236 = vmatprep.subr.msk.bf16.mxu0 %vm21235_vm15, %v22744_v15  ;;  %18587 = vmatmul.mubr.msk.f32.vlgmr.msra.gmra.mrb[8].mxu1 %vm2803_vm12, %v28398_v51  ;;  %vm21213_vm2 = vmpackc.low %vm9056_vm10, %vm9022_vm9  ;;  %vm9092_vm9 = vcmp.eq.s32.totalorder %v22812_v9, %v28604_v62  ;;  %vm9126_vm10 = vcmp.eq.s32.totalorder %v22815_v10, %v28604_v62 }
 0x294   :  { %18615 = vmatmul.mubr.msk.f32.vlgmr.msra.gmra.mrb[64].mxu0 %vm2803_vm12, %v28398_v51  ;;  %21214 = vmatpush1.bf16.msk.msra.mxu1 %vm21213_vm2, %v22744_v15  ;;  %vm21237_vm5 = vmpackc.low %vm9058_vm14, %vm9024_vm13  ;;  %vm9159_vm13 = vcmp.eq.s32.totalorder %v22851_v16, %v28553_v53  ;;  %vm9193_vm14 = vcmp.eq.s32.totalorder %v22854_v17, %v28553_v53 }
 0x295   :  { %21238 = vmatpush1.bf16.msk.msra.mxu0 %vm21237_vm5, %v22744_v15  ;;  %vm21215_vm8 = vmpackc.low %vm9125_vm1, %vm9091_vm0  ;;  %10416 = vmatprep.mubr.f32.mxu1 %v22743_v3  ;;  %vm9161_vm0 = vcmp.eq.s32.totalorder %v22851_v16, %v28570_v55  ;;  %vm9195_vm1 = vcmp.eq.s32.totalorder %v22854_v17, %v28570_v55 }
 0x296   :  { %21216 = vmatprep.subr.msk.bf16.mxu1 %vm21215_vm8, %v22744_v15  ;;  %vm21239_vm11 = vmpackc.low %vm9127_vm4, %vm9093_vm3  ;;  %10505 = vmatprep.mubr.f32.mxu0 %v22743_v3  ;;  %vm9158_vm3 = vcmp.eq.s32.totalorder %v22851_v16, %v28587_v57  ;;  %vm9192_vm4 = vcmp.eq.s32.totalorder %v22854_v17, %v28587_v57 }
 0x297   :  { %21240 = vmatprep.subr.msk.bf16.mxu0 %vm21239_vm11, %v22744_v15  ;;  %vm21217_vm15 = vmpackc.low %vm9124_vm7, %vm9090_vm6  ;;  %18588 = vmatmul.mubr.msk.f32.gmra.mrb[10].mxu1 %vm2803_vm12, %v28432_v36  ;;  %vm9160_vm6 = vcmp.eq.s32.totalorder %v22851_v16, %v28604_v62  ;;  %vm9194_vm7 = vcmp.eq.s32.totalorder %v22854_v17, %v28604_v62 }
 0x298   :  { %21218 = vmatpush1.bf16.msk.msra.mxu1 %vm21217_vm15, %v22744_v15  ;;  %vm21241_vm2 = vmpackc.low %vm9126_vm10, %vm9092_vm9  ;;  %18616 = vmatmul.mubr.msk.f32.gmra.mrb[66].mxu0 %vm2803_vm12, %v28432_v36  ;;  %vm9227_vm9 = vcmp.eq.s32.totalorder %v22877_v18, %v28553_v53  ;;  %vm9261_vm10 = vcmp.eq.s32.totalorder %v22880_v19, %v28553_v53 }
 0x299   :  { %21242 = vmatpush1.bf16.msk.msra.mxu0 %vm21241_vm2, %v22744_v15  ;;  %vm21219_vm5 = vmpackc.low %vm9193_vm14, %vm9159_vm13  ;;  %10422 = vmatprep.mubr.f32.mxu1 %v22743_v3  ;;  %vm9229_vm13 = vcmp.eq.s32.totalorder %v22877_v18, %v28570_v55  ;;  %vm9263_vm14 = vcmp.eq.s32.totalorder %v22880_v19, %v28570_v55 }
 0x29a   :  { %21220 = vmatprep.subr.msk.bf16.mxu1 %vm21219_vm5, %v22744_v15  ;;  %vm21243_vm8 = vmpackc.low %vm9195_vm1, %vm9161_vm0  ;;  %10511 = vmatprep.mubr.f32.mxu0 %v22743_v3  ;;  %vm9226_vm0 = vcmp.eq.s32.totalorder %v22877_v18, %v28587_v57  ;;  %vm9260_vm1 = vcmp.eq.s32.totalorder %v22880_v19, %v28587_v57 }
 0x29b   :  { %21244 = vmatprep.subr.msk.bf16.mxu0 %vm21243_vm8, %v22744_v15  ;;  %vm21221_vm11 = vmpackc.low %vm9192_vm4, %vm9158_vm3  ;;  %18589 = vmatmul.mubr.msk.f32.gmra.mrb[12].mxu1 %vm2803_vm12, %v28466_v37  ;;  %vm9228_vm3 = vcmp.eq.s32.totalorder %v22877_v18, %v28604_v62  ;;  %vm9262_vm4 = vcmp.eq.s32.totalorder %v22880_v19, %v28604_v62 }
 0x29c   :  { %21222 = vmatpush1.bf16.msk.msra.mxu1 %vm21221_vm11, %v22744_v15  ;;  %vm21245_vm15 = vmpackc.low %vm9194_vm7, %vm9160_vm6  ;;  %18617 = vmatmul.mubr.msk.f32.gmra.mrb[68].mxu0 %vm2803_vm12, %v28466_v37  ;;  %vm9295_vm6 = vcmp.eq.s32.totalorder %v22903_v20, %v28553_v53  ;;  %vm9329_vm7 = vcmp.eq.s32.totalorder %v22906_v21, %v28553_v53 }
 0x29d   :  { %21246 = vmatpush1.bf16.msk.msra.mxu0 %vm21245_vm15, %v22744_v15  ;;  %vm21223_vm2 = vmpackc.low %vm9261_vm10, %vm9227_vm9  ;;  %10428 = vmatprep.mubr.f32.mxu1 %v22743_v3  ;;  %vm9297_vm9 = vcmp.eq.s32.totalorder %v22903_v20, %v28570_v55  ;;  %vm9331_vm10 = vcmp.eq.s32.totalorder %v22906_v21, %v28570_v55 }
 0x29e   :  { %21224 = vmatprep.subr.msk.bf16.mxu1 %vm21223_vm2, %v22744_v15  ;;  %vm21247_vm5 = vmpackc.low %vm9263_vm14, %vm9229_vm13  ;;  %10517 = vmatprep.mubr.f32.mxu0 %v22743_v3  ;;  %vm9294_vm13 = vcmp.eq.s32.totalorder %v22903_v20, %v28587_v57  ;;  %vm9328_vm14 = vcmp.eq.s32.totalorder %v22906_v21, %v28587_v57 }
 0x29f   :  { %21248 = vmatprep.subr.msk.bf16.mxu0 %vm21247_vm5, %v22744_v15  ;;  %vm21225_vm8 = vmpackc.low %vm9260_vm1, %vm9226_vm0  ;;  %18590 = vmatmul.mubr.msk.f32.gmra.mrb[14].mxu1 %vm2803_vm12, %v28506_v39  ;;  %vm9296_vm0 = vcmp.eq.s32.totalorder %v22903_v20, %v28604_v62  ;;  %vm9330_vm1 = vcmp.eq.s32.totalorder %v22906_v21, %v28604_v62 }
 0x2a0   :  { %21226 = vmatpush1.bf16.msk.msra.mxu1 %vm21225_vm8, %v22744_v15  ;;  %vm21249_vm11 = vmpackc.low %vm9262_vm4, %vm9228_vm3  ;;  %18618 = vmatmul.mubr.msk.f32.gmra.mrb[70].mxu0 %vm2803_vm12, %v28506_v39  ;;  %vm9363_vm3 = vcmp.eq.s32.totalorder %v22929_v22, %v28553_v53  ;;  %vm9397_vm4 = vcmp.eq.s32.totalorder %v22932_v23, %v28553_v53  ;;  %v22664_v53 = vld [vmem:[%s31974_s0 + $0xa0] sm:$0x1f] }
 0x2a1   :  { %21250 = vmatpush1.bf16.msk.msra.mxu0 %vm21249_vm11, %v22744_v15  ;;  %vm21227_vm15 = vmpackc.low %vm9329_vm7, %vm9295_vm6  ;;  %10588 = vmatprep.mubr.f32.mxu1 %v22743_v3  ;;  %vm9365_vm6 = vcmp.eq.s32.totalorder %v22929_v22, %v28570_v55  ;;  %vm9399_vm7 = vcmp.eq.s32.totalorder %v22932_v23, %v28570_v55  ;;  %v29189_v54 = vrot.slane %v22664_v53, %v28088_v26  ;;  %v22667_v55 = vld [vmem:[%s31974_s0 + $0xb0] sm:$0x1f] }
 0x2a2   :  { %21228 = vmatprep.subr.msk.bf16.mxu1 %vm21227_vm15, %v22744_v15  ;;  %vm21251_vm2 = vmpackc.low %vm9331_vm10, %vm9297_vm9  ;;  %10677 = vmatprep.mubr.f32.mxu0 %v22743_v3  ;;  %vm9362_vm9 = vcmp.eq.s32.totalorder %v22929_v22, %v28587_v57  ;;  %vm9396_vm10 = vcmp.eq.s32.totalorder %v22932_v23, %v28587_v57  ;;  %v29367_v56 = vrot.slane %v22667_v55, %v28088_v26  ;;  %v22668_v57 = vld [vmem:[%s31974_s0 + $0xc0] sm:$0x1f] }
 0x2a3   :  { %21252 = vmatprep.subr.msk.bf16.mxu0 %vm21251_vm2, %v22744_v15  ;;  %vm21229_vm5 = vmpackc.low %vm9328_vm14, %vm9294_vm13  ;;  %vm9364_vm13 = vcmp.eq.s32.totalorder %v22929_v22, %v28604_v62  ;;  %vm9398_vm14 = vcmp.eq.s32.totalorder %v22932_v23, %v28604_v62  ;;  %v29384_v8 = vrot.slane %v22668_v57, %v28088_v26  ;;  %v29424_v62 = vld [vmem:[%s31975_s1 + $0x60] sm:$0xff] }
 0x2a4   :  { %21230 = vmatpush1.bf16.msk.msra.mxu1 %vm21229_vm5, %v22744_v15  ;;  %vm21253_vm8 = vmpackc.low %vm9330_vm1, %vm9296_vm0  ;;  %vm9027_vm0 = vcmp.eq.s32.totalorder %v22792_v2, %v28748_v32  ;;  %vm9061_vm1 = vcmp.eq.s32.totalorder %v22806_v7, %v28748_v32 }
 0x2a5   :  { %21254 = vmatpush1.bf16.msk.msra.mxu0 %vm21253_vm8, %v22744_v15  ;;  %vm21231_vm11 = vmpackc.low %vm9397_vm4, %vm9363_vm3  ;;  %vm9029_vm3 = vcmp.eq.s32.totalorder %v22792_v2, %v28765_v61  ;;  %vm9063_vm4 = vcmp.eq.s32.totalorder %v22806_v7, %v28765_v61 }
 0x2a6   :  { %21232 = vmatprep.subr.msk.bf16.mxu1 %vm21231_vm11, %v22744_v15  ;;  %vm21255_vm15 = vmpackc.low %vm9399_vm7, %vm9365_vm6  ;;  %vm9026_vm6 = vcmp.eq.s32.totalorder %v22792_v2, %v28782_v27  ;;  %vm9060_vm7 = vcmp.eq.s32.totalorder %v22806_v7, %v28782_v27 }
 0x2a7   :  { %21256 = vmatprep.subr.msk.bf16.mxu0 %vm21255_vm15, %v22744_v15  ;;  %vm21233_vm2 = vmpackc.low %vm9396_vm10, %vm9362_vm9  ;;  %vm9028_vm9 = vcmp.eq.s32.totalorder %v22792_v2, %v28799_v29  ;;  %vm9062_vm10 = vcmp.eq.s32.totalorder %v22806_v7, %v28799_v29 }
 0x2a8   :  { %21234 = vmatpush1.bf16.msk.msra.mxu1 %vm21233_vm2, %v22744_v15  ;;  %vm21257_vm5 = vmpackc.low %vm9398_vm14, %vm9364_vm13  ;;  %vm9095_vm13 = vcmp.eq.s32.totalorder %v22812_v9, %v28748_v32  ;;  %vm9129_vm14 = vcmp.eq.s32.totalorder %v22815_v10, %v28748_v32 }
 0x2a9   :  { %21258 = vmatpush1.bf16.msk.msra.mxu0 %vm21257_vm5, %v22744_v15  ;;  %vm21259_vm8 = vmpackc.low %vm9061_vm1, %vm9027_vm0  ;;  %vm9097_vm0 = vcmp.eq.s32.totalorder %v22812_v9, %v28765_v61  ;;  %vm9131_vm1 = vcmp.eq.s32.totalorder %v22815_v10, %v28765_v61 }
 0x2aa   :  { %21260 = vmatprep.subr.msk.bf16.mxu1 %vm21259_vm8, %v22744_v15  ;;  %vm21283_vm11 = vmpackc.low %vm9063_vm4, %vm9029_vm3  ;;  %vm9094_vm3 = vcmp.eq.s32.totalorder %v22812_v9, %v28782_v27  ;;  %vm9128_vm4 = vcmp.eq.s32.totalorder %v22815_v10, %v28782_v27 }
 0x2ab   :  { %21284 = vmatprep.subr.msk.bf16.mxu0 %vm21283_vm11, %v22744_v15  ;;  %18643 = vmatmul.mubr.msk.f32.vlgmr.msra.gmra.mrb[24].mxu1 %vm2803_vm12, %v28398_v51  ;;  %vm21261_vm15 = vmpackc.low %vm9060_vm7, %vm9026_vm6  ;;  %vm9096_vm6 = vcmp.eq.s32.totalorder %v22812_v9, %v28799_v29  ;;  %vm9130_vm7 = vcmp.eq.s32.totalorder %v22815_v10, %v28799_v29 }
 0x2ac   :  { %18671 = vmatmul.mubr.msk.f32.vlgmr.msra.gmra.mrb[0].mxu0 %vm2803_vm12, %v28398_v51  ;;  %21262 = vmatpush1.bf16.msk.msra.mxu1 %vm21261_vm15, %v22744_v15  ;;  %vm21285_vm2 = vmpackc.low %vm9062_vm10, %vm9028_vm9  ;;  %vm9163_vm9 = vcmp.eq.s32.totalorder %v22851_v16, %v28748_v32  ;;  %vm9197_vm10 = vcmp.eq.s32.totalorder %v22854_v17, %v28748_v32 }
 0x2ad   :  { %21286 = vmatpush1.bf16.msk.msra.mxu0 %vm21285_vm2, %v22744_v15  ;;  %vm21263_vm5 = vmpackc.low %vm9129_vm14, %vm9095_vm13  ;;  %10594 = vmatprep.mubr.f32.mxu1 %v22743_v3  ;;  %vm9165_vm13 = vcmp.eq.s32.totalorder %v22851_v16, %v28765_v61  ;;  %vm9199_vm14 = vcmp.eq.s32.totalorder %v22854_v17, %v28765_v61 }
 0x2ae   :  { %21264 = vmatprep.subr.msk.bf16.mxu1 %vm21263_vm5, %v22744_v15  ;;  %vm21287_vm8 = vmpackc.low %vm9131_vm1, %vm9097_vm0  ;;  %10683 = vmatprep.mubr.f32.mxu0 %v22743_v3  ;;  %vm9162_vm0 = vcmp.eq.s32.totalorder %v22851_v16, %v28782_v27  ;;  %vm9196_vm1 = vcmp.eq.s32.totalorder %v22854_v17, %v28782_v27 }
 0x2af   :  { %21288 = vmatprep.subr.msk.bf16.mxu0 %vm21287_vm8, %v22744_v15  ;;  %vm21265_vm11 = vmpackc.low %vm9128_vm4, %vm9094_vm3  ;;  %18644 = vmatmul.mubr.msk.f32.gmra.mrb[26].mxu1 %vm2803_vm12, %v28432_v36  ;;  %vm9164_vm3 = vcmp.eq.s32.totalorder %v22851_v16, %v28799_v29  ;;  %vm9198_vm4 = vcmp.eq.s32.totalorder %v22854_v17, %v28799_v29 }
 0x2b0   :  { %21266 = vmatpush1.bf16.msk.msra.mxu1 %vm21265_vm11, %v22744_v15  ;;  %vm21289_vm15 = vmpackc.low %vm9130_vm7, %vm9096_vm6  ;;  %18672 = vmatmul.mubr.msk.f32.gmra.mrb[2].mxu0 %vm2803_vm12, %v28432_v36  ;;  %vm9231_vm6 = vcmp.eq.s32.totalorder %v22877_v18, %v28748_v32  ;;  %vm9265_vm7 = vcmp.eq.s32.totalorder %v22880_v19, %v28748_v32 }
 0x2b1   :  { %21290 = vmatpush1.bf16.msk.msra.mxu0 %vm21289_vm15, %v22744_v15  ;;  %vm21267_vm2 = vmpackc.low %vm9197_vm10, %vm9163_vm9  ;;  %10600 = vmatprep.mubr.f32.mxu1 %v22743_v3  ;;  %vm9233_vm9 = vcmp.eq.s32.totalorder %v22877_v18, %v28765_v61  ;;  %vm9267_vm10 = vcmp.eq.s32.totalorder %v22880_v19, %v28765_v61 }
 0x2b2   :  { %21268 = vmatprep.subr.msk.bf16.mxu1 %vm21267_vm2, %v22744_v15  ;;  %vm21291_vm5 = vmpackc.low %vm9199_vm14, %vm9165_vm13  ;;  %10689 = vmatprep.mubr.f32.mxu0 %v22743_v3  ;;  %vm9230_vm13 = vcmp.eq.s32.totalorder %v22877_v18, %v28782_v27  ;;  %vm9264_vm14 = vcmp.eq.s32.totalorder %v22880_v19, %v28782_v27 }
 0x2b3   :  { %21292 = vmatprep.subr.msk.bf16.mxu0 %vm21291_vm5, %v22744_v15  ;;  %vm21269_vm8 = vmpackc.low %vm9196_vm1, %vm9162_vm0  ;;  %18645 = vmatmul.mubr.msk.f32.gmra.mrb[28].mxu1 %vm2803_vm12, %v28466_v37  ;;  %vm9232_vm0 = vcmp.eq.s32.totalorder %v22877_v18, %v28799_v29  ;;  %vm9266_vm1 = vcmp.eq.s32.totalorder %v22880_v19, %v28799_v29 }
 0x2b4   :  { %21270 = vmatpush1.bf16.msk.msra.mxu1 %vm21269_vm8, %v22744_v15  ;;  %vm21293_vm11 = vmpackc.low %vm9198_vm4, %vm9164_vm3  ;;  %18673 = vmatmul.mubr.msk.f32.gmra.mrb[4].mxu0 %vm2803_vm12, %v28466_v37  ;;  %vm9299_vm3 = vcmp.eq.s32.totalorder %v22903_v20, %v28748_v32  ;;  %vm9333_vm4 = vcmp.eq.s32.totalorder %v22906_v21, %v28748_v32 }
 0x2b5   :  { %21294 = vmatpush1.bf16.msk.msra.mxu0 %vm21293_vm11, %v22744_v15  ;;  %vm21271_vm15 = vmpackc.low %vm9265_vm7, %vm9231_vm6  ;;  %10606 = vmatprep.mubr.f32.mxu1 %v22743_v3  ;;  %vm9301_vm6 = vcmp.eq.s32.totalorder %v22903_v20, %v28765_v61  ;;  %vm9335_vm7 = vcmp.eq.s32.totalorder %v22906_v21, %v28765_v61 }
 0x2b6   :  { %21272 = vmatprep.subr.msk.bf16.mxu1 %vm21271_vm15, %v22744_v15  ;;  %vm21295_vm2 = vmpackc.low %vm9267_vm10, %vm9233_vm9  ;;  %10695 = vmatprep.mubr.f32.mxu0 %v22743_v3  ;;  %vm9298_vm9 = vcmp.eq.s32.totalorder %v22903_v20, %v28782_v27  ;;  %vm9332_vm10 = vcmp.eq.s32.totalorder %v22906_v21, %v28782_v27 }
 0x2b7   :  { %21296 = vmatprep.subr.msk.bf16.mxu0 %vm21295_vm2, %v22744_v15  ;;  %vm21273_vm5 = vmpackc.low %vm9264_vm14, %vm9230_vm13  ;;  %18646 = vmatmul.mubr.msk.f32.gmra.mrb[30].mxu1 %vm2803_vm12, %v28506_v39  ;;  %vm9300_vm13 = vcmp.eq.s32.totalorder %v22903_v20, %v28799_v29  ;;  %vm9334_vm14 = vcmp.eq.s32.totalorder %v22906_v21, %v28799_v29 }
 0x2b8   :  { %21274 = vmatpush1.bf16.msk.msra.mxu1 %vm21273_vm5, %v22744_v15  ;;  %vm21297_vm8 = vmpackc.low %vm9266_vm1, %vm9232_vm0  ;;  %18674 = vmatmul.mubr.msk.f32.gmra.mrb[6].mxu0 %vm2803_vm12, %v28506_v39  ;;  %vm9367_vm0 = vcmp.eq.s32.totalorder %v22929_v22, %v28748_v32  ;;  %vm9401_vm1 = vcmp.eq.s32.totalorder %v22932_v23, %v28748_v32  ;;  %v29499_v32 = vld [vmem:[%s31975_s1 + $0x70] sm:$0xff] }
 0x2b9   :  { %21298 = vmatpush1.bf16.msk.msra.mxu0 %vm21297_vm8, %v22744_v15  ;;  %vm21275_vm11 = vmpackc.low %vm9333_vm4, %vm9299_vm3  ;;  %10766 = vmatprep.mubr.f32.mxu1 %v22743_v3  ;;  %vm9369_vm3 = vcmp.eq.s32.totalorder %v22929_v22, %v28765_v61  ;;  %vm9403_vm4 = vcmp.eq.s32.totalorder %v22932_v23, %v28765_v61  ;;  %v22673_v61 = vld [vmem:[%s31974_s0 + $0xd8] sm:$0x1f] }
 0x2ba   :  { %21276 = vmatprep.subr.msk.bf16.mxu1 %vm21275_vm11, %v22744_v15  ;;  %vm21299_vm15 = vmpackc.low %vm9335_vm7, %vm9301_vm6  ;;  %10855 = vmatprep.mubr.f32.mxu0 %v22743_v3  ;;  %vm9366_vm6 = vcmp.eq.s32.totalorder %v22929_v22, %v28782_v27  ;;  %vm9400_vm7 = vcmp.eq.s32.totalorder %v22932_v23, %v28782_v27  ;;  %v29575_v4 = vrot.slane %v22673_v61, %v28088_v26  ;;  %v22674_v27 = vld [vmem:[%s31974_s0 + $0xe8] sm:$0x1f] }
 0x2bb   :  { %21300 = vmatprep.subr.msk.bf16.mxu0 %vm21299_vm15, %v22744_v15  ;;  %vm21277_vm2 = vmpackc.low %vm9332_vm10, %vm9298_vm9  ;;  %vm9368_vm9 = vcmp.eq.s32.totalorder %v22929_v22, %v28799_v29  ;;  %vm9402_vm10 = vcmp.eq.s32.totalorder %v22932_v23, %v28799_v29  ;;  %v29592_v28 = vrot.slane %v22674_v27, %v28088_v26  ;;  %v22675_v29 = vld [vmem:[%s31974_s0 + $0xd0] sm:$0x1f]  ;;  %v30297_v61 = vld [vmem:[%s31975_s1 + $0x88] sm:$0xff] }
 0x2bc   :  { %21278 = vmatpush1.bf16.msk.msra.mxu1 %vm21277_vm2, %v22744_v15  ;;  %vm21301_vm5 = vmpackc.low %vm9334_vm14, %vm9300_vm13  ;;  %vm9031_vm13 = vcmp.eq.s32.totalorder %v22792_v2, %v28943_v1  ;;  %vm9065_vm14 = vcmp.eq.s32.totalorder %v22806_v7, %v28943_v1  ;;  %v29609_v30 = vrot.slane %v22675_v29, %v28088_v26  ;;  %v30374_v27 = vld [vmem:[%s31975_s1 + $0x98] sm:$0xff] }
 0x2bd   :  { %21302 = vmatpush1.bf16.msk.msra.mxu0 %vm21301_vm5, %v22744_v15  ;;  %vm21279_vm8 = vmpackc.low %vm9401_vm1, %vm9367_vm0  ;;  %vm9033_vm0 = vcmp.eq.s32.totalorder %v22792_v2, %v28960_v38  ;;  %vm9067_vm1 = vcmp.eq.s32.totalorder %v22806_v7, %v28960_v38 }
 0x2be   :  { %21280 = vmatprep.subr.msk.bf16.mxu1 %vm21279_vm8, %v22744_v15  ;;  %vm21303_vm11 = vmpackc.low %vm9403_vm4, %vm9369_vm3  ;;  %vm9030_vm3 = vcmp.eq.s32.totalorder %v22792_v2, %v28977_v60  ;;  %vm9064_vm4 = vcmp.eq.s32.totalorder %v22806_v7, %v28977_v60 }
 0x2bf   :  { %21304 = vmatprep.subr.msk.bf16.mxu0 %vm21303_vm11, %v22744_v15  ;;  %vm21281_vm15 = vmpackc.low %vm9400_vm7, %vm9366_vm6  ;;  %vm9032_vm6 = vcmp.eq.s32.totalorder %v22792_v2, %v28994_v33  ;;  %vm9066_vm7 = vcmp.eq.s32.totalorder %v22806_v7, %v28994_v33 }
 0x2c0   :  { %21282 = vmatpush1.bf16.msk.msra.mxu1 %vm21281_vm15, %v22744_v15  ;;  %vm21305_vm2 = vmpackc.low %vm9402_vm10, %vm9368_vm9  ;;  %vm9099_vm9 = vcmp.eq.s32.totalorder %v22812_v9, %v28943_v1  ;;  %vm9133_vm10 = vcmp.eq.s32.totalorder %v22815_v10, %v28943_v1 }
 0x2c1   :  { %21306 = vmatpush1.bf16.msk.msra.mxu0 %vm21305_vm2, %v22744_v15  ;;  %vm21307_vm5 = vmpackc.low %vm9065_vm14, %vm9031_vm13  ;;  %vm9101_vm13 = vcmp.eq.s32.totalorder %v22812_v9, %v28960_v38  ;;  %vm9135_vm14 = vcmp.eq.s32.totalorder %v22815_v10, %v28960_v38 }
 0x2c2   :  { %21308 = vmatprep.subr.msk.bf16.mxu1 %vm21307_vm5, %v22744_v15  ;;  %vm21331_vm8 = vmpackc.low %vm9067_vm1, %vm9033_vm0  ;;  %vm9098_vm0 = vcmp.eq.s32.totalorder %v22812_v9, %v28977_v60  ;;  %vm9132_vm1 = vcmp.eq.s32.totalorder %v22815_v10, %v28977_v60 }
 0x2c3   :  { %21332 = vmatprep.subr.msk.bf16.mxu0 %vm21331_vm8, %v22744_v15  ;;  %18699 = vmatmul.mubr.msk.f32.vlgmr.msra.gmra.mrb[32].mxu1 %vm2803_vm12, %v28398_v51  ;;  %vm21309_vm11 = vmpackc.low %vm9064_vm4, %vm9030_vm3  ;;  %vm9100_vm3 = vcmp.eq.s32.totalorder %v22812_v9, %v28994_v33  ;;  %vm9134_vm4 = vcmp.eq.s32.totalorder %v22815_v10, %v28994_v33 }
 0x2c4   :  { %18727 = vmatmul.mubr.msk.f32.vlgmr.msra.gmra.mrb[8].mxu0 %vm2803_vm12, %v28398_v51  ;;  %21310 = vmatpush1.bf16.msk.msra.mxu1 %vm21309_vm11, %v22744_v15  ;;  %vm21333_vm15 = vmpackc.low %vm9066_vm7, %vm9032_vm6  ;;  %vm9167_vm6 = vcmp.eq.s32.totalorder %v22851_v16, %v28943_v1  ;;  %vm9201_vm7 = vcmp.eq.s32.totalorder %v22854_v17, %v28943_v1 }
 0x2c5   :  { %21334 = vmatpush1.bf16.msk.msra.mxu0 %vm21333_vm15, %v22744_v15  ;;  %vm21311_vm2 = vmpackc.low %vm9133_vm10, %vm9099_vm9  ;;  %10772 = vmatprep.mubr.f32.mxu1 %v22743_v3  ;;  %vm9169_vm9 = vcmp.eq.s32.totalorder %v22851_v16, %v28960_v38  ;;  %vm9203_vm10 = vcmp.eq.s32.totalorder %v22854_v17, %v28960_v38 }
 0x2c6   :  { %21312 = vmatprep.subr.msk.bf16.mxu1 %vm21311_vm2, %v22744_v15  ;;  %vm21335_vm5 = vmpackc.low %vm9135_vm14, %vm9101_vm13  ;;  %10861 = vmatprep.mubr.f32.mxu0 %v22743_v3  ;;  %vm9166_vm13 = vcmp.eq.s32.totalorder %v22851_v16, %v28977_v60  ;;  %vm9200_vm14 = vcmp.eq.s32.totalorder %v22854_v17, %v28977_v60 }
 0x2c7   :  { %21336 = vmatprep.subr.msk.bf16.mxu0 %vm21335_vm5, %v22744_v15  ;;  %vm21313_vm8 = vmpackc.low %vm9132_vm1, %vm9098_vm0  ;;  %18700 = vmatmul.mubr.msk.f32.gmra.mrb[34].mxu1 %vm2803_vm12, %v28432_v36  ;;  %vm9168_vm0 = vcmp.eq.s32.totalorder %v22851_v16, %v28994_v33  ;;  %vm9202_vm1 = vcmp.eq.s32.totalorder %v22854_v17, %v28994_v33 }
 0x2c8   :  { %21314 = vmatpush1.bf16.msk.msra.mxu1 %vm21313_vm8, %v22744_v15  ;;  %vm21337_vm11 = vmpackc.low %vm9134_vm4, %vm9100_vm3  ;;  %18728 = vmatmul.mubr.msk.f32.gmra.mrb[10].mxu0 %vm2803_vm12, %v28432_v36  ;;  %vm9235_vm3 = vcmp.eq.s32.totalorder %v22877_v18, %v28943_v1  ;;  %vm9269_vm4 = vcmp.eq.s32.totalorder %v22880_v19, %v28943_v1 }
 0x2c9   :  { %21338 = vmatpush1.bf16.msk.msra.mxu0 %vm21337_vm11, %v22744_v15  ;;  %vm21315_vm15 = vmpackc.low %vm9201_vm7, %vm9167_vm6  ;;  %10778 = vmatprep.mubr.f32.mxu1 %v22743_v3  ;;  %vm9237_vm6 = vcmp.eq.s32.totalorder %v22877_v18, %v28960_v38  ;;  %vm9271_vm7 = vcmp.eq.s32.totalorder %v22880_v19, %v28960_v38 }
 0x2ca   :  { %21316 = vmatprep.subr.msk.bf16.mxu1 %vm21315_vm15, %v22744_v15  ;;  %vm21339_vm2 = vmpackc.low %vm9203_vm10, %vm9169_vm9  ;;  %10867 = vmatprep.mubr.f32.mxu0 %v22743_v3  ;;  %vm9234_vm9 = vcmp.eq.s32.totalorder %v22877_v18, %v28977_v60  ;;  %vm9268_vm10 = vcmp.eq.s32.totalorder %v22880_v19, %v28977_v60 }
 0x2cb   :  { %21340 = vmatprep.subr.msk.bf16.mxu0 %vm21339_vm2, %v22744_v15  ;;  %vm21317_vm5 = vmpackc.low %vm9200_vm14, %vm9166_vm13  ;;  %18701 = vmatmul.mubr.msk.f32.gmra.mrb[36].mxu1 %vm2803_vm12, %v28466_v37  ;;  %vm9236_vm13 = vcmp.eq.s32.totalorder %v22877_v18, %v28994_v33  ;;  %vm9270_vm14 = vcmp.eq.s32.totalorder %v22880_v19, %v28994_v33 }
 0x2cc   :  { %21318 = vmatpush1.bf16.msk.msra.mxu1 %vm21317_vm5, %v22744_v15  ;;  %vm21341_vm8 = vmpackc.low %vm9202_vm1, %vm9168_vm0  ;;  %18729 = vmatmul.mubr.msk.f32.gmra.mrb[12].mxu0 %vm2803_vm12, %v28466_v37  ;;  %vm9303_vm0 = vcmp.eq.s32.totalorder %v22903_v20, %v28943_v1  ;;  %vm9337_vm1 = vcmp.eq.s32.totalorder %v22906_v21, %v28943_v1 }
 0x2cd   :  { %21342 = vmatpush1.bf16.msk.msra.mxu0 %vm21341_vm8, %v22744_v15  ;;  %vm21319_vm11 = vmpackc.low %vm9269_vm4, %vm9235_vm3  ;;  %10784 = vmatprep.mubr.f32.mxu1 %v22743_v3  ;;  %vm9305_vm3 = vcmp.eq.s32.totalorder %v22903_v20, %v28960_v38  ;;  %vm9339_vm4 = vcmp.eq.s32.totalorder %v22906_v21, %v28960_v38 }
 0x2ce   :  { %21320 = vmatprep.subr.msk.bf16.mxu1 %vm21319_vm11, %v22744_v15  ;;  %vm21343_vm15 = vmpackc.low %vm9271_vm7, %vm9237_vm6  ;;  %10873 = vmatprep.mubr.f32.mxu0 %v22743_v3  ;;  %vm9302_vm6 = vcmp.eq.s32.totalorder %v22903_v20, %v28977_v60  ;;  %vm9336_vm7 = vcmp.eq.s32.totalorder %v22906_v21, %v28977_v60 }
 0x2cf   :  { %21344 = vmatprep.subr.msk.bf16.mxu0 %vm21343_vm15, %v22744_v15  ;;  %vm21321_vm2 = vmpackc.low %vm9268_vm10, %vm9234_vm9  ;;  %18702 = vmatmul.mubr.msk.f32.gmra.mrb[38].mxu1 %vm2803_vm12, %v28506_v39  ;;  %vm9304_vm9 = vcmp.eq.s32.totalorder %v22903_v20, %v28994_v33  ;;  %vm9338_vm10 = vcmp.eq.s32.totalorder %v22906_v21, %v28994_v33 }
 0x2d0   :  { %21322 = vmatpush1.bf16.msk.msra.mxu1 %vm21321_vm2, %v22744_v15  ;;  %vm21345_vm5 = vmpackc.low %vm9270_vm14, %vm9236_vm13  ;;  %18730 = vmatmul.mubr.msk.f32.gmra.mrb[14].mxu0 %vm2803_vm12, %v28506_v39  ;;  %vm9371_vm13 = vcmp.eq.s32.totalorder %v22929_v22, %v28943_v1  ;;  %vm9405_vm14 = vcmp.eq.s32.totalorder %v22932_v23, %v28943_v1  ;;  %v22676_v1 = vld [vmem:[%s31974_s0 + $0xe0] sm:$0x1f] }
 0x2d1   :  { %21346 = vmatpush1.bf16.msk.msra.mxu0 %vm21345_vm5, %v22744_v15  ;;  %vm21323_vm8 = vmpackc.low %vm9337_vm1, %vm9303_vm0  ;;  %10944 = vmatprep.mubr.f32.mxu1 %v22743_v3  ;;  %vm9373_vm0 = vcmp.eq.s32.totalorder %v22929_v22, %v28960_v38  ;;  %vm9407_vm1 = vcmp.eq.s32.totalorder %v22932_v23, %v28960_v38  ;;  %v29626_v58 = vrot.slane %v22676_v1, %v28088_v26  ;;  %v22677_v38 = vld [vmem:[%s31974_s0 + $0xf8] sm:$0x1f] }
 0x2d2   :  { %21324 = vmatprep.subr.msk.bf16.mxu1 %vm21323_vm8, %v22744_v15  ;;  %vm21347_vm11 = vmpackc.low %vm9339_vm4, %vm9305_vm3  ;;  %11033 = vmatprep.mubr.f32.mxu0 %v22743_v3  ;;  %vm9370_vm3 = vcmp.eq.s32.totalorder %v22929_v22, %v28977_v60  ;;  %vm9404_vm4 = vcmp.eq.s32.totalorder %v22932_v23, %v28977_v60  ;;  %v29770_v59 = vrot.slane %v22677_v38, %v28088_v26  ;;  %v22678_v60 = vld [vmem:[%s31974_s0 + $0x108] sm:$0x1f] }
 0x2d3   :  { %21348 = vmatprep.subr.msk.bf16.mxu0 %vm21347_vm11, %v22744_v15  ;;  %vm21325_vm15 = vmpackc.low %vm9336_vm7, %vm9302_vm6  ;;  %vm9372_vm6 = vcmp.eq.s32.totalorder %v22929_v22, %v28994_v33  ;;  %vm9406_vm7 = vcmp.eq.s32.totalorder %v22932_v23, %v28994_v33  ;;  %v29787_v31 = vrot.slane %v22678_v60, %v28088_v26  ;;  %v22679_v33 = vld [vmem:[%s31974_s0 + $0xf0] sm:$0x1f] }
 0x2d4   :  { %21326 = vmatpush1.bf16.msk.msra.mxu1 %vm21325_vm15, %v22744_v15  ;;  %vm21349_vm2 = vmpackc.low %vm9338_vm10, %vm9304_vm9  ;;  %vm9035_vm9 = vcmp.eq.s32.totalorder %v22792_v2, %v29138_v35  ;;  %vm9069_vm10 = vcmp.eq.s32.totalorder %v22806_v7, %v29138_v35  ;;  %v29804_v34 = vrot.slane %v22679_v33, %v28088_v26 }
 0x2d5   :  { %21350 = vmatpush1.bf16.msk.msra.mxu0 %vm21349_vm2, %v22744_v15  ;;  %vm21327_vm5 = vmpackc.low %vm9405_vm14, %vm9371_vm13  ;;  %vm9037_vm13 = vcmp.eq.s32.totalorder %v22792_v2, %v29155_v42  ;;  %vm9071_vm14 = vcmp.eq.s32.totalorder %v22806_v7, %v29155_v42 }
 0x2d6   :  { %21328 = vmatprep.subr.msk.bf16.mxu1 %vm21327_vm5, %v22744_v15  ;;  %vm21351_vm8 = vmpackc.low %vm9407_vm1, %vm9373_vm0  ;;  %vm9034_vm0 = vcmp.eq.s32.totalorder %v22792_v2, %v29172_v40  ;;  %vm9068_vm1 = vcmp.eq.s32.totalorder %v22806_v7, %v29172_v40 }
 0x2d7   :  { %21352 = vmatprep.subr.msk.bf16.mxu0 %vm21351_vm8, %v22744_v15  ;;  %vm21329_vm11 = vmpackc.low %vm9404_vm4, %vm9370_vm3  ;;  %vm9036_vm3 = vcmp.eq.s32.totalorder %v22792_v2, %v29189_v54  ;;  %vm9070_vm4 = vcmp.eq.s32.totalorder %v22806_v7, %v29189_v54 }
 0x2d8   :  { %21330 = vmatpush1.bf16.msk.msra.mxu1 %vm21329_vm11, %v22744_v15  ;;  %vm21353_vm15 = vmpackc.low %vm9406_vm7, %vm9372_vm6  ;;  %vm9103_vm6 = vcmp.eq.s32.totalorder %v22812_v9, %v29138_v35  ;;  %vm9137_vm7 = vcmp.eq.s32.totalorder %v22815_v10, %v29138_v35 }
 0x2d9   :  { %21354 = vmatpush1.bf16.msk.msra.mxu0 %vm21353_vm15, %v22744_v15  ;;  %vm21355_vm2 = vmpackc.low %vm9069_vm10, %vm9035_vm9  ;;  %vm9105_vm9 = vcmp.eq.s32.totalorder %v22812_v9, %v29155_v42  ;;  %vm9139_vm10 = vcmp.eq.s32.totalorder %v22815_v10, %v29155_v42 }
 0x2da   :  { %21356 = vmatprep.subr.msk.bf16.mxu1 %vm21355_vm2, %v22744_v15  ;;  %vm21379_vm5 = vmpackc.low %vm9071_vm14, %vm9037_vm13  ;;  %vm9102_vm13 = vcmp.eq.s32.totalorder %v22812_v9, %v29172_v40  ;;  %vm9136_vm14 = vcmp.eq.s32.totalorder %v22815_v10, %v29172_v40 }
 0x2db   :  { %21380 = vmatprep.subr.msk.bf16.mxu0 %vm21379_vm5, %v22744_v15  ;;  %18755 = vmatmul.mubr.msk.f32.vlgmr.msra.gmra.mrb[40].mxu1 %vm2803_vm12, %v28398_v51  ;;  %vm21357_vm8 = vmpackc.low %vm9068_vm1, %vm9034_vm0  ;;  %vm9104_vm0 = vcmp.eq.s32.totalorder %v22812_v9, %v29189_v54  ;;  %vm9138_vm1 = vcmp.eq.s32.totalorder %v22815_v10, %v29189_v54 }
 0x2dc   :  { %18783 = vmatmul.mubr.msk.f32.vlgmr.msra.gmra.mrb[16].mxu0 %vm2803_vm12, %v28398_v51  ;;  %21358 = vmatpush1.bf16.msk.msra.mxu1 %vm21357_vm8, %v22744_v15  ;;  %vm21381_vm11 = vmpackc.low %vm9070_vm4, %vm9036_vm3  ;;  %vm9171_vm3 = vcmp.eq.s32.totalorder %v22851_v16, %v29138_v35  ;;  %vm9205_vm4 = vcmp.eq.s32.totalorder %v22854_v17, %v29138_v35  ;;  %v22665_v51 = vld [vmem:[%s31974_s0 + $0xb8] sm:$0x1f] }
 0x2dd   :  { %21382 = vmatpush1.bf16.msk.msra.mxu0 %vm21381_vm11, %v22744_v15  ;;  %vm21359_vm15 = vmpackc.low %vm9137_vm7, %vm9103_vm6  ;;  %10950 = vmatprep.mubr.f32.mxu1 %v22743_v3  ;;  %vm9173_vm6 = vcmp.eq.s32.totalorder %v22851_v16, %v29155_v42  ;;  %vm9207_vm7 = vcmp.eq.s32.totalorder %v22854_v17, %v29155_v42 }
 0x2de   :  { %21360 = vmatprep.subr.msk.bf16.mxu1 %vm21359_vm15, %v22744_v15  ;;  %vm21383_vm2 = vmpackc.low %vm9139_vm10, %vm9105_vm9  ;;  %11039 = vmatprep.mubr.f32.mxu0 %v22743_v3  ;;  %vm9170_vm9 = vcmp.eq.s32.totalorder %v22851_v16, %v29172_v40  ;;  %vm9204_vm10 = vcmp.eq.s32.totalorder %v22854_v17, %v29172_v40 }
 0x2df   :  { %21384 = vmatprep.subr.msk.bf16.mxu0 %vm21383_vm2, %v22744_v15  ;;  %vm21361_vm5 = vmpackc.low %vm9136_vm14, %vm9102_vm13  ;;  %18756 = vmatmul.mubr.msk.f32.gmra.mrb[42].mxu1 %vm2803_vm12, %v28432_v36  ;;  %vm9172_vm13 = vcmp.eq.s32.totalorder %v22851_v16, %v29189_v54  ;;  %vm9206_vm14 = vcmp.eq.s32.totalorder %v22854_v17, %v29189_v54 }
 0x2e0   :  { %21362 = vmatpush1.bf16.msk.msra.mxu1 %vm21361_vm5, %v22744_v15  ;;  %vm21385_vm8 = vmpackc.low %vm9138_vm1, %vm9104_vm0  ;;  %18784 = vmatmul.mubr.msk.f32.gmra.mrb[18].mxu0 %vm2803_vm12, %v28432_v36  ;;  %vm9239_vm0 = vcmp.eq.s32.totalorder %v22877_v18, %v29138_v35  ;;  %vm9273_vm1 = vcmp.eq.s32.totalorder %v22880_v19, %v29138_v35  ;;  %v29333_v36 = vrot.slane %v22665_v51, %v28088_v26 }
 0x2e1   :  { %21386 = vmatpush1.bf16.msk.msra.mxu0 %vm21385_vm8, %v22744_v15  ;;  %vm21363_vm11 = vmpackc.low %vm9205_vm4, %vm9171_vm3  ;;  %10956 = vmatprep.mubr.f32.mxu1 %v22743_v3  ;;  %vm9241_vm3 = vcmp.eq.s32.totalorder %v22877_v18, %v29155_v42  ;;  %vm9275_vm4 = vcmp.eq.s32.totalorder %v22880_v19, %v29155_v42 }
 0x2e2   :  { %21364 = vmatprep.subr.msk.bf16.mxu1 %vm21363_vm11, %v22744_v15  ;;  %vm21387_vm15 = vmpackc.low %vm9207_vm7, %vm9173_vm6  ;;  %11045 = vmatprep.mubr.f32.mxu0 %v22743_v3  ;;  %vm9238_vm6 = vcmp.eq.s32.totalorder %v22877_v18, %v29172_v40  ;;  %vm9272_vm7 = vcmp.eq.s32.totalorder %v22880_v19, %v29172_v40 }
 0x2e3   :  { %21388 = vmatprep.subr.msk.bf16.mxu0 %vm21387_vm15, %v22744_v15  ;;  %vm21365_vm2 = vmpackc.low %vm9204_vm10, %vm9170_vm9  ;;  %18757 = vmatmul.mubr.msk.f32.gmra.mrb[44].mxu1 %vm2803_vm12, %v28466_v37  ;;  %vm9240_vm9 = vcmp.eq.s32.totalorder %v22877_v18, %v29189_v54  ;;  %vm9274_vm10 = vcmp.eq.s32.totalorder %v22880_v19, %v29189_v54 }
 0x2e4   :  { %21366 = vmatpush1.bf16.msk.msra.mxu1 %vm21365_vm2, %v22744_v15  ;;  %vm21389_vm5 = vmpackc.low %vm9206_vm14, %vm9172_vm13  ;;  %18785 = vmatmul.mubr.msk.f32.gmra.mrb[20].mxu0 %vm2803_vm12, %v28466_v37  ;;  %vm9307_vm13 = vcmp.eq.s32.totalorder %v22903_v20, %v29138_v35  ;;  %vm9341_vm14 = vcmp.eq.s32.totalorder %v22906_v21, %v29138_v35  ;;  %v22666_v37 = vld [vmem:[%s31974_s0 + $0xc8] sm:$0x1f] }
 0x2e5   :  { %21390 = vmatpush1.bf16.msk.msra.mxu0 %vm21389_vm5, %v22744_v15  ;;  %vm21367_vm8 = vmpackc.low %vm9273_vm1, %vm9239_vm0  ;;  %10962 = vmatprep.mubr.f32.mxu1 %v22743_v3  ;;  %vm9309_vm0 = vcmp.eq.s32.totalorder %v22903_v20, %v29155_v42  ;;  %vm9343_vm1 = vcmp.eq.s32.totalorder %v22906_v21, %v29155_v42 }
 0x2e6   :  { %21368 = vmatprep.subr.msk.bf16.mxu1 %vm21367_vm8, %v22744_v15  ;;  %vm21391_vm11 = vmpackc.low %vm9275_vm4, %vm9241_vm3  ;;  %11051 = vmatprep.mubr.f32.mxu0 %v22743_v3  ;;  %vm9306_vm3 = vcmp.eq.s32.totalorder %v22903_v20, %v29172_v40  ;;  %vm9340_vm4 = vcmp.eq.s32.totalorder %v22906_v21, %v29172_v40 }
 0x2e7   :  { %21392 = vmatprep.subr.msk.bf16.mxu0 %vm21391_vm11, %v22744_v15  ;;  %vm21369_vm15 = vmpackc.low %vm9272_vm7, %vm9238_vm6  ;;  %18758 = vmatmul.mubr.msk.f32.gmra.mrb[46].mxu1 %vm2803_vm12, %v28506_v39  ;;  %vm9308_vm6 = vcmp.eq.s32.totalorder %v22903_v20, %v29189_v54  ;;  %vm9342_vm7 = vcmp.eq.s32.totalorder %v22906_v21, %v29189_v54 }
 0x2e8   :  { %21370 = vmatpush1.bf16.msk.msra.mxu1 %vm21369_vm15, %v22744_v15  ;;  %vm21393_vm2 = vmpackc.low %vm9274_vm10, %vm9240_vm9  ;;  %18786 = vmatmul.mubr.msk.f32.gmra.mrb[22].mxu0 %vm2803_vm12, %v28506_v39  ;;  %vm9375_vm9 = vcmp.eq.s32.totalorder %v22929_v22, %v29138_v35  ;;  %vm9409_vm10 = vcmp.eq.s32.totalorder %v22932_v23, %v29138_v35  ;;  %v29350_v39 = vrot.slane %v22666_v37, %v28088_v26  ;;  %v22680_v35 = vld [vmem:[%s31974_s0 + $0x100] sm:$0x1f] }
 0x2e9   :  { %21394 = vmatpush1.bf16.msk.msra.mxu0 %vm21393_vm2, %v22744_v15  ;;  %vm21371_vm5 = vmpackc.low %vm9341_vm14, %vm9307_vm13  ;;  %11122 = vmatprep.mubr.f32.mxu1 %v22743_v3  ;;  %vm9377_vm13 = vcmp.eq.s32.totalorder %v22929_v22, %v29155_v42  ;;  %vm9411_vm14 = vcmp.eq.s32.totalorder %v22932_v23, %v29155_v42  ;;  %v29821_v41 = vrot.slane %v22680_v35, %v28088_v26  ;;  %v29936_v26 = vsub.s32 4, %v22792_v2  ;;  %v22681_v42 = vld [vmem:[%s31974_s0 + $0x8] sm:$0x1f] }
 0x2ea   :  { %21372 = vmatprep.subr.msk.bf16.mxu1 %vm21371_vm5, %v22744_v15  ;;  %vm21395_vm8 = vmpackc.low %vm9343_vm1, %vm9309_vm0  ;;  %11211 = vmatprep.mubr.f32.mxu0 %v22743_v3  ;;  %vm9374_vm0 = vcmp.eq.s32.totalorder %v22929_v22, %v29172_v40  ;;  %vm9408_vm1 = vcmp.eq.s32.totalorder %v22932_v23, %v29172_v40  ;;  %v22682_v40 = vld [vmem:[%s31974_s0 + $0x18] sm:$0x1f] }
 0x2eb   :  { %21396 = vmatprep.subr.msk.bf16.mxu0 %vm21395_vm8, %v22744_v15  ;;  %vm21373_vm11 = vmpackc.low %vm9340_vm4, %vm9306_vm3  ;;  %vm9376_vm3 = vcmp.eq.s32.totalorder %v22929_v22, %v29189_v54  ;;  %vm9410_vm4 = vcmp.eq.s32.totalorder %v22932_v23, %v29189_v54  ;;  %v29977_v50 = vrot.slane %v22681_v42, %v29936_v26  ;;  %v29994_v53 = vrot.slane %v22682_v40, %v29936_v26  ;;  %v22683_v54 = vld [vmem:[%s31974_s0] sm:$0x1f] }
 0x2ec   :  { %21374 = vmatpush1.bf16.msk.msra.mxu1 %vm21373_vm11, %v22744_v15  ;;  %vm21397_vm15 = vmpackc.low %vm9342_vm7, %vm9308_vm6  ;;  %vm9039_vm6 = vcmp.eq.s32.totalorder %v22792_v2, %v29333_v36  ;;  %vm9073_vm7 = vcmp.eq.s32.totalorder %v22806_v7, %v29333_v36  ;;  %v30011_v51 = vrot.slane %v22683_v54, %v29936_v26 }
 0x2ed   :  { %21398 = vmatpush1.bf16.msk.msra.mxu0 %vm21397_vm15, %v22744_v15  ;;  %vm21375_vm2 = vmpackc.low %vm9409_vm10, %vm9375_vm9  ;;  %vm9041_vm9 = vcmp.eq.s32.totalorder %v22792_v2, %v29350_v39  ;;  %vm9075_vm10 = vcmp.eq.s32.totalorder %v22806_v7, %v29350_v39 }
 0x2ee   :  { %21376 = vmatprep.subr.msk.bf16.mxu1 %vm21375_vm2, %v22744_v15  ;;  %vm21399_vm5 = vmpackc.low %vm9411_vm14, %vm9377_vm13  ;;  %vm9038_vm13 = vcmp.eq.s32.totalorder %v22792_v2, %v29367_v56  ;;  %vm9072_vm14 = vcmp.eq.s32.totalorder %v22806_v7, %v29367_v56 }
 0x2ef   :  { %21400 = vmatprep.subr.msk.bf16.mxu0 %vm21399_vm5, %v22744_v15  ;;  %vm21377_vm8 = vmpackc.low %vm9408_vm1, %vm9374_vm0  ;;  %vm9040_vm0 = vcmp.eq.s32.totalorder %v22792_v2, %v29384_v8  ;;  %vm9074_vm1 = vcmp.eq.s32.totalorder %v22806_v7, %v29384_v8 }
 0x2f0   :  { %21378 = vmatpush1.bf16.msk.msra.mxu1 %vm21377_vm8, %v22744_v15  ;;  %vm21401_vm11 = vmpackc.low %vm9410_vm4, %vm9376_vm3  ;;  %vm9107_vm3 = vcmp.eq.s32.totalorder %v22812_v9, %v29333_v36  ;;  %vm9141_vm4 = vcmp.eq.s32.totalorder %v22815_v10, %v29333_v36 }
 0x2f1   :  { %21402 = vmatpush1.bf16.msk.msra.mxu0 %vm21401_vm11, %v22744_v15  ;;  %vm21403_vm15 = vmpackc.low %vm9073_vm7, %vm9039_vm6  ;;  %vm9109_vm6 = vcmp.eq.s32.totalorder %v22812_v9, %v29350_v39  ;;  %vm9143_vm7 = vcmp.eq.s32.totalorder %v22815_v10, %v29350_v39 }
 0x2f2   :  { %21404 = vmatprep.subr.msk.bf16.mxu1 %vm21403_vm15, %v22744_v15  ;;  %vm21427_vm2 = vmpackc.low %vm9075_vm10, %vm9041_vm9  ;;  %vm9106_vm9 = vcmp.eq.s32.totalorder %v22812_v9, %v29367_v56  ;;  %vm9140_vm10 = vcmp.eq.s32.totalorder %v22815_v10, %v29367_v56 }
 0x2f3   :  { %21428 = vmatprep.subr.msk.bf16.mxu0 %vm21427_vm2, %v22744_v15  ;;  %18811 = vmatmul.mubr.msk.f32.vlgmr.msra.gmra.mrb[48].mxu1 %vm2803_vm12, %v29424_v62  ;;  %vm21405_vm5 = vmpackc.low %vm9072_vm14, %vm9038_vm13  ;;  %vm9108_vm13 = vcmp.eq.s32.totalorder %v22812_v9, %v29384_v8  ;;  %vm9142_vm14 = vcmp.eq.s32.totalorder %v22815_v10, %v29384_v8 }
 0x2f4   :  { %18839 = vmatmul.mubr.msk.f32.vlgmr.msra.gmra.mrb[24].mxu0 %vm2803_vm12, %v29424_v62  ;;  %21406 = vmatpush1.bf16.msk.msra.mxu1 %vm21405_vm5, %v22744_v15  ;;  %vm21429_vm8 = vmpackc.low %vm9074_vm1, %vm9040_vm0  ;;  %vm9175_vm0 = vcmp.eq.s32.totalorder %v22851_v16, %v29333_v36  ;;  %vm9209_vm1 = vcmp.eq.s32.totalorder %v22854_v17, %v29333_v36 }
 0x2f5   :  { %21430 = vmatpush1.bf16.msk.msra.mxu0 %vm21429_vm8, %v22744_v15  ;;  %vm21407_vm11 = vmpackc.low %vm9141_vm4, %vm9107_vm3  ;;  %11128 = vmatprep.mubr.f32.mxu1 %v22743_v3  ;;  %vm9177_vm3 = vcmp.eq.s32.totalorder %v22851_v16, %v29350_v39  ;;  %vm9211_vm4 = vcmp.eq.s32.totalorder %v22854_v17, %v29350_v39 }
 0x2f6   :  { %21408 = vmatprep.subr.msk.bf16.mxu1 %vm21407_vm11, %v22744_v15  ;;  %vm21431_vm15 = vmpackc.low %vm9143_vm7, %vm9109_vm6  ;;  %11217 = vmatprep.mubr.f32.mxu0 %v22743_v3  ;;  %vm9174_vm6 = vcmp.eq.s32.totalorder %v22851_v16, %v29367_v56  ;;  %vm9208_vm7 = vcmp.eq.s32.totalorder %v22854_v17, %v29367_v56 }
 0x2f7   :  { %21432 = vmatprep.subr.msk.bf16.mxu0 %vm21431_vm15, %v22744_v15  ;;  %vm21409_vm2 = vmpackc.low %vm9140_vm10, %vm9106_vm9  ;;  %18812 = vmatmul.mubr.msk.f32.gmra.mrb[50].mxu1 %vm2803_vm12, %v29459_v63  ;;  %vm9176_vm9 = vcmp.eq.s32.totalorder %v22851_v16, %v29384_v8  ;;  %vm9210_vm10 = vcmp.eq.s32.totalorder %v22854_v17, %v29384_v8 }
 0x2f8   :  { %21410 = vmatpush1.bf16.msk.msra.mxu1 %vm21409_vm2, %v22744_v15  ;;  %vm21433_vm5 = vmpackc.low %vm9142_vm14, %vm9108_vm13  ;;  %18840 = vmatmul.mubr.msk.f32.gmra.mrb[26].mxu0 %vm2803_vm12, %v29459_v63  ;;  %vm9243_vm13 = vcmp.eq.s32.totalorder %v22877_v18, %v29333_v36  ;;  %vm9277_vm14 = vcmp.eq.s32.totalorder %v22880_v19, %v29333_v36 }
 0x2f9   :  { %21434 = vmatpush1.bf16.msk.msra.mxu0 %vm21433_vm5, %v22744_v15  ;;  %vm21411_vm8 = vmpackc.low %vm9209_vm1, %vm9175_vm0  ;;  %11134 = vmatprep.mubr.f32.mxu1 %v22743_v3  ;;  %vm9245_vm0 = vcmp.eq.s32.totalorder %v22877_v18, %v29350_v39  ;;  %vm9279_vm1 = vcmp.eq.s32.totalorder %v22880_v19, %v29350_v39 }
 0x2fa   :  { %21412 = vmatprep.subr.msk.bf16.mxu1 %vm21411_vm8, %v22744_v15  ;;  %vm21435_vm11 = vmpackc.low %vm9211_vm4, %vm9177_vm3  ;;  %11223 = vmatprep.mubr.f32.mxu0 %v22743_v3  ;;  %vm9242_vm3 = vcmp.eq.s32.totalorder %v22877_v18, %v29367_v56  ;;  %vm9276_vm4 = vcmp.eq.s32.totalorder %v22880_v19, %v29367_v56 }
 0x2fb   :  { %21436 = vmatprep.subr.msk.bf16.mxu0 %vm21435_vm11, %v22744_v15  ;;  %vm21413_vm15 = vmpackc.low %vm9208_vm7, %vm9174_vm6  ;;  %18813 = vmatmul.mubr.msk.f32.gmra.mrb[52].mxu1 %vm2803_vm12, %v29499_v32  ;;  %vm9244_vm6 = vcmp.eq.s32.totalorder %v22877_v18, %v29384_v8  ;;  %vm9278_vm7 = vcmp.eq.s32.totalorder %v22880_v19, %v29384_v8 }
 0x2fc   :  { %21414 = vmatpush1.bf16.msk.msra.mxu1 %vm21413_vm15, %v22744_v15  ;;  %vm21437_vm2 = vmpackc.low %vm9210_vm10, %vm9176_vm9  ;;  %18841 = vmatmul.mubr.msk.f32.gmra.mrb[28].mxu0 %vm2803_vm12, %v29499_v32  ;;  %vm9311_vm9 = vcmp.eq.s32.totalorder %v22903_v20, %v29333_v36  ;;  %vm9345_vm10 = vcmp.eq.s32.totalorder %v22906_v21, %v29333_v36 }
 0x2fd   :  { %21438 = vmatpush1.bf16.msk.msra.mxu0 %vm21437_vm2, %v22744_v15  ;;  %vm21415_vm5 = vmpackc.low %vm9277_vm14, %vm9243_vm13  ;;  %11140 = vmatprep.mubr.f32.mxu1 %v22743_v3  ;;  %vm9313_vm13 = vcmp.eq.s32.totalorder %v22903_v20, %v29350_v39  ;;  %vm9347_vm14 = vcmp.eq.s32.totalorder %v22906_v21, %v29350_v39 }
 0x2fe   :  { %21416 = vmatprep.subr.msk.bf16.mxu1 %vm21415_vm5, %v22744_v15  ;;  %vm21439_vm8 = vmpackc.low %vm9279_vm1, %vm9245_vm0  ;;  %11229 = vmatprep.mubr.f32.mxu0 %v22743_v3  ;;  %vm9310_vm0 = vcmp.eq.s32.totalorder %v22903_v20, %v29367_v56  ;;  %vm9344_vm1 = vcmp.eq.s32.totalorder %v22906_v21, %v29367_v56 }
 0x2ff   :  { %21440 = vmatprep.subr.msk.bf16.mxu0 %vm21439_vm8, %v22744_v15  ;;  %vm21417_vm11 = vmpackc.low %vm9276_vm4, %vm9242_vm3  ;;  %18814 = vmatmul.mubr.msk.f32.gmra.mrb[54].mxu1 %vm2803_vm12, %v29539_v0  ;;  %vm9312_vm3 = vcmp.eq.s32.totalorder %v22903_v20, %v29384_v8  ;;  %vm9346_vm4 = vcmp.eq.s32.totalorder %v22906_v21, %v29384_v8 }
 0x300   :  { %21418 = vmatpush1.bf16.msk.msra.mxu1 %vm21417_vm11, %v22744_v15  ;;  %vm21441_vm15 = vmpackc.low %vm9278_vm7, %vm9244_vm6  ;;  %18842 = vmatmul.mubr.msk.f32.gmra.mrb[30].mxu0 %vm2803_vm12, %v29539_v0  ;;  %vm9379_vm6 = vcmp.eq.s32.totalorder %v22929_v22, %v29333_v36  ;;  %vm9413_vm7 = vcmp.eq.s32.totalorder %v22932_v23, %v29333_v36  ;;  %v22684_v36 = vld [vmem:[%s31974_s0 + $0x10] sm:$0x1f] }
 0x301   :  { %21442 = vmatpush1.bf16.msk.msra.mxu0 %vm21441_vm15, %v22744_v15  ;;  %vm21419_vm2 = vmpackc.low %vm9345_vm10, %vm9311_vm9  ;;  %11300 = vmatprep.mubr.f32.mxu1 %v22743_v3  ;;  %vm9381_vm9 = vcmp.eq.s32.totalorder %v22929_v22, %v29350_v39  ;;  %vm9415_vm10 = vcmp.eq.s32.totalorder %v22932_v23, %v29350_v39  ;;  %v30028_v37 = vrot.slane %v22684_v36, %v29936_v26  ;;  %v22685_v39 = vld [vmem:[%s31974_s0 + $0x28] sm:$0x1f] }
 0x302   :  { %21420 = vmatprep.subr.msk.bf16.mxu1 %vm21419_vm2, %v22744_v15  ;;  %vm21443_vm5 = vmpackc.low %vm9347_vm14, %vm9313_vm13  ;;  %11389 = vmatprep.mubr.f32.mxu0 %v22743_v3  ;;  %vm9378_vm13 = vcmp.eq.s32.totalorder %v22929_v22, %v29367_v56  ;;  %vm9412_vm14 = vcmp.eq.s32.totalorder %v22932_v23, %v29367_v56  ;;  %v30187_v55 = vrot.slane %v22685_v39, %v29936_v26  ;;  %v22686_v56 = vld [vmem:[%s31974_s0 + $0x38] sm:$0x1f] }
 0x303   :  { %21444 = vmatprep.subr.msk.bf16.mxu0 %vm21443_vm5, %v22744_v15  ;;  %vm21421_vm8 = vmpackc.low %vm9344_vm1, %vm9310_vm0  ;;  %vm9380_vm0 = vcmp.eq.s32.totalorder %v22929_v22, %v29384_v8  ;;  %vm9414_vm1 = vcmp.eq.s32.totalorder %v22932_v23, %v29384_v8  ;;  %v30204_v57 = vrot.slane %v22686_v56, %v29936_v26  ;;  %v22687_v8 = vld [vmem:[%s31974_s0 + $0x20] sm:$0x1f] }
 0x304   :  { %21422 = vmatpush1.bf16.msk.msra.mxu1 %vm21421_vm8, %v22744_v15  ;;  %vm21445_vm11 = vmpackc.low %vm9346_vm4, %vm9312_vm3  ;;  %vm9043_vm3 = vcmp.eq.s32.totalorder %v22792_v2, %v29575_v4  ;;  %vm9077_vm4 = vcmp.eq.s32.totalorder %v22806_v7, %v29575_v4 }
 0x305   :  { %21446 = vmatpush1.bf16.msk.msra.mxu0 %vm21445_vm11, %v22744_v15  ;;  %vm21423_vm15 = vmpackc.low %vm9413_vm7, %vm9379_vm6  ;;  %vm9045_vm6 = vcmp.eq.s32.totalorder %v22792_v2, %v29592_v28  ;;  %vm9079_vm7 = vcmp.eq.s32.totalorder %v22806_v7, %v29592_v28 }
 0x306   :  { %21424 = vmatprep.subr.msk.bf16.mxu1 %vm21423_vm15, %v22744_v15  ;;  %vm21447_vm2 = vmpackc.low %vm9415_vm10, %vm9381_vm9  ;;  %vm9042_vm9 = vcmp.eq.s32.totalorder %v22792_v2, %v29609_v30  ;;  %vm9076_vm10 = vcmp.eq.s32.totalorder %v22806_v7, %v29609_v30 }
 0x307   :  { %21448 = vmatprep.subr.msk.bf16.mxu0 %vm21447_vm2, %v22744_v15  ;;  %vm21425_vm5 = vmpackc.low %vm9412_vm14, %vm9378_vm13  ;;  %vm9044_vm13 = vcmp.eq.s32.totalorder %v22792_v2, %v29626_v58  ;;  %vm9078_vm14 = vcmp.eq.s32.totalorder %v22806_v7, %v29626_v58 }
 0x308   :  { %21426 = vmatpush1.bf16.msk.msra.mxu1 %vm21425_vm5, %v22744_v15  ;;  %vm21449_vm8 = vmpackc.low %vm9414_vm1, %vm9380_vm0  ;;  %vm9111_vm0 = vcmp.eq.s32.totalorder %v22812_v9, %v29575_v4  ;;  %vm9145_vm1 = vcmp.eq.s32.totalorder %v22815_v10, %v29575_v4 }
 0x309   :  { %21450 = vmatpush1.bf16.msk.msra.mxu0 %vm21449_vm8, %v22744_v15  ;;  %vm21451_vm11 = vmpackc.low %vm9077_vm4, %vm9043_vm3  ;;  %vm9113_vm3 = vcmp.eq.s32.totalorder %v22812_v9, %v29592_v28  ;;  %vm9147_vm4 = vcmp.eq.s32.totalorder %v22815_v10, %v29592_v28 }
 0x30a   :  { %21452 = vmatprep.subr.msk.bf16.mxu1 %vm21451_vm11, %v22744_v15  ;;  %vm21475_vm15 = vmpackc.low %vm9079_vm7, %vm9045_vm6  ;;  %vm9110_vm6 = vcmp.eq.s32.totalorder %v22812_v9, %v29609_v30  ;;  %vm9144_vm7 = vcmp.eq.s32.totalorder %v22815_v10, %v29609_v30 }
 0x30b   :  { %21476 = vmatprep.subr.msk.bf16.mxu0 %vm21475_vm15, %v22744_v15  ;;  %18867 = vmatmul.mubr.msk.f32.vlgmr.msra.gmra.mrb[56].mxu1 %vm2803_vm12, %v29424_v62  ;;  %vm21453_vm2 = vmpackc.low %vm9076_vm10, %vm9042_vm9  ;;  %vm9112_vm9 = vcmp.eq.s32.totalorder %v22812_v9, %v29626_v58  ;;  %vm9146_vm10 = vcmp.eq.s32.totalorder %v22815_v10, %v29626_v58 }
 0x30c   :  { %18895 = vmatmul.mubr.msk.f32.vlgmr.msra.gmra.mrb[32].mxu0 %vm2803_vm12, %v29424_v62  ;;  %21454 = vmatpush1.bf16.msk.msra.mxu1 %vm21453_vm2, %v22744_v15  ;;  %vm21477_vm5 = vmpackc.low %vm9078_vm14, %vm9044_vm13  ;;  %vm9179_vm13 = vcmp.eq.s32.totalorder %v22851_v16, %v29575_v4  ;;  %vm9213_vm14 = vcmp.eq.s32.totalorder %v22854_v17, %v29575_v4 }
 0x30d   :  { %21478 = vmatpush1.bf16.msk.msra.mxu0 %vm21477_vm5, %v22744_v15  ;;  %vm21455_vm8 = vmpackc.low %vm9145_vm1, %vm9111_vm0  ;;  %11306 = vmatprep.mubr.f32.mxu1 %v22743_v3  ;;  %vm9181_vm0 = vcmp.eq.s32.totalorder %v22851_v16, %v29592_v28  ;;  %vm9215_vm1 = vcmp.eq.s32.totalorder %v22854_v17, %v29592_v28 }
 0x30e   :  { %21456 = vmatprep.subr.msk.bf16.mxu1 %vm21455_vm8, %v22744_v15  ;;  %vm21479_vm11 = vmpackc.low %vm9147_vm4, %vm9113_vm3  ;;  %11395 = vmatprep.mubr.f32.mxu0 %v22743_v3  ;;  %vm9178_vm3 = vcmp.eq.s32.totalorder %v22851_v16, %v29609_v30  ;;  %vm9212_vm4 = vcmp.eq.s32.totalorder %v22854_v17, %v29609_v30 }
 0x30f   :  { %21480 = vmatprep.subr.msk.bf16.mxu0 %vm21479_vm11, %v22744_v15  ;;  %vm21457_vm15 = vmpackc.low %vm9144_vm7, %vm9110_vm6  ;;  %18868 = vmatmul.mubr.msk.f32.gmra.mrb[58].mxu1 %vm2803_vm12, %v29459_v63  ;;  %vm9180_vm6 = vcmp.eq.s32.totalorder %v22851_v16, %v29626_v58  ;;  %vm9214_vm7 = vcmp.eq.s32.totalorder %v22854_v17, %v29626_v58 }
 0x310   :  { %21458 = vmatpush1.bf16.msk.msra.mxu1 %vm21457_vm15, %v22744_v15  ;;  %vm21481_vm2 = vmpackc.low %vm9146_vm10, %vm9112_vm9  ;;  %18896 = vmatmul.mubr.msk.f32.gmra.mrb[34].mxu0 %vm2803_vm12, %v29459_v63  ;;  %vm9247_vm9 = vcmp.eq.s32.totalorder %v22877_v18, %v29575_v4  ;;  %vm9281_vm10 = vcmp.eq.s32.totalorder %v22880_v19, %v29575_v4 }
 0x311   :  { %21482 = vmatpush1.bf16.msk.msra.mxu0 %vm21481_vm2, %v22744_v15  ;;  %vm21459_vm5 = vmpackc.low %vm9213_vm14, %vm9179_vm13  ;;  %11312 = vmatprep.mubr.f32.mxu1 %v22743_v3  ;;  %vm9249_vm13 = vcmp.eq.s32.totalorder %v22877_v18, %v29592_v28  ;;  %vm9283_vm14 = vcmp.eq.s32.totalorder %v22880_v19, %v29592_v28 }
 0x312   :  { %21460 = vmatprep.subr.msk.bf16.mxu1 %vm21459_vm5, %v22744_v15  ;;  %vm21483_vm8 = vmpackc.low %vm9215_vm1, %vm9181_vm0  ;;  %11401 = vmatprep.mubr.f32.mxu0 %v22743_v3  ;;  %vm9246_vm0 = vcmp.eq.s32.totalorder %v22877_v18, %v29609_v30  ;;  %vm9280_vm1 = vcmp.eq.s32.totalorder %v22880_v19, %v29609_v30 }
 0x313   :  { %21484 = vmatprep.subr.msk.bf16.mxu0 %vm21483_vm8, %v22744_v15  ;;  %vm21461_vm11 = vmpackc.low %vm9212_vm4, %vm9178_vm3  ;;  %18869 = vmatmul.mubr.msk.f32.gmra.mrb[60].mxu1 %vm2803_vm12, %v29499_v32  ;;  %vm9248_vm3 = vcmp.eq.s32.totalorder %v22877_v18, %v29626_v58  ;;  %vm9282_vm4 = vcmp.eq.s32.totalorder %v22880_v19, %v29626_v58 }
 0x314   :  { %21462 = vmatpush1.bf16.msk.msra.mxu1 %vm21461_vm11, %v22744_v15  ;;  %vm21485_vm15 = vmpackc.low %vm9214_vm7, %vm9180_vm6  ;;  %18897 = vmatmul.mubr.msk.f32.gmra.mrb[36].mxu0 %vm2803_vm12, %v29499_v32  ;;  %vm9315_vm6 = vcmp.eq.s32.totalorder %v22903_v20, %v29575_v4  ;;  %vm9349_vm7 = vcmp.eq.s32.totalorder %v22906_v21, %v29575_v4 }
 0x315   :  { %21486 = vmatpush1.bf16.msk.msra.mxu0 %vm21485_vm15, %v22744_v15  ;;  %vm21463_vm2 = vmpackc.low %vm9281_vm10, %vm9247_vm9  ;;  %11318 = vmatprep.mubr.f32.mxu1 %v22743_v3  ;;  %vm9317_vm9 = vcmp.eq.s32.totalorder %v22903_v20, %v29592_v28  ;;  %vm9351_vm10 = vcmp.eq.s32.totalorder %v22906_v21, %v29592_v28 }
 0x316   :  { %21464 = vmatprep.subr.msk.bf16.mxu1 %vm21463_vm2, %v22744_v15  ;;  %vm21487_vm5 = vmpackc.low %vm9283_vm14, %vm9249_vm13  ;;  %11407 = vmatprep.mubr.f32.mxu0 %v22743_v3  ;;  %vm9314_vm13 = vcmp.eq.s32.totalorder %v22903_v20, %v29609_v30  ;;  %vm9348_vm14 = vcmp.eq.s32.totalorder %v22906_v21, %v29609_v30 }
 0x317   :  { %21488 = vmatprep.subr.msk.bf16.mxu0 %vm21487_vm5, %v22744_v15  ;;  %vm21465_vm8 = vmpackc.low %vm9280_vm1, %vm9246_vm0  ;;  %18870 = vmatmul.mubr.msk.f32.gmra.mrb[62].mxu1 %vm2803_vm12, %v29539_v0  ;;  %vm9316_vm0 = vcmp.eq.s32.totalorder %v22903_v20, %v29626_v58  ;;  %vm9350_vm1 = vcmp.eq.s32.totalorder %v22906_v21, %v29626_v58 }
 0x318   :  { %21466 = vmatpush1.bf16.msk.msra.mxu1 %vm21465_vm8, %v22744_v15  ;;  %vm21489_vm11 = vmpackc.low %vm9282_vm4, %vm9248_vm3  ;;  %18898 = vmatmul.mubr.msk.f32.gmra.mrb[38].mxu0 %vm2803_vm12, %v29539_v0  ;;  %vm9383_vm3 = vcmp.eq.s32.totalorder %v22929_v22, %v29575_v4  ;;  %vm9417_vm4 = vcmp.eq.s32.totalorder %v22932_v23, %v29575_v4  ;;  %v30334_v4 = vld [vmem:[%s31975_s1 + $0x90] sm:$0xff] }
 0x319   :  { %21490 = vmatpush1.bf16.msk.msra.mxu0 %vm21489_vm11, %v22744_v15  ;;  %vm21467_vm15 = vmpackc.low %vm9349_vm7, %vm9315_vm6  ;;  %11478 = vmatprep.mubr.f32.mxu1 %v22743_v3  ;;  %vm9385_vm6 = vcmp.eq.s32.totalorder %v22929_v22, %v29592_v28  ;;  %vm9419_vm7 = vcmp.eq.s32.totalorder %v22932_v23, %v29592_v28  ;;  %v22689_v28 = vld [vmem:[%s31974_s0 + $0x48] sm:$0x1f] }
 0x31a   :  { %21468 = vmatprep.subr.msk.bf16.mxu1 %vm21467_vm15, %v22744_v15  ;;  %vm21491_vm2 = vmpackc.low %vm9351_vm10, %vm9317_vm9  ;;  %11567 = vmatprep.mubr.f32.mxu0 %v22743_v3  ;;  %vm9382_vm9 = vcmp.eq.s32.totalorder %v22929_v22, %v29609_v30  ;;  %vm9416_vm10 = vcmp.eq.s32.totalorder %v22932_v23, %v29609_v30  ;;  %v30425_v29 = vrot.slane %v22689_v28, %v29936_v26  ;;  %v22690_v30 = vld [vmem:[%s31974_s0 + $0x58] sm:$0x1f] }
 0x31b   :  { %21492 = vmatprep.subr.msk.bf16.mxu0 %vm21491_vm2, %v22744_v15  ;;  %vm21469_vm5 = vmpackc.low %vm9348_vm14, %vm9314_vm13  ;;  %vm9384_vm13 = vcmp.eq.s32.totalorder %v22929_v22, %v29626_v58  ;;  %vm9418_vm14 = vcmp.eq.s32.totalorder %v22932_v23, %v29626_v58  ;;  %v30440_v1 = vrot.slane %v22690_v30, %v29936_v26  ;;  %v22691_v58 = vld [vmem:[%s31974_s0 + $0x40] sm:$0x1f] }
 0x31c   :  { %21470 = vmatpush1.bf16.msk.msra.mxu1 %vm21469_vm5, %v22744_v15  ;;  %vm21493_vm8 = vmpackc.low %vm9350_vm1, %vm9316_vm0  ;;  %vm9047_vm0 = vcmp.eq.s32.totalorder %v22792_v2, %v29770_v59  ;;  %vm9081_vm1 = vcmp.eq.s32.totalorder %v22806_v7, %v29770_v59  ;;  %v30456_v38 = vrot.slane %v22691_v58, %v29936_v26 }
 0x31d   :  { %21494 = vmatpush1.bf16.msk.msra.mxu0 %vm21493_vm8, %v22744_v15  ;;  %vm21471_vm11 = vmpackc.low %vm9417_vm4, %vm9383_vm3  ;;  %vm9049_vm3 = vcmp.eq.s32.totalorder %v22792_v2, %v29787_v31  ;;  %vm9083_vm4 = vcmp.eq.s32.totalorder %v22806_v7, %v29787_v31 }
 0x31e   :  { %21472 = vmatprep.subr.msk.bf16.mxu1 %vm21471_vm11, %v22744_v15  ;;  %vm21495_vm15 = vmpackc.low %vm9419_vm7, %vm9385_vm6  ;;  %vm9046_vm6 = vcmp.eq.s32.totalorder %v22792_v2, %v29804_v34  ;;  %vm9080_vm7 = vcmp.eq.s32.totalorder %v22806_v7, %v29804_v34 }
 0x31f   :  { %21496 = vmatprep.subr.msk.bf16.mxu0 %vm21495_vm15, %v22744_v15  ;;  %vm21473_vm2 = vmpackc.low %vm9416_vm10, %vm9382_vm9  ;;  %vm9048_vm9 = vcmp.eq.s32.totalorder %v22792_v2, %v29821_v41  ;;  %vm9082_vm10 = vcmp.eq.s32.totalorder %v22806_v7, %v29821_v41 }
 0x320   :  { %21474 = vmatpush1.bf16.msk.msra.mxu1 %vm21473_vm2, %v22744_v15  ;;  %vm21497_vm5 = vmpackc.low %vm9418_vm14, %vm9384_vm13  ;;  %vm9115_vm13 = vcmp.eq.s32.totalorder %v22812_v9, %v29770_v59  ;;  %vm9149_vm14 = vcmp.eq.s32.totalorder %v22815_v10, %v29770_v59 }
 0x321   :  { %21498 = vmatpush1.bf16.msk.msra.mxu0 %vm21497_vm5, %v22744_v15  ;;  %vm21499_vm8 = vmpackc.low %vm9081_vm1, %vm9047_vm0  ;;  %vm9117_vm0 = vcmp.eq.s32.totalorder %v22812_v9, %v29787_v31  ;;  %vm9151_vm1 = vcmp.eq.s32.totalorder %v22815_v10, %v29787_v31 }
 0x322   :  { %21500 = vmatprep.subr.msk.bf16.mxu1 %vm21499_vm8, %v22744_v15  ;;  %vm21523_vm11 = vmpackc.low %vm9083_vm4, %vm9049_vm3  ;;  %vm9114_vm3 = vcmp.eq.s32.totalorder %v22812_v9, %v29804_v34  ;;  %vm9148_vm4 = vcmp.eq.s32.totalorder %v22815_v10, %v29804_v34 }
 0x323   :  { %21524 = vmatprep.subr.msk.bf16.mxu0 %vm21523_vm11, %v22744_v15  ;;  %18923 = vmatmul.mubr.msk.f32.vlgmr.msra.gmra.mrb[64].mxu1 %vm2803_vm12, %v29424_v62  ;;  %vm21501_vm15 = vmpackc.low %vm9080_vm7, %vm9046_vm6  ;;  %vm9116_vm6 = vcmp.eq.s32.totalorder %v22812_v9, %v29821_v41  ;;  %vm9150_vm7 = vcmp.eq.s32.totalorder %v22815_v10, %v29821_v41 }
 0x324   :  { %18951 = vmatmul.mubr.msk.f32.vlgmr.msra.gmra.mrb[40].mxu0 %vm2803_vm12, %v29424_v62  ;;  %21502 = vmatpush1.bf16.msk.msra.mxu1 %vm21501_vm15, %v22744_v15  ;;  %vm21525_vm2 = vmpackc.low %vm9082_vm10, %vm9048_vm9  ;;  %vm9183_vm9 = vcmp.eq.s32.totalorder %v22851_v16, %v29770_v59  ;;  %vm9217_vm10 = vcmp.eq.s32.totalorder %v22854_v17, %v29770_v59 }
 0x325   :  { %21526 = vmatpush1.bf16.msk.msra.mxu0 %vm21525_vm2, %v22744_v15  ;;  %vm21503_vm5 = vmpackc.low %vm9149_vm14, %vm9115_vm13  ;;  %11484 = vmatprep.mubr.f32.mxu1 %v22743_v3  ;;  %vm9185_vm13 = vcmp.eq.s32.totalorder %v22851_v16, %v29787_v31  ;;  %vm9219_vm14 = vcmp.eq.s32.totalorder %v22854_v17, %v29787_v31 }
 0x326   :  { %21504 = vmatprep.subr.msk.bf16.mxu1 %vm21503_vm5, %v22744_v15  ;;  %vm21527_vm8 = vmpackc.low %vm9151_vm1, %vm9117_vm0  ;;  %11573 = vmatprep.mubr.f32.mxu0 %v22743_v3  ;;  %vm9182_vm0 = vcmp.eq.s32.totalorder %v22851_v16, %v29804_v34  ;;  %vm9216_vm1 = vcmp.eq.s32.totalorder %v22854_v17, %v29804_v34 }
 0x327   :  { %21528 = vmatprep.subr.msk.bf16.mxu0 %vm21527_vm8, %v22744_v15  ;;  %vm21505_vm11 = vmpackc.low %vm9148_vm4, %vm9114_vm3  ;;  %18924 = vmatmul.mubr.msk.f32.gmra.mrb[66].mxu1 %vm2803_vm12, %v29459_v63  ;;  %vm9184_vm3 = vcmp.eq.s32.totalorder %v22851_v16, %v29821_v41  ;;  %vm9218_vm4 = vcmp.eq.s32.totalorder %v22854_v17, %v29821_v41 }
 0x328   :  { %21506 = vmatpush1.bf16.msk.msra.mxu1 %vm21505_vm11, %v22744_v15  ;;  %vm21529_vm15 = vmpackc.low %vm9150_vm7, %vm9116_vm6  ;;  %18952 = vmatmul.mubr.msk.f32.gmra.mrb[42].mxu0 %vm2803_vm12, %v29459_v63  ;;  %vm9251_vm6 = vcmp.eq.s32.totalorder %v22877_v18, %v29770_v59  ;;  %vm9285_vm7 = vcmp.eq.s32.totalorder %v22880_v19, %v29770_v59 }
 0x329   :  { %21530 = vmatpush1.bf16.msk.msra.mxu0 %vm21529_vm15, %v22744_v15  ;;  %vm21507_vm2 = vmpackc.low %vm9217_vm10, %vm9183_vm9  ;;  %11490 = vmatprep.mubr.f32.mxu1 %v22743_v3  ;;  %vm9253_vm9 = vcmp.eq.s32.totalorder %v22877_v18, %v29787_v31  ;;  %vm9287_vm10 = vcmp.eq.s32.totalorder %v22880_v19, %v29787_v31 }
 0x32a   :  { %21508 = vmatprep.subr.msk.bf16.mxu1 %vm21507_vm2, %v22744_v15  ;;  %vm21531_vm5 = vmpackc.low %vm9219_vm14, %vm9185_vm13  ;;  %11579 = vmatprep.mubr.f32.mxu0 %v22743_v3  ;;  %vm9250_vm13 = vcmp.eq.s32.totalorder %v22877_v18, %v29804_v34  ;;  %vm9284_vm14 = vcmp.eq.s32.totalorder %v22880_v19, %v29804_v34 }
 0x32b   :  { %21532 = vmatprep.subr.msk.bf16.mxu0 %vm21531_vm5, %v22744_v15  ;;  %vm21509_vm8 = vmpackc.low %vm9216_vm1, %vm9182_vm0  ;;  %18925 = vmatmul.mubr.msk.f32.gmra.mrb[68].mxu1 %vm2803_vm12, %v29499_v32  ;;  %vm9252_vm0 = vcmp.eq.s32.totalorder %v22877_v18, %v29821_v41  ;;  %vm9286_vm1 = vcmp.eq.s32.totalorder %v22880_v19, %v29821_v41 }
 0x32c   :  { %21510 = vmatpush1.bf16.msk.msra.mxu1 %vm21509_vm8, %v22744_v15  ;;  %vm21533_vm11 = vmpackc.low %vm9218_vm4, %vm9184_vm3  ;;  %18953 = vmatmul.mubr.msk.f32.gmra.mrb[44].mxu0 %vm2803_vm12, %v29499_v32  ;;  %vm9319_vm3 = vcmp.eq.s32.totalorder %v22903_v20, %v29770_v59  ;;  %vm9353_vm4 = vcmp.eq.s32.totalorder %v22906_v21, %v29770_v59 }
 0x32d   :  { %21534 = vmatpush1.bf16.msk.msra.mxu0 %vm21533_vm11, %v22744_v15  ;;  %vm21511_vm15 = vmpackc.low %vm9285_vm7, %vm9251_vm6  ;;  %11496 = vmatprep.mubr.f32.mxu1 %v22743_v3  ;;  %vm9321_vm6 = vcmp.eq.s32.totalorder %v22903_v20, %v29787_v31  ;;  %vm9355_vm7 = vcmp.eq.s32.totalorder %v22906_v21, %v29787_v31 }
 0x32e   :  { %21512 = vmatprep.subr.msk.bf16.mxu1 %vm21511_vm15, %v22744_v15  ;;  %vm21535_vm2 = vmpackc.low %vm9287_vm10, %vm9253_vm9  ;;  %11585 = vmatprep.mubr.f32.mxu0 %v22743_v3  ;;  %vm9318_vm9 = vcmp.eq.s32.totalorder %v22903_v20, %v29804_v34  ;;  %vm9352_vm10 = vcmp.eq.s32.totalorder %v22906_v21, %v29804_v34 }
 0x32f   :  { %21536 = vmatprep.subr.msk.bf16.mxu0 %vm21535_vm2, %v22744_v15  ;;  %vm21513_vm5 = vmpackc.low %vm9284_vm14, %vm9250_vm13  ;;  %18926 = vmatmul.mubr.msk.f32.gmra.mrb[70].mxu1 %vm2803_vm12, %v29539_v0  ;;  %vm9320_vm13 = vcmp.eq.s32.totalorder %v22903_v20, %v29821_v41  ;;  %vm9354_vm14 = vcmp.eq.s32.totalorder %v22906_v21, %v29821_v41 }
 0x330   :  { %21514 = vmatpush1.bf16.msk.msra.mxu1 %vm21513_vm5, %v22744_v15  ;;  %vm21537_vm8 = vmpackc.low %vm9286_vm1, %vm9252_vm0  ;;  %18954 = vmatmul.mubr.msk.f32.gmra.mrb[46].mxu0 %vm2803_vm12, %v29539_v0  ;;  %vm9387_vm0 = vcmp.eq.s32.totalorder %v22929_v22, %v29770_v59  ;;  %vm9421_vm1 = vcmp.eq.s32.totalorder %v22932_v23, %v29770_v59  ;;  %v22692_v59 = vld [vmem:[%s31974_s0 + $0x50] sm:$0x1f] }
 0x331   :  { %21538 = vmatpush1.bf16.msk.msra.mxu0 %vm21537_vm8, %v22744_v15  ;;  %vm21515_vm11 = vmpackc.low %vm9353_vm4, %vm9319_vm3  ;;  %11656 = vmatprep.mubr.f32.mxu1 %v22743_v3  ;;  %vm9389_vm3 = vcmp.eq.s32.totalorder %v22929_v22, %v29787_v31  ;;  %vm9423_vm4 = vcmp.eq.s32.totalorder %v22932_v23, %v29787_v31  ;;  %v30474_v60 = vrot.slane %v22692_v59, %v29936_v26  ;;  %v22693_v31 = vld [vmem:[%s31974_s0 + $0x68] sm:$0x1f] }
 0x332   :  { %21516 = vmatprep.subr.msk.bf16.mxu1 %vm21515_vm11, %v22744_v15  ;;  %vm21539_vm15 = vmpackc.low %vm9355_vm7, %vm9321_vm6  ;;  %11745 = vmatprep.mubr.f32.mxu0 %v22743_v3  ;;  %vm9386_vm6 = vcmp.eq.s32.totalorder %v22929_v22, %v29804_v34  ;;  %vm9420_vm7 = vcmp.eq.s32.totalorder %v22932_v23, %v29804_v34  ;;  %v30620_v33 = vrot.slane %v22693_v31, %v29936_v26  ;;  %v22694_v34 = vld [vmem:[%s31974_s0 + $0x78] sm:$0x1f]  ;;  %v31335_v31 = vld [vmem:[%s31975_s1 + $0x88] sm:$0xff] }
 0x333   :  { %21540 = vmatprep.subr.msk.bf16.mxu0 %vm21539_vm15, %v22744_v15  ;;  %vm21517_vm2 = vmpackc.low %vm9352_vm10, %vm9318_vm9  ;;  %vm9388_vm9 = vcmp.eq.s32.totalorder %v22929_v22, %v29821_v41  ;;  %vm9422_vm10 = vcmp.eq.s32.totalorder %v22932_v23, %v29821_v41  ;;  %v30635_v35 = vrot.slane %v22694_v34, %v29936_v26  ;;  %v22695_v41 = vld [vmem:[%s31974_s0 + $0x60] sm:$0x1f]  ;;  %v31415_v34 = vld [vmem:[%s31975_s1 + $0x98] sm:$0xff] }
 0x334   :  { %21518 = vmatpush1.bf16.msk.msra.mxu1 %vm21517_vm2, %v22744_v15  ;;  %vm21541_vm5 = vmpackc.low %vm9354_vm14, %vm9320_vm13  ;;  %vm12043_vm13 = vcmp.eq.s32.totalorder %v22792_v2, %v29977_v50  ;;  %vm12077_vm14 = vcmp.eq.s32.totalorder %v22806_v7, %v29977_v50  ;;  %v30651_v42 = vrot.slane %v22695_v41, %v29936_v26 }
 0x335   :  { %21542 = vmatpush1.bf16.msk.msra.mxu0 %vm21541_vm5, %v22744_v15  ;;  %vm21519_vm8 = vmpackc.low %vm9421_vm1, %vm9387_vm0  ;;  %vm12045_vm0 = vcmp.eq.s32.totalorder %v22792_v2, %v29994_v53  ;;  %vm12079_vm1 = vcmp.eq.s32.totalorder %v22806_v7, %v29994_v53 }
 0x336   :  { %21520 = vmatprep.subr.msk.bf16.mxu1 %vm21519_vm8, %v22744_v15  ;;  %vm21543_vm11 = vmpackc.low %vm9423_vm4, %vm9389_vm3  ;;  %vm12042_vm3 = vcmp.eq.s32.totalorder %v22792_v2, %v30011_v51  ;;  %vm12076_vm4 = vcmp.eq.s32.totalorder %v22806_v7, %v30011_v51 }
 0x337   :  { %21544 = vmatprep.subr.msk.bf16.mxu0 %vm21543_vm11, %v22744_v15  ;;  %vm21521_vm15 = vmpackc.low %vm9420_vm7, %vm9386_vm6  ;;  %vm12044_vm6 = vcmp.eq.s32.totalorder %v22792_v2, %v30028_v37  ;;  %vm12078_vm7 = vcmp.eq.s32.totalorder %v22806_v7, %v30028_v37 }
 0x338   :  { %21522 = vmatpush1.bf16.msk.msra.mxu1 %vm21521_vm15, %v22744_v15  ;;  %vm21545_vm2 = vmpackc.low %vm9422_vm10, %vm9388_vm9  ;;  %vm12111_vm9 = vcmp.eq.s32.totalorder %v22812_v9, %v29977_v50  ;;  %vm12145_vm10 = vcmp.eq.s32.totalorder %v22815_v10, %v29977_v50 }
 0x339   :  { %21546 = vmatpush1.bf16.msk.msra.mxu0 %vm21545_vm2, %v22744_v15  ;;  %vm21547_vm5 = vmpackc.low %vm12077_vm14, %vm12043_vm13  ;;  %vm12113_vm13 = vcmp.eq.s32.totalorder %v22812_v9, %v29994_v53  ;;  %vm12147_vm14 = vcmp.eq.s32.totalorder %v22815_v10, %v29994_v53 }
 0x33a   :  { %21548 = vmatprep.subr.msk.bf16.mxu0 %vm21547_vm5, %v22744_v15  ;;  %vm21571_vm8 = vmpackc.low %vm12079_vm1, %vm12045_vm0  ;;  %vm12110_vm0 = vcmp.eq.s32.totalorder %v22812_v9, %v30011_v51  ;;  %vm12144_vm1 = vcmp.eq.s32.totalorder %v22815_v10, %v30011_v51 }
 0x33b   :  { %21572 = vmatprep.subr.msk.bf16.mxu1 %vm21571_vm8, %v22744_v15  ;;  %18979 = vmatmul.mubr.msk.f32.vlgmr.msra.gmra.mrb[72].mxu1 %vm2803_vm12, %v29424_v62  ;;  %vm21549_vm11 = vmpackc.low %vm12076_vm4, %vm12042_vm3  ;;  %vm12112_vm3 = vcmp.eq.s32.totalorder %v22812_v9, %v30028_v37  ;;  %vm12146_vm4 = vcmp.eq.s32.totalorder %v22815_v10, %v30028_v37 }
 0x33c   :  { %19007 = vmatmul.mubr.msk.f32.vlgmr.msra.gmra.mrb[48].mxu0 %vm2803_vm12, %v29424_v62  ;;  %vm21573_vm15 = vmpackc.low %vm12078_vm7, %vm12044_vm6  ;;  %11662 = vmatprep.mubr.f32.mxu1 %v22743_v3  ;;  %vm12179_vm6 = vcmp.eq.s32.totalorder %v22851_v16, %v29977_v50  ;;  %vm12213_vm7 = vcmp.eq.s32.totalorder %v22854_v17, %v29977_v50  ;;  %v30217_v62 = vrot.slane %v22687_v8, %v29936_v26 }
 0x33d   :  { %21550 = vmatpush1.bf16.msk.msra.mxu0 %vm21549_vm11, %v22744_v15  ;;  %21574 = vmatpush1.bf16.msk.msra.mxu1 %vm21573_vm15, %v22744_v15  ;;  %vm21551_vm2 = vmpackc.low %vm12145_vm10, %vm12111_vm9  ;;  %vm12181_vm9 = vcmp.eq.s32.totalorder %v22851_v16, %v29994_v53  ;;  %vm12215_vm10 = vcmp.eq.s32.totalorder %v22854_v17, %v29994_v53 }
 0x33e   :  { %21552 = vmatprep.subr.msk.bf16.mxu0 %vm21551_vm2, %v22744_v15  ;;  %vm21575_vm5 = vmpackc.low %vm12147_vm14, %vm12113_vm13  ;;  %11751 = vmatprep.mubr.f32.mxu0 %v22743_v3  ;;  %vm12178_vm13 = vcmp.eq.s32.totalorder %v22851_v16, %v30011_v51  ;;  %vm12212_vm14 = vcmp.eq.s32.totalorder %v22854_v17, %v30011_v51 }
 0x33f   :  { %21576 = vmatprep.subr.msk.bf16.mxu1 %vm21575_vm5, %v22744_v15  ;;  %vm21553_vm8 = vmpackc.low %vm12144_vm1, %vm12110_vm0  ;;  %18980 = vmatmul.mubr.msk.f32.gmra.mrb[74].mxu1 %vm2803_vm12, %v29459_v63  ;;  %vm12180_vm0 = vcmp.eq.s32.totalorder %v22851_v16, %v30028_v37  ;;  %vm12214_vm1 = vcmp.eq.s32.totalorder %v22854_v17, %v30028_v37 }
 0x340   :  { %vm21577_vm11 = vmpackc.low %vm12146_vm4, %vm12112_vm3  ;;  %19008 = vmatmul.mubr.msk.f32.gmra.mrb[50].mxu0 %vm2803_vm12, %v29459_v63  ;;  %11668 = vmatprep.mubr.f32.mxu1 %v22743_v3  ;;  %vm12247_vm3 = vcmp.eq.s32.totalorder %v22877_v18, %v29977_v50  ;;  %vm12281_vm4 = vcmp.eq.s32.totalorder %v22880_v19, %v29977_v50  ;;  %v22688_v63 = vld [vmem:[%s31974_s0 + $0x30] sm:$0x1f] }
 0x341   :  { %21554 = vmatpush1.bf16.msk.msra.mxu0 %vm21553_vm8, %v22744_v15  ;;  %21578 = vmatpush1.bf16.msk.msra.mxu1 %vm21577_vm11, %v22744_v15  ;;  %vm21555_vm15 = vmpackc.low %vm12213_vm7, %vm12179_vm6  ;;  %vm12249_vm6 = vcmp.eq.s32.totalorder %v22877_v18, %v29994_v53  ;;  %vm12283_vm7 = vcmp.eq.s32.totalorder %v22880_v19, %v29994_v53 }
 0x342   :  { %21556 = vmatprep.subr.msk.bf16.mxu0 %vm21555_vm15, %v22744_v15  ;;  %vm21579_vm2 = vmpackc.low %vm12215_vm10, %vm12181_vm9  ;;  %11757 = vmatprep.mubr.f32.mxu0 %v22743_v3  ;;  %vm12246_vm9 = vcmp.eq.s32.totalorder %v22877_v18, %v30011_v51  ;;  %vm12280_vm10 = vcmp.eq.s32.totalorder %v22880_v19, %v30011_v51 }
 0x343   :  { %21580 = vmatprep.subr.msk.bf16.mxu1 %vm21579_vm2, %v22744_v15  ;;  %vm21557_vm5 = vmpackc.low %vm12212_vm14, %vm12178_vm13  ;;  %18981 = vmatmul.mubr.msk.f32.gmra.mrb[76].mxu1 %vm2803_vm12, %v29499_v32  ;;  %vm12248_vm13 = vcmp.eq.s32.totalorder %v22877_v18, %v30028_v37  ;;  %vm12282_vm14 = vcmp.eq.s32.totalorder %v22880_v19, %v30028_v37 }
 0x344   :  { %vm21581_vm8 = vmpackc.low %vm12214_vm1, %vm12180_vm0  ;;  %19009 = vmatmul.mubr.msk.f32.gmra.mrb[52].mxu0 %vm2803_vm12, %v29499_v32  ;;  %11674 = vmatprep.mubr.f32.mxu1 %v22743_v3  ;;  %vm12315_vm0 = vcmp.eq.s32.totalorder %v22903_v20, %v29977_v50  ;;  %vm12349_vm1 = vcmp.eq.s32.totalorder %v22906_v21, %v29977_v50  ;;  %v30235_v32 = vrot.slane %v22688_v63, %v29936_v26 }
 0x345   :  { %21558 = vmatpush1.bf16.msk.msra.mxu0 %vm21557_vm5, %v22744_v15  ;;  %21582 = vmatpush1.bf16.msk.msra.mxu1 %vm21581_vm8, %v22744_v15  ;;  %vm21559_vm11 = vmpackc.low %vm12281_vm4, %vm12247_vm3  ;;  %vm12317_vm3 = vcmp.eq.s32.totalorder %v22903_v20, %v29994_v53  ;;  %vm12351_vm4 = vcmp.eq.s32.totalorder %v22906_v21, %v29994_v53 }
 0x346   :  { %21560 = vmatprep.subr.msk.bf16.mxu0 %vm21559_vm11, %v22744_v15  ;;  %vm21583_vm15 = vmpackc.low %vm12283_vm7, %vm12249_vm6  ;;  %11763 = vmatprep.mubr.f32.mxu0 %v22743_v3  ;;  %vm12314_vm6 = vcmp.eq.s32.totalorder %v22903_v20, %v30011_v51  ;;  %vm12348_vm7 = vcmp.eq.s32.totalorder %v22906_v21, %v30011_v51 }
 0x347   :  { %21584 = vmatprep.subr.msk.bf16.mxu1 %vm21583_vm15, %v22744_v15  ;;  %vm21561_vm2 = vmpackc.low %vm12280_vm10, %vm12246_vm9  ;;  %18982 = vmatmul.mubr.msk.f32.gmra.mrb[78].mxu1 %vm2803_vm12, %v29539_v0  ;;  %vm12316_vm9 = vcmp.eq.s32.totalorder %v22903_v20, %v30028_v37  ;;  %vm12350_vm10 = vcmp.eq.s32.totalorder %v22906_v21, %v30028_v37 }
 0x348   :  { %vm21585_vm5 = vmpackc.low %vm12282_vm14, %vm12248_vm13  ;;  %19010 = vmatmul.mubr.msk.f32.gmra.mrb[54].mxu0 %vm2803_vm12, %v29539_v0  ;;  %13436 = vmatprep.mubr.f32.mxu1 %v22743_v3  ;;  %vm12383_vm13 = vcmp.eq.s32.totalorder %v22929_v22, %v29977_v50  ;;  %vm12417_vm14 = vcmp.eq.s32.totalorder %v22932_v23, %v29977_v50  ;;  %v30268_v0 = vld [vmem:[%s31975_s1 + $0x80] sm:$0xff]  ;;  %v22696_v50 = vld [vmem:[%s31974_s0 + $0x70] sm:$0x1f] }
 0x349   :  { %21562 = vmatpush1.bf16.msk.msra.mxu0 %vm21561_vm2, %v22744_v15  ;;  %21586 = vmatpush1.bf16.msk.msra.mxu1 %vm21585_vm5, %v22744_v15  ;;  %vm21563_vm8 = vmpackc.low %vm12349_vm1, %vm12315_vm0  ;;  %vm12385_vm0 = vcmp.eq.s32.totalorder %v22929_v22, %v29994_v53  ;;  %vm12419_vm1 = vcmp.eq.s32.totalorder %v22932_v23, %v29994_v53  ;;  %v30669_v40 = vrot.slane %v22696_v50, %v29936_v26  ;;  %v22697_v53 = vld [vmem:[%s31974_s0 + $0x88] sm:$0x1f] }
 0x34a   :  { %21564 = vmatprep.subr.msk.bf16.mxu0 %vm21563_vm8, %v22744_v15  ;;  %vm21587_vm11 = vmpackc.low %vm12351_vm4, %vm12317_vm3  ;;  %13347 = vmatprep.mubr.f32.mxu0 %v22743_v3  ;;  %vm12382_vm3 = vcmp.eq.s32.totalorder %v22929_v22, %v30011_v51  ;;  %vm12416_vm4 = vcmp.eq.s32.totalorder %v22932_v23, %v30011_v51  ;;  %v30815_v54 = vrot.slane %v22697_v53, %v29936_v26  ;;  %v22698_v51 = vld [vmem:[%s31974_s0 + $0x98] sm:$0x1f]  ;;  %v22715_v53 = vld [vmem:[%s31974_s0 + $0xe0] sm:$0x1f] }
 0x34b   :  { %21588 = vmatprep.subr.msk.bf16.mxu1 %vm21587_vm11, %v22744_v15  ;;  %vm21565_vm15 = vmpackc.low %vm12348_vm7, %vm12314_vm6  ;;  %vm12384_vm6 = vcmp.eq.s32.totalorder %v22929_v22, %v30028_v37  ;;  %vm12418_vm7 = vcmp.eq.s32.totalorder %v22932_v23, %v30028_v37  ;;  %v30830_v36 = vrot.slane %v22698_v51, %v29936_v26  ;;  %v22699_v37 = vld [vmem:[%s31974_s0 + $0x80] sm:$0x1f]  ;;  %v22745_v51 = vmov 0  }
 0x34c   :  { %vm21589_vm2 = vmpackc.low %vm12350_vm10, %vm12316_vm9  ;;  %vm12047_vm9 = vcmp.eq.s32.totalorder %v22792_v2, %v30187_v55  ;;  %vm12081_vm10 = vcmp.eq.s32.totalorder %v22806_v7, %v30187_v55  ;;  %v30846_v39 = vrot.slane %v22699_v37, %v29936_v26  ;;  %22525 = vset.pattern.permute.xlu0 %v22745_v51  ;;  %22526 = vset.pattern.permute.xlu1 %v22745_v51 }
 0x34d   :  { %21566 = vmatpush1.bf16.msk.msra.mxu0 %vm21565_vm15, %v22744_v15  ;;  %21590 = vmatpush1.bf16.msk.msra.mxu1 %vm21589_vm2, %v22744_v15  ;;  %vm21567_vm5 = vmpackc.low %vm12417_vm14, %vm12383_vm13  ;;  %vm12049_vm13 = vcmp.eq.s32.totalorder %v22792_v2, %v30204_v57  ;;  %vm12083_vm14 = vcmp.eq.s32.totalorder %v22806_v7, %v30204_v57 }
 0x34e   :  { %21568 = vmatprep.subr.msk.bf16.mxu0 %vm21567_vm5, %v22744_v15  ;;  %vm21591_vm8 = vmpackc.low %vm12419_vm1, %vm12385_vm0  ;;  %vm12046_vm0 = vcmp.eq.s32.totalorder %v22792_v2, %v30217_v62  ;;  %vm12080_vm1 = vcmp.eq.s32.totalorder %v22806_v7, %v30217_v62 }
 0x34f   :  { %21592 = vmatprep.subr.msk.bf16.mxu1 %vm21591_vm8, %v22744_v15  ;;  %vm21569_vm11 = vmpackc.low %vm12416_vm4, %vm12382_vm3  ;;  %vm12048_vm3 = vcmp.eq.s32.totalorder %v22792_v2, %v30235_v32  ;;  %vm12082_vm4 = vcmp.eq.s32.totalorder %v22806_v7, %v30235_v32 }
 0x350   :  { %vm21593_vm15 = vmpackc.low %vm12418_vm7, %vm12384_vm6  ;;  %vm12115_vm6 = vcmp.eq.s32.totalorder %v22812_v9, %v30187_v55  ;;  %vm12149_vm7 = vcmp.eq.s32.totalorder %v22815_v10, %v30187_v55 }
 0x351   :  { %21570 = vmatpush1.bf16.msk.msra.mxu0 %vm21569_vm11, %v22744_v15  ;;  %21594 = vmatpush1.bf16.msk.msra.mxu1 %vm21593_vm15, %v22744_v15  ;;  %vm21595_vm2 = vmpackc.low %vm12081_vm10, %vm12047_vm9  ;;  %vm12117_vm9 = vcmp.eq.s32.totalorder %v22812_v9, %v30204_v57  ;;  %vm12151_vm10 = vcmp.eq.s32.totalorder %v22815_v10, %v30204_v57 }
 0x352   :  { %21596 = vmatprep.subr.msk.bf16.mxu0 %vm21595_vm2, %v22744_v15  ;;  %vm21619_vm5 = vmpackc.low %vm12083_vm14, %vm12049_vm13  ;;  %vm12114_vm13 = vcmp.eq.s32.totalorder %v22812_v9, %v30217_v62  ;;  %vm12148_vm14 = vcmp.eq.s32.totalorder %v22815_v10, %v30217_v62 }
 0x353   :  { %21620 = vmatprep.subr.msk.bf16.mxu1 %vm21619_vm5, %v22744_v15  ;;  %vm21597_vm8 = vmpackc.low %vm12080_vm1, %vm12046_vm0  ;;  %vm12116_vm0 = vcmp.eq.s32.totalorder %v22812_v9, %v30235_v32  ;;  %vm12150_vm1 = vcmp.eq.s32.totalorder %v22815_v10, %v30235_v32 }
 0x354   :  { %19447 = vmatmul.mubr.msk.f32.vlgmr.msra.gmra.mrb[56].mxu0 %vm2803_vm12, %v30268_v0  ;;  %19475 = vmatmul.mubr.msk.f32.vlgmr.msra.gmra.mrb[8].mxu1 %vm2803_vm12, %v30268_v0  ;;  %vm21621_vm11 = vmpackc.low %vm12082_vm4, %vm12048_vm3  ;;  %vm12183_vm3 = vcmp.eq.s32.totalorder %v22851_v16, %v30187_v55  ;;  %vm12217_vm4 = vcmp.eq.s32.totalorder %v22854_v17, %v30187_v55 }
 0x355   :  { %21598 = vmatpush1.bf16.msk.msra.mxu0 %vm21597_vm8, %v22744_v15  ;;  %21622 = vmatpush1.bf16.msk.msra.mxu1 %vm21621_vm11, %v22744_v15  ;;  %vm21599_vm15 = vmpackc.low %vm12149_vm7, %vm12115_vm6  ;;  %vm12185_vm6 = vcmp.eq.s32.totalorder %v22851_v16, %v30204_v57  ;;  %vm12219_vm7 = vcmp.eq.s32.totalorder %v22854_v17, %v30204_v57 }
 0x356   :  { %13353 = vmatprep.mubr.f32.mxu0 %v22743_v3  ;;  %13442 = vmatprep.mubr.f32.mxu1 %v22743_v3  ;;  %vm21623_vm2 = vmpackc.low %vm12151_vm10, %vm12117_vm9  ;;  %vm12182_vm9 = vcmp.eq.s32.totalorder %v22851_v16, %v30217_v62  ;;  %vm12216_vm10 = vcmp.eq.s32.totalorder %v22854_v17, %v30217_v62 }
 0x357   :  { %21600 = vmatprep.subr.msk.bf16.mxu0 %vm21599_vm15, %v22744_v15  ;;  %21624 = vmatprep.subr.msk.bf16.mxu1 %vm21623_vm2, %v22744_v15  ;;  %vm21601_vm5 = vmpackc.low %vm12148_vm14, %vm12114_vm13  ;;  %vm12184_vm13 = vcmp.eq.s32.totalorder %v22851_v16, %v30235_v32  ;;  %vm12218_vm14 = vcmp.eq.s32.totalorder %v22854_v17, %v30235_v32 }
 0x358   :  { %19448 = vmatmul.mubr.msk.f32.gmra.mrb[58].mxu0 %vm2803_vm12, %v30297_v61  ;;  %19476 = vmatmul.mubr.msk.f32.gmra.mrb[10].mxu1 %vm2803_vm12, %v30297_v61  ;;  %vm21625_vm8 = vmpackc.low %vm12150_vm1, %vm12116_vm0  ;;  %vm12251_vm0 = vcmp.eq.s32.totalorder %v22877_v18, %v30187_v55  ;;  %vm12285_vm1 = vcmp.eq.s32.totalorder %v22880_v19, %v30187_v55 }
 0x359   :  { %21602 = vmatpush1.bf16.msk.msra.mxu0 %vm21601_vm5, %v22744_v15  ;;  %21626 = vmatpush1.bf16.msk.msra.mxu1 %vm21625_vm8, %v22744_v15  ;;  %vm21603_vm11 = vmpackc.low %vm12217_vm4, %vm12183_vm3  ;;  %vm12253_vm3 = vcmp.eq.s32.totalorder %v22877_v18, %v30204_v57  ;;  %vm12287_vm4 = vcmp.eq.s32.totalorder %v22880_v19, %v30204_v57 }
 0x35a   :  { %13359 = vmatprep.mubr.f32.mxu0 %v22743_v3  ;;  %13448 = vmatprep.mubr.f32.mxu1 %v22743_v3  ;;  %vm21627_vm15 = vmpackc.low %vm12219_vm7, %vm12185_vm6  ;;  %vm12250_vm6 = vcmp.eq.s32.totalorder %v22877_v18, %v30217_v62  ;;  %vm12284_vm7 = vcmp.eq.s32.totalorder %v22880_v19, %v30217_v62 }
 0x35b   :  { %21604 = vmatprep.subr.msk.bf16.mxu0 %vm21603_vm11, %v22744_v15  ;;  %21628 = vmatprep.subr.msk.bf16.mxu1 %vm21627_vm15, %v22744_v15  ;;  %vm21605_vm2 = vmpackc.low %vm12216_vm10, %vm12182_vm9  ;;  %vm12252_vm9 = vcmp.eq.s32.totalorder %v22877_v18, %v30235_v32  ;;  %vm12286_vm10 = vcmp.eq.s32.totalorder %v22880_v19, %v30235_v32 }
 0x35c   :  { %19449 = vmatmul.mubr.msk.f32.gmra.mrb[60].mxu0 %vm2803_vm12, %v30334_v4  ;;  %19477 = vmatmul.mubr.msk.f32.gmra.mrb[12].mxu1 %vm2803_vm12, %v30334_v4  ;;  %vm21629_vm5 = vmpackc.low %vm12218_vm14, %vm12184_vm13  ;;  %vm12319_vm13 = vcmp.eq.s32.totalorder %v22903_v20, %v30187_v55  ;;  %vm12353_vm14 = vcmp.eq.s32.totalorder %v22906_v21, %v30187_v55 }
 0x35d   :  { %21606 = vmatpush1.bf16.msk.msra.mxu0 %vm21605_vm2, %v22744_v15  ;;  %21630 = vmatpush1.bf16.msk.msra.mxu1 %vm21629_vm5, %v22744_v15  ;;  %vm21607_vm8 = vmpackc.low %vm12285_vm1, %vm12251_vm0  ;;  %vm12321_vm0 = vcmp.eq.s32.totalorder %v22903_v20, %v30204_v57  ;;  %vm12355_vm1 = vcmp.eq.s32.totalorder %v22906_v21, %v30204_v57 }
 0x35e   :  { %13365 = vmatprep.mubr.f32.mxu0 %v22743_v3  ;;  %13454 = vmatprep.mubr.f32.mxu1 %v22743_v3  ;;  %vm21631_vm11 = vmpackc.low %vm12287_vm4, %vm12253_vm3  ;;  %vm12318_vm3 = vcmp.eq.s32.totalorder %v22903_v20, %v30217_v62  ;;  %vm12352_vm4 = vcmp.eq.s32.totalorder %v22906_v21, %v30217_v62 }
 0x35f   :  { %21608 = vmatprep.subr.msk.bf16.mxu0 %vm21607_vm8, %v22744_v15  ;;  %21632 = vmatprep.subr.msk.bf16.mxu1 %vm21631_vm11, %v22744_v15  ;;  %vm21609_vm15 = vmpackc.low %vm12284_vm7, %vm12250_vm6  ;;  %vm12320_vm6 = vcmp.eq.s32.totalorder %v22903_v20, %v30235_v32  ;;  %vm12354_vm7 = vcmp.eq.s32.totalorder %v22906_v21, %v30235_v32 }
 0x360   :  { %19450 = vmatmul.mubr.msk.f32.gmra.mrb[62].mxu0 %vm2803_vm12, %v30374_v27  ;;  %19478 = vmatmul.mubr.msk.f32.gmra.mrb[14].mxu1 %vm2803_vm12, %v30374_v27  ;;  %vm21633_vm2 = vmpackc.low %vm12286_vm10, %vm12252_vm9  ;;  %vm12387_vm9 = vcmp.eq.s32.totalorder %v22929_v22, %v30187_v55  ;;  %vm12421_vm10 = vcmp.eq.s32.totalorder %v22932_v23, %v30187_v55  ;;  %v22700_v55 = vld [vmem:[%s31974_s0 + $0x90] sm:$0x1f] }
 0x361   :  { %21610 = vmatpush1.bf16.msk.msra.mxu0 %vm21609_vm15, %v22744_v15  ;;  %21634 = vmatpush1.bf16.msk.msra.mxu1 %vm21633_vm2, %v22744_v15  ;;  %vm21611_vm5 = vmpackc.low %vm12353_vm14, %vm12319_vm13  ;;  %vm12389_vm13 = vcmp.eq.s32.totalorder %v22929_v22, %v30204_v57  ;;  %vm12423_vm14 = vcmp.eq.s32.totalorder %v22932_v23, %v30204_v57  ;;  %v30864_v56 = vrot.slane %v22700_v55, %v29936_v26  ;;  %v22701_v57 = vld [vmem:[%s31974_s0 + $0xa8] sm:$0x1f] }
 0x362   :  { %21612 = vmatprep.subr.msk.bf16.mxu0 %vm21611_vm5, %v22744_v15  ;;  %vm21635_vm8 = vmpackc.low %vm12355_vm1, %vm12321_vm0  ;;  %13525 = vmatprep.mubr.f32.mxu0 %v22743_v3  ;;  %vm12386_vm0 = vcmp.eq.s32.totalorder %v22929_v22, %v30217_v62  ;;  %vm12420_vm1 = vcmp.eq.s32.totalorder %v22932_v23, %v30217_v62  ;;  %v31010_v8 = vrot.slane %v22701_v57, %v29936_v26  ;;  %v22702_v62 = vld [vmem:[%s31974_s0 + $0xb8] sm:$0x1f]  ;;  %v15061_v55 = vld [vmem:[%s31976_s2 + $0x8] sm:$0xff] }
 0x363   :  { %21636 = vmatprep.subr.msk.bf16.mxu1 %vm21635_vm8, %v22744_v15  ;;  %vm21613_vm11 = vmpackc.low %vm12352_vm4, %vm12318_vm3  ;;  %13614 = vmatprep.mubr.f32.mxu1 %v22743_v3  ;;  %vm12388_vm3 = vcmp.eq.s32.totalorder %v22929_v22, %v30235_v32  ;;  %vm12422_vm4 = vcmp.eq.s32.totalorder %v22932_v23, %v30235_v32  ;;  %v31025_v63 = vrot.slane %v22702_v62, %v29936_v26  ;;  %v22703_v32 = vld [vmem:[%s31974_s0 + $0xa0] sm:$0x1f]  ;;  %v22717_v62 = vld [vmem:[%s31974_s0 + $0x108] sm:$0x1f] }
 0x364   :  { %vm21637_vm15 = vmpackc.low %vm12354_vm7, %vm12320_vm6  ;;  %vm12051_vm6 = vcmp.eq.s32.totalorder %v22792_v2, %v30425_v29  ;;  %vm12085_vm7 = vcmp.eq.s32.totalorder %v22806_v7, %v30425_v29  ;;  %v31041_v28 = vrot.slane %v22703_v32, %v29936_v26  ;;  %v15242_v57 = vld [vmem:[%s31980_s6] sm:$0xff] }
 0x365   :  { %21614 = vmatpush1.bf16.msk.msra.mxu0 %vm21613_vm11, %v22744_v15  ;;  %21638 = vmatpush1.bf16.msk.msra.mxu1 %vm21637_vm15, %v22744_v15  ;;  %vm21615_vm2 = vmpackc.low %vm12421_vm10, %vm12387_vm9  ;;  %vm12053_vm9 = vcmp.eq.s32.totalorder %v22792_v2, %v30440_v1  ;;  %vm12087_vm10 = vcmp.eq.s32.totalorder %v22806_v7, %v30440_v1  ;;  %v22718_v32 = vld [vmem:[%s31974_s0 + $0x100] sm:$0x1f] }
 0x366   :  { %21616 = vmatprep.subr.msk.bf16.mxu0 %vm21615_vm2, %v22744_v15  ;;  %vm21639_vm5 = vmpackc.low %vm12423_vm14, %vm12389_vm13  ;;  %vm12050_vm13 = vcmp.eq.s32.totalorder %v22792_v2, %v30456_v38  ;;  %vm12084_vm14 = vcmp.eq.s32.totalorder %v22806_v7, %v30456_v38 }
 0x367   :  { %21640 = vmatprep.subr.msk.bf16.mxu1 %vm21639_vm5, %v22744_v15  ;;  %vm21617_vm8 = vmpackc.low %vm12420_vm1, %vm12386_vm0  ;;  %vm12052_vm0 = vcmp.eq.s32.totalorder %v22792_v2, %v30474_v60  ;;  %vm12086_vm1 = vcmp.eq.s32.totalorder %v22806_v7, %v30474_v60 }
 0x368   :  { %vm21641_vm11 = vmpackc.low %vm12422_vm4, %vm12388_vm3  ;;  %vm12119_vm3 = vcmp.eq.s32.totalorder %v22812_v9, %v30425_v29  ;;  %vm12153_vm4 = vcmp.eq.s32.totalorder %v22815_v10, %v30425_v29 }
 0x369   :  { %21618 = vmatpush1.bf16.msk.msra.mxu0 %vm21617_vm8, %v22744_v15  ;;  %21642 = vmatpush1.bf16.msk.msra.mxu1 %vm21641_vm11, %v22744_v15  ;;  %vm21643_vm15 = vmpackc.low %vm12085_vm7, %vm12051_vm6  ;;  %vm12121_vm6 = vcmp.eq.s32.totalorder %v22812_v9, %v30440_v1  ;;  %vm12155_vm7 = vcmp.eq.s32.totalorder %v22815_v10, %v30440_v1 }
 0x36a   :  { %21644 = vmatprep.subr.msk.bf16.mxu0 %vm21643_vm15, %v22744_v15  ;;  %vm21667_vm2 = vmpackc.low %vm12087_vm10, %vm12053_vm9  ;;  %vm12118_vm9 = vcmp.eq.s32.totalorder %v22812_v9, %v30456_v38  ;;  %vm12152_vm10 = vcmp.eq.s32.totalorder %v22815_v10, %v30456_v38 }
 0x36b   :  { %21668 = vmatprep.subr.msk.bf16.mxu1 %vm21667_vm2, %v22744_v15  ;;  %vm21645_vm5 = vmpackc.low %vm12084_vm14, %vm12050_vm13  ;;  %vm12120_vm13 = vcmp.eq.s32.totalorder %v22812_v9, %v30474_v60  ;;  %vm12154_vm14 = vcmp.eq.s32.totalorder %v22815_v10, %v30474_v60 }
 0x36c   :  { %19503 = vmatmul.mubr.msk.f32.vlgmr.msra.gmra.mrb[64].mxu0 %vm2803_vm12, %v30268_v0  ;;  %19531 = vmatmul.mubr.msk.f32.vlgmr.msra.gmra.mrb[24].mxu1 %vm2803_vm12, %v30268_v0  ;;  %vm21669_vm8 = vmpackc.low %vm12086_vm1, %vm12052_vm0  ;;  %vm12187_vm0 = vcmp.eq.s32.totalorder %v22851_v16, %v30425_v29  ;;  %vm12221_vm1 = vcmp.eq.s32.totalorder %v22854_v17, %v30425_v29 }
 0x36d   :  { %21646 = vmatpush1.bf16.msk.msra.mxu0 %vm21645_vm5, %v22744_v15  ;;  %21670 = vmatpush1.bf16.msk.msra.mxu1 %vm21669_vm8, %v22744_v15  ;;  %vm21647_vm11 = vmpackc.low %vm12153_vm4, %vm12119_vm3  ;;  %vm12189_vm3 = vcmp.eq.s32.totalorder %v22851_v16, %v30440_v1  ;;  %vm12223_vm4 = vcmp.eq.s32.totalorder %v22854_v17, %v30440_v1 }
 0x36e   :  { %13531 = vmatprep.mubr.f32.mxu0 %v22743_v3  ;;  %13620 = vmatprep.mubr.f32.mxu1 %v22743_v3  ;;  %vm21671_vm15 = vmpackc.low %vm12155_vm7, %vm12121_vm6  ;;  %vm12186_vm6 = vcmp.eq.s32.totalorder %v22851_v16, %v30456_v38  ;;  %vm12220_vm7 = vcmp.eq.s32.totalorder %v22854_v17, %v30456_v38 }
 0x36f   :  { %21648 = vmatprep.subr.msk.bf16.mxu0 %vm21647_vm11, %v22744_v15  ;;  %21672 = vmatprep.subr.msk.bf16.mxu1 %vm21671_vm15, %v22744_v15  ;;  %vm21649_vm2 = vmpackc.low %vm12152_vm10, %vm12118_vm9  ;;  %vm12188_vm9 = vcmp.eq.s32.totalorder %v22851_v16, %v30474_v60  ;;  %vm12222_vm10 = vcmp.eq.s32.totalorder %v22854_v17, %v30474_v60 }
 0x370   :  { %19504 = vmatmul.mubr.msk.f32.gmra.mrb[66].mxu0 %vm2803_vm12, %v30297_v61  ;;  %19532 = vmatmul.mubr.msk.f32.gmra.mrb[26].mxu1 %vm2803_vm12, %v30297_v61  ;;  %vm21673_vm5 = vmpackc.low %vm12154_vm14, %vm12120_vm13  ;;  %vm12255_vm13 = vcmp.eq.s32.totalorder %v22877_v18, %v30425_v29  ;;  %vm12289_vm14 = vcmp.eq.s32.totalorder %v22880_v19, %v30425_v29 }
 0x371   :  { %21650 = vmatpush1.bf16.msk.msra.mxu0 %vm21649_vm2, %v22744_v15  ;;  %21674 = vmatpush1.bf16.msk.msra.mxu1 %vm21673_vm5, %v22744_v15  ;;  %vm21651_vm8 = vmpackc.low %vm12221_vm1, %vm12187_vm0  ;;  %vm12257_vm0 = vcmp.eq.s32.totalorder %v22877_v18, %v30440_v1  ;;  %vm12291_vm1 = vcmp.eq.s32.totalorder %v22880_v19, %v30440_v1 }
 0x372   :  { %13537 = vmatprep.mubr.f32.mxu0 %v22743_v3  ;;  %13626 = vmatprep.mubr.f32.mxu1 %v22743_v3  ;;  %vm21675_vm11 = vmpackc.low %vm12223_vm4, %vm12189_vm3  ;;  %vm12254_vm3 = vcmp.eq.s32.totalorder %v22877_v18, %v30456_v38  ;;  %vm12288_vm4 = vcmp.eq.s32.totalorder %v22880_v19, %v30456_v38 }
 0x373   :  { %21652 = vmatprep.subr.msk.bf16.mxu0 %vm21651_vm8, %v22744_v15  ;;  %21676 = vmatprep.subr.msk.bf16.mxu1 %vm21675_vm11, %v22744_v15  ;;  %vm21653_vm15 = vmpackc.low %vm12220_vm7, %vm12186_vm6  ;;  %vm12256_vm6 = vcmp.eq.s32.totalorder %v22877_v18, %v30474_v60  ;;  %vm12290_vm7 = vcmp.eq.s32.totalorder %v22880_v19, %v30474_v60 }
 0x374   :  { %19505 = vmatmul.mubr.msk.f32.gmra.mrb[68].mxu0 %vm2803_vm12, %v30334_v4  ;;  %19533 = vmatmul.mubr.msk.f32.gmra.mrb[28].mxu1 %vm2803_vm12, %v30334_v4  ;;  %vm21677_vm2 = vmpackc.low %vm12222_vm10, %vm12188_vm9  ;;  %vm12323_vm9 = vcmp.eq.s32.totalorder %v22903_v20, %v30425_v29  ;;  %vm12357_vm10 = vcmp.eq.s32.totalorder %v22906_v21, %v30425_v29 }
 0x375   :  { %21654 = vmatpush1.bf16.msk.msra.mxu0 %vm21653_vm15, %v22744_v15  ;;  %21678 = vmatpush1.bf16.msk.msra.mxu1 %vm21677_vm2, %v22744_v15  ;;  %vm21655_vm5 = vmpackc.low %vm12289_vm14, %vm12255_vm13  ;;  %vm12325_vm13 = vcmp.eq.s32.totalorder %v22903_v20, %v30440_v1  ;;  %vm12359_vm14 = vcmp.eq.s32.totalorder %v22906_v21, %v30440_v1 }
 0x376   :  { %13543 = vmatprep.mubr.f32.mxu0 %v22743_v3  ;;  %13632 = vmatprep.mubr.f32.mxu1 %v22743_v3  ;;  %vm21679_vm8 = vmpackc.low %vm12291_vm1, %vm12257_vm0  ;;  %vm12322_vm0 = vcmp.eq.s32.totalorder %v22903_v20, %v30456_v38  ;;  %vm12356_vm1 = vcmp.eq.s32.totalorder %v22906_v21, %v30456_v38 }
 0x377   :  { %21656 = vmatprep.subr.msk.bf16.mxu0 %vm21655_vm5, %v22744_v15  ;;  %21680 = vmatprep.subr.msk.bf16.mxu1 %vm21679_vm8, %v22744_v15  ;;  %vm21657_vm11 = vmpackc.low %vm12288_vm4, %vm12254_vm3  ;;  %vm12324_vm3 = vcmp.eq.s32.totalorder %v22903_v20, %v30474_v60  ;;  %vm12358_vm4 = vcmp.eq.s32.totalorder %v22906_v21, %v30474_v60 }
 0x378   :  { %19506 = vmatmul.mubr.msk.f32.gmra.mrb[70].mxu0 %vm2803_vm12, %v30374_v27  ;;  %19534 = vmatmul.mubr.msk.f32.gmra.mrb[30].mxu1 %vm2803_vm12, %v30374_v27  ;;  %vm21681_vm15 = vmpackc.low %vm12290_vm7, %vm12256_vm6  ;;  %vm12391_vm6 = vcmp.eq.s32.totalorder %v22929_v22, %v30425_v29  ;;  %vm12425_vm7 = vcmp.eq.s32.totalorder %v22932_v23, %v30425_v29  ;;  %v22704_v29 = vld [vmem:[%s31974_s0 + $0xb0] sm:$0x1f] }
 0x379   :  { %21658 = vmatpush1.bf16.msk.msra.mxu0 %vm21657_vm11, %v22744_v15  ;;  %21682 = vmatpush1.bf16.msk.msra.mxu1 %vm21681_vm15, %v22744_v15  ;;  %vm21659_vm2 = vmpackc.low %vm12357_vm10, %vm12323_vm9  ;;  %vm12393_vm9 = vcmp.eq.s32.totalorder %v22929_v22, %v30440_v1  ;;  %vm12427_vm10 = vcmp.eq.s32.totalorder %v22932_v23, %v30440_v1  ;;  %v31059_v30 = vrot.slane %v22704_v29, %v29936_v26  ;;  %v22707_v1 = vld [vmem:[%s31974_s0 + $0xc0] sm:$0x1f]  ;;  %v15245_v29 = vld [vmem:[%s31980_s6 + $0x18] sm:$0xff] }
 0x37a   :  { %21660 = vmatprep.subr.msk.bf16.mxu0 %vm21659_vm2, %v22744_v15  ;;  %vm21683_vm5 = vmpackc.low %vm12359_vm14, %vm12325_vm13  ;;  %13703 = vmatprep.mubr.f32.mxu0 %v22743_v3  ;;  %vm12390_vm13 = vcmp.eq.s32.totalorder %v22929_v22, %v30456_v38  ;;  %vm12424_vm14 = vcmp.eq.s32.totalorder %v22932_v23, %v30456_v38  ;;  %v31236_v58 = vrot.slane %v22707_v1, %v29936_v26  ;;  %v22708_v38 = vld [vmem:[%s31974_s0 + $0xd0] sm:$0x1f] }
 0x37b   :  { %21684 = vmatprep.subr.msk.bf16.mxu1 %vm21683_vm5, %v22744_v15  ;;  %vm21661_vm8 = vmpackc.low %vm12356_vm1, %vm12322_vm0  ;;  %13792 = vmatprep.mubr.f32.mxu1 %v22743_v3  ;;  %vm12392_vm0 = vcmp.eq.s32.totalorder %v22929_v22, %v30474_v60  ;;  %vm12426_vm1 = vcmp.eq.s32.totalorder %v22932_v23, %v30474_v60  ;;  %v31254_v59 = vrot.slane %v22708_v38, %v29936_v26  ;;  %v31301_v60 = vld [vmem:[%s31975_s1 + $0x80] sm:$0xff] }
 0x37c   :  { %vm21685_vm11 = vmpackc.low %vm12358_vm4, %vm12324_vm3  ;;  %vm12055_vm3 = vcmp.eq.s32.totalorder %v22792_v2, %v30620_v33  ;;  %vm12089_vm4 = vcmp.eq.s32.totalorder %v22806_v7, %v30620_v33 }
 0x37d   :  { %21662 = vmatpush1.bf16.msk.msra.mxu0 %vm21661_vm8, %v22744_v15  ;;  %21686 = vmatpush1.bf16.msk.msra.mxu1 %vm21685_vm11, %v22744_v15  ;;  %vm21663_vm15 = vmpackc.low %vm12425_vm7, %vm12391_vm6  ;;  %vm12057_vm6 = vcmp.eq.s32.totalorder %v22792_v2, %v30635_v35  ;;  %vm12091_vm7 = vcmp.eq.s32.totalorder %v22806_v7, %v30635_v35 }
 0x37e   :  { %21664 = vmatprep.subr.msk.bf16.mxu0 %vm21663_vm15, %v22744_v15  ;;  %vm21687_vm2 = vmpackc.low %vm12427_vm10, %vm12393_vm9  ;;  %vm12054_vm9 = vcmp.eq.s32.totalorder %v22792_v2, %v30651_v42  ;;  %vm12088_vm10 = vcmp.eq.s32.totalorder %v22806_v7, %v30651_v42 }
 0x37f   :  { %21688 = vmatprep.subr.msk.bf16.mxu1 %vm21687_vm2, %v22744_v15  ;;  %vm21665_vm5 = vmpackc.low %vm12424_vm14, %vm12390_vm13  ;;  %vm12056_vm13 = vcmp.eq.s32.totalorder %v22792_v2, %v30669_v40  ;;  %vm12090_vm14 = vcmp.eq.s32.totalorder %v22806_v7, %v30669_v40 }
 0x380   :  { %vm21689_vm8 = vmpackc.low %vm12426_vm1, %vm12392_vm0  ;;  %vm12123_vm0 = vcmp.eq.s32.totalorder %v22812_v9, %v30620_v33  ;;  %vm12157_vm1 = vcmp.eq.s32.totalorder %v22815_v10, %v30620_v33 }
 0x381   :  { %21666 = vmatpush1.bf16.msk.msra.mxu0 %vm21665_vm5, %v22744_v15  ;;  %21690 = vmatpush1.bf16.msk.msra.mxu1 %vm21689_vm8, %v22744_v15  ;;  %vm21691_vm11 = vmpackc.low %vm12089_vm4, %vm12055_vm3  ;;  %vm12125_vm3 = vcmp.eq.s32.totalorder %v22812_v9, %v30635_v35  ;;  %vm12159_vm4 = vcmp.eq.s32.totalorder %v22815_v10, %v30635_v35 }
 0x382   :  { %21692 = vmatprep.subr.msk.bf16.mxu0 %vm21691_vm11, %v22744_v15  ;;  %vm21715_vm15 = vmpackc.low %vm12091_vm7, %vm12057_vm6  ;;  %vm12122_vm6 = vcmp.eq.s32.totalorder %v22812_v9, %v30651_v42  ;;  %vm12156_vm7 = vcmp.eq.s32.totalorder %v22815_v10, %v30651_v42 }
 0x383   :  { %21716 = vmatprep.subr.msk.bf16.mxu1 %vm21715_vm15, %v22744_v15  ;;  %vm21693_vm2 = vmpackc.low %vm12088_vm10, %vm12054_vm9  ;;  %vm12124_vm9 = vcmp.eq.s32.totalorder %v22812_v9, %v30669_v40  ;;  %vm12158_vm10 = vcmp.eq.s32.totalorder %v22815_v10, %v30669_v40 }
 0x384   :  { %19559 = vmatmul.mubr.msk.f32.vlgmr.msra.gmra.mrb[0].mxu0 %vm2803_vm12, %v30268_v0  ;;  %19587 = vmatmul.mubr.msk.f32.vlgmr.msra.gmra.mrb[32].mxu1 %vm2803_vm12, %v30268_v0  ;;  %vm21717_vm5 = vmpackc.low %vm12090_vm14, %vm12056_vm13  ;;  %vm12191_vm13 = vcmp.eq.s32.totalorder %v22851_v16, %v30620_v33  ;;  %vm12225_vm14 = vcmp.eq.s32.totalorder %v22854_v17, %v30620_v33 }
 0x385   :  { %21694 = vmatpush1.bf16.msk.msra.mxu0 %vm21693_vm2, %v22744_v15  ;;  %21718 = vmatpush1.bf16.msk.msra.mxu1 %vm21717_vm5, %v22744_v15  ;;  %vm21695_vm8 = vmpackc.low %vm12157_vm1, %vm12123_vm0  ;;  %vm12193_vm0 = vcmp.eq.s32.totalorder %v22851_v16, %v30635_v35  ;;  %vm12227_vm1 = vcmp.eq.s32.totalorder %v22854_v17, %v30635_v35 }
 0x386   :  { %13709 = vmatprep.mubr.f32.mxu0 %v22743_v3  ;;  %13798 = vmatprep.mubr.f32.mxu1 %v22743_v3  ;;  %vm21719_vm11 = vmpackc.low %vm12159_vm4, %vm12125_vm3  ;;  %vm12190_vm3 = vcmp.eq.s32.totalorder %v22851_v16, %v30651_v42  ;;  %vm12224_vm4 = vcmp.eq.s32.totalorder %v22854_v17, %v30651_v42 }
 0x387   :  { %21696 = vmatprep.subr.msk.bf16.mxu0 %vm21695_vm8, %v22744_v15  ;;  %21720 = vmatprep.subr.msk.bf16.mxu1 %vm21719_vm11, %v22744_v15  ;;  %vm21697_vm15 = vmpackc.low %vm12156_vm7, %vm12122_vm6  ;;  %vm12192_vm6 = vcmp.eq.s32.totalorder %v22851_v16, %v30669_v40  ;;  %vm12226_vm7 = vcmp.eq.s32.totalorder %v22854_v17, %v30669_v40 }
 0x388   :  { %19560 = vmatmul.mubr.msk.f32.gmra.mrb[2].mxu0 %vm2803_vm12, %v30297_v61  ;;  %19588 = vmatmul.mubr.msk.f32.gmra.mrb[34].mxu1 %vm2803_vm12, %v30297_v61  ;;  %vm21721_vm2 = vmpackc.low %vm12158_vm10, %vm12124_vm9  ;;  %vm12259_vm9 = vcmp.eq.s32.totalorder %v22877_v18, %v30620_v33  ;;  %vm12293_vm10 = vcmp.eq.s32.totalorder %v22880_v19, %v30620_v33 }
 0x389   :  { %21698 = vmatpush1.bf16.msk.msra.mxu0 %vm21697_vm15, %v22744_v15  ;;  %21722 = vmatpush1.bf16.msk.msra.mxu1 %vm21721_vm2, %v22744_v15  ;;  %vm21699_vm5 = vmpackc.low %vm12225_vm14, %vm12191_vm13  ;;  %vm12261_vm13 = vcmp.eq.s32.totalorder %v22877_v18, %v30635_v35  ;;  %vm12295_vm14 = vcmp.eq.s32.totalorder %v22880_v19, %v30635_v35 }
 0x38a   :  { %13715 = vmatprep.mubr.f32.mxu0 %v22743_v3  ;;  %13804 = vmatprep.mubr.f32.mxu1 %v22743_v3  ;;  %vm21723_vm8 = vmpackc.low %vm12227_vm1, %vm12193_vm0  ;;  %vm12258_vm0 = vcmp.eq.s32.totalorder %v22877_v18, %v30651_v42  ;;  %vm12292_vm1 = vcmp.eq.s32.totalorder %v22880_v19, %v30651_v42 }
 0x38b   :  { %21700 = vmatprep.subr.msk.bf16.mxu0 %vm21699_vm5, %v22744_v15  ;;  %21724 = vmatprep.subr.msk.bf16.mxu1 %vm21723_vm8, %v22744_v15  ;;  %vm21701_vm11 = vmpackc.low %vm12224_vm4, %vm12190_vm3  ;;  %vm12260_vm3 = vcmp.eq.s32.totalorder %v22877_v18, %v30669_v40  ;;  %vm12294_vm4 = vcmp.eq.s32.totalorder %v22880_v19, %v30669_v40 }
 0x38c   :  { %19561 = vmatmul.mubr.msk.f32.gmra.mrb[4].mxu0 %vm2803_vm12, %v30334_v4  ;;  %19589 = vmatmul.mubr.msk.f32.gmra.mrb[36].mxu1 %vm2803_vm12, %v30334_v4  ;;  %vm21725_vm15 = vmpackc.low %vm12226_vm7, %vm12192_vm6  ;;  %vm12327_vm6 = vcmp.eq.s32.totalorder %v22903_v20, %v30620_v33  ;;  %vm12361_vm7 = vcmp.eq.s32.totalorder %v22906_v21, %v30620_v33 }
 0x38d   :  { %21702 = vmatpush1.bf16.msk.msra.mxu0 %vm21701_vm11, %v22744_v15  ;;  %21726 = vmatpush1.bf16.msk.msra.mxu1 %vm21725_vm15, %v22744_v15  ;;  %vm21703_vm2 = vmpackc.low %vm12293_vm10, %vm12259_vm9  ;;  %vm12329_vm9 = vcmp.eq.s32.totalorder %v22903_v20, %v30635_v35  ;;  %vm12363_vm10 = vcmp.eq.s32.totalorder %v22906_v21, %v30635_v35 }
 0x38e   :  { %13721 = vmatprep.mubr.f32.mxu0 %v22743_v3  ;;  %13810 = vmatprep.mubr.f32.mxu1 %v22743_v3  ;;  %vm21727_vm5 = vmpackc.low %vm12295_vm14, %vm12261_vm13  ;;  %vm12326_vm13 = vcmp.eq.s32.totalorder %v22903_v20, %v30651_v42  ;;  %vm12360_vm14 = vcmp.eq.s32.totalorder %v22906_v21, %v30651_v42 }
 0x38f   :  { %21704 = vmatprep.subr.msk.bf16.mxu0 %vm21703_vm2, %v22744_v15  ;;  %21728 = vmatprep.subr.msk.bf16.mxu1 %vm21727_vm5, %v22744_v15  ;;  %vm21705_vm8 = vmpackc.low %vm12292_vm1, %vm12258_vm0  ;;  %vm12328_vm0 = vcmp.eq.s32.totalorder %v22903_v20, %v30669_v40  ;;  %vm12362_vm1 = vcmp.eq.s32.totalorder %v22906_v21, %v30669_v40 }
 0x390   :  { %19562 = vmatmul.mubr.msk.f32.gmra.mrb[6].mxu0 %vm2803_vm12, %v30374_v27  ;;  %19590 = vmatmul.mubr.msk.f32.gmra.mrb[38].mxu1 %vm2803_vm12, %v30374_v27  ;;  %vm21729_vm11 = vmpackc.low %vm12294_vm4, %vm12260_vm3  ;;  %vm12395_vm3 = vcmp.eq.s32.totalorder %v22929_v22, %v30620_v33  ;;  %vm12429_vm4 = vcmp.eq.s32.totalorder %v22932_v23, %v30620_v33  ;;  %v31375_v33 = vld [vmem:[%s31975_s1 + $0x90] sm:$0xff] }
 0x391   :  { %21706 = vmatpush1.bf16.msk.msra.mxu0 %vm21705_vm8, %v22744_v15  ;;  %21730 = vmatpush1.bf16.msk.msra.mxu1 %vm21729_vm11, %v22744_v15  ;;  %vm21707_vm15 = vmpackc.low %vm12361_vm7, %vm12327_vm6  ;;  %vm12397_vm6 = vcmp.eq.s32.totalorder %v22929_v22, %v30635_v35  ;;  %vm12431_vm7 = vcmp.eq.s32.totalorder %v22932_v23, %v30635_v35  ;;  %v22713_v35 = vld [vmem:[%s31974_s0 + $0xe8] sm:$0x1f] }
 0x392   :  { %21708 = vmatprep.subr.msk.bf16.mxu0 %vm21707_vm15, %v22744_v15  ;;  %vm21731_vm2 = vmpackc.low %vm12363_vm10, %vm12329_vm9  ;;  %13881 = vmatprep.mubr.f32.mxu0 %v22743_v3  ;;  %vm12394_vm9 = vcmp.eq.s32.totalorder %v22929_v22, %v30651_v42  ;;  %vm12428_vm10 = vcmp.eq.s32.totalorder %v22932_v23, %v30651_v42  ;;  %v31447_v41 = vrot.slane %v22713_v35, %v29936_v26  ;;  %v22714_v42 = vld [vmem:[%s31974_s0 + $0xf8] sm:$0x1f] }
 0x393   :  { %21732 = vmatprep.subr.msk.bf16.mxu1 %vm21731_vm2, %v22744_v15  ;;  %vm21709_vm5 = vmpackc.low %vm12360_vm14, %vm12326_vm13  ;;  %13970 = vmatprep.mubr.f32.mxu1 %v22743_v3  ;;  %vm12396_vm13 = vcmp.eq.s32.totalorder %v22929_v22, %v30669_v40  ;;  %vm12430_vm14 = vcmp.eq.s32.totalorder %v22932_v23, %v30669_v40  ;;  %v31462_v50 = vrot.slane %v22714_v42, %v29936_v26  ;;  %v15060_v40 = vld [vmem:[%s31976_s2] sm:$0xff] }
 0x394   :  { %vm21733_vm8 = vmpackc.low %vm12362_vm1, %vm12328_vm0  ;;  %vm12059_vm0 = vcmp.eq.s32.totalorder %v22792_v2, %v30815_v54  ;;  %vm12093_vm1 = vcmp.eq.s32.totalorder %v22806_v7, %v30815_v54  ;;  %15066 = vperm.xlu0 %22525, %v15060_v40  }
 0x395   :  { %21710 = vmatpush1.bf16.msk.msra.mxu0 %vm21709_vm5, %v22744_v15  ;;  %21734 = vmatpush1.bf16.msk.msra.mxu1 %vm21733_vm8, %v22744_v15  ;;  %vm21711_vm11 = vmpackc.low %vm12429_vm4, %vm12395_vm3  ;;  %vm12061_vm3 = vcmp.eq.s32.totalorder %v22792_v2, %v30830_v36  ;;  %vm12095_vm4 = vcmp.eq.s32.totalorder %v22806_v7, %v30830_v36 }
 0x396   :  { %21712 = vmatprep.subr.msk.bf16.mxu0 %vm21711_vm11, %v22744_v15  ;;  %vm21735_vm15 = vmpackc.low %vm12431_vm7, %vm12397_vm6  ;;  %vm12058_vm6 = vcmp.eq.s32.totalorder %v22792_v2, %v30846_v39  ;;  %vm12092_vm7 = vcmp.eq.s32.totalorder %v22806_v7, %v30846_v39 }
 0x397   :  { %21736 = vmatprep.subr.msk.bf16.mxu1 %vm21735_vm15, %v22744_v15  ;;  %vm21713_vm2 = vmpackc.low %vm12428_vm10, %vm12394_vm9  ;;  %vm12060_vm9 = vcmp.eq.s32.totalorder %v22792_v2, %v30864_v56  ;;  %vm12094_vm10 = vcmp.eq.s32.totalorder %v22806_v7, %v30864_v56 }
 0x398   :  { %vm21737_vm5 = vmpackc.low %vm12430_vm14, %vm12396_vm13  ;;  %vm12127_vm13 = vcmp.eq.s32.totalorder %v22812_v9, %v30815_v54  ;;  %vm12161_vm14 = vcmp.eq.s32.totalorder %v22815_v10, %v30815_v54  ;;  %15071 = vperm.xlu0 %22525, %v15061_v55  }
 0x399   :  { %21714 = vmatpush1.bf16.msk.msra.mxu0 %vm21713_vm2, %v22744_v15  ;;  %21738 = vmatpush1.bf16.msk.msra.mxu1 %vm21737_vm5, %v22744_v15  ;;  %vm21739_vm8 = vmpackc.low %vm12093_vm1, %vm12059_vm0  ;;  %vm12129_vm0 = vcmp.eq.s32.totalorder %v22812_v9, %v30830_v36  ;;  %vm12163_vm1 = vcmp.eq.s32.totalorder %v22815_v10, %v30830_v36 }
 0x39a   :  { %21740 = vmatprep.subr.msk.bf16.mxu0 %vm21739_vm8, %v22744_v15  ;;  %vm21763_vm11 = vmpackc.low %vm12095_vm4, %vm12061_vm3  ;;  %vm12126_vm3 = vcmp.eq.s32.totalorder %v22812_v9, %v30846_v39  ;;  %vm12160_vm4 = vcmp.eq.s32.totalorder %v22815_v10, %v30846_v39 }
 0x39b   :  { %21764 = vmatprep.subr.msk.bf16.mxu1 %vm21763_vm11, %v22744_v15  ;;  %vm21741_vm15 = vmpackc.low %vm12092_vm7, %vm12058_vm6  ;;  %vm12128_vm6 = vcmp.eq.s32.totalorder %v22812_v9, %v30864_v56  ;;  %vm12162_vm7 = vcmp.eq.s32.totalorder %v22815_v10, %v30864_v56 }
 0x39c   :  { %19615 = vmatmul.mubr.msk.f32.vlgmr.msra.gmra.mrb[8].mxu0 %vm2803_vm12, %v30268_v0  ;;  %19643 = vmatmul.mubr.msk.f32.vlgmr.msra.gmra.mrb[40].mxu1 %vm2803_vm12, %v30268_v0  ;;  %vm21765_vm2 = vmpackc.low %vm12094_vm10, %vm12060_vm9  ;;  %vm12195_vm9 = vcmp.eq.s32.totalorder %v22851_v16, %v30815_v54  ;;  %vm12229_vm10 = vcmp.eq.s32.totalorder %v22854_v17, %v30815_v54 }
 0x39d   :  { %21742 = vmatpush1.bf16.msk.msra.mxu0 %vm21741_vm15, %v22744_v15  ;;  %21766 = vmatpush1.bf16.msk.msra.mxu1 %vm21765_vm2, %v22744_v15  ;;  %vm21743_vm5 = vmpackc.low %vm12161_vm14, %vm12127_vm13  ;;  %vm12197_vm13 = vcmp.eq.s32.totalorder %v22851_v16, %v30830_v36  ;;  %vm12231_vm14 = vcmp.eq.s32.totalorder %v22854_v17, %v30830_v36 }
 0x39e   :  { %13887 = vmatprep.mubr.f32.mxu0 %v22743_v3  ;;  %13976 = vmatprep.mubr.f32.mxu1 %v22743_v3  ;;  %vm21767_vm8 = vmpackc.low %vm12163_vm1, %vm12129_vm0  ;;  %vm12194_vm0 = vcmp.eq.s32.totalorder %v22851_v16, %v30846_v39  ;;  %vm12228_vm1 = vcmp.eq.s32.totalorder %v22854_v17, %v30846_v39 }
 0x39f   :  { %21744 = vmatprep.subr.msk.bf16.mxu0 %vm21743_vm5, %v22744_v15  ;;  %21768 = vmatprep.subr.msk.bf16.mxu1 %vm21767_vm8, %v22744_v15  ;;  %vm21745_vm11 = vmpackc.low %vm12160_vm4, %vm12126_vm3  ;;  %vm12196_vm3 = vcmp.eq.s32.totalorder %v22851_v16, %v30864_v56  ;;  %vm12230_vm4 = vcmp.eq.s32.totalorder %v22854_v17, %v30864_v56 }
 0x3a0   :  { %19616 = vmatmul.mubr.msk.f32.gmra.mrb[10].mxu0 %vm2803_vm12, %v30297_v61  ;;  %19644 = vmatmul.mubr.msk.f32.gmra.mrb[42].mxu1 %vm2803_vm12, %v30297_v61  ;;  %vm21769_vm15 = vmpackc.low %vm12162_vm7, %vm12128_vm6  ;;  %vm12263_vm6 = vcmp.eq.s32.totalorder %v22877_v18, %v30815_v54  ;;  %vm12297_vm7 = vcmp.eq.s32.totalorder %v22880_v19, %v30815_v54 }
 0x3a1   :  { %21746 = vmatpush1.bf16.msk.msra.mxu0 %vm21745_vm11, %v22744_v15  ;;  %21770 = vmatpush1.bf16.msk.msra.mxu1 %vm21769_vm15, %v22744_v15  ;;  %vm21747_vm2 = vmpackc.low %vm12229_vm10, %vm12195_vm9  ;;  %vm12265_vm9 = vcmp.eq.s32.totalorder %v22877_v18, %v30830_v36  ;;  %vm12299_vm10 = vcmp.eq.s32.totalorder %v22880_v19, %v30830_v36 }
 0x3a2   :  { %13893 = vmatprep.mubr.f32.mxu0 %v22743_v3  ;;  %13982 = vmatprep.mubr.f32.mxu1 %v22743_v3  ;;  %vm21771_vm5 = vmpackc.low %vm12231_vm14, %vm12197_vm13  ;;  %vm12262_vm13 = vcmp.eq.s32.totalorder %v22877_v18, %v30846_v39  ;;  %vm12296_vm14 = vcmp.eq.s32.totalorder %v22880_v19, %v30846_v39 }
 0x3a3   :  { %21748 = vmatprep.subr.msk.bf16.mxu0 %vm21747_vm2, %v22744_v15  ;;  %21772 = vmatprep.subr.msk.bf16.mxu1 %vm21771_vm5, %v22744_v15  ;;  %vm21749_vm8 = vmpackc.low %vm12228_vm1, %vm12194_vm0  ;;  %vm12264_vm0 = vcmp.eq.s32.totalorder %v22877_v18, %v30864_v56  ;;  %vm12298_vm1 = vcmp.eq.s32.totalorder %v22880_v19, %v30864_v56 }
 0x3a4   :  { %19617 = vmatmul.mubr.msk.f32.gmra.mrb[12].mxu0 %vm2803_vm12, %v30334_v4  ;;  %19645 = vmatmul.mubr.msk.f32.gmra.mrb[44].mxu1 %vm2803_vm12, %v30334_v4  ;;  %vm21773_vm11 = vmpackc.low %vm12230_vm4, %vm12196_vm3  ;;  %vm12331_vm3 = vcmp.eq.s32.totalorder %v22903_v20, %v30815_v54  ;;  %vm12365_vm4 = vcmp.eq.s32.totalorder %v22906_v21, %v30815_v54 }
 0x3a5   :  { %21750 = vmatpush1.bf16.msk.msra.mxu0 %vm21749_vm8, %v22744_v15  ;;  %21774 = vmatpush1.bf16.msk.msra.mxu1 %vm21773_vm11, %v22744_v15  ;;  %vm21751_vm15 = vmpackc.low %vm12297_vm7, %vm12263_vm6  ;;  %vm12333_vm6 = vcmp.eq.s32.totalorder %v22903_v20, %v30830_v36  ;;  %vm12367_vm7 = vcmp.eq.s32.totalorder %v22906_v21, %v30830_v36 }
 0x3a6   :  { %13899 = vmatprep.mubr.f32.mxu0 %v22743_v3  ;;  %13988 = vmatprep.mubr.f32.mxu1 %v22743_v3  ;;  %vm21775_vm2 = vmpackc.low %vm12299_vm10, %vm12265_vm9  ;;  %vm12330_vm9 = vcmp.eq.s32.totalorder %v22903_v20, %v30846_v39  ;;  %vm12364_vm10 = vcmp.eq.s32.totalorder %v22906_v21, %v30846_v39 }
 0x3a7   :  { %21752 = vmatprep.subr.msk.bf16.mxu0 %vm21751_vm15, %v22744_v15  ;;  %21776 = vmatprep.subr.msk.bf16.mxu1 %vm21775_vm2, %v22744_v15  ;;  %vm21753_vm5 = vmpackc.low %vm12296_vm14, %vm12262_vm13  ;;  %vm12332_vm13 = vcmp.eq.s32.totalorder %v22903_v20, %v30864_v56  ;;  %vm12366_vm14 = vcmp.eq.s32.totalorder %v22906_v21, %v30864_v56 }
 0x3a8   :  { %19618 = vmatmul.mubr.msk.f32.gmra.mrb[14].mxu0 %vm2803_vm12, %v30374_v27  ;;  %19646 = vmatmul.mubr.msk.f32.gmra.mrb[46].mxu1 %vm2803_vm12, %v30374_v27  ;;  %vm21777_vm8 = vmpackc.low %vm12298_vm1, %vm12264_vm0  ;;  %vm12399_vm0 = vcmp.eq.s32.totalorder %v22929_v22, %v30815_v54  ;;  %vm12433_vm1 = vcmp.eq.s32.totalorder %v22932_v23, %v30815_v54  ;;  %v31481_v54 = vrot.slane %v22715_v53, %v29936_v26 }
 0x3a9   :  { %21754 = vmatpush1.bf16.msk.msra.mxu0 %vm21753_vm5, %v22744_v15  ;;  %21778 = vmatpush1.bf16.msk.msra.mxu1 %vm21777_vm8, %v22744_v15  ;;  %vm21755_vm11 = vmpackc.low %vm12365_vm4, %vm12331_vm3  ;;  %vm12401_vm3 = vcmp.eq.s32.totalorder %v22929_v22, %v30830_v36  ;;  %vm12435_vm4 = vcmp.eq.s32.totalorder %v22932_v23, %v30830_v36  ;;  %v22716_v36 = vld [vmem:[%s31974_s0 + $0xf0] sm:$0x1f] }
 0x3aa   :  { %21756 = vmatprep.subr.msk.bf16.mxu0 %vm21755_vm11, %v22744_v15  ;;  %vm21779_vm15 = vmpackc.low %vm12367_vm7, %vm12333_vm6  ;;  %14059 = vmatprep.mubr.f32.mxu0 %v22743_v3  ;;  %vm12398_vm6 = vcmp.eq.s32.totalorder %v22929_v22, %v30846_v39  ;;  %vm12432_vm7 = vcmp.eq.s32.totalorder %v22932_v23, %v30846_v39  ;;  %v31499_v37 = vrot.slane %v22716_v36, %v29936_v26  ;;  %v15062_v39 = vld [vmem:[%s31976_s2 + $0x10] sm:$0xff] }
 0x3ab   :  { %21780 = vmatprep.subr.msk.bf16.mxu1 %vm21779_vm15, %v22744_v15  ;;  %vm21757_vm2 = vmpackc.low %vm12364_vm10, %vm12330_vm9  ;;  %14148 = vmatprep.mubr.f32.mxu1 %v22743_v3  ;;  %vm12400_vm9 = vcmp.eq.s32.totalorder %v22929_v22, %v30864_v56  ;;  %vm12434_vm10 = vcmp.eq.s32.totalorder %v22932_v23, %v30864_v56  ;;  %v15063_v56 = vld [vmem:[%s31976_s2 + $0x18] sm:$0xff] }
 0x3ac   :  { %vm21781_vm5 = vmpackc.low %vm12366_vm14, %vm12332_vm13  ;;  %vm12063_vm13 = vcmp.eq.s32.totalorder %v22792_v2, %v31010_v8  ;;  %vm12097_vm14 = vcmp.eq.s32.totalorder %v22806_v7, %v31010_v8  ;;  %15076 = vperm.xlu1 %22526, %v15062_v39   ;;  %15248 = vperm.xlu0 %22525, %v15242_v57  }
 0x3ad   :  { %21758 = vmatpush1.bf16.msk.msra.mxu0 %vm21757_vm2, %v22744_v15  ;;  %21782 = vmatpush1.bf16.msk.msra.mxu1 %vm21781_vm5, %v22744_v15  ;;  %vm21759_vm8 = vmpackc.low %vm12433_vm1, %vm12399_vm0  ;;  %vm12065_vm0 = vcmp.eq.s32.totalorder %v22792_v2, %v31025_v63  ;;  %vm12099_vm1 = vcmp.eq.s32.totalorder %v22806_v7, %v31025_v63 }
 0x3ae   :  { %21760 = vmatprep.subr.msk.bf16.mxu0 %vm21759_vm8, %v22744_v15  ;;  %vm21783_vm11 = vmpackc.low %vm12435_vm4, %vm12401_vm3  ;;  %vm12062_vm3 = vcmp.eq.s32.totalorder %v22792_v2, %v31041_v28  ;;  %vm12096_vm4 = vcmp.eq.s32.totalorder %v22806_v7, %v31041_v28 }
 0x3af   :  { %21784 = vmatprep.subr.msk.bf16.mxu1 %vm21783_vm11, %v22744_v15  ;;  %vm21761_vm15 = vmpackc.low %vm12432_vm7, %vm12398_vm6  ;;  %vm12064_vm6 = vcmp.eq.s32.totalorder %v22792_v2, %v31059_v30  ;;  %vm12098_vm7 = vcmp.eq.s32.totalorder %v22806_v7, %v31059_v30 }
 0x3b0   :  { %vm21785_vm2 = vmpackc.low %vm12434_vm10, %vm12400_vm9  ;;  %vm12131_vm9 = vcmp.eq.s32.totalorder %v22812_v9, %v31010_v8  ;;  %vm12165_vm10 = vcmp.eq.s32.totalorder %v22815_v10, %v31010_v8  ;;  %15081 = vperm.xlu1 %22526, %v15063_v56  }
 0x3b1   :  { %21762 = vmatpush1.bf16.msk.msra.mxu0 %vm21761_vm15, %v22744_v15  ;;  %21786 = vmatpush1.bf16.msk.msra.mxu1 %vm21785_vm2, %v22744_v15  ;;  %vm21787_vm5 = vmpackc.low %vm12097_vm14, %vm12063_vm13  ;;  %vm12133_vm13 = vcmp.eq.s32.totalorder %v22812_v9, %v31025_v63  ;;  %vm12167_vm14 = vcmp.eq.s32.totalorder %v22815_v10, %v31025_v63 }
 0x3b2   :  { %21788 = vmatprep.subr.msk.bf16.mxu0 %vm21787_vm5, %v22744_v15  ;;  %vm21811_vm8 = vmpackc.low %vm12099_vm1, %vm12065_vm0  ;;  %vm12130_vm0 = vcmp.eq.s32.totalorder %v22812_v9, %v31041_v28  ;;  %vm12164_vm1 = vcmp.eq.s32.totalorder %v22815_v10, %v31041_v28 }
 0x3b3   :  { %21812 = vmatprep.subr.msk.bf16.mxu1 %vm21811_vm8, %v22744_v15  ;;  %vm21789_vm11 = vmpackc.low %vm12096_vm4, %vm12062_vm3  ;;  %vm12132_vm3 = vcmp.eq.s32.totalorder %v22812_v9, %v31059_v30  ;;  %vm12166_vm4 = vcmp.eq.s32.totalorder %v22815_v10, %v31059_v30 }
 0x3b4   :  { %19671 = vmatmul.mubr.msk.f32.vlgmr.msra.gmra.mrb[16].mxu0 %vm2803_vm12, %v30268_v0  ;;  %19699 = vmatmul.mubr.msk.f32.vlgmr.msra.gmra.mrb[48].mxu1 %vm2803_vm12, %v30268_v0  ;;  %vm21813_vm15 = vmpackc.low %vm12098_vm7, %vm12064_vm6  ;;  %vm12199_vm6 = vcmp.eq.s32.totalorder %v22851_v16, %v31010_v8  ;;  %vm12233_vm7 = vcmp.eq.s32.totalorder %v22854_v17, %v31010_v8  ;;  %v22705_v0 = vld [vmem:[%s31974_s0 + $0xc8] sm:$0x1f] }
 0x3b5   :  { %21790 = vmatpush1.bf16.msk.msra.mxu0 %vm21789_vm11, %v22744_v15  ;;  %21814 = vmatpush1.bf16.msk.msra.mxu1 %vm21813_vm15, %v22744_v15  ;;  %vm21791_vm2 = vmpackc.low %vm12165_vm10, %vm12131_vm9  ;;  %vm12201_vm9 = vcmp.eq.s32.totalorder %v22851_v16, %v31025_v63  ;;  %vm12235_vm10 = vcmp.eq.s32.totalorder %v22854_v17, %v31025_v63 }
 0x3b6   :  { %14065 = vmatprep.mubr.f32.mxu0 %v22743_v3  ;;  %14154 = vmatprep.mubr.f32.mxu1 %v22743_v3  ;;  %vm21815_vm5 = vmpackc.low %vm12167_vm14, %vm12133_vm13  ;;  %vm12198_vm13 = vcmp.eq.s32.totalorder %v22851_v16, %v31041_v28  ;;  %vm12232_vm14 = vcmp.eq.s32.totalorder %v22854_v17, %v31041_v28 }
 0x3b7   :  { %21792 = vmatprep.subr.msk.bf16.mxu0 %vm21791_vm2, %v22744_v15  ;;  %21816 = vmatprep.subr.msk.bf16.mxu1 %vm21815_vm5, %v22744_v15  ;;  %vm21793_vm8 = vmpackc.low %vm12164_vm1, %vm12130_vm0  ;;  %vm12200_vm0 = vcmp.eq.s32.totalorder %v22851_v16, %v31059_v30  ;;  %vm12234_vm1 = vcmp.eq.s32.totalorder %v22854_v17, %v31059_v30 }
 0x3b8   :  { %19672 = vmatmul.mubr.msk.f32.gmra.mrb[18].mxu0 %vm2803_vm12, %v30297_v61  ;;  %19700 = vmatmul.mubr.msk.f32.gmra.mrb[50].mxu1 %vm2803_vm12, %v30297_v61  ;;  %vm21817_vm11 = vmpackc.low %vm12166_vm4, %vm12132_vm3  ;;  %vm12267_vm3 = vcmp.eq.s32.totalorder %v22877_v18, %v31010_v8  ;;  %vm12301_vm4 = vcmp.eq.s32.totalorder %v22880_v19, %v31010_v8  ;;  %v31205_v61 = vrot.slane %v22705_v0, %v29936_v26 }
 0x3b9   :  { %21794 = vmatpush1.bf16.msk.msra.mxu0 %vm21793_vm8, %v22744_v15  ;;  %21818 = vmatpush1.bf16.msk.msra.mxu1 %vm21817_vm11, %v22744_v15  ;;  %vm21795_vm15 = vmpackc.low %vm12233_vm7, %vm12199_vm6  ;;  %vm12269_vm6 = vcmp.eq.s32.totalorder %v22877_v18, %v31025_v63  ;;  %vm12303_vm7 = vcmp.eq.s32.totalorder %v22880_v19, %v31025_v63 }
 0x3ba   :  { %14071 = vmatprep.mubr.f32.mxu0 %v22743_v3  ;;  %14160 = vmatprep.mubr.f32.mxu1 %v22743_v3  ;;  %vm21819_vm2 = vmpackc.low %vm12235_vm10, %vm12201_vm9  ;;  %vm12266_vm9 = vcmp.eq.s32.totalorder %v22877_v18, %v31041_v28  ;;  %vm12300_vm10 = vcmp.eq.s32.totalorder %v22880_v19, %v31041_v28 }
 0x3bb   :  { %21796 = vmatprep.subr.msk.bf16.mxu0 %vm21795_vm15, %v22744_v15  ;;  %21820 = vmatprep.subr.msk.bf16.mxu1 %vm21819_vm2, %v22744_v15  ;;  %vm21797_vm5 = vmpackc.low %vm12232_vm14, %vm12198_vm13  ;;  %vm12268_vm13 = vcmp.eq.s32.totalorder %v22877_v18, %v31059_v30  ;;  %vm12302_vm14 = vcmp.eq.s32.totalorder %v22880_v19, %v31059_v30 }
 0x3bc   :  { %19673 = vmatmul.mubr.msk.f32.gmra.mrb[20].mxu0 %vm2803_vm12, %v30334_v4  ;;  %19701 = vmatmul.mubr.msk.f32.gmra.mrb[52].mxu1 %vm2803_vm12, %v30334_v4  ;;  %vm21821_vm8 = vmpackc.low %vm12234_vm1, %vm12200_vm0  ;;  %vm12335_vm0 = vcmp.eq.s32.totalorder %v22903_v20, %v31010_v8  ;;  %vm12369_vm1 = vcmp.eq.s32.totalorder %v22906_v21, %v31010_v8  ;;  %v22706_v4 = vld [vmem:[%s31974_s0 + $0xd8] sm:$0x1f] }
 0x3bd   :  { %21798 = vmatpush1.bf16.msk.msra.mxu0 %vm21797_vm5, %v22744_v15  ;;  %21822 = vmatpush1.bf16.msk.msra.mxu1 %vm21821_vm8, %v22744_v15  ;;  %vm21799_vm11 = vmpackc.low %vm12301_vm4, %vm12267_vm3  ;;  %vm12337_vm3 = vcmp.eq.s32.totalorder %v22903_v20, %v31025_v63  ;;  %vm12371_vm4 = vcmp.eq.s32.totalorder %v22906_v21, %v31025_v63 }
 0x3be   :  { %14077 = vmatprep.mubr.f32.mxu0 %v22743_v3  ;;  %14166 = vmatprep.mubr.f32.mxu1 %v22743_v3  ;;  %vm21823_vm15 = vmpackc.low %vm12303_vm7, %vm12269_vm6  ;;  %vm12334_vm6 = vcmp.eq.s32.totalorder %v22903_v20, %v31041_v28  ;;  %vm12368_vm7 = vcmp.eq.s32.totalorder %v22906_v21, %v31041_v28 }
 0x3bf   :  { %21800 = vmatprep.subr.msk.bf16.mxu0 %vm21799_vm11, %v22744_v15  ;;  %21824 = vmatprep.subr.msk.bf16.mxu1 %vm21823_vm15, %v22744_v15  ;;  %vm21801_vm2 = vmpackc.low %vm12300_vm10, %vm12266_vm9  ;;  %vm12336_vm9 = vcmp.eq.s32.totalorder %v22903_v20, %v31059_v30  ;;  %vm12370_vm10 = vcmp.eq.s32.totalorder %v22906_v21, %v31059_v30 }
 0x3c0   :  { %19674 = vmatmul.mubr.msk.f32.gmra.mrb[22].mxu0 %vm2803_vm12, %v30374_v27  ;;  %19702 = vmatmul.mubr.msk.f32.gmra.mrb[54].mxu1 %vm2803_vm12, %v30374_v27  ;;  %vm21825_vm5 = vmpackc.low %vm12302_vm14, %vm12268_vm13  ;;  %vm12403_vm13 = vcmp.eq.s32.totalorder %v22929_v22, %v31010_v8  ;;  %vm12437_vm14 = vcmp.eq.s32.totalorder %v22932_v23, %v31010_v8  ;;  %v31220_v27 = vrot.slane %v22706_v4, %v29936_v26  ;;  %v15243_v8 = vld [vmem:[%s31980_s6 + $0x8] sm:$0xff] }
 0x3c1   :  { %21802 = vmatpush1.bf16.msk.msra.mxu0 %vm21801_vm2, %v22744_v15  ;;  %21826 = vmatpush1.bf16.msk.msra.mxu1 %vm21825_vm5, %v22744_v15  ;;  %vm21803_vm8 = vmpackc.low %vm12369_vm1, %vm12335_vm0  ;;  %vm12405_vm0 = vcmp.eq.s32.totalorder %v22929_v22, %v31025_v63  ;;  %vm12439_vm1 = vcmp.eq.s32.totalorder %v22932_v23, %v31025_v63  ;;  %v31684_v63 = vrot.slane %v22717_v62, %v29936_v26 }
 0x3c2   :  { %21804 = vmatprep.subr.msk.bf16.mxu0 %vm21803_vm8, %v22744_v15  ;;  %vm21827_vm11 = vmpackc.low %vm12371_vm4, %vm12337_vm3  ;;  %14237 = vmatprep.mubr.f32.mxu0 %v22743_v3  ;;  %vm12402_vm3 = vcmp.eq.s32.totalorder %v22929_v22, %v31041_v28  ;;  %vm12436_vm4 = vcmp.eq.s32.totalorder %v22932_v23, %v31041_v28  ;;  %v31702_v28 = vrot.slane %v22718_v32, %v29936_v26  ;;  %v15244_v26 = vld [vmem:[%s31980_s6 + $0x10] sm:$0xff] }
 0x3c3   :  { %21828 = vmatprep.subr.msk.bf16.mxu1 %vm21827_vm11, %v22744_v15  ;;  %vm21805_vm15 = vmpackc.low %vm12368_vm7, %vm12334_vm6  ;;  %14326 = vmatprep.mubr.f32.mxu1 %v22743_v3  ;;  %vm12404_vm6 = vcmp.eq.s32.totalorder %v22929_v22, %v31059_v30  ;;  %vm12438_vm7 = vcmp.eq.s32.totalorder %v22932_v23, %v31059_v30 }
 0x3c4   :  { %vm21829_vm2 = vmpackc.low %vm12370_vm10, %vm12336_vm9  ;;  %vm12067_vm9 = vcmp.eq.s32.totalorder %v22792_v2, %v31205_v61  ;;  %vm12101_vm10 = vcmp.eq.s32.totalorder %v22806_v7, %v31205_v61  ;;  %15253 = vperm.xlu1 %22526, %v15243_v8   ;;  %15258 = vperm.xlu0 %22525, %v15244_v26  }
 0x3c5   :  { %21806 = vmatpush1.bf16.msk.msra.mxu0 %vm21805_vm15, %v22744_v15  ;;  %21830 = vmatpush1.bf16.msk.msra.mxu1 %vm21829_vm2, %v22744_v15  ;;  %vm21807_vm5 = vmpackc.low %vm12437_vm14, %vm12403_vm13  ;;  %vm12069_vm13 = vcmp.eq.s32.totalorder %v22792_v2, %v31220_v27  ;;  %vm12103_vm14 = vcmp.eq.s32.totalorder %v22806_v7, %v31220_v27 }
 0x3c6   :  { %21808 = vmatprep.subr.msk.bf16.mxu0 %vm21807_vm5, %v22744_v15  ;;  %vm21831_vm8 = vmpackc.low %vm12439_vm1, %vm12405_vm0  ;;  %vm12066_vm0 = vcmp.eq.s32.totalorder %v22792_v2, %v31236_v58  ;;  %vm12100_vm1 = vcmp.eq.s32.totalorder %v22806_v7, %v31236_v58 }
 0x3c7   :  { %21832 = vmatprep.subr.msk.bf16.mxu1 %vm21831_vm8, %v22744_v15  ;;  %vm21809_vm11 = vmpackc.low %vm12436_vm4, %vm12402_vm3  ;;  %vm12068_vm3 = vcmp.eq.s32.totalorder %v22792_v2, %v31254_v59  ;;  %vm12102_vm4 = vcmp.eq.s32.totalorder %v22806_v7, %v31254_v59 }
 0x3c8   :  { %vm21833_vm15 = vmpackc.low %vm12438_vm7, %vm12404_vm6  ;;  %vm12135_vm6 = vcmp.eq.s32.totalorder %v22812_v9, %v31205_v61  ;;  %vm12169_vm7 = vcmp.eq.s32.totalorder %v22815_v10, %v31205_v61  ;;  %15263 = vperm.xlu1 %22526, %v15245_v29  }
 0x3c9   :  { %21810 = vmatpush1.bf16.msk.msra.mxu0 %vm21809_vm11, %v22744_v15  ;;  %21834 = vmatpush1.bf16.msk.msra.mxu1 %vm21833_vm15, %v22744_v15  ;;  %vm21835_vm2 = vmpackc.low %vm12101_vm10, %vm12067_vm9  ;;  %vm12137_vm9 = vcmp.eq.s32.totalorder %v22812_v9, %v31220_v27  ;;  %vm12171_vm10 = vcmp.eq.s32.totalorder %v22815_v10, %v31220_v27 }
 0x3ca   :  { %21836 = vmatprep.subr.msk.bf16.mxu0 %vm21835_vm2, %v22744_v15  ;;  %vm21859_vm5 = vmpackc.low %vm12103_vm14, %vm12069_vm13  ;;  %vm12134_vm13 = vcmp.eq.s32.totalorder %v22812_v9, %v31236_v58  ;;  %vm12168_vm14 = vcmp.eq.s32.totalorder %v22815_v10, %v31236_v58 }
 0x3cb   :  { %21860 = vmatprep.subr.msk.bf16.mxu1 %vm21859_vm5, %v22744_v15  ;;  %vm21837_vm8 = vmpackc.low %vm12100_vm1, %vm12066_vm0  ;;  %vm12136_vm0 = vcmp.eq.s32.totalorder %v22812_v9, %v31254_v59  ;;  %vm12170_vm1 = vcmp.eq.s32.totalorder %v22815_v10, %v31254_v59 }
 0x3cc   :  { %19727 = vmatmul.mubr.msk.f32.vlgmr.msra.gmra.mrb[24].mxu0 %vm2803_vm12, %v31301_v60  ;;  %19755 = vmatmul.mubr.msk.f32.vlgmr.msra.gmra.mrb[56].mxu1 %vm2803_vm12, %v31301_v60  ;;  %vm21861_vm11 = vmpackc.low %vm12102_vm4, %vm12068_vm3  ;;  %vm12203_vm3 = vcmp.eq.s32.totalorder %v22851_v16, %v31205_v61  ;;  %vm12237_vm4 = vcmp.eq.s32.totalorder %v22854_v17, %v31205_v61 }
 0x3cd   :  { %21838 = vmatpush1.bf16.msk.msra.mxu0 %vm21837_vm8, %v22744_v15  ;;  %21862 = vmatpush1.bf16.msk.msra.mxu1 %vm21861_vm11, %v22744_v15  ;;  %vm21839_vm15 = vmpackc.low %vm12169_vm7, %vm12135_vm6  ;;  %vm12205_vm6 = vcmp.eq.s32.totalorder %v22851_v16, %v31220_v27  ;;  %vm12239_vm7 = vcmp.eq.s32.totalorder %v22854_v17, %v31220_v27 }
 0x3ce   :  { %14243 = vmatprep.mubr.f32.mxu0 %v22743_v3  ;;  %14332 = vmatprep.mubr.f32.mxu1 %v22743_v3  ;;  %vm21863_vm2 = vmpackc.low %vm12171_vm10, %vm12137_vm9  ;;  %vm12202_vm9 = vcmp.eq.s32.totalorder %v22851_v16, %v31236_v58  ;;  %vm12236_vm10 = vcmp.eq.s32.totalorder %v22854_v17, %v31236_v58 }
 0x3cf   :  { %21840 = vmatprep.subr.msk.bf16.mxu0 %vm21839_vm15, %v22744_v15  ;;  %21864 = vmatprep.subr.msk.bf16.mxu1 %vm21863_vm2, %v22744_v15  ;;  %vm21841_vm5 = vmpackc.low %vm12168_vm14, %vm12134_vm13  ;;  %vm12204_vm13 = vcmp.eq.s32.totalorder %v22851_v16, %v31254_v59  ;;  %vm12238_vm14 = vcmp.eq.s32.totalorder %v22854_v17, %v31254_v59 }
 0x3d0   :  { %19728 = vmatmul.mubr.msk.f32.gmra.mrb[26].mxu0 %vm2803_vm12, %v31335_v31  ;;  %19756 = vmatmul.mubr.msk.f32.gmra.mrb[58].mxu1 %vm2803_vm12, %v31335_v31  ;;  %vm21865_vm8 = vmpackc.low %vm12170_vm1, %vm12136_vm0  ;;  %vm12271_vm0 = vcmp.eq.s32.totalorder %v22877_v18, %v31205_v61  ;;  %vm12305_vm1 = vcmp.eq.s32.totalorder %v22880_v19, %v31205_v61 }
 0x3d1   :  { %21842 = vmatpush1.bf16.msk.msra.mxu0 %vm21841_vm5, %v22744_v15  ;;  %21866 = vmatpush1.bf16.msk.msra.mxu1 %vm21865_vm8, %v22744_v15  ;;  %vm21843_vm11 = vmpackc.low %vm12237_vm4, %vm12203_vm3  ;;  %vm12273_vm3 = vcmp.eq.s32.totalorder %v22877_v18, %v31220_v27  ;;  %vm12307_vm4 = vcmp.eq.s32.totalorder %v22880_v19, %v31220_v27 }
 0x3d2   :  { %14249 = vmatprep.mubr.f32.mxu0 %v22743_v3  ;;  %14338 = vmatprep.mubr.f32.mxu1 %v22743_v3  ;;  %vm21867_vm15 = vmpackc.low %vm12239_vm7, %vm12205_vm6  ;;  %vm12270_vm6 = vcmp.eq.s32.totalorder %v22877_v18, %v31236_v58  ;;  %vm12304_vm7 = vcmp.eq.s32.totalorder %v22880_v19, %v31236_v58 }
 0x3d3   :  { %21844 = vmatprep.subr.msk.bf16.mxu0 %vm21843_vm11, %v22744_v15  ;;  %21868 = vmatprep.subr.msk.bf16.mxu1 %vm21867_vm15, %v22744_v15  ;;  %vm21845_vm2 = vmpackc.low %vm12236_vm10, %vm12202_vm9  ;;  %vm12272_vm9 = vcmp.eq.s32.totalorder %v22877_v18, %v31254_v59  ;;  %vm12306_vm10 = vcmp.eq.s32.totalorder %v22880_v19, %v31254_v59 }
 0x3d4   :  { %19729 = vmatmul.mubr.msk.f32.gmra.mrb[28].mxu0 %vm2803_vm12, %v31375_v33  ;;  %19757 = vmatmul.mubr.msk.f32.gmra.mrb[60].mxu1 %vm2803_vm12, %v31375_v33  ;;  %vm21869_vm5 = vmpackc.low %vm12238_vm14, %vm12204_vm13  ;;  %vm12339_vm13 = vcmp.eq.s32.totalorder %v22903_v20, %v31205_v61  ;;  %vm12373_vm14 = vcmp.eq.s32.totalorder %v22906_v21, %v31205_v61 }
 0x3d5   :  { %21846 = vmatpush1.bf16.msk.msra.mxu0 %vm21845_vm2, %v22744_v15  ;;  %21870 = vmatpush1.bf16.msk.msra.mxu1 %vm21869_vm5, %v22744_v15  ;;  %vm21847_vm8 = vmpackc.low %vm12305_vm1, %vm12271_vm0  ;;  %vm12341_vm0 = vcmp.eq.s32.totalorder %v22903_v20, %v31220_v27  ;;  %vm12375_vm1 = vcmp.eq.s32.totalorder %v22906_v21, %v31220_v27 }
 0x3d6   :  { %14255 = vmatprep.mubr.f32.mxu0 %v22743_v3  ;;  %14344 = vmatprep.mubr.f32.mxu1 %v22743_v3  ;;  %vm21871_vm11 = vmpackc.low %vm12307_vm4, %vm12273_vm3  ;;  %vm12338_vm3 = vcmp.eq.s32.totalorder %v22903_v20, %v31236_v58  ;;  %vm12372_vm4 = vcmp.eq.s32.totalorder %v22906_v21, %v31236_v58 }
 0x3d7   :  { %21848 = vmatprep.subr.msk.bf16.mxu0 %vm21847_vm8, %v22744_v15  ;;  %21872 = vmatprep.subr.msk.bf16.mxu1 %vm21871_vm11, %v22744_v15  ;;  %vm21849_vm15 = vmpackc.low %vm12304_vm7, %vm12270_vm6  ;;  %vm12340_vm6 = vcmp.eq.s32.totalorder %v22903_v20, %v31254_v59  ;;  %vm12374_vm7 = vcmp.eq.s32.totalorder %v22906_v21, %v31254_v59 }
 0x3d8   :  { %19730 = vmatmul.mubr.msk.f32.gmra.mrb[30].mxu0 %vm2803_vm12, %v31415_v34  ;;  %19758 = vmatmul.mubr.msk.f32.gmra.mrb[62].mxu1 %vm2803_vm12, %v31415_v34  ;;  %vm21873_vm2 = vmpackc.low %vm12306_vm10, %vm12272_vm9  ;;  %vm12407_vm9 = vcmp.eq.s32.totalorder %v22929_v22, %v31205_v61  ;;  %vm12441_vm10 = vcmp.eq.s32.totalorder %v22932_v23, %v31205_v61 }
 0x3d9   :  { %21850 = vmatpush1.bf16.msk.msra.mxu0 %vm21849_vm15, %v22744_v15  ;;  %21874 = vmatpush1.bf16.msk.msra.mxu1 %vm21873_vm2, %v22744_v15  ;;  %vm21851_vm5 = vmpackc.low %vm12373_vm14, %vm12339_vm13  ;;  %vm12409_vm13 = vcmp.eq.s32.totalorder %v22929_v22, %v31220_v27  ;;  %vm12443_vm14 = vcmp.eq.s32.totalorder %v22932_v23, %v31220_v27 }
 0x3da   :  { %21852 = vmatprep.subr.msk.bf16.mxu0 %vm21851_vm5, %v22744_v15  ;;  %vm21875_vm8 = vmpackc.low %vm12375_vm1, %vm12341_vm0  ;;  %14415 = vmatprep.mubr.f32.mxu0 %v22743_v3  ;;  %vm12406_vm0 = vcmp.eq.s32.totalorder %v22929_v22, %v31236_v58  ;;  %vm12440_vm1 = vcmp.eq.s32.totalorder %v22932_v23, %v31236_v58 }
 0x3db   :  { %21876 = vmatprep.subr.msk.bf16.mxu1 %vm21875_vm8, %v22744_v15  ;;  %vm21853_vm11 = vmpackc.low %vm12372_vm4, %vm12338_vm3  ;;  %14504 = vmatprep.mubr.f32.mxu1 %v22743_v3  ;;  %vm12408_vm3 = vcmp.eq.s32.totalorder %v22929_v22, %v31254_v59  ;;  %vm12442_vm4 = vcmp.eq.s32.totalorder %v22932_v23, %v31254_v59 }
 0x3dc   :  { %vm21877_vm15 = vmpackc.low %vm12374_vm7, %vm12340_vm6  ;;  %vm12071_vm6 = vcmp.eq.s32.totalorder %v22792_v2, %v31447_v41  ;;  %vm12105_vm7 = vcmp.eq.s32.totalorder %v22806_v7, %v31447_v41 }
 0x3dd   :  { %21854 = vmatpush1.bf16.msk.msra.mxu0 %vm21853_vm11, %v22744_v15  ;;  %21878 = vmatpush1.bf16.msk.msra.mxu1 %vm21877_vm15, %v22744_v15  ;;  %vm21855_vm2 = vmpackc.low %vm12441_vm10, %vm12407_vm9  ;;  %vm12073_vm9 = vcmp.eq.s32.totalorder %v22792_v2, %v31462_v50  ;;  %vm12107_vm10 = vcmp.eq.s32.totalorder %v22806_v7, %v31462_v50 }
 0x3de   :  { %21856 = vmatprep.subr.msk.bf16.mxu0 %vm21855_vm2, %v22744_v15  ;;  %vm21879_vm5 = vmpackc.low %vm12443_vm14, %vm12409_vm13  ;;  %vm12070_vm13 = vcmp.eq.s32.totalorder %v22792_v2, %v31481_v54  ;;  %vm12104_vm14 = vcmp.eq.s32.totalorder %v22806_v7, %v31481_v54 }
 0x3df   :  { %21880 = vmatprep.subr.msk.bf16.mxu1 %vm21879_vm5, %v22744_v15  ;;  %vm21857_vm8 = vmpackc.low %vm12440_vm1, %vm12406_vm0  ;;  %vm12072_vm0 = vcmp.eq.s32.totalorder %v22792_v2, %v31499_v37  ;;  %vm12106_vm1 = vcmp.eq.s32.totalorder %v22806_v7, %v31499_v37 }
 0x3e0   :  { %vm21881_vm11 = vmpackc.low %vm12442_vm4, %vm12408_vm3  ;;  %vm12139_vm3 = vcmp.eq.s32.totalorder %v22812_v9, %v31447_v41  ;;  %vm12173_vm4 = vcmp.eq.s32.totalorder %v22815_v10, %v31447_v41 }
 0x3e1   :  { %21858 = vmatpush1.bf16.msk.msra.mxu0 %vm21857_vm8, %v22744_v15  ;;  %21882 = vmatpush1.bf16.msk.msra.mxu1 %vm21881_vm11, %v22744_v15  ;;  %vm21883_vm15 = vmpackc.low %vm12105_vm7, %vm12071_vm6  ;;  %vm12141_vm6 = vcmp.eq.s32.totalorder %v22812_v9, %v31462_v50  ;;  %vm12175_vm7 = vcmp.eq.s32.totalorder %v22815_v10, %v31462_v50 }
 0x3e2   :  { %21884 = vmatprep.subr.msk.bf16.mxu0 %vm21883_vm15, %v22744_v15  ;;  %vm21907_vm2 = vmpackc.low %vm12107_vm10, %vm12073_vm9  ;;  %vm12138_vm9 = vcmp.eq.s32.totalorder %v22812_v9, %v31481_v54  ;;  %vm12172_vm10 = vcmp.eq.s32.totalorder %v22815_v10, %v31481_v54 }
 0x3e3   :  { %21908 = vmatprep.subr.msk.bf16.mxu1 %vm21907_vm2, %v22744_v15  ;;  %vm21885_vm5 = vmpackc.low %vm12104_vm14, %vm12070_vm13  ;;  %vm12140_vm13 = vcmp.eq.s32.totalorder %v22812_v9, %v31499_v37  ;;  %vm12174_vm14 = vcmp.eq.s32.totalorder %v22815_v10, %v31499_v37 }
 0x3e4   :  { %19783 = vmatmul.mubr.msk.f32.vlgmr.msra.gmra.mrb[32].mxu0 %vm2803_vm12, %v31301_v60  ;;  %19811 = vmatmul.mubr.msk.f32.vlgmr.msra.gmra.mrb[64].mxu1 %vm2803_vm12, %v31301_v60  ;;  %vm21909_vm8 = vmpackc.low %vm12106_vm1, %vm12072_vm0  ;;  %vm12207_vm0 = vcmp.eq.s32.totalorder %v22851_v16, %v31447_v41  ;;  %vm12241_vm1 = vcmp.eq.s32.totalorder %v22854_v17, %v31447_v41 }
 0x3e5   :  { %21886 = vmatpush1.bf16.msk.msra.mxu0 %vm21885_vm5, %v22744_v15  ;;  %21910 = vmatpush1.bf16.msk.msra.mxu1 %vm21909_vm8, %v22744_v15  ;;  %vm21887_vm11 = vmpackc.low %vm12173_vm4, %vm12139_vm3  ;;  %vm12209_vm3 = vcmp.eq.s32.totalorder %v22851_v16, %v31462_v50  ;;  %vm12243_vm4 = vcmp.eq.s32.totalorder %v22854_v17, %v31462_v50 }
 0x3e6   :  { %14421 = vmatprep.mubr.f32.mxu0 %v22743_v3  ;;  %14510 = vmatprep.mubr.f32.mxu1 %v22743_v3  ;;  %vm21911_vm15 = vmpackc.low %vm12175_vm7, %vm12141_vm6  ;;  %vm12206_vm6 = vcmp.eq.s32.totalorder %v22851_v16, %v31481_v54  ;;  %vm12240_vm7 = vcmp.eq.s32.totalorder %v22854_v17, %v31481_v54 }
 0x3e7   :  { %21888 = vmatprep.subr.msk.bf16.mxu0 %vm21887_vm11, %v22744_v15  ;;  %21912 = vmatprep.subr.msk.bf16.mxu1 %vm21911_vm15, %v22744_v15  ;;  %vm21889_vm2 = vmpackc.low %vm12172_vm10, %vm12138_vm9  ;;  %vm12208_vm9 = vcmp.eq.s32.totalorder %v22851_v16, %v31499_v37  ;;  %vm12242_vm10 = vcmp.eq.s32.totalorder %v22854_v17, %v31499_v37 }
 0x3e8   :  { %19784 = vmatmul.mubr.msk.f32.gmra.mrb[34].mxu0 %vm2803_vm12, %v31335_v31  ;;  %19812 = vmatmul.mubr.msk.f32.gmra.mrb[66].mxu1 %vm2803_vm12, %v31335_v31  ;;  %vm21913_vm5 = vmpackc.low %vm12174_vm14, %vm12140_vm13  ;;  %vm12275_vm13 = vcmp.eq.s32.totalorder %v22877_v18, %v31447_v41  ;;  %vm12309_vm14 = vcmp.eq.s32.totalorder %v22880_v19, %v31447_v41 }
 0x3e9   :  { %21890 = vmatpush1.bf16.msk.msra.mxu0 %vm21889_vm2, %v22744_v15  ;;  %21914 = vmatpush1.bf16.msk.msra.mxu1 %vm21913_vm5, %v22744_v15  ;;  %vm21891_vm8 = vmpackc.low %vm12241_vm1, %vm12207_vm0  ;;  %vm12277_vm0 = vcmp.eq.s32.totalorder %v22877_v18, %v31462_v50  ;;  %vm12311_vm1 = vcmp.eq.s32.totalorder %v22880_v19, %v31462_v50 }
 0x3ea   :  { %14427 = vmatprep.mubr.f32.mxu0 %v22743_v3  ;;  %14516 = vmatprep.mubr.f32.mxu1 %v22743_v3  ;;  %vm21915_vm11 = vmpackc.low %vm12243_vm4, %vm12209_vm3  ;;  %vm12274_vm3 = vcmp.eq.s32.totalorder %v22877_v18, %v31481_v54  ;;  %vm12308_vm4 = vcmp.eq.s32.totalorder %v22880_v19, %v31481_v54 }
 0x3eb   :  { %21892 = vmatprep.subr.msk.bf16.mxu0 %vm21891_vm8, %v22744_v15  ;;  %21916 = vmatprep.subr.msk.bf16.mxu1 %vm21915_vm11, %v22744_v15  ;;  %vm21893_vm15 = vmpackc.low %vm12240_vm7, %vm12206_vm6  ;;  %vm12276_vm6 = vcmp.eq.s32.totalorder %v22877_v18, %v31499_v37  ;;  %vm12310_vm7 = vcmp.eq.s32.totalorder %v22880_v19, %v31499_v37 }
 0x3ec   :  { %19785 = vmatmul.mubr.msk.f32.gmra.mrb[36].mxu0 %vm2803_vm12, %v31375_v33  ;;  %19813 = vmatmul.mubr.msk.f32.gmra.mrb[68].mxu1 %vm2803_vm12, %v31375_v33  ;;  %vm21917_vm2 = vmpackc.low %vm12242_vm10, %vm12208_vm9  ;;  %vm12343_vm9 = vcmp.eq.s32.totalorder %v22903_v20, %v31447_v41  ;;  %vm12377_vm10 = vcmp.eq.s32.totalorder %v22906_v21, %v31447_v41 }
 0x3ed   :  { %21894 = vmatpush1.bf16.msk.msra.mxu0 %vm21893_vm15, %v22744_v15  ;;  %21918 = vmatpush1.bf16.msk.msra.mxu1 %vm21917_vm2, %v22744_v15  ;;  %vm21895_vm5 = vmpackc.low %vm12309_vm14, %vm12275_vm13  ;;  %vm12345_vm13 = vcmp.eq.s32.totalorder %v22903_v20, %v31462_v50  ;;  %vm12379_vm14 = vcmp.eq.s32.totalorder %v22906_v21, %v31462_v50 }
 0x3ee   :  { %14433 = vmatprep.mubr.f32.mxu0 %v22743_v3  ;;  %14522 = vmatprep.mubr.f32.mxu1 %v22743_v3  ;;  %vm21919_vm8 = vmpackc.low %vm12311_vm1, %vm12277_vm0  ;;  %vm12342_vm0 = vcmp.eq.s32.totalorder %v22903_v20, %v31481_v54  ;;  %vm12376_vm1 = vcmp.eq.s32.totalorder %v22906_v21, %v31481_v54 }
 0x3ef   :  { %21896 = vmatprep.subr.msk.bf16.mxu0 %vm21895_vm5, %v22744_v15  ;;  %21920 = vmatprep.subr.msk.bf16.mxu1 %vm21919_vm8, %v22744_v15  ;;  %vm21897_vm11 = vmpackc.low %vm12308_vm4, %vm12274_vm3  ;;  %vm12344_vm3 = vcmp.eq.s32.totalorder %v22903_v20, %v31499_v37  ;;  %vm12378_vm4 = vcmp.eq.s32.totalorder %v22906_v21, %v31499_v37 }
 0x3f0   :  { %19786 = vmatmul.mubr.msk.f32.gmra.mrb[38].mxu0 %vm2803_vm12, %v31415_v34  ;;  %19814 = vmatmul.mubr.msk.f32.gmra.mrb[70].mxu1 %vm2803_vm12, %v31415_v34  ;;  %vm21921_vm15 = vmpackc.low %vm12310_vm7, %vm12276_vm6  ;;  %vm12411_vm6 = vcmp.eq.s32.totalorder %v22929_v22, %v31447_v41  ;;  %vm12445_vm7 = vcmp.eq.s32.totalorder %v22932_v23, %v31447_v41 }
 0x3f1   :  { %21898 = vmatpush1.bf16.msk.msra.mxu0 %vm21897_vm11, %v22744_v15  ;;  %21922 = vmatpush1.bf16.msk.msra.mxu1 %vm21921_vm15, %v22744_v15  ;;  %vm21899_vm2 = vmpackc.low %vm12377_vm10, %vm12343_vm9  ;;  %vm12413_vm9 = vcmp.eq.s32.totalorder %v22929_v22, %v31462_v50  ;;  %vm12447_vm10 = vcmp.eq.s32.totalorder %v22932_v23, %v31462_v50 }
 0x3f2   :  { %21900 = vmatprep.subr.msk.bf16.mxu0 %vm21899_vm2, %v22744_v15  ;;  %vm21923_vm5 = vmpackc.low %vm12379_vm14, %vm12345_vm13  ;;  %14593 = vmatprep.mubr.f32.mxu0 %v22743_v3  ;;  %vm12410_vm13 = vcmp.eq.s32.totalorder %v22929_v22, %v31481_v54  ;;  %vm12444_vm14 = vcmp.eq.s32.totalorder %v22932_v23, %v31481_v54 }
 0x3f3   :  { %21924 = vmatprep.subr.msk.bf16.mxu1 %vm21923_vm5, %v22744_v15  ;;  %vm21901_vm8 = vmpackc.low %vm12376_vm1, %vm12342_vm0  ;;  %14682 = vmatprep.mubr.f32.mxu1 %v22743_v3  ;;  %vm12412_vm0 = vcmp.eq.s32.totalorder %v22929_v22, %v31499_v37  ;;  %vm12446_vm1 = vcmp.eq.s32.totalorder %v22932_v23, %v31499_v37 }
 0x3f4   :  { %vm21925_vm11 = vmpackc.low %vm12378_vm4, %vm12344_vm3  ;;  %vm12075_vm3 = vcmp.eq.s32.totalorder %v22792_v2, %v31684_v63  ;;  %vm12109_vm4 = vcmp.eq.s32.totalorder %v22806_v7, %v31684_v63 }
 0x3f5   :  { %21902 = vmatpush1.bf16.msk.msra.mxu0 %vm21901_vm8, %v22744_v15  ;;  %21926 = vmatpush1.bf16.msk.msra.mxu1 %vm21925_vm11, %v22744_v15  ;;  %vm21903_vm15 = vmpackc.low %vm12445_vm7, %vm12411_vm6  ;;  %vm12074_vm6 = vcmp.eq.s32.totalorder %v22792_v2, %v31702_v28  ;;  %vm12108_vm7 = vcmp.eq.s32.totalorder %v22806_v7, %v31702_v28  ;;  %v15104_v2 = vld [vmem:[%s31978_s4] sm:$0xff]  ;;  %v15105_v7 = vld [vmem:[%s31978_s4 + $0x8] sm:$0xff] }
 0x3f6   :  { %21904 = vmatprep.subr.msk.bf16.mxu0 %vm21903_vm15, %v22744_v15  ;;  %vm21927_vm2 = vmpackc.low %vm12447_vm10, %vm12413_vm9  ;;  %vm12143_vm9 = vcmp.eq.s32.totalorder %v22812_v9, %v31684_v63  ;;  %vm12177_vm10 = vcmp.eq.s32.totalorder %v22815_v10, %v31684_v63  ;;  %vm12142_vm15 = vcmp.eq.s32.totalorder %v22812_v9, %v31702_v28  ;;  %15110 = vperm.xlu0 %22525, %v15104_v2   ;;  %v15106_v9 = vld [vmem:[%s31978_s4 + $0x10] sm:$0xff] }
 0x3f7   :  { %21928 = vmatprep.subr.msk.bf16.mxu1 %vm21927_vm2, %v22744_v15  ;;  %vm21905_vm5 = vmpackc.low %vm12444_vm14, %vm12410_vm13  ;;  %vm12245_vm2 = vcmp.eq.s32.totalorder %v22854_v17, %v31684_v63  ;;  %15115 = vperm.xlu1 %22526, %v15105_v7  }
 0x3f8   :  { %vm21929_vm8 = vmpackc.low %vm12446_vm1, %vm12412_vm0  ;;  %vm12176_vm0 = vcmp.eq.s32.totalorder %v22815_v10, %v31702_v28  ;;  %vm12211_vm1 = vcmp.eq.s32.totalorder %v22851_v16, %v31684_v63  ;;  %v15107_v10 = vld [vmem:[%s31978_s4 + $0x18] sm:$0xff] }
 0x3f9   :  { %21906 = vmatpush1.bf16.msk.msra.mxu0 %vm21905_vm5, %v22744_v15  ;;  %21930 = vmatpush1.bf16.msk.msra.mxu1 %vm21929_vm8, %v22744_v15  ;;  %vm21931_vm11 = vmpackc.low %vm12109_vm4, %vm12075_vm3  ;;  %vm12210_vm5 = vcmp.eq.s32.totalorder %v22851_v16, %v31702_v28  ;;  %vm12313_vm8 = vcmp.eq.s32.totalorder %v22880_v19, %v31684_v63 }
 0x3fa   :  { %21932 = vmatprep.subr.msk.bf16.mxu0 %vm21931_vm11, %v22744_v15  ;;  %vm21933_vm13 = vmpackc.low %vm12108_vm7, %vm12074_vm6  ;;  %vm12244_vm6 = vcmp.eq.s32.totalorder %v22854_v17, %v31702_v28  ;;  %vm12279_vm7 = vcmp.eq.s32.totalorder %v22877_v18, %v31684_v63  ;;  %vm12278_vm11 = vcmp.eq.s32.totalorder %v22877_v18, %v31702_v28  ;;  %15120 = vperm.xlu0 %22525, %v15106_v9  }
 0x3fb   :  { %vm21935_vm14 = vmpackc.low %vm12177_vm10, %vm12143_vm9  ;;  %15125 = vperm.xlu1 %22526, %v15107_v10  }
 0x3fc   :  { %19839 = vmatmul.mubr.msk.f32.vlgmr.msra.gmra.mrb[40].mxu0 %vm2803_vm12, %v31301_v60  ;;  %19867 = vmatmul.mubr.msk.f32.vlgmr.msra.gmra.mrb[72].mxu1 %vm2803_vm12, %v31301_v60  ;;  %vm21937_vm3 = vmpackc.low %vm12176_vm0, %vm12142_vm15  ;;  %vm12381_vm15 = vcmp.eq.s32.totalorder %v22906_v21, %v31684_v63 }
 0x3fd   :  { %21934 = vmatpush1.bf16.msk.msra.mxu0 %vm21933_vm13, %v22744_v15  ;;  %14599 = vmatprep.mubr.f32.mxu0 %v22743_v3  ;;  %vm21939_vm4 = vmpackc.low %vm12245_vm2, %vm12211_vm1  ;;  %vm12312_vm13 = vcmp.eq.s32.totalorder %v22880_v19, %v31702_v28 }
 0x3fe   :  { %14688 = vmatprep.mubr.f32.mxu1 %v22743_v3  ;;  %21936 = vmatprep.subr.msk.bf16.mxu0 %vm21935_vm14, %v22744_v15  ;;  %vm21941_vm9 = vmpackc.low %vm12244_vm6, %vm12210_vm5  ;;  %vm12347_vm14 = vcmp.eq.s32.totalorder %v22903_v20, %v31684_v63 }
 0x3ff   :  { %vm21943_vm10 = vmpackc.low %vm12313_vm8, %vm12279_vm7 }
 0x400   :  { %19840 = vmatmul.mubr.msk.f32.gmra.mrb[42].mxu0 %vm2803_vm12, %v31335_v31  ;;  %19868 = vmatmul.mubr.msk.f32.gmra.mrb[74].mxu1 %vm2803_vm12, %v31335_v31 }
 0x401   :  { %21938 = vmatpush1.bf16.msk.msra.mxu0 %vm21937_vm3, %v22744_v15  ;;  %14605 = vmatprep.mubr.f32.mxu0 %v22743_v3 }
 0x402   :  { %14694 = vmatprep.mubr.f32.mxu1 %v22743_v3  ;;  %21940 = vmatprep.subr.msk.bf16.mxu0 %vm21939_vm4, %v22744_v15 }
 0x404   :  { %19841 = vmatmul.mubr.msk.f32.gmra.mrb[44].mxu0 %vm2803_vm12, %v31375_v33  ;;  %19869 = vmatmul.mubr.msk.f32.gmra.mrb[76].mxu1 %vm2803_vm12, %v31375_v33 }
 0x405   :  { %21942 = vmatpush1.bf16.msk.msra.mxu0 %vm21941_vm9, %v22744_v15  ;;  %14611 = vmatprep.mubr.f32.mxu0 %v22743_v3 }
 0x406   :  { %12 = vsyncpa [#allocation3], 0  ;;  %14700 = vmatprep.mubr.f32.mxu1 %v22743_v3  ;;  %21944 = vmatprep.subr.msk.bf16.mxu0 %vm21943_vm10, %v22744_v15  ;;  %vm12346_vm2 = vcmp.eq.s32.totalorder %v22903_v20, %v31702_v28  ;;  %vm12380_vm3 = vcmp.eq.s32.totalorder %v22906_v21, %v31702_v28  ;;  %vm12415_vm4 = vcmp.eq.s32.totalorder %v22929_v22, %v31684_v63 }
 0x407   :  { %vm21945_vm0 = vmpackc.low %vm12312_vm13, %vm12278_vm11  ;;  %vm12449_vm5 = vcmp.eq.s32.totalorder %v22932_v23, %v31684_v63  ;;  %vm12414_vm8 = vcmp.eq.s32.totalorder %v22929_v22, %v31702_v28  ;;  %vm12448_vm9 = vcmp.eq.s32.totalorder %v22932_v23, %v31702_v28 }
 0x408   :  { %vm21947_vm1 = vmpackc.low %vm12381_vm15, %vm12347_vm14  ;;  %19842 = vmatmul.mubr.msk.f32.gmra.mrb[46].mxu0 %vm2803_vm12, %v31415_v34  ;;  %19870 = vmatmul.mubr.msk.f32.gmra.mrb[78].mxu1 %vm2803_vm12, %v31415_v34 }
 0x409   :  { %21946 = vmatpush1.bf16.msk.msra.mxu0 %vm21945_vm0, %v22744_v15  ;;  %14771 = vmatprep.mubr.f32.mxu0 %v22743_v3  ;;  %vm21949_vm6 = vmpackc.low %vm12380_vm3, %vm12346_vm2 }
 0x40a   :  { %21948 = vmatprep.subr.msk.bf16.mxu0 %vm21947_vm1, %v22744_v15  ;;  %15211 = vmatprep.mubr.f32.mxu1 %v22743_v3  ;;  %vm21951_vm7 = vmpackc.low %vm12449_vm5, %vm12415_vm4 }
 0x40b   :  { %vm21953_vm10 = vmpackc.low %vm12448_vm9, %vm12414_vm8 }
 0x40d   :  { %21950 = vmatpush1.bf16.msk.msra.mxu0 %vm21949_vm6, %v22744_v15 }
 0x40e   :  { %21952 = vmatprep.subr.msk.bf16.mxu0 %vm21951_vm7, %v22744_v15 }
 0x411   :  { %21954 = vmatpush1.bf16.msk.msra.mxu0 %vm21953_vm10, %v22744_v15 }
 0x414   :  { %19895 = vmatmul.mubr.msk.f32.vlgmr.msra.gmra.mrb[48].mxu0 %vm2803_vm12, %v31301_v60 }
 0x415   :  { %14777 = vmatprep.mubr.f32.mxu0 %v22743_v3 }
 0x418   :  { %19896 = vmatmul.mubr.msk.f32.gmra.mrb[50].mxu0 %vm2803_vm12, %v31335_v31 }
 0x419   :  { %14783 = vmatprep.mubr.f32.mxu0 %v22743_v3 }
 0x41c   :  { %19897 = vmatmul.mubr.msk.f32.gmra.mrb[52].mxu0 %vm2803_vm12, %v31375_v33 }
 0x41d   :  { %14789 = vmatprep.mubr.f32.mxu0 %v22743_v3 }
 0x420   :  { %19898 = vmatmul.mubr.msk.f32.gmra.mrb[54].mxu0 %vm2803_vm12, %v31415_v34  ;;  %vm15128_vm12 = vcmask 261120  }
 0x421   :  { %15205 = vmatprep.mubr.f32.mxu0 %v22743_v3 }
 0x427   :  { %v13349_v15 = vpop.f32.mrb[56].mxu0  ;;  %v13438_v16 = vpop.f32.mrb[8].mxu1 }
 0x428   :  { %v21975_v17 = vadd.f32 %v13349_v15, %v24945_v5  ;;  %v13351_v18 = vpop.f32.mrb[57].mxu0  ;;  %v13440_v19 = vpop.f32.mrb[9].mxu1 }
 0x429   :  { %v21976_v20 = vadd.f32 %v13351_v18, %v24958_v6 }
 0x42a   :  { %v14932_v21 = vmax.f32 %v21975_v17, %v13438_v16 }
 0x42b   :  { %v14933_v22 = vmax.f32 %v21976_v20, %v13440_v19  ;;  %v13355_v23 = vpop.f32.mrb[58].mxu0  ;;  %v13444_v30 = vpop.f32.mrb[10].mxu1 }
 0x42c   :  { %v21977_v0 = vadd.f32 %v13355_v23, %v24978_v11  ;;  %v13357_v61 = vpop.f32.mrb[59].mxu0  ;;  %v13446_v4 = vpop.f32.mrb[11].mxu1 }
 0x42d   :  { %v21978_v27 = vadd.f32 %v13357_v61, %v24987_v12 }
 0x42e   :  { %v14934_v1 = vmax.f32 %v21977_v0, %v13444_v30 }
 0x42f   :  { %v14935_v58 = vmax.f32 %v21978_v27, %v13446_v4  ;;  %v13361_v38 = vpop.f32.mrb[60].mxu0  ;;  %v13450_v59 = vpop.f32.mrb[12].mxu1 }
 0x430   :  { %v21979_v5 = vadd.f32 %v13361_v38, %v25014_v13  ;;  %v13363_v60 = vpop.f32.mrb[61].mxu0  ;;  %v13452_v31 = vpop.f32.mrb[13].mxu1 }
 0x431   :  { %v21980_v6 = vadd.f32 %v13363_v60, %v25023_v14 }
 0x432   :  { %v14936_v33 = vmax.f32 %v21979_v5, %v13450_v59 }
 0x433   :  { %v14937_v34 = vmax.f32 %v21980_v6, %v13452_v31  ;;  %v13367_v35 = vpop.f32.mrb[62].mxu0  ;;  %v13456_v41 = vpop.f32.mrb[14].mxu1 }
 0x434   :  { %v21981_v11 = vadd.f32 %v13367_v35, %v25059_v24  ;;  %v13369_v42 = vpop.f32.mrb[63].mxu0  ;;  %v13458_v50 = vpop.f32.mrb[15].mxu1 }
 0x435   :  { %v21982_v12 = vadd.f32 %v13369_v42, %v25071_v25 }
 0x436   :  { %v14938_v40 = vmax.f32 %v21981_v11, %v13456_v41 }
 0x437   :  { %v14939_v53 = vmax.f32 %v21982_v12, %v13458_v50 }
 0x43f   :  { %v13527_v54 = vpop.f32.mrb[64].mxu0  ;;  %v13616_v51 = vpop.f32.mrb[24].mxu1 }
 0x440   :  { %v21983_v13 = vadd.f32 %v13527_v54, %v25396_v43  ;;  %v13529_v36 = vpop.f32.mrb[65].mxu0  ;;  %v13618_v37 = vpop.f32.mrb[25].mxu1 }
 0x441   :  { %v21984_v14 = vadd.f32 %v13529_v36, %v25409_v44 }
 0x442   :  { %v14940_v39 = vmax.f32 %v14932_v21, %v21983_v13 }
 0x443   :  { %v14941_v55 = vmax.f32 %v14933_v22, %v21984_v14  ;;  %v13533_v56 = vpop.f32.mrb[66].mxu0  ;;  %v13622_v57 = vpop.f32.mrb[26].mxu1 }
 0x444   :  { %v14948_v8 = vmax.f32 %v14940_v39, %v13616_v51  ;;  %v21985_v24 = vadd.f32 %v13533_v56, %v25429_v45  ;;  %v13535_v62 = vpop.f32.mrb[67].mxu0  ;;  %v13624_v63 = vpop.f32.mrb[27].mxu1 }
 0x445   :  { %v14949_v25 = vmax.f32 %v14941_v55, %v13618_v37  ;;  %v21986_v32 = vadd.f32 %v13535_v62, %v25438_v46 }
 0x446   :  { %v14942_v28 = vmax.f32 %v14934_v1, %v21985_v24 }
 0x447   :  { %v14943_v26 = vmax.f32 %v14935_v58, %v21986_v32  ;;  %v13539_v29 = vpop.f32.mrb[68].mxu0  ;;  %v13628_v43 = vpop.f32.mrb[28].mxu1 }
 0x448   :  { %v14950_v2 = vmax.f32 %v14942_v28, %v13622_v57  ;;  %v21987_v7 = vadd.f32 %v13539_v29, %v25465_v47  ;;  %v13541_v44 = vpop.f32.mrb[69].mxu0  ;;  %v13630_v9 = vpop.f32.mrb[29].mxu1 }
 0x449   :  { %v14951_v10 = vmax.f32 %v14943_v26, %v13624_v63  ;;  %v21988_v15 = vadd.f32 %v13541_v44, %v25474_v48 }
 0x44a   :  { %v14944_v16 = vmax.f32 %v14936_v33, %v21987_v7 }
 0x44b   :  { %v14945_v17 = vmax.f32 %v14937_v34, %v21988_v15  ;;  %v13545_v45 = vpop.f32.mrb[70].mxu0  ;;  %v13634_v18 = vpop.f32.mrb[30].mxu1 }
 0x44c   :  { %v14952_v19 = vmax.f32 %v14944_v16, %v13628_v43  ;;  %v21989_v20 = vadd.f32 %v13545_v45, %v25510_v49  ;;  %v13547_v46 = vpop.f32.mrb[71].mxu0  ;;  %v13636_v21 = vpop.f32.mrb[31].mxu1 }
 0x44d   :  { %v14953_v22 = vmax.f32 %v14945_v17, %v13630_v9  ;;  %v21990_v23 = vadd.f32 %v13547_v46, %v25522_v52 }
 0x44e   :  { %v14946_v30 = vmax.f32 %v14938_v40, %v21989_v20 }
 0x44f   :  { %v14947_v0 = vmax.f32 %v14939_v53, %v21990_v23 }
 0x450   :  { %v14954_v47 = vmax.f32 %v14946_v30, %v13634_v18 }
 0x451   :  { %v14955_v61 = vmax.f32 %v14947_v0, %v13636_v21 }
 0x457   :  { %v13705_v4 = vpop.f32.mrb[0].mxu0  ;;  %v13794_v27 = vpop.f32.mrb[32].mxu1 }
 0x458   :  { %v14956_v1 = vmax.f32 %v14948_v8, %v13705_v4  ;;  %v13707_v48 = vpop.f32.mrb[1].mxu0  ;;  %v13796_v58 = vpop.f32.mrb[33].mxu1 }
 0x459   :  { %v14957_v38 = vmax.f32 %v14949_v25, %v13707_v48 }
 0x45a   :  { %v14964_v59 = vmax.f32 %v14956_v1, %v13794_v27 }
 0x45b   :  { %v14965_v5 = vmax.f32 %v14957_v38, %v13796_v58  ;;  %v13711_v60 = vpop.f32.mrb[2].mxu0  ;;  %v13800_v31 = vpop.f32.mrb[34].mxu1 }
 0x45c   :  { %v14958_v49 = vmax.f32 %v14950_v2, %v13711_v60  ;;  %v13713_v6 = vpop.f32.mrb[3].mxu0  ;;  %v13802_v33 = vpop.f32.mrb[35].mxu1 }
 0x45d   :  { %v14959_v34 = vmax.f32 %v14951_v10, %v13713_v6 }
 0x45e   :  { %v14966_v35 = vmax.f32 %v14958_v49, %v13800_v31 }
 0x45f   :  { %v14967_v52 = vmax.f32 %v14959_v34, %v13802_v33  ;;  %v13717_v41 = vpop.f32.mrb[4].mxu0  ;;  %v13806_v11 = vpop.f32.mrb[36].mxu1 }
 0x460   :  { %v14960_v42 = vmax.f32 %v14952_v19, %v13717_v41  ;;  %v13719_v50 = vpop.f32.mrb[5].mxu0  ;;  %v13808_v12 = vpop.f32.mrb[37].mxu1 }
 0x461   :  { %v14961_v40 = vmax.f32 %v14953_v22, %v13719_v50 }
 0x462   :  { %v14968_v53 = vmax.f32 %v14960_v42, %v13806_v11 }
 0x463   :  { %v14969_v54 = vmax.f32 %v14961_v40, %v13808_v12  ;;  %v13723_v51 = vpop.f32.mrb[6].mxu0  ;;  %v13812_v13 = vpop.f32.mrb[38].mxu1 }
 0x464   :  { %v14962_v36 = vmax.f32 %v14954_v47, %v13723_v51  ;;  %v13725_v37 = vpop.f32.mrb[7].mxu0  ;;  %v13814_v14 = vpop.f32.mrb[39].mxu1 }
 0x465   :  { %v14963_v39 = vmax.f32 %v14955_v61, %v13725_v37 }
 0x466   :  { %v14970_v55 = vmax.f32 %v14962_v36, %v13812_v13 }
 0x467   :  { %v14971_v56 = vmax.f32 %v14963_v39, %v13814_v14 }
 0x46f   :  { %v13883_v57 = vpop.f32.mrb[8].mxu0  ;;  %v13972_v8 = vpop.f32.mrb[40].mxu1 }
 0x470   :  { %v14972_v24 = vmax.f32 %v14964_v59, %v13883_v57  ;;  %v13885_v62 = vpop.f32.mrb[9].mxu0  ;;  %v13974_v63 = vpop.f32.mrb[41].mxu1 }
 0x471   :  { %v14973_v25 = vmax.f32 %v14965_v5, %v13885_v62 }
 0x472   :  { %v14980_v32 = vmax.f32 %v14972_v24, %v13972_v8 }
 0x473   :  { %v14981_v28 = vmax.f32 %v14973_v25, %v13974_v63  ;;  %v13889_v26 = vpop.f32.mrb[10].mxu0  ;;  %v13978_v29 = vpop.f32.mrb[42].mxu1 }
 0x474   :  { %v14974_v43 = vmax.f32 %v14966_v35, %v13889_v26  ;;  %v13891_v2 = vpop.f32.mrb[11].mxu0  ;;  %v13980_v7 = vpop.f32.mrb[43].mxu1 }
 0x475   :  { %v14975_v44 = vmax.f32 %v14967_v52, %v13891_v2 }
 0x476   :  { %v14982_v9 = vmax.f32 %v14974_v43, %v13978_v29 }
 0x477   :  { %v14983_v10 = vmax.f32 %v14975_v44, %v13980_v7  ;;  %v13895_v15 = vpop.f32.mrb[12].mxu0  ;;  %v13984_v16 = vpop.f32.mrb[44].mxu1 }
 0x478   :  { %v14976_v17 = vmax.f32 %v14968_v53, %v13895_v15  ;;  %v13897_v45 = vpop.f32.mrb[13].mxu0  ;;  %v13986_v18 = vpop.f32.mrb[45].mxu1 }
 0x479   :  { %v14977_v19 = vmax.f32 %v14969_v54, %v13897_v45 }
 0x47a   :  { %v14984_v20 = vmax.f32 %v14976_v17, %v13984_v16 }
 0x47b   :  { %v14985_v46 = vmax.f32 %v14977_v19, %v13986_v18  ;;  %v13901_v21 = vpop.f32.mrb[14].mxu0  ;;  %v13990_v22 = vpop.f32.mrb[46].mxu1 }
 0x47c   :  { %v14978_v23 = vmax.f32 %v14970_v55, %v13901_v21  ;;  %v13903_v30 = vpop.f32.mrb[15].mxu0  ;;  %v13992_v0 = vpop.f32.mrb[47].mxu1 }
 0x47d   :  { %v14979_v47 = vmax.f32 %v14971_v56, %v13903_v30 }
 0x47e   :  { %v14986_v61 = vmax.f32 %v14978_v23, %v13990_v22 }
 0x47f   :  { %v14987_v4 = vmax.f32 %v14979_v47, %v13992_v0 }
 0x487   :  { %v14061_v27 = vpop.f32.mrb[16].mxu0  ;;  %v14150_v1 = vpop.f32.mrb[48].mxu1 }
 0x488   :  { %v14988_v48 = vmax.f32 %v14980_v32, %v14061_v27  ;;  %v14063_v58 = vpop.f32.mrb[17].mxu0  ;;  %v14152_v38 = vpop.f32.mrb[49].mxu1 }
 0x489   :  { %v14989_v59 = vmax.f32 %v14981_v28, %v14063_v58 }
 0x48a   :  { %v14996_v5 = vmax.f32 %v14988_v48, %v14150_v1 }
 0x48b   :  { %v14997_v60 = vmax.f32 %v14989_v59, %v14152_v38  ;;  %v14067_v31 = vpop.f32.mrb[18].mxu0  ;;  %v14156_v49 = vpop.f32.mrb[50].mxu1 }
 0x48c   :  { %v14990_v6 = vmax.f32 %v14982_v9, %v14067_v31  ;;  %v14069_v33 = vpop.f32.mrb[19].mxu0  ;;  %v14158_v34 = vpop.f32.mrb[51].mxu1 }
 0x48d   :  { %v14991_v35 = vmax.f32 %v14983_v10, %v14069_v33 }
 0x48e   :  { %v14998_v52 = vmax.f32 %v14990_v6, %v14156_v49 }
 0x48f   :  { %v14999_v41 = vmax.f32 %v14991_v35, %v14158_v34  ;;  %v14073_v11 = vpop.f32.mrb[20].mxu0  ;;  %v14162_v42 = vpop.f32.mrb[52].mxu1 }
 0x490   :  { %v14992_v50 = vmax.f32 %v14984_v20, %v14073_v11  ;;  %v14075_v12 = vpop.f32.mrb[21].mxu0  ;;  %v14164_v40 = vpop.f32.mrb[53].mxu1 }
 0x491   :  { %v14993_v53 = vmax.f32 %v14985_v46, %v14075_v12 }
 0x492   :  { %v15000_v54 = vmax.f32 %v14992_v50, %v14162_v42 }
 0x493   :  { %v15001_v51 = vmax.f32 %v14993_v53, %v14164_v40  ;;  %v14079_v13 = vpop.f32.mrb[22].mxu0  ;;  %v14168_v36 = vpop.f32.mrb[54].mxu1 }
 0x494   :  { %v14994_v37 = vmax.f32 %v14986_v61, %v14079_v13  ;;  %v14081_v14 = vpop.f32.mrb[23].mxu0  ;;  %v14170_v39 = vpop.f32.mrb[55].mxu1 }
 0x495   :  { %v14995_v55 = vmax.f32 %v14987_v4, %v14081_v14 }
 0x496   :  { %v15002_v56 = vmax.f32 %v14994_v37, %v14168_v36 }
 0x497   :  { %v15003_v57 = vmax.f32 %v14995_v55, %v14170_v39 }
 0x49f   :  { %v14239_v8 = vpop.f32.mrb[24].mxu0  ;;  %v14328_v24 = vpop.f32.mrb[56].mxu1 }
 0x4a0   :  { %v15004_v62 = vmax.f32 %v14996_v5, %v14239_v8  ;;  %v14241_v63 = vpop.f32.mrb[25].mxu0  ;;  %v14330_v25 = vpop.f32.mrb[57].mxu1 }
 0x4a1   :  { %v15005_v32 = vmax.f32 %v14997_v60, %v14241_v63 }
 0x4a2   :  { %v15012_v28 = vmax.f32 %v15004_v62, %v14328_v24 }
 0x4a3   :  { %v15013_v26 = vmax.f32 %v15005_v32, %v14330_v25  ;;  %v14245_v29 = vpop.f32.mrb[26].mxu0  ;;  %v14334_v43 = vpop.f32.mrb[58].mxu1 }
 0x4a4   :  { %v15006_v2 = vmax.f32 %v14998_v52, %v14245_v29  ;;  %v14247_v7 = vpop.f32.mrb[27].mxu0  ;;  %v14336_v44 = vpop.f32.mrb[59].mxu1 }
 0x4a5   :  { %v15007_v9 = vmax.f32 %v14999_v41, %v14247_v7 }
 0x4a6   :  { %v15014_v10 = vmax.f32 %v15006_v2, %v14334_v43 }
 0x4a7   :  { %v15015_v15 = vmax.f32 %v15007_v9, %v14336_v44  ;;  %v14251_v16 = vpop.f32.mrb[28].mxu0  ;;  %v14340_v17 = vpop.f32.mrb[60].mxu1 }
 0x4a8   :  { %v15008_v45 = vmax.f32 %v15000_v54, %v14251_v16  ;;  %v14253_v18 = vpop.f32.mrb[29].mxu0  ;;  %v14342_v19 = vpop.f32.mrb[61].mxu1 }
 0x4a9   :  { %v15009_v20 = vmax.f32 %v15001_v51, %v14253_v18 }
 0x4aa   :  { %v15016_v46 = vmax.f32 %v15008_v45, %v14340_v17 }
 0x4ab   :  { %v15017_v21 = vmax.f32 %v15009_v20, %v14342_v19  ;;  %v14257_v22 = vpop.f32.mrb[30].mxu0  ;;  %v14346_v23 = vpop.f32.mrb[62].mxu1 }
 0x4ac   :  { %v15010_v30 = vmax.f32 %v15002_v56, %v14257_v22  ;;  %v14259_v0 = vpop.f32.mrb[31].mxu0  ;;  %v14348_v47 = vpop.f32.mrb[63].mxu1 }
 0x4ad   :  { %v15011_v61 = vmax.f32 %v15003_v57, %v14259_v0 }
 0x4ae   :  { %v15018_v4 = vmax.f32 %v15010_v30, %v14346_v23 }
 0x4af   :  { %v15019_v27 = vmax.f32 %v15011_v61, %v14348_v47 }
 0x4b7   :  { %v14417_v1 = vpop.f32.mrb[32].mxu0  ;;  %v14506_v48 = vpop.f32.mrb[64].mxu1 }
 0x4b8   :  { %v15020_v58 = vmax.f32 %v15012_v28, %v14417_v1  ;;  %v14419_v38 = vpop.f32.mrb[33].mxu0  ;;  %v14508_v59 = vpop.f32.mrb[65].mxu1 }
 0x4b9   :  { %v15021_v5 = vmax.f32 %v15013_v26, %v14419_v38 }
 0x4ba   :  { %v15028_v60 = vmax.f32 %v15020_v58, %v14506_v48  ;;  %v15067_v48 = vpop.permute.xlu0 %15066 }
 0x4bb   :  { %v15029_v31 = vmax.f32 %v15021_v5, %v14508_v59  ;;  %v14423_v49 = vpop.f32.mrb[34].mxu0  ;;  %v14512_v6 = vpop.f32.mrb[66].mxu1 }
 0x4bc   :  { %v15022_v33 = vmax.f32 %v15014_v10, %v14423_v49  ;;  %v14425_v34 = vpop.f32.mrb[35].mxu0  ;;  %v14514_v35 = vpop.f32.mrb[67].mxu1 }
 0x4bd   :  { %v15023_v52 = vmax.f32 %v15015_v15, %v14425_v34 }
 0x4be   :  { %v15030_v41 = vmax.f32 %v15022_v33, %v14512_v6  ;;  %v15072_v6 = vpop.permute.xlu0 %15071 }
 0x4bf   :  { %v15031_v11 = vmax.f32 %v15023_v52, %v14514_v35  ;;  %v14429_v42 = vpop.f32.mrb[36].mxu0  ;;  %v14518_v50 = vpop.f32.mrb[68].mxu1 }
 0x4c0   :  { %v15024_v12 = vmax.f32 %v15016_v46, %v14429_v42  ;;  %v14431_v40 = vpop.f32.mrb[37].mxu0  ;;  %v14520_v53 = vpop.f32.mrb[69].mxu1 }
 0x4c1   :  { %v15025_v54 = vmax.f32 %v15017_v21, %v14431_v40 }
 0x4c2   :  { %v15032_v51 = vmax.f32 %v15024_v12, %v14518_v50 }
 0x4c3   :  { %v15033_v13 = vmax.f32 %v15025_v54, %v14520_v53  ;;  %v14435_v36 = vpop.f32.mrb[38].mxu0  ;;  %v14524_v37 = vpop.f32.mrb[70].mxu1 }
 0x4c4   :  { %v15026_v14 = vmax.f32 %v15018_v4, %v14435_v36  ;;  %v14437_v39 = vpop.f32.mrb[39].mxu0  ;;  %v14526_v55 = vpop.f32.mrb[71].mxu1 }
 0x4c5   :  { %v15027_v56 = vmax.f32 %v15019_v27, %v14437_v39 }
 0x4c6   :  { %v15034_v57 = vmax.f32 %v15026_v14, %v14524_v37 }
 0x4c7   :  { %v15035_v8 = vmax.f32 %v15027_v56, %v14526_v55 }
 0x4cf   :  { %v14595_v24 = vpop.f32.mrb[40].mxu0  ;;  %v14684_v62 = vpop.f32.mrb[72].mxu1 }
 0x4d0   :  { %v15036_v63 = vmax.f32 %v15028_v60, %v14595_v24  ;;  %v14597_v25 = vpop.f32.mrb[41].mxu0  ;;  %v14686_v32 = vpop.f32.mrb[73].mxu1 }
 0x4d1   :  { %v15037_v28 = vmax.f32 %v15029_v31, %v14597_v25 }
 0x4d2   :  { %v15044_v26 = vmax.f32 %v15036_v63, %v14684_v62 }
 0x4d3   :  { %v15045_v29 = vmax.f32 %v15037_v28, %v14686_v32  ;;  %v14601_v43 = vpop.f32.mrb[42].mxu0  ;;  %v14690_v2 = vpop.f32.mrb[74].mxu1 }
 0x4d4   :  { %v15038_v7 = vmax.f32 %v15030_v41, %v14601_v43  ;;  %v14603_v44 = vpop.f32.mrb[43].mxu0  ;;  %v14692_v9 = vpop.f32.mrb[75].mxu1 }
 0x4d5   :  { %v15039_v10 = vmax.f32 %v15031_v11, %v14603_v44  ;;  %v15077_v41 = vpop.permute.xlu1 %15076  ;;  %v15102_v44 = vld [vmem:[%s31977_s3 + $0x10] sm:$0xff] }
 0x4d6   :  { %v15046_v15 = vmax.f32 %v15038_v7, %v14690_v2  ;;  %v15100_v2 = vld [vmem:[%s31977_s3] sm:$0xff]  ;;  %v15101_v7 = vld [vmem:[%s31977_s3 + $0x8] sm:$0xff] }
 0x4d7   :  { %v15047_v16 = vmax.f32 %v15039_v10, %v14692_v9  ;;  %v14607_v17 = vpop.f32.mrb[44].mxu0  ;;  %v14696_v45 = vpop.f32.mrb[76].mxu1  ;;  %v15103_v9 = vld [vmem:[%s31977_s3 + $0x18] sm:$0xff]  ;;  %v15238_v10 = vld [vmem:[%s31979_s5] sm:$0xff] }
 0x4d8   :  { %v15040_v18 = vmax.f32 %v15032_v51, %v14607_v17  ;;  %v14609_v19 = vpop.f32.mrb[45].mxu0  ;;  %v14698_v20 = vpop.f32.mrb[77].mxu1  ;;  %v15241_v17 = vld [vmem:[%s31979_s5 + $0x18] sm:$0xff] }
 0x4d9   :  { %v15041_v46 = vmax.f32 %v15033_v13, %v14609_v19  ;;  %v15082_v56 = vpop.permute.xlu1 %15081 }
 0x4da   :  { %v15048_v21 = vmax.f32 %v15040_v18, %v14696_v45 }
 0x4db   :  { %v15049_v22 = vmax.f32 %v15041_v46, %v14698_v20  ;;  %v14613_v23 = vpop.f32.mrb[46].mxu0  ;;  %v14702_v30 = vpop.f32.mrb[78].mxu1 }
 0x4dc   :  { %v15042_v0 = vmax.f32 %v15034_v57, %v14613_v23  ;;  %v14615_v47 = vpop.f32.mrb[47].mxu0  ;;  %v14704_v61 = vpop.f32.mrb[79].mxu1 }
 0x4dd   :  { %v15043_v4 = vmax.f32 %v15035_v8, %v14615_v47 }
 0x4de   :  { %v15050_v27 = vmax.f32 %v15042_v0, %v14702_v30  ;;  %v15249_v30 = vpop.permute.xlu0 %15248 }
 0x4df   :  { %v15051_v1 = vmax.f32 %v15043_v4, %v14704_v61 }
 0x4e7   :  { %v14773_v58 = vpop.f32.mrb[48].mxu0 }
 0x4e8   :  { %v15052_v38 = vmax.f32 %v15044_v26, %v14773_v58  ;;  %v14775_v59 = vpop.f32.mrb[49].mxu0 }
 0x4e9   :  { %v15053_v5 = vmax.f32 %v15045_v29, %v14775_v59 }
 0x4ea   :  { %v15084_v35 = vadd.f32 %v15067_v48, %v15052_v38 }
 0x4eb   :  { %v14779_v60 = vpop.f32.mrb[50].mxu0  ;;  %v15085_v33 = vadd.f32 %v15067_v48, %v15053_v5 }
 0x4ec   :  { %v15054_v31 = vmax.f32 %v15046_v15, %v14779_v60  ;;  %v14781_v49 = vpop.f32.mrb[51].mxu0  ;;  %v31878_v13 = vmax.f32 %v15084_v35, 0.0  ;;  %v15239_v15 = vld [vmem:[%s31979_s5 + $0x8] sm:$0xff]  ;;  %v15259_v60 = vpop.permute.xlu0 %15258 }
 0x4ed   :  { %v15055_v34 = vmax.f32 %v15047_v16, %v14781_v49  ;;  %v31874_v53 = vmax.f32 %v15085_v33, 0.0  ;;  %v15240_v16 = vld [vmem:[%s31979_s5 + $0x10] sm:$0xff]  ;;  %s22746_s5 = smov [#allocation2]  }
 0x4ee   :  { %v15086_v52 = vadd.f32 %v15072_v6, %v15054_v31  ;;  %s15452_s24 = sshll.u32 %s22746_s5, 4  ;;  %s15453_s24 = int_to_ptr.vmem [resolvable:$true] %s15452_s24 }
 0x4ef   :  { %v15087_v11 = vadd.f32 %v15072_v6, %v15055_v34  ;;  %v14785_v42 = vpop.f32.mrb[52].mxu0  ;;  %s22719_s0 = scalar_lea.vmem %s15453_s24, 1024  ;;  %p22724_p1 = scmp.lt.s32.totalorder %s15453_s24, %s15453_s24 }
 0x4f0   :  { %v31872_v50 = vmax.f32 %v15086_v52, 0.0  ;;  %v15056_v12 = vmax.f32 %v15048_v21, %v14785_v42  ;;  %v14787_v40 = vpop.f32.mrb[53].mxu0  ;;  %p22720_p0 = scmp.ne.s32.totalorder %s15453_s24, %s22719_s0  ;;  %p22725_p2 = scmp.lt.s32.totalorder %s22719_s0, %s22719_s0 }
 0x4f1   :  { %v31876_v54 = vmax.f32 %v15087_v11, 0.0  ;;  %v15057_v51 = vmax.f32 %v15049_v22, %v14787_v40 }
 0x4f2   :  { %v21957_v55 = vpack.c.bf16 %v31872_v50, %v31878_v13  ;;  %v15088_v24 = vadd.f32 %v15077_v41, %v15056_v12  ;;  %p22726_p3 = por %p22725_p2, %p22724_p1 }
 0x4f3   :  { %v14791_v36 = vpop.f32.mrb[54].mxu0  ;;  %v21955_v37 = vpack.c.bf16 %v31876_v54, %v31874_v53  ;;  %v15089_v57 = vadd.f32 %v15077_v41, %v15057_v51 }
 0x4f4   :  { %v15058_v14 = vmax.f32 %v15050_v27, %v14791_v36  ;;  %v14793_v39 = vpop.f32.mrb[55].mxu0  ;;  %v31890_v26 = vmax.f32 %v15088_v24, 0.0  ;;  %v15254_v27 = vpop.permute.xlu1 %15253  ;;  %p22727_p4 = pnand %p22726_p3, %p22720_p0 }
 0x4f5   :  { %v15059_v8 = vmax.f32 %v15051_v1, %v14793_v39  ;;  %21956 = vmatprep.subr.bf16.mxu0 %v21955_v37  ;;  %21971 = vmatprep.subr.bf16.mxu1 %v21955_v37  ;;  %v31886_v32 = vmax.f32 %v15089_v57, 0.0 }
 0x4f6   :  { %v15090_v62 = vadd.f32 %v15082_v56, %v15058_v14  ;;  %21958 = vmatpush1.bf16.msra.mxu0 %v21957_v55  ;;  %21973 = vmatpush1.bf16.msra.mxu1 %v21957_v55 }
 0x4f7   :  { %v15091_v63 = vadd.f32 %v15082_v56, %v15059_v8  ;;  %v15111_v56 = vpop.permute.xlu0 %15110 }
 0x4f8   :  { %v31884_v25 = vmax.f32 %v15090_v62, 0.0  ;;  %v15264_v52 = vpop.permute.xlu1 %15263 }
 0x4f9   :  { %v31888_v28 = vmax.f32 %v15091_v63, 0.0 }
 0x4fa   :  { %v21961_v43 = vpack.c.bf16 %v31884_v25, %v31890_v26 }
 0x4fb   :  { %v21959_v29 = vpack.c.bf16 %v31888_v28, %v31886_v32 }
 0x4fd   :  { %21960 = vmatprep.subr.bf16.mxu0 %v21959_v29  ;;  %21972 = vmatprep.subr.bf16.mxu1 %v21959_v29 }
 0x4fe   :  { %21962 = vmatpush1.bf16.msra.mxu0 %v21961_v43  ;;  %21974 = vmatpush1.bf16.msra.mxu1 %v21961_v43 }
 0x4ff   :  { %21964 = vmatprep.subr.bf16.mxu1 %v21955_v37 }
 0x501   :  { %19899 = vmatmul.mubr.msk.f32.vlgmr.msra.gmra.mrb[72].mxu0 %vm15128_vm12, %v15100_v2  ;;  %19900 = vmatmul.mubr.msk.f32.vlgmr.msra.gmra.mrb[80].mxu1 %vm15128_vm12, %v15101_v7 }
 0x502   :  { %21966 = vmatpush1.bf16.msra.mxu1 %v21957_v55  ;;  %15217 = vmatprep.mubr.f32.mxu1 %v22743_v3 }
 0x503   :  { %21968 = vmatprep.subr.bf16.mxu1 %v21959_v29  ;;  %v15116_v29 = vpop.permute.xlu1 %15115 }
 0x505   :  { %19901 = vmatmul.mubr.msk.f32.gmra.mrb[82].mxu1 %vm15128_vm12, %v15102_v44 }
 0x506   :  { %21970 = vmatpush1.bf16.msra.mxu1 %v21961_v43  ;;  %15223 = vmatprep.mubr.f32.mxu1 %v22743_v3 }
 0x509   :  { %19902 = vmatmul.mubr.msk.f32.gmra.mrb[84].mxu1 %vm15128_vm12, %v15103_v9 }
 0x50a   :  { %15342 = vmatprep.mubr.f32.mxu1 %v22743_v3 }
 0x50d   :  { %19903 = vmatmul.mubr.msk.f32.vlgmr.msra.gmra.mrb[86].mxu1 %vm15128_vm12, %v15238_v10 }
 0x50e   :  { %15348 = vmatprep.mubr.f32.mxu1 %v22743_v3 }
 0x511   :  { %19904 = vmatmul.mubr.msk.f32.gmra.mrb[88].mxu1 %vm15128_vm12, %v15239_v15 }
 0x512   :  { %15354 = vmatprep.mubr.f32.mxu1 %v22743_v3 }
 0x515   :  { %19905 = vmatmul.mubr.msk.f32.gmra.mrb[90].mxu1 %vm15128_vm12, %v15240_v16 }
 0x516   :  { %15360 = vmatprep.mubr.f32.mxu1 %v22743_v3 }
 0x519   :  { %19906 = vmatmul.mubr.msk.f32.gmra.mrb[92].mxu1 %vm15128_vm12, %v15241_v17 }
 0x5d4   :  { %v15207_v45 = vpop.f32.mrb[72].mxu0  ;;  %v15213_v18 = vpop.f32.mrb[80].mxu1 }
 0x5d5   :  { %v15209_v19 = vpop.f32.mrb[73].mxu0  ;;  %v15215_v20 = vpop.f32.mrb[81].mxu1  ;;  %v15208_v8 = vadd.f32 %v15207_v45, %v15111_v56  ;;  %v15214_v2 = vadd.f32 %v15213_v18, %v15116_v29 }
 0x5d6   :  { %v15210_v62 = vadd.f32 %v15209_v19, %v15111_v56  ;;  %v15216_v15 = vadd.f32 %v15215_v20, %v15116_v29 }
 0x5d7   :  { %v15230_v44 = vmax.f32 %v15208_v8, 0.0 }
 0x5d8   :  { %v31934_v46 = vpop.f32.mrb[82].mxu1  ;;  %v15231_v10 = vmax.f32 %v15210_v62, 0.0 }
 0x5d9   :  { %v31936_v21 = vpop.f32.mrb[83].mxu1  ;;  %v15415_v19 = vsub.f32 %v15230_v44, %v31878_v13 }
 0x5da   :  { %v15416_v18 = vsub.f32 %v15231_v10, %v31874_v53 }
 0x5dc   :  { %v31938_v22 = vpop.f32.mrb[84].mxu1 }
 0x5dd   :  { %v31940_v23 = vpop.f32.mrb[85].mxu1 }
 0x5e0   :  { %v15344_v3 = vpop.f32.mrb[86].mxu1 }
 0x5e1   :  { %v15345_v0 = vadd.f32 %v15344_v3, %v15249_v30  ;;  %v15346_v47 = vpop.f32.mrb[87].mxu1  ;;  %v15232_v3 = vmax.f32 %v15214_v2, 0.0 }
 0x5e2   :  { %v15347_v61 = vadd.f32 %v15346_v47, %v15249_v30  ;;  %v15121_v30 = vpop.permute.xlu0 %15120 }
 0x5e3   :  { %v19907_v4 = vmul.f32 -1.442695, %v15345_v0  ;;  %v15220_v0 = vadd.f32 %v31934_v46, %v15121_v30 }
 0x5e4   :  { %v19908_v1 = vmul.f32 -1.442695, %v15347_v61  ;;  %v15350_v48 = vpop.f32.mrb[88].mxu1  ;;  %v15233_v61 = vmax.f32 %v15216_v15, 0.0 }
 0x5e5   :  { %22527 = vpow2.f32 %v19907_v4  ;;  %v15351_v58 = vadd.f32 %v15350_v48, %v15254_v27  ;;  %v15352_v38 = vpop.f32.mrb[89].mxu1  ;;  %v15222_v4 = vadd.f32 %v31936_v21, %v15121_v30 }
 0x5e6   :  { %22529 = vpow2.f32 %v19908_v1  ;;  %v15353_v59 = vadd.f32 %v15352_v38, %v15254_v27  ;;  %v15417_v38 = vsub.f32 %v15232_v3, %v31872_v50 }
 0x5e7   :  { %v19909_v5 = vmul.f32 -1.442695, %v15351_v58  ;;  %v15126_v58 = vpop.permute.xlu1 %15125 }
 0x5e8   :  { %v19910_v31 = vmul.f32 -1.442695, %v15353_v59  ;;  %v15356_v49 = vpop.f32.mrb[90].mxu1 }
 0x5e9   :  { %22531 = vpow2.f32 %v19909_v5  ;;  %v15357_v6 = vadd.f32 %v15356_v49, %v15259_v60  ;;  %v15358_v33 = vpop.f32.mrb[91].mxu1  ;;  %v15234_v5 = vmax.f32 %v15220_v0, 0.0 }
 0x5ea   :  { %22533 = vpow2.f32 %v19910_v31  ;;  %v15359_v34 = vadd.f32 %v15358_v33, %v15259_v60  ;;  %v15226_v60 = vadd.f32 %v31938_v22, %v15126_v58  ;;  %v15235_v33 = vmax.f32 %v15222_v4, 0.0 }
 0x5eb   :  { %v19911_v35 = vmul.f32 -1.442695, %v15357_v6  ;;  %v15418_v6 = vsub.f32 %v15233_v61, %v31876_v54 }
 0x5ec   :  { %v19912_v41 = vmul.f32 -1.442695, %v15359_v34  ;;  %v15362_v11 = vpop.f32.mrb[92].mxu1  ;;  %v15236_v22 = vmax.f32 %v15226_v60, 0.0 }
 0x5ed   :  { %22535 = vpow2.f32 %v19911_v35  ;;  %v15363_v42 = vadd.f32 %v15362_v11, %v15264_v52  ;;  %v15364_v12 = vpop.f32.mrb[93].mxu1  ;;  %v15419_v11 = vsub.f32 %v15234_v5, %v31890_v26 }
 0x5ee   :  { %22537 = vpow2.f32 %v19912_v41  ;;  %v15365_v40 = vadd.f32 %v15364_v12, %v15264_v52  ;;  %v15228_v52 = vadd.f32 %v31940_v23, %v15126_v58  ;;  %v15420_v12 = vsub.f32 %v15235_v33, %v31886_v32 }
 0x5ef   :  { %v22528_v51 = vpop.eup %22527  ;;  %v19913_v36 = vmul.f32 -1.442695, %v15363_v42  ;;  %v15421_v23 = vsub.f32 %v15236_v22, %v31884_v25 }
 0x5f0   :  { %v22530_v37 = vpop.eup %22529  ;;  %v15391_v14 = vadd.f32 1.0, %v22528_v51  ;;  %v19914_v39 = vmul.f32 -1.442695, %v15365_v40 }
 0x5f1   :  { %v15392_v55 = vadd.f32 1.0, %v22530_v37  ;;  %22539 = vpow2.f32 %v19913_v36  ;;  %v15237_v36 = vmax.f32 %v15228_v52, 0.0 }
 0x5f2   :  { %22541 = vrcp.f32 %v15391_v14 }
 0x5f3   :  { %v22532_v57 = vpop.eup %22531  ;;  %22543 = vrcp.f32 %v15392_v55  ;;  %v15422_v56 = vsub.f32 %v15237_v36, %v31888_v28 }
 0x5f4   :  { %v22534_v24 = vpop.eup %22533  ;;  %v15393_v63 = vadd.f32 1.0, %v22532_v57  ;;  %22545 = vpow2.f32 %v19914_v39 }
 0x5f5   :  { %v15394_v43 = vadd.f32 1.0, %v22534_v24 }
 0x5f6   :  { %22547 = vrcp.f32 %v15393_v63 }
 0x5f7   :  { %v22536_v7 = vpop.eup %22535  ;;  %22549 = vrcp.f32 %v15394_v43 }
 0x5f8   :  { %v22538_v9 = vpop.eup %22537  ;;  %v15395_v16 = vadd.f32 1.0, %v22536_v7 }
 0x5f9   :  { %v15396_v17 = vadd.f32 1.0, %v22538_v9 }
 0x5fa   :  { %22551 = vrcp.f32 %v15395_v16 }
 0x5fb   :  { %v22540_v45 = vpop.eup %22539  ;;  %22553 = vrcp.f32 %v15396_v17 }
 0x5fc   :  { %v22542_v47 = vpop.eup %22541  ;;  %v15397_v27 = vadd.f32 1.0, %v22540_v45 }
 0x5fd   :  { %v22544_v1 = vpop.eup %22543  ;;  %v15423_v20 = vmul.f32 %v22542_v47, %v15415_v19 }
 0x5fe   :  { %v22546_v48 = vpop.eup %22545  ;;  %v15424_v59 = vmul.f32 %v22544_v1, %v15416_v18  ;;  %22555 = vrcp.f32 %v15397_v27 }
 0x5ff   :  { %v15431_v46 = vadd.f32 %v15423_v20, %v31878_v13  ;;  %v15398_v31 = vadd.f32 1.0, %v22546_v48 }
 0x600   :  { %v22548_v49 = vpop.eup %22547  ;;  %v15432_v21 = vadd.f32 %v15424_v59, %v31874_v53 }
 0x601   :  { %v22550_v34 = vpop.eup %22549  ;;  %15439 = vst [vmem:[#allocation2] sm:$0xff] %v15431_v46  ;;  %v15425_v35 = vmul.f32 %v22548_v49, %v15417_v38  ;;  %22557 = vrcp.f32 %v15398_v31 }
 0x602   :  { %15440 = vst [vmem:[#allocation2 + $0x8] sm:$0xff] %v15432_v21  ;;  %v15426_v41 = vmul.f32 %v22550_v34, %v15418_v6 }
 0x603   :  { %v15433_v13 = vadd.f32 %v15425_v35, %v31872_v50 }
 0x604   :  { %v22552_v42 = vpop.eup %22551  ;;  %v15434_v40 = vadd.f32 %v15426_v41, %v31876_v54 }
 0x605   :  { %v22554_v51 = vpop.eup %22553  ;;  %15441 = vst [vmem:[#allocation2 + $0x10] sm:$0xff] %v15433_v13  ;;  %v15427_v53 = vmul.f32 %v22552_v42, %v15419_v11 }
 0x606   :  { %15442 = vst [vmem:[#allocation2 + $0x18] sm:$0xff] %v15434_v40  ;;  %v15428_v37 = vmul.f32 %v22554_v51, %v15420_v12 }
 0x607   :  { %v15435_v14 = vadd.f32 %v15427_v53, %v31890_v26 }
 0x608   :  { %v22556_v39 = vpop.eup %22555  ;;  %v15436_v55 = vadd.f32 %v15428_v37, %v31886_v32 }
 0x609   :  { %15443 = vst [vmem:[#allocation2 + $0x20] sm:$0xff] %v15435_v14  ;;  %v15429_v50 = vmul.f32 %v22556_v39, %v15421_v23 }
 0x60a   :  { %15444 = vst [vmem:[#allocation2 + $0x28] sm:$0xff] %v15436_v55 }
 0x60b   :  { %v22558_v54 = vpop.eup %22557  ;;  %v15437_v57 = vadd.f32 %v15429_v50, %v31884_v25 }
 0x60c   :  { %v15430_v8 = vmul.f32 %v22558_v54, %v15422_v56 }
 0x60d   :  { %15445 = vst [vmem:[#allocation2 + $0x30] sm:$0xff] %v15437_v57 }
 0x60e   :  { %v15438_v24 = vadd.f32 %v15430_v8, %v31888_v28 }
 0x610   :  { %15446 = vst [vmem:[#allocation2 + $0x38] sm:$0xff] %v15438_v24 }
 0x611   :  { %22730 = shalt.err (!%p22727_p4)
}
 0x612   :  { %s22731_s26 = scalar_lea.hbm %s31981_s7, 1024 }
 0x613   :  { %p22732_p5 = scmp.ne.s32.totalorder %s31981_s7, %s22731_s26  ;;  %p22735_p6 = scmp.lt.u32.totalorder %s22731_s26, %s31981_s7 }
 0x615   :  { %p22737_p7 = pnand %p22735_p6, %p22732_p5 }
 0x617   :  { %22740 = shalt.err (!%p22737_p7)
}
 0x618   :  { %s22747_s30 = smov 256   ;;  %s22748_s8 = smov 16  }
 0x619   :  { %15458 = dma.vmem_to_hbm [thread:$0]  %s15453_s24, 1024, %s31981_s7, [#allocation3], %s22747_s30, %s22747_s30, %s22748_s8  }
 0x61a   :  { %22741 = dma.done.wait [#allocation3], 1024  }
 0x61b   :  { %22742 = vsyncadd [#allocation3], 4294966272 }
 0x61c   :  { %15462 = vsyncpa [#allocation3], 1 }

</bundles_post_ra>
